<compile_context>
chip_gen: v5e
topology: v5e:2x2
jax: 0.10.0
libtpu: 0.0.40
codegen_flags: <defaults>
</compile_context>

<pallas_src>
import math
from functools import partial

import jax
import jax.numpy as jnp
from jax.experimental import pallas as pl
from jax.experimental.pallas import tpu as pltpu

MSG_TOKEN_LEN = 32

# Matmul input dtype for the MXU.  float32 preserves the PyTorch numerics
# exactly; switch to jnp.bfloat16 on v6e/v7x for higher MXU throughput
# (accumulation stays f32 via preferred_element_type; softmax/LayerNorm
# statistics are always computed in f32).
MXU_DTYPE = jnp.float32


# ----------------------------- in-kernel helpers ----------------------------

def _mm(a, b):
    return jnp.dot(a.astype(MXU_DTYPE), b.astype(MXU_DTYPE),
                   preferred_element_type=jnp.float32)


def _layernorm(x, g, b, eps=1e-5):
    mu = jnp.mean(x, axis=-1, keepdims=True)
    var = jnp.mean(jnp.square(x - mu), axis=-1, keepdims=True)
    return (x - mu) * jax.lax.rsqrt(var + eps) * g + b


def _mha_block(q, k, v, wo, kbias, nhead):
    """Multi-head attention + output projection (without its bias).

    q: (L, E) with the 1/sqrt(Dh) scale already folded into the projection,
    k, v: (S, E), wo: (E, E), kbias: (1, S) additive bias or None.
    concat_h(softmax(q_h k_h^T) v_h) @ Wo is computed as
    sum_h (softmax(q_h k_h^T) v_h) @ Wo[h*Dh:(h+1)*Dh, :].
    """
    E = q.shape[-1]
    Dh = E // nhead
    out = None
    for h in range(nhead):
        sl = slice(h * Dh, (h + 1) * Dh)
        s = jax.lax.dot_general(q[:, sl].astype(MXU_DTYPE),
                                k[:, sl].astype(MXU_DTYPE),
                                (((1,), (1,)), ((), ())),
                                preferred_element_type=jnp.float32)   # (L, S)
        if kbias is not None:
            s = s + kbias
        s = s - jnp.max(s, axis=-1, keepdims=True)
        p = jnp.exp(s)
        p = p * pl.reciprocal(jnp.sum(p, axis=-1, keepdims=True), approx=True)
        oh = _mm(p, v[:, sl])                    # (L, Dh)
        contrib = _mm(oh, wo[sl, :])             # (L, E)
        out = contrib if out is None else out + contrib
    return out


# ------------------------------ fused layer kernels --------------------------

def _encoder_layer_kernel(x_ref, pos_ref, kbias_ref,
                          wqkv_ref, bqkv_ref, wo_ref, bo_ref,
                          ln1g_ref, ln1b_ref,
                          w1_ref, b1_ref, w2_ref, b2_ref,
                          ln2g_ref, ln2b_ref,
                          o_ref, *, nhead):
    E = x_ref.shape[-1]
    x = x_ref[0].astype(jnp.float32)             # (L, E)
    pos = pos_ref[0].astype(jnp.float32)
    kbias = kbias_ref[0]                         # (1, L) additive (0 / -1e9)

    wqkv = wqkv_ref[...]                         # (E, 3E), q columns pre-scaled
    bqkv = bqkv_ref[...]                         # (1, 3E)

    a = x + pos                                  # q = k = src + pos, v = src
    qk = _mm(a, wqkv[:, :2 * E]) + bqkv[:, :2 * E]
    v = _mm(x, wqkv[:, 2 * E:]) + bqkv[:, 2 * E:]

    attn = _mha_block(qk[:, :E], qk[:, E:], v, wo_ref[...], kbias, nhead) + bo_ref[...]
    y = _layernorm(x + attn, ln1g_ref[...], ln1b_ref[...])

    hid = jnp.maximum(_mm(y, w1_ref[...]) + b1_ref[...], 0.0)
    ffn = _mm(hid, w2_ref[...]) + b2_ref[...]
    out = _layernorm(y + ffn, ln2g_ref[...], ln2b_ref[...])
    o_ref[0] = out.astype(o_ref.dtype)


def _decoder_layer_kernel(tgt_ref, qpos_ref, mem_ref, mpos_ref, mkbias_ref,
                          wqkv_sa_ref, bqkv_sa_ref, wo_sa_ref, bo_sa_ref,
                          ln1g_ref, ln1b_ref,
                          wqkv_ca_ref, bqkv_ca_ref, wo_ca_ref, bo_ca_ref,
                          ln2g_ref, ln2b_ref,
                          w1_ref, b1_ref, w2_ref, b2_ref,
                          ln3g_ref, ln3b_ref,
                          o_ref, *, nhead):
    E = tgt_ref.shape[-1]
    tgt = tgt_ref[0].astype(jnp.float32)         # (Lq, E)
    qpos = qpos_ref[0].astype(jnp.float32)
    mem = mem_ref[0].astype(jnp.float32)         # (S, E)
    mpos = mpos_ref[0].astype(jnp.float32)
    mkbias = mkbias_ref[0]                       # (1, S)

    # ---- self-attention: q = k = tgt + query_pos, v = tgt, no key mask ----
    w = wqkv_sa_ref[...]
    b = bqkv_sa_ref[...]
    a = tgt + qpos
    qk = _mm(a, w[:, :2 * E]) + b[:, :2 * E]
    v = _mm(tgt, w[:, 2 * E:]) + b[:, 2 * E:]
    attn = _mha_block(qk[:, :E], qk[:, E:], v, wo_sa_ref[...], None, nhead) + bo_sa_ref[...]
    t1 = _layernorm(tgt + attn, ln1g_ref[...], ln1b_ref[...])

    # ---- cross-attention: q = t1 + query_pos, k = memory + pos, v = memory ----
    w = wqkv_ca_ref[...]
    b = bqkv_ca_ref[...]
    q = _mm(t1 + qpos, w[:, :E]) + b[:, :E]
    k = _mm(mem + mpos, w[:, E:2 * E]) + b[:, E:2 * E]
    v = _mm(mem, w[:, 2 * E:]) + b[:, 2 * E:]
    attn = _mha_block(q, k, v, wo_ca_ref[...], mkbias, nhead) + bo_ca_ref[...]
    t2 = _layernorm(t1 + attn, ln2g_ref[...], ln2b_ref[...])

    # ---- feed-forward ----
    hid = jnp.maximum(_mm(t2, w1_ref[...]) + b1_ref[...], 0.0)
    ffn = _mm(hid, w2_ref[...]) + b2_ref[...]
    out = _layernorm(t2 + ffn, ln3g_ref[...], ln3b_ref[...])
    o_ref[0] = out.astype(o_ref.dtype)


def _layernorm_kernel(x_ref, g_ref, b_ref, o_ref):
    o_ref[...] = _layernorm(x_ref[...].astype(jnp.float32),
                            g_ref[...], b_ref[...]).astype(o_ref.dtype)


# --------------------------------- wrappers ----------------------------------

def _batch_spec(shape):
    """(N, A, B) array -> one batch element per grid step."""
    return pl.BlockSpec((1,) + tuple(shape[1:]), lambda n: (n, 0, 0))


def _whole_spec(shape):
    nd = len(shape)
    return pl.BlockSpec(tuple(shape), lambda n, nd=nd: (0,) * nd)


_ENC_WEIGHT_NAMES = ("wqkv", "bqkv", "wo", "bo", "ln1_g", "ln1_b",
                     "w1", "b1", "w2", "b2", "ln2_g", "ln2_b")

_DEC_WEIGHT_NAMES = ("wqkv_sa", "bqkv_sa", "wo_sa", "bo_sa", "ln1_g", "ln1_b",
                     "wqkv_ca", "bqkv_ca", "wo_ca", "bo_ca", "ln2_g", "ln2_b",
                     "w1", "b1", "w2", "b2", "ln3_g", "ln3_b")


def encoder_layer_fwd(x, pos, kbias, lp, nhead):
    N, L, E = x.shape
    weights = [lp[k] for k in _ENC_WEIGHT_NAMES]
    return pl.pallas_call(
        partial(_encoder_layer_kernel, nhead=nhead),
        out_shape=jax.ShapeDtypeStruct((N, L, E), x.dtype),
        grid=(N,),
        in_specs=[_batch_spec(x.shape), _batch_spec(pos.shape), _batch_spec(kbias.shape)]
                + [_whole_spec(w.shape) for w in weights],
        out_specs=_batch_spec((N, L, E)),
        compiler_params=pltpu.CompilerParams(dimension_semantics=("parallel",)),
    )(x, pos, kbias, *weights)


def decoder_layer_fwd(tgt, qpos, memory, mpos, mkbias, lp, nhead):
    N, Lq, E = tgt.shape
    weights = [lp[k] for k in _DEC_WEIGHT_NAMES]
    return pl.pallas_call(
        partial(_decoder_layer_kernel, nhead=nhead),
        out_shape=jax.ShapeDtypeStruct((N, Lq, E), tgt.dtype),
        grid=(N,),
        in_specs=[_batch_spec(tgt.shape), _batch_spec(qpos.shape),
                  _batch_spec(memory.shape), _batch_spec(mpos.shape),
                  _batch_spec(mkbias.shape)]
                + [_whole_spec(w.shape) for w in weights],
        out_specs=_batch_spec((N, Lq, E)),
        compiler_params=pltpu.CompilerParams(dimension_semantics=("parallel",)),
    )(tgt, qpos, memory, mpos, mkbias, *weights)


def layernorm_fwd(x, g, b):
    """No-residual LayerNorm over the last dim (decoder final norm)."""
    shp = x.shape
    E = shp[-1]
    x2 = x.reshape(-1, E)
    M = x2.shape[0]
    out = pl.pallas_call(
        _layernorm_kernel,
        out_shape=jax.ShapeDtypeStruct((M, E), x.dtype),
        grid=(1,),
        in_specs=[pl.BlockSpec((M, E), lambda i: (0, 0)),
                  pl.BlockSpec((1, E), lambda i: (0, 0)),
                  pl.BlockSpec((1, E), lambda i: (0, 0))],
        out_specs=pl.BlockSpec((M, E), lambda i: (0, 0)),
    )(x2, g, b)
    return out.reshape(shp)


# ------------------------------- stacks / model -------------------------------

def _build_msg_shift(num_layers):
    shift_strides = [1, -1, 2, -2]
    msg_shift = []
    for lid in range(num_layers):
        if lid % 2 == 0:
            msg_shift.append(list(shift_strides))
        else:
            msg_shift.append([-s for s in shift_strides])
    if num_layers % 2 == 1:
        msg_shift[-1] = None
    return msg_shift


def _msg_perm(seq_len, msg_token_len, shifts):
    """Static sequence permutation equivalent to the chunked torch.roll shuffle."""
    perm = list(range(seq_len))
    start = seq_len - msg_token_len
    chunk = msg_token_len // len(shifts)
    for c, s in enumerate(shifts):
        for i in range(chunk):
            # torch.roll / jnp.roll semantics: out[i] = in[(i - shift) % n]
            perm[start + c * chunk + i] = start + c * chunk + ((i - s) % chunk)
    return jnp.asarray(perm, dtype=jnp.int32)


def encoder_forward(src, pos, kbias, enc_params, nhead, msg_token_len=MSG_TOKEN_LEN):
    output = src                                  # (N, L, E)
    L = src.shape[1]
    msg_shift = _build_msg_shift(len(enc_params))
    for lid, lp in enumerate(enc_params):
        output = encoder_layer_fwd(output, pos, kbias, lp, nhead)
        shifts = msg_shift[lid]
        if shifts is not None:
            perm = _msg_perm(L, msg_token_len, shifts)
            output = jnp.take(output, perm, axis=1)   # one gather replaces split/roll/concat
    return output   # encoder norm is None (normalize_before=False)


def decoder_forward(tgt, qpos, memory, mpos, mkbias, dec_params,
                    dec_norm_g, dec_norm_b, nhead):
    output = tgt
    for lp in dec_params:
        output = decoder_layer_fwd(output, qpos, memory, mpos, mkbias, lp, nhead)
    # return_intermediate=False -> (norm(output), output)
    normed = layernorm_fwd(output, dec_norm_g, dec_norm_b)
    return normed, output


def transformer_forward(kparams, src, mask, query_embed, pos_embed, nhead, tgt=None):
    bs, c, h, w = src.shape
    L = h * w
    src_seq = src.reshape(bs, c, L).transpose(0, 2, 1)       # (N, L, E) batch-major
    pos_seq = pos_embed.reshape(bs, c, L).transpose(0, 2, 1)
    kbias = jnp.where(mask.reshape(bs, 1, L), -1e9, 0.0).astype(jnp.float32)  # (N,1,L)

    qpos = query_embed.transpose(1, 0, 2)                    # (N, Lq, E)
    tgt_b = jnp.zeros_like(qpos) if tgt is None else tgt.transpose(1, 0, 2)

    memory = encoder_forward(src_seq, pos_seq, kbias, kparams["enc"], nhead)
    hs, hs_wo_norm = decoder_forward(tgt_b, qpos, memory, pos_seq, kbias,
                                     kparams["dec"], kparams["dec_norm_g"],
                                     kparams["dec_norm_b"], nhead)

    # PyTorch return convention:
    #   hs (Lq, N, E).transpose(1, 2)          -> (Lq, E, N)
    #   memory (L, N, E).permute(1,2,0).view   -> (N, E, h, w)
    return (hs.transpose(1, 2, 0),
            hs_wo_norm.transpose(1, 2, 0),
            memory.transpose(0, 2, 1).reshape(bs, c, h, w))


# ------------------------------- parameters ----------------------------------

def _xavier_uniform(key, shape):
    fan_out, fan_in = shape[0], shape[1]
    a = math.sqrt(6.0 / (fan_in + fan_out))
    return jax.random.uniform(key, shape, jnp.float32, minval=-a, maxval=a)


def _init_mha(key, d):
    k1, k2 = jax.random.split(key)
    return {"in_w": _xavier_uniform(k1, (3 * d, d)),
            "in_b": jnp.zeros((3 * d,), jnp.float32),
            "out_w": _xavier_uniform(k2, (d, d)),
            "out_b": jnp.zeros((d,), jnp.float32)}


def _init_encoder_layer(key, d, dff):
    ks = jax.random.split(key, 3)
    p = {"sa": _init_mha(ks[0], d),
         "lin1_w": _xavier_uniform(ks[1], (dff, d)),
         "lin1_b": jnp.zeros((dff,), jnp.float32),
         "lin2_w": _xavier_uniform(ks[2], (d, dff)),
         "lin2_b": jnp.zeros((d,), jnp.float32)}
    for i in (1, 2):
        p[f"ln{i}_g"] = jnp.ones((d,), jnp.float32)
        p[f"ln{i}_b"] = jnp.zeros((d,), jnp.float32)
    return p


def _init_decoder_layer(key, d, dff):
    ks = jax.random.split(key, 4)
    p = {"sa": _init_mha(ks[0], d),
         "ca": _init_mha(ks[1], d),
         "lin1_w": _xavier_uniform(ks[2], (dff, d)),
         "lin1_b": jnp.zeros((dff,), jnp.float32),
         "lin2_w": _xavier_uniform(ks[3], (d, dff)),
         "lin2_b": jnp.zeros((d,), jnp.float32)}
    for i in (1, 2, 3):
        p[f"ln{i}_g"] = jnp.ones((d,), jnp.float32)
        p[f"ln{i}_b"] = jnp.zeros((d,), jnp.float32)
    return p


def init_transformer_params(key, d_model, num_encoder_layers, num_decoder_layers,
                            dim_feedforward):
    keys = jax.random.split(key, num_encoder_layers + num_decoder_layers)
    enc = [_init_encoder_layer(keys[i], d_model, dim_feedforward)
           for i in range(num_encoder_layers)]
    dec = [_init_decoder_layer(keys[num_encoder_layers + i], d_model, dim_feedforward)
           for i in range(num_decoder_layers)]
    dec_norm = {"g": jnp.ones((d_model,), jnp.float32),
                "b": jnp.zeros((d_model,), jnp.float32)}
    return {"enc": enc, "dec": dec, "dec_norm": dec_norm}


def _prep_attn_in(in_w, in_b, nhead):
    """(3E, E)/(3E,) PyTorch in-proj -> (E, 3E)/(1, 3E) with the 1/sqrt(Dh)
    softmax scale folded into the q columns."""
    E = in_w.shape[1]
    scale = 1.0 / math.sqrt(E // nhead)
    w = in_w.T
    b = in_b.reshape(1, 3 * E)
    w = w.at[:, :E].multiply(scale)
    b = b.at[:, :E].multiply(scale)
    return w, b


def _prep_encoder_layer(p, nhead):
    wqkv, bqkv = _prep_attn_in(p["sa"]["in_w"], p["sa"]["in_b"], nhead)
    return {"wqkv": wqkv, "bqkv": bqkv,
            "wo": p["sa"]["out_w"].T, "bo": p["sa"]["out_b"].reshape(1, -1),
            "ln1_g": p["ln1_g"].reshape(1, -1), "ln1_b": p["ln1_b"].reshape(1, -1),
            "w1": p["lin1_w"].T, "b1": p["lin1_b"].reshape(1, -1),
            "w2": p["lin2_w"].T, "b2": p["lin2_b"].reshape(1, -1),
            "ln2_g": p["ln2_g"].reshape(1, -1), "ln2_b": p["ln2_b"].reshape(1, -1)}


def _prep_decoder_layer(p, nhead):
    wqkv_sa, bqkv_sa = _prep_attn_in(p["sa"]["in_w"], p["sa"]["in_b"], nhead)
    wqkv_ca, bqkv_ca = _prep_attn_in(p["ca"]["in_w"], p["ca"]["in_b"], nhead)
    return {"wqkv_sa": wqkv_sa, "bqkv_sa": bqkv_sa,
            "wo_sa": p["sa"]["out_w"].T, "bo_sa": p["sa"]["out_b"].reshape(1, -1),
            "ln1_g": p["ln1_g"].reshape(1, -1), "ln1_b": p["ln1_b"].reshape(1, -1),
            "wqkv_ca": wqkv_ca, "bqkv_ca": bqkv_ca,
            "wo_ca": p["ca"]["out_w"].T, "bo_ca": p["ca"]["out_b"].reshape(1, -1),
            "ln2_g": p["ln2_g"].reshape(1, -1), "ln2_b": p["ln2_b"].reshape(1, -1),
            "w1": p["lin1_w"].T, "b1": p["lin1_b"].reshape(1, -1),
            "w2": p["lin2_w"].T, "b2": p["lin2_b"].reshape(1, -1),
            "ln3_g": p["ln3_g"].reshape(1, -1), "ln3_b": p["ln3_b"].reshape(1, -1)}


def prepare_params(params, nhead):
    """One-time conversion of PyTorch-layout weights into the kernel layout
    (pre-transposed GEMM weights, (1, N) biases, q-scale folded) so the
    forward pass carries no runtime transposes."""
    return {"enc": [_prep_encoder_layer(p, nhead) for p in params["enc"]],
            "dec": [_prep_decoder_layer(p, nhead) for p in params["dec"]],
            "dec_norm_g": params["dec_norm"]["g"].reshape(1, -1),
            "dec_norm_b": params["dec_norm"]["b"].reshape(1, -1)}


# ----------------------------------- main -------------------------------------

if __name__ == "__main__":
    d_model, nhead, dim_feedforward = 32, 4, 64
    num_encoder_layers, num_decoder_layers = 2, 2
    bs, h, w = 2, 8, 8          # hw = 64 > msg_token_len = 32
    num_queries = 16

    key = jax.random.PRNGKey(0)
    pkey, k1, k2, k3 = jax.random.split(key, 4)

    params = init_transformer_params(pkey, d_model, num_encoder_layers,
                                     num_decoder_layers, dim_feedforward)
    kparams = prepare_params(params, nhead)     # one-time layout conversion

    src = jax.random.normal(k1, (bs, d_model, h, w), jnp.float32)          # NCHW
    pos_embed = jax.random.normal(k2, (bs, d_model, h, w), jnp.float32)    # NCHW
    query_embed = jax.random.normal(k3, (num_queries, bs, d_model), jnp.float32)
    mask = jnp.zeros((bs, h, w), dtype=bool)                               # no padding

    fwd = jax.jit(partial(transformer_forward, nhead=nhead))
    hs, hs_wo_norm, memory_out = fwd(kparams, src, mask, query_embed, pos_embed)
    jax.block_until_ready((hs, hs_wo_norm, memory_out))

    assert hs.shape == (num_queries, d_model, bs)
    assert hs_wo_norm.shape == (num_queries, d_model, bs)
    assert memory_out.shape == (bs, d_model, h, w)
    assert jnp.all(jnp.isfinite(hs)) and jnp.all(jnp.isfinite(memory_out))
    print("KERNEL_OK")
</pallas_src>

<mosaic_0001>
module attributes {stable_mosaic.version = 11 : i64} {
  func.func @_encoder_layer_kernel(%arg0: i32, %arg1: memref<1x64x32xf32, #tpu.memory_space<vmem>>, %arg2: memref<1x64x32xf32, #tpu.memory_space<vmem>>, %arg3: memref<1x1x64xf32, #tpu.memory_space<vmem>>, %arg4: memref<32x96xf32, #tpu.memory_space<vmem>>, %arg5: memref<1x96xf32, #tpu.memory_space<vmem>>, %arg6: memref<32x32xf32, #tpu.memory_space<vmem>>, %arg7: memref<1x32xf32, #tpu.memory_space<vmem>>, %arg8: memref<1x32xf32, #tpu.memory_space<vmem>>, %arg9: memref<1x32xf32, #tpu.memory_space<vmem>>, %arg10: memref<32x64xf32, #tpu.memory_space<vmem>>, %arg11: memref<1x64xf32, #tpu.memory_space<vmem>>, %arg12: memref<64x32xf32, #tpu.memory_space<vmem>>, %arg13: memref<1x32xf32, #tpu.memory_space<vmem>>, %arg14: memref<1x32xf32, #tpu.memory_space<vmem>>, %arg15: memref<1x32xf32, #tpu.memory_space<vmem>>, %arg16: memref<1x64x32xf32, #tpu.memory_space<vmem>>) attributes {dimension_semantics = [#tpu.dimension_semantics<parallel>], iteration_bounds = array<i64: 2>, scalar_prefetch = 0 : i64, scratch_operands = 0 : i64, tpu.core_type = #tpu.core_type<tc>, window_params = [{transform_indices = @transform_0, window_bounds = array<i64: 1, 64, 32>}, {transform_indices = @transform_1, window_bounds = array<i64: 1, 64, 32>}, {transform_indices = @transform_2, window_bounds = array<i64: 1, 1, 64>}, {pipeline_mode = #tpu.pipeline_mode<synchronous>, transform_indices = @transform_3, window_bounds = array<i64: 32, 96>}, {pipeline_mode = #tpu.pipeline_mode<synchronous>, transform_indices = @transform_4, window_bounds = array<i64: 1, 96>}, {pipeline_mode = #tpu.pipeline_mode<synchronous>, transform_indices = @transform_5, window_bounds = array<i64: 32, 32>}, {pipeline_mode = #tpu.pipeline_mode<synchronous>, transform_indices = @transform_6, window_bounds = array<i64: 1, 32>}, {pipeline_mode = #tpu.pipeline_mode<synchronous>, transform_indices = @transform_7, window_bounds = array<i64: 1, 32>}, {pipeline_mode = #tpu.pipeline_mode<synchronous>, transform_indices = @transform_8, window_bounds = array<i64: 1, 32>}, {pipeline_mode = #tpu.pipeline_mode<synchronous>, transform_indices = @transform_9, window_bounds = array<i64: 32, 64>}, {pipeline_mode = #tpu.pipeline_mode<synchronous>, transform_indices = @transform_10, window_bounds = array<i64: 1, 64>}, {pipeline_mode = #tpu.pipeline_mode<synchronous>, transform_indices = @transform_11, window_bounds = array<i64: 64, 32>}, {pipeline_mode = #tpu.pipeline_mode<synchronous>, transform_indices = @transform_12, window_bounds = array<i64: 1, 32>}, {pipeline_mode = #tpu.pipeline_mode<synchronous>, transform_indices = @transform_13, window_bounds = array<i64: 1, 32>}, {pipeline_mode = #tpu.pipeline_mode<synchronous>, transform_indices = @transform_14, window_bounds = array<i64: 1, 32>}, {transform_indices = @transform_15, window_bounds = array<i64: 1, 64, 32>}]} {
    %c0 = arith.constant 0 : index
    %c0_0 = arith.constant 0 : index
    %c0_1 = arith.constant 0 : index
    %0 = vector.load %arg1[%c0, %c0_0, %c0_1] : memref<1x64x32xf32, #tpu.memory_space<vmem>>, vector<1x64x32xf32>
    %1 = vector.shape_cast %0 : vector<1x64x32xf32> to vector<64x32xf32>
    %c0_2 = arith.constant 0 : index
    %c0_3 = arith.constant 0 : index
    %c0_4 = arith.constant 0 : index
    %2 = vector.load %arg2[%c0_2, %c0_3, %c0_4] : memref<1x64x32xf32, #tpu.memory_space<vmem>>, vector<1x64x32xf32>
    %3 = vector.shape_cast %2 : vector<1x64x32xf32> to vector<64x32xf32>
    %c0_5 = arith.constant 0 : index
    %c0_6 = arith.constant 0 : index
    %c0_7 = arith.constant 0 : index
    %4 = vector.load %arg3[%c0_5, %c0_6, %c0_7] : memref<1x1x64xf32, #tpu.memory_space<vmem>>, vector<1x1x64xf32>
    %5 = vector.shape_cast %4 : vector<1x1x64xf32> to vector<1x64xf32>
    %c0_8 = arith.constant 0 : index
    %c0_9 = arith.constant 0 : index
    %6 = vector.load %arg4[%c0_8, %c0_9] : memref<32x96xf32, #tpu.memory_space<vmem>>, vector<32x96xf32>
    %c0_10 = arith.constant 0 : index
    %c0_11 = arith.constant 0 : index
    %7 = vector.load %arg5[%c0_10, %c0_11] : memref<1x96xf32, #tpu.memory_space<vmem>>, vector<1x96xf32>
    %8 = arith.addf %1, %3 : vector<64x32xf32>
    %9 = vector.extract_strided_slice %6 {offsets = [0, 0], sizes = [32, 64], strides = [1, 1]} : vector<32x96xf32> to vector<32x64xf32>
    %cst = arith.constant dense<0.000000e+00> : vector<64x64xf32>
    %10 = tpu.matmul %8, %9, %cst {dimension_numbers = #tpu.dot_dimension_numbers<[1], [0], [0], [1], [0, 0, 1, 1], [], []>} : vector<64x32xf32>, vector<32x64xf32>, vector<64x64xf32> -> vector<64x64xf32>
    %11 = vector.extract_strided_slice %7 {offsets = [0, 0], sizes = [1, 64], strides = [1, 1]} : vector<1x96xf32> to vector<1x64xf32>
    %12 = vector.broadcast %11 : vector<1x64xf32> to vector<64x64xf32>
    %13 = arith.addf %10, %12 : vector<64x64xf32>
    %14 = vector.extract_strided_slice %6 {offsets = [0, 64], sizes = [32, 32], strides = [1, 1]} : vector<32x96xf32> to vector<32x32xf32>
    %cst_12 = arith.constant dense<0.000000e+00> : vector<64x32xf32>
    %15 = tpu.matmul %1, %14, %cst_12 {dimension_numbers = #tpu.dot_dimension_numbers<[1], [0], [0], [1], [0, 0, 1, 1], [], []>} : vector<64x32xf32>, vector<32x32xf32>, vector<64x32xf32> -> vector<64x32xf32>
    %16 = vector.extract_strided_slice %7 {offsets = [0, 64], sizes = [1, 32], strides = [1, 1]} : vector<1x96xf32> to vector<1x32xf32>
    %17 = vector.broadcast %16 : vector<1x32xf32> to vector<64x32xf32>
    %18 = arith.addf %15, %17 : vector<64x32xf32>
    %19 = vector.extract_strided_slice %13 {offsets = [0, 0], sizes = [64, 32], strides = [1, 1]} : vector<64x64xf32> to vector<64x32xf32>
    %20 = vector.extract_strided_slice %13 {offsets = [0, 32], sizes = [64, 32], strides = [1, 1]} : vector<64x64xf32> to vector<64x32xf32>
    %c0_13 = arith.constant 0 : index
    %c0_14 = arith.constant 0 : index
    %21 = vector.load %arg6[%c0_13, %c0_14] : memref<32x32xf32, #tpu.memory_space<vmem>>, vector<32x32xf32>
    %22 = vector.extract_strided_slice %19 {offsets = [0, 0], sizes = [64, 8], strides = [1, 1]} : vector<64x32xf32> to vector<64x8xf32>
    %23 = vector.extract_strided_slice %20 {offsets = [0, 0], sizes = [64, 8], strides = [1, 1]} : vector<64x32xf32> to vector<64x8xf32>
    %cst_15 = arith.constant dense<0.000000e+00> : vector<64x64xf32>
    %24 = tpu.matmul %22, %23, %cst_15 {dimension_numbers = #tpu.dot_dimension_numbers<[1], [1], [0], [0], [0, 0, 1, 0], [], []>} : vector<64x8xf32>, vector<64x8xf32>, vector<64x64xf32> -> vector<64x64xf32>
    %25 = vector.broadcast %5 : vector<1x64xf32> to vector<64x64xf32>
    %26 = arith.addf %24, %25 : vector<64x64xf32>
    %cst_16 = arith.constant dense<0xFF800000> : vector<64xf32>
    %27 = vector.multi_reduction <maximumf>, %26, %cst_16 [1] : vector<64x64xf32> to vector<64xf32>
    %28 = vector.shape_cast %27 : vector<64xf32> to vector<64x1xf32>
    %29 = vector.broadcast %28 : vector<64x1xf32> to vector<64x64xf32>
    %30 = arith.subf %26, %29 : vector<64x64xf32>
    %31 = math.exp %30 : vector<64x64xf32>
    %cst_17 = arith.constant dense<0.000000e+00> : vector<64xf32>
    %32 = vector.multi_reduction <add>, %31, %cst_17 [1] : vector<64x64xf32> to vector<64xf32>
    %33 = vector.shape_cast %32 : vector<64xf32> to vector<64x1xf32>
    %34 = tpu.reciprocal %33 {approx = true} : vector<64x1xf32> -> vector<64x1xf32>
    %35 = vector.broadcast %34 : vector<64x1xf32> to vector<64x64xf32>
    %36 = arith.mulf %31, %35 : vector<64x64xf32>
    %37 = vector.extract_strided_slice %18 {offsets = [0, 0], sizes = [64, 8], strides = [1, 1]} : vector<64x32xf32> to vector<64x8xf32>
    %cst_18 = arith.constant dense<0.000000e+00> : vector<64x8xf32>
    %38 = tpu.matmul %36, %37, %cst_18 {dimension_numbers = #tpu.dot_dimension_numbers<[1], [0], [0], [1], [0, 0, 1, 1], [], []>} : vector<64x64xf32>, vector<64x8xf32>, vector<64x8xf32> -> vector<64x8xf32>
    %39 = vector.extract_strided_slice %21 {offsets = [0, 0], sizes = [8, 32], strides = [1, 1]} : vector<32x32xf32> to vector<8x32xf32>
    %cst_19 = arith.constant dense<0.000000e+00> : vector<64x32xf32>
    %40 = tpu.matmul %38, %39, %cst_19 {dimension_numbers = #tpu.dot_dimension_numbers<[1], [0], [0], [1], [0, 0, 1, 1], [], []>} : vector<64x8xf32>, vector<8x32xf32>, vector<64x32xf32> -> vector<64x32xf32>
    %41 = vector.extract_strided_slice %19 {offsets = [0, 8], sizes = [64, 8], strides = [1, 1]} : vector<64x32xf32> to vector<64x8xf32>
    %42 = vector.extract_strided_slice %20 {offsets = [0, 8], sizes = [64, 8], strides = [1, 1]} : vector<64x32xf32> to vector<64x8xf32>
    %cst_20 = arith.constant dense<0.000000e+00> : vector<64x64xf32>
    %43 = tpu.matmul %41, %42, %cst_20 {dimension_numbers = #tpu.dot_dimension_numbers<[1], [1], [0], [0], [0, 0, 1, 0], [], []>} : vector<64x8xf32>, vector<64x8xf32>, vector<64x64xf32> -> vector<64x64xf32>
    %44 = vector.broadcast %5 : vector<1x64xf32> to vector<64x64xf32>
    %45 = arith.addf %43, %44 : vector<64x64xf32>
    %cst_21 = arith.constant dense<0xFF800000> : vector<64xf32>
    %46 = vector.multi_reduction <maximumf>, %45, %cst_21 [1] : vector<64x64xf32> to vector<64xf32>
    %47 = vector.shape_cast %46 : vector<64xf32> to vector<64x1xf32>
    %48 = vector.broadcast %47 : vector<64x1xf32> to vector<64x64xf32>
    %49 = arith.subf %45, %48 : vector<64x64xf32>
    %50 = math.exp %49 : vector<64x64xf32>
    %cst_22 = arith.constant dense<0.000000e+00> : vector<64xf32>
    %51 = vector.multi_reduction <add>, %50, %cst_22 [1] : vector<64x64xf32> to vector<64xf32>
    %52 = vector.shape_cast %51 : vector<64xf32> to vector<64x1xf32>
    %53 = tpu.reciprocal %52 {approx = true} : vector<64x1xf32> -> vector<64x1xf32>
    %54 = vector.broadcast %53 : vector<64x1xf32> to vector<64x64xf32>
    %55 = arith.mulf %50, %54 : vector<64x64xf32>
    %56 = vector.extract_strided_slice %18 {offsets = [0, 8], sizes = [64, 8], strides = [1, 1]} : vector<64x32xf32> to vector<64x8xf32>
    %cst_23 = arith.constant dense<0.000000e+00> : vector<64x8xf32>
    %57 = tpu.matmul %55, %56, %cst_23 {dimension_numbers = #tpu.dot_dimension_numbers<[1], [0], [0], [1], [0, 0, 1, 1], [], []>} : vector<64x64xf32>, vector<64x8xf32>, vector<64x8xf32> -> vector<64x8xf32>
    %58 = vector.extract_strided_slice %21 {offsets = [8, 0], sizes = [8, 32], strides = [1, 1]} : vector<32x32xf32> to vector<8x32xf32>
    %cst_24 = arith.constant dense<0.000000e+00> : vector<64x32xf32>
    %59 = tpu.matmul %57, %58, %cst_24 {dimension_numbers = #tpu.dot_dimension_numbers<[1], [0], [0], [1], [0, 0, 1, 1], [], []>} : vector<64x8xf32>, vector<8x32xf32>, vector<64x32xf32> -> vector<64x32xf32>
    %60 = arith.addf %40, %59 : vector<64x32xf32>
    %61 = vector.extract_strided_slice %19 {offsets = [0, 16], sizes = [64, 8], strides = [1, 1]} : vector<64x32xf32> to vector<64x8xf32>
    %62 = vector.extract_strided_slice %20 {offsets = [0, 16], sizes = [64, 8], strides = [1, 1]} : vector<64x32xf32> to vector<64x8xf32>
    %cst_25 = arith.constant dense<0.000000e+00> : vector<64x64xf32>
    %63 = tpu.matmul %61, %62, %cst_25 {dimension_numbers = #tpu.dot_dimension_numbers<[1], [1], [0], [0], [0, 0, 1, 0], [], []>} : vector<64x8xf32>, vector<64x8xf32>, vector<64x64xf32> -> vector<64x64xf32>
    %64 = vector.broadcast %5 : vector<1x64xf32> to vector<64x64xf32>
    %65 = arith.addf %63, %64 : vector<64x64xf32>
    %cst_26 = arith.constant dense<0xFF800000> : vector<64xf32>
    %66 = vector.multi_reduction <maximumf>, %65, %cst_26 [1] : vector<64x64xf32> to vector<64xf32>
    %67 = vector.shape_cast %66 : vector<64xf32> to vector<64x1xf32>
    %68 = vector.broadcast %67 : vector<64x1xf32> to vector<64x64xf32>
    %69 = arith.subf %65, %68 : vector<64x64xf32>
    %70 = math.exp %69 : vector<64x64xf32>
    %cst_27 = arith.constant dense<0.000000e+00> : vector<64xf32>
    %71 = vector.multi_reduction <add>, %70, %cst_27 [1] : vector<64x64xf32> to vector<64xf32>
    %72 = vector.shape_cast %71 : vector<64xf32> to vector<64x1xf32>
    %73 = tpu.reciprocal %72 {approx = true} : vector<64x1xf32> -> vector<64x1xf32>
    %74 = vector.broadcast %73 : vector<64x1xf32> to vector<64x64xf32>
    %75 = arith.mulf %70, %74 : vector<64x64xf32>
    %76 = vector.extract_strided_slice %18 {offsets = [0, 16], sizes = [64, 8], strides = [1, 1]} : vector<64x32xf32> to vector<64x8xf32>
    %cst_28 = arith.constant dense<0.000000e+00> : vector<64x8xf32>
    %77 = tpu.matmul %75, %76, %cst_28 {dimension_numbers = #tpu.dot_dimension_numbers<[1], [0], [0], [1], [0, 0, 1, 1], [], []>} : vector<64x64xf32>, vector<64x8xf32>, vector<64x8xf32> -> vector<64x8xf32>
    %78 = vector.extract_strided_slice %21 {offsets = [16, 0], sizes = [8, 32], strides = [1, 1]} : vector<32x32xf32> to vector<8x32xf32>
    %cst_29 = arith.constant dense<0.000000e+00> : vector<64x32xf32>
    %79 = tpu.matmul %77, %78, %cst_29 {dimension_numbers = #tpu.dot_dimension_numbers<[1], [0], [0], [1], [0, 0, 1, 1], [], []>} : vector<64x8xf32>, vector<8x32xf32>, vector<64x32xf32> -> vector<64x32xf32>
    %80 = arith.addf %60, %79 : vector<64x32xf32>
    %81 = vector.extract_strided_slice %19 {offsets = [0, 24], sizes = [64, 8], strides = [1, 1]} : vector<64x32xf32> to vector<64x8xf32>
    %82 = vector.extract_strided_slice %20 {offsets = [0, 24], sizes = [64, 8], strides = [1, 1]} : vector<64x32xf32> to vector<64x8xf32>
    %cst_30 = arith.constant dense<0.000000e+00> : vector<64x64xf32>
    %83 = tpu.matmul %81, %82, %cst_30 {dimension_numbers = #tpu.dot_dimension_numbers<[1], [1], [0], [0], [0, 0, 1, 0], [], []>} : vector<64x8xf32>, vector<64x8xf32>, vector<64x64xf32> -> vector<64x64xf32>
    %84 = vector.broadcast %5 : vector<1x64xf32> to vector<64x64xf32>
    %85 = arith.addf %83, %84 : vector<64x64xf32>
    %cst_31 = arith.constant dense<0xFF800000> : vector<64xf32>
    %86 = vector.multi_reduction <maximumf>, %85, %cst_31 [1] : vector<64x64xf32> to vector<64xf32>
    %87 = vector.shape_cast %86 : vector<64xf32> to vector<64x1xf32>
    %88 = vector.broadcast %87 : vector<64x1xf32> to vector<64x64xf32>
    %89 = arith.subf %85, %88 : vector<64x64xf32>
    %90 = math.exp %89 : vector<64x64xf32>
    %cst_32 = arith.constant dense<0.000000e+00> : vector<64xf32>
    %91 = vector.multi_reduction <add>, %90, %cst_32 [1] : vector<64x64xf32> to vector<64xf32>
    %92 = vector.shape_cast %91 : vector<64xf32> to vector<64x1xf32>
    %93 = tpu.reciprocal %92 {approx = true} : vector<64x1xf32> -> vector<64x1xf32>
    %94 = vector.broadcast %93 : vector<64x1xf32> to vector<64x64xf32>
    %95 = arith.mulf %90, %94 : vector<64x64xf32>
    %96 = vector.extract_strided_slice %18 {offsets = [0, 24], sizes = [64, 8], strides = [1, 1]} : vector<64x32xf32> to vector<64x8xf32>
    %cst_33 = arith.constant dense<0.000000e+00> : vector<64x8xf32>
    %97 = tpu.matmul %95, %96, %cst_33 {dimension_numbers = #tpu.dot_dimension_numbers<[1], [0], [0], [1], [0, 0, 1, 1], [], []>} : vector<64x64xf32>, vector<64x8xf32>, vector<64x8xf32> -> vector<64x8xf32>
    %98 = vector.extract_strided_slice %21 {offsets = [24, 0], sizes = [8, 32], strides = [1, 1]} : vector<32x32xf32> to vector<8x32xf32>
    %cst_34 = arith.constant dense<0.000000e+00> : vector<64x32xf32>
    %99 = tpu.matmul %97, %98, %cst_34 {dimension_numbers = #tpu.dot_dimension_numbers<[1], [0], [0], [1], [0, 0, 1, 1], [], []>} : vector<64x8xf32>, vector<8x32xf32>, vector<64x32xf32> -> vector<64x32xf32>
    %100 = arith.addf %80, %99 : vector<64x32xf32>
    %c0_35 = arith.constant 0 : index
    %c0_36 = arith.constant 0 : index
    %101 = vector.load %arg7[%c0_35, %c0_36] : memref<1x32xf32, #tpu.memory_space<vmem>>, vector<1x32xf32>
    %102 = vector.broadcast %101 : vector<1x32xf32> to vector<64x32xf32>
    %103 = arith.addf %100, %102 : vector<64x32xf32>
    %104 = arith.addf %1, %103 : vector<64x32xf32>
    %c0_37 = arith.constant 0 : index
    %c0_38 = arith.constant 0 : index
    %105 = vector.load %arg8[%c0_37, %c0_38] : memref<1x32xf32, #tpu.memory_space<vmem>>, vector<1x32xf32>
    %c0_39 = arith.constant 0 : index
    %c0_40 = arith.constant 0 : index
    %106 = vector.load %arg9[%c0_39, %c0_40] : memref<1x32xf32, #tpu.memory_space<vmem>>, vector<1x32xf32>
    %cst_41 = arith.constant dense<0.000000e+00> : vector<64xf32>
    %107 = vector.multi_reduction <add>, %104, %cst_41 [1] : vector<64x32xf32> to vector<64xf32>
    %108 = vector.shape_cast %107 : vector<64xf32> to vector<64x1xf32>
    %cst_42 = arith.constant 3.200000e+01 : f32
    %109 = vector.broadcast %cst_42 : f32 to vector<64x1xf32>
    %110 = arith.divf %108, %109 : vector<64x1xf32>
    %111 = vector.broadcast %110 : vector<64x1xf32> to vector<64x32xf32>
    %112 = arith.subf %104, %111 : vector<64x32xf32>
    %113 = arith.mulf %112, %112 : vector<64x32xf32>
    %cst_43 = arith.constant dense<0.000000e+00> : vector<64xf32>
    %114 = vector.multi_reduction <add>, %113, %cst_43 [1] : vector<64x32xf32> to vector<64xf32>
    %115 = vector.shape_cast %114 : vector<64xf32> to vector<64x1xf32>
    %cst_44 = arith.constant 3.200000e+01 : f32
    %116 = vector.broadcast %cst_44 : f32 to vector<64x1xf32>
    %117 = arith.divf %115, %116 : vector<64x1xf32>
    %118 = vector.broadcast %110 : vector<64x1xf32> to vector<64x32xf32>
    %119 = arith.subf %104, %118 : vector<64x32xf32>
    %cst_45 = arith.constant 9.99999974E-6 : f32
    %120 = vector.broadcast %cst_45 : f32 to vector<64x1xf32>
    %121 = arith.addf %117, %120 : vector<64x1xf32>
    %122 = math.rsqrt %121 : vector<64x1xf32>
    %123 = vector.broadcast %122 : vector<64x1xf32> to vector<64x32xf32>
    %124 = arith.mulf %119, %123 : vector<64x32xf32>
    %125 = vector.broadcast %105 : vector<1x32xf32> to vector<64x32xf32>
    %126 = arith.mulf %124, %125 : vector<64x32xf32>
    %127 = vector.broadcast %106 : vector<1x32xf32> to vector<64x32xf32>
    %128 = arith.addf %126, %127 : vector<64x32xf32>
    %c0_46 = arith.constant 0 : index
    %c0_47 = arith.constant 0 : index
    %129 = vector.load %arg10[%c0_46, %c0_47] : memref<32x64xf32, #tpu.memory_space<vmem>>, vector<32x64xf32>
    %cst_48 = arith.constant dense<0.000000e+00> : vector<64x64xf32>
    %130 = tpu.matmul %128, %129, %cst_48 {dimension_numbers = #tpu.dot_dimension_numbers<[1], [0], [0], [1], [0, 0, 1, 1], [], []>} : vector<64x32xf32>, vector<32x64xf32>, vector<64x64xf32> -> vector<64x64xf32>
    %c0_49 = arith.constant 0 : index
    %c0_50 = arith.constant 0 : index
    %131 = vector.load %arg11[%c0_49, %c0_50] : memref<1x64xf32, #tpu.memory_space<vmem>>, vector<1x64xf32>
    %132 = vector.broadcast %131 : vector<1x64xf32> to vector<64x64xf32>
    %133 = arith.addf %130, %132 : vector<64x64xf32>
    %cst_51 = arith.constant 0.000000e+00 : f32
    %134 = vector.broadcast %cst_51 : f32 to vector<64x64xf32>
    %135 = arith.maximumf %133, %134 : vector<64x64xf32>
    %c0_52 = arith.constant 0 : index
    %c0_53 = arith.constant 0 : index
    %136 = vector.load %arg12[%c0_52, %c0_53] : memref<64x32xf32, #tpu.memory_space<vmem>>, vector<64x32xf32>
    %cst_54 = arith.constant dense<0.000000e+00> : vector<64x32xf32>
    %137 = tpu.matmul %135, %136, %cst_54 {dimension_numbers = #tpu.dot_dimension_numbers<[1], [0], [0], [1], [0, 0, 1, 1], [], []>} : vector<64x64xf32>, vector<64x32xf32>, vector<64x32xf32> -> vector<64x32xf32>
    %c0_55 = arith.constant 0 : index
    %c0_56 = arith.constant 0 : index
    %138 = vector.load %arg13[%c0_55, %c0_56] : memref<1x32xf32, #tpu.memory_space<vmem>>, vector<1x32xf32>
    %139 = vector.broadcast %138 : vector<1x32xf32> to vector<64x32xf32>
    %140 = arith.addf %137, %139 : vector<64x32xf32>
    %141 = arith.addf %128, %140 : vector<64x32xf32>
    %c0_57 = arith.constant 0 : index
    %c0_58 = arith.constant 0 : index
    %142 = vector.load %arg14[%c0_57, %c0_58] : memref<1x32xf32, #tpu.memory_space<vmem>>, vector<1x32xf32>
    %c0_59 = arith.constant 0 : index
    %c0_60 = arith.constant 0 : index
    %143 = vector.load %arg15[%c0_59, %c0_60] : memref<1x32xf32, #tpu.memory_space<vmem>>, vector<1x32xf32>
    %cst_61 = arith.constant dense<0.000000e+00> : vector<64xf32>
    %144 = vector.multi_reduction <add>, %141, %cst_61 [1] : vector<64x32xf32> to vector<64xf32>
    %145 = vector.shape_cast %144 : vector<64xf32> to vector<64x1xf32>
    %cst_62 = arith.constant 3.200000e+01 : f32
    %146 = vector.broadcast %cst_62 : f32 to vector<64x1xf32>
    %147 = arith.divf %145, %146 : vector<64x1xf32>
    %148 = vector.broadcast %147 : vector<64x1xf32> to vector<64x32xf32>
    %149 = arith.subf %141, %148 : vector<64x32xf32>
    %150 = arith.mulf %149, %149 : vector<64x32xf32>
    %cst_63 = arith.constant dense<0.000000e+00> : vector<64xf32>
    %151 = vector.multi_reduction <add>, %150, %cst_63 [1] : vector<64x32xf32> to vector<64xf32>
    %152 = vector.shape_cast %151 : vector<64xf32> to vector<64x1xf32>
    %cst_64 = arith.constant 3.200000e+01 : f32
    %153 = vector.broadcast %cst_64 : f32 to vector<64x1xf32>
    %154 = arith.divf %152, %153 : vector<64x1xf32>
    %155 = vector.broadcast %147 : vector<64x1xf32> to vector<64x32xf32>
    %156 = arith.subf %141, %155 : vector<64x32xf32>
    %cst_65 = arith.constant 9.99999974E-6 : f32
    %157 = vector.broadcast %cst_65 : f32 to vector<64x1xf32>
    %158 = arith.addf %154, %157 : vector<64x1xf32>
    %159 = math.rsqrt %158 : vector<64x1xf32>
    %160 = vector.broadcast %159 : vector<64x1xf32> to vector<64x32xf32>
    %161 = arith.mulf %156, %160 : vector<64x32xf32>
    %162 = vector.broadcast %142 : vector<1x32xf32> to vector<64x32xf32>
    %163 = arith.mulf %161, %162 : vector<64x32xf32>
    %164 = vector.broadcast %143 : vector<1x32xf32> to vector<64x32xf32>
    %165 = arith.addf %163, %164 : vector<64x32xf32>
    %c0_66 = arith.constant 0 : index
    %c0_67 = arith.constant 0 : index
    %c0_68 = arith.constant 0 : index
    %166 = vector.load %arg16[%c0_66, %c0_67, %c0_68] : memref<1x64x32xf32, #tpu.memory_space<vmem>>, vector<1x64x32xf32>
    %167 = vector.shape_cast %166 : vector<1x64x32xf32> to vector<64x32xf32>
    %168 = vector.shape_cast %165 : vector<64x32xf32> to vector<1x64x32xf32>
    tpu.vector_store %arg16[%c0_66, %c0_67, %c0_68], %168 {strides = array<i32>} : memref<1x64x32xf32, #tpu.memory_space<vmem>>, vector<1x64x32xf32>,
    return
  }
  func.func @transform_0(%arg0: i32) -> (i32, i32, i32) {
    %c0_i32 = arith.constant 0 : i32
    %c0_i32_0 = arith.constant 0 : i32
    %c0_i32_1 = arith.constant 0 : i32
    return %arg0, %c0_i32, %c0_i32_0 : i32, i32, i32
  }
  func.func @transform_1(%arg0: i32) -> (i32, i32, i32) {
    %c0_i32 = arith.constant 0 : i32
    %c0_i32_0 = arith.constant 0 : i32
    %c0_i32_1 = arith.constant 0 : i32
    return %arg0, %c0_i32, %c0_i32_0 : i32, i32, i32
  }
  func.func @transform_2(%arg0: i32) -> (i32, i32, i32) {
    %c0_i32 = arith.constant 0 : i32
    %c0_i32_0 = arith.constant 0 : i32
    %c0_i32_1 = arith.constant 0 : i32
    return %arg0, %c0_i32, %c0_i32_0 : i32, i32, i32
  }
  func.func @transform_3(%arg0: i32) -> (i32, i32) {
    %c0_i32 = arith.constant 0 : i32
    %c0_i32_0 = arith.constant 0 : i32
    %c0_i32_1 = arith.constant 0 : i32
    return %c0_i32, %c0_i32_0 : i32, i32
  }
  func.func @transform_4(%arg0: i32) -> (i32, i32) {
    %c0_i32 = arith.constant 0 : i32
    %c0_i32_0 = arith.constant 0 : i32
    %c0_i32_1 = arith.constant 0 : i32
    return %c0_i32, %c0_i32_0 : i32, i32
  }
  func.func @transform_5(%arg0: i32) -> (i32, i32) {
    %c0_i32 = arith.constant 0 : i32
    %c0_i32_0 = arith.constant 0 : i32
    %c0_i32_1 = arith.constant 0 : i32
    return %c0_i32, %c0_i32_0 : i32, i32
  }
  func.func @transform_6(%arg0: i32) -> (i32, i32) {
    %c0_i32 = arith.constant 0 : i32
    %c0_i32_0 = arith.constant 0 : i32
    %c0_i32_1 = arith.constant 0 : i32
    return %c0_i32, %c0_i32_0 : i32, i32
  }
  func.func @transform_7(%arg0: i32) -> (i32, i32) {
    %c0_i32 = arith.constant 0 : i32
    %c0_i32_0 = arith.constant 0 : i32
    %c0_i32_1 = arith.constant 0 : i32
    return %c0_i32, %c0_i32_0 : i32, i32
  }
  func.func @transform_8(%arg0: i32) -> (i32, i32) {
    %c0_i32 = arith.constant 0 : i32
    %c0_i32_0 = arith.constant 0 : i32
    %c0_i32_1 = arith.constant 0 : i32
    return %c0_i32, %c0_i32_0 : i32, i32
  }
  func.func @transform_9(%arg0: i32) -> (i32, i32) {
    %c0_i32 = arith.constant 0 : i32
    %c0_i32_0 = arith.constant 0 : i32
    %c0_i32_1 = arith.constant 0 : i32
    return %c0_i32, %c0_i32_0 : i32, i32
  }
  func.func @transform_10(%arg0: i32) -> (i32, i32) {
    %c0_i32 = arith.constant 0 : i32
    %c0_i32_0 = arith.constant 0 : i32
    %c0_i32_1 = arith.constant 0 : i32
    return %c0_i32, %c0_i32_0 : i32, i32
  }
  func.func @transform_11(%arg0: i32) -> (i32, i32) {
    %c0_i32 = arith.constant 0 : i32
    %c0_i32_0 = arith.constant 0 : i32
    %c0_i32_1 = arith.constant 0 : i32
    return %c0_i32, %c0_i32_0 : i32, i32
  }
  func.func @transform_12(%arg0: i32) -> (i32, i32) {
    %c0_i32 = arith.constant 0 : i32
    %c0_i32_0 = arith.constant 0 : i32
    %c0_i32_1 = arith.constant 0 : i32
    return %c0_i32, %c0_i32_0 : i32, i32
  }
  func.func @transform_13(%arg0: i32) -> (i32, i32) {
    %c0_i32 = arith.constant 0 : i32
    %c0_i32_0 = arith.constant 0 : i32
    %c0_i32_1 = arith.constant 0 : i32
    return %c0_i32, %c0_i32_0 : i32, i32
  }
  func.func @transform_14(%arg0: i32) -> (i32, i32) {
    %c0_i32 = arith.constant 0 : i32
    %c0_i32_0 = arith.constant 0 : i32
    %c0_i32_1 = arith.constant 0 : i32
    return %c0_i32, %c0_i32_0 : i32, i32
  }
  func.func @transform_15(%arg0: i32) -> (i32, i32, i32) {
    %c0_i32 = arith.constant 0 : i32
    %c0_i32_0 = arith.constant 0 : i32
    %c0_i32_1 = arith.constant 0 : i32
    return %arg0, %c0_i32, %c0_i32_0 : i32, i32, i32
  }
}

module attributes {stable_mosaic.version = 11 : i64} {
  func.func @_encoder_layer_kernel(%arg0: i32, %arg1: memref<1x64x32xf32, #tpu.memory_space<vmem>>, %arg2: memref<1x64x32xf32, #tpu.memory_space<vmem>>, %arg3: memref<1x1x64xf32, #tpu.memory_space<vmem>>, %arg4: memref<32x96xf32, #tpu.memory_space<vmem>>, %arg5: memref<1x96xf32, #tpu.memory_space<vmem>>, %arg6: memref<32x32xf32, #tpu.memory_space<vmem>>, %arg7: memref<1x32xf32, #tpu.memory_space<vmem>>, %arg8: memref<1x32xf32, #tpu.memory_space<vmem>>, %arg9: memref<1x32xf32, #tpu.memory_space<vmem>>, %arg10: memref<32x64xf32, #tpu.memory_space<vmem>>, %arg11: memref<1x64xf32, #tpu.memory_space<vmem>>, %arg12: memref<64x32xf32, #tpu.memory_space<vmem>>, %arg13: memref<1x32xf32, #tpu.memory_space<vmem>>, %arg14: memref<1x32xf32, #tpu.memory_space<vmem>>, %arg15: memref<1x32xf32, #tpu.memory_space<vmem>>, %arg16: memref<1x64x32xf32, #tpu.memory_space<vmem>>) attributes {dimension_semantics = [#tpu.dimension_semantics<parallel>], iteration_bounds = array<i64: 2>, scalar_prefetch = 0 : i64, scratch_operands = 0 : i64, tpu.core_type = #tpu.core_type<tc>, window_params = [{transform_indices = @transform_0, window_bounds = array<i64: 1, 64, 32>}, {transform_indices = @transform_1, window_bounds = array<i64: 1, 64, 32>}, {transform_indices = @transform_2, window_bounds = array<i64: 1, 1, 64>}, {pipeline_mode = #tpu.pipeline_mode<synchronous>, transform_indices = @transform_3, window_bounds = array<i64: 32, 96>}, {pipeline_mode = #tpu.pipeline_mode<synchronous>, transform_indices = @transform_4, window_bounds = array<i64: 1, 96>}, {pipeline_mode = #tpu.pipeline_mode<synchronous>, transform_indices = @transform_5, window_bounds = array<i64: 32, 32>}, {pipeline_mode = #tpu.pipeline_mode<synchronous>, transform_indices = @transform_6, window_bounds = array<i64: 1, 32>}, {pipeline_mode = #tpu.pipeline_mode<synchronous>, transform_indices = @transform_7, window_bounds = array<i64: 1, 32>}, {pipeline_mode = #tpu.pipeline_mode<synchronous>, transform_indices = @transform_8, window_bounds = array<i64: 1, 32>}, {pipeline_mode = #tpu.pipeline_mode<synchronous>, transform_indices = @transform_9, window_bounds = array<i64: 32, 64>}, {pipeline_mode = #tpu.pipeline_mode<synchronous>, transform_indices = @transform_10, window_bounds = array<i64: 1, 64>}, {pipeline_mode = #tpu.pipeline_mode<synchronous>, transform_indices = @transform_11, window_bounds = array<i64: 64, 32>}, {pipeline_mode = #tpu.pipeline_mode<synchronous>, transform_indices = @transform_12, window_bounds = array<i64: 1, 32>}, {pipeline_mode = #tpu.pipeline_mode<synchronous>, transform_indices = @transform_13, window_bounds = array<i64: 1, 32>}, {pipeline_mode = #tpu.pipeline_mode<synchronous>, transform_indices = @transform_14, window_bounds = array<i64: 1, 32>}, {transform_indices = @transform_15, window_bounds = array<i64: 1, 64, 32>}]} {
    %c0 = arith.constant 0 : index
    %c0_0 = arith.constant 0 : index
    %c0_1 = arith.constant 0 : index
    %0 = vector.load %arg1[%c0, %c0_0, %c0_1] : memref<1x64x32xf32, #tpu.memory_space<vmem>>, vector<1x64x32xf32>
    %1 = vector.shape_cast %0 : vector<1x64x32xf32> to vector<64x32xf32>
    %c0_2 = arith.constant 0 : index
    %c0_3 = arith.constant 0 : index
    %c0_4 = arith.constant 0 : index
    %2 = vector.load %arg2[%c0_2, %c0_3, %c0_4] : memref<1x64x32xf32, #tpu.memory_space<vmem>>, vector<1x64x32xf32>
    %3 = vector.shape_cast %2 : vector<1x64x32xf32> to vector<64x32xf32>
    %c0_5 = arith.constant 0 : index
    %c0_6 = arith.constant 0 : index
    %c0_7 = arith.constant 0 : index
    %4 = vector.load %arg3[%c0_5, %c0_6, %c0_7] : memref<1x1x64xf32, #tpu.memory_space<vmem>>, vector<1x1x64xf32>
    %5 = vector.shape_cast %4 : vector<1x1x64xf32> to vector<1x64xf32>
    %c0_8 = arith.constant 0 : index
    %c0_9 = arith.constant 0 : index
    %6 = vector.load %arg4[%c0_8, %c0_9] : memref<32x96xf32, #tpu.memory_space<vmem>>, vector<32x96xf32>
    %c0_10 = arith.constant 0 : index
    %c0_11 = arith.constant 0 : index
    %7 = vector.load %arg5[%c0_10, %c0_11] : memref<1x96xf32, #tpu.memory_space<vmem>>, vector<1x96xf32>
    %8 = arith.addf %1, %3 : vector<64x32xf32>
    %9 = vector.extract_strided_slice %6 {offsets = [0, 0], sizes = [32, 64], strides = [1, 1]} : vector<32x96xf32> to vector<32x64xf32>
    %cst = arith.constant dense<0.000000e+00> : vector<64x64xf32>
    %10 = tpu.matmul %8, %9, %cst {dimension_numbers = #tpu.dot_dimension_numbers<[1], [0], [0], [1], [0, 0, 1, 1], [], []>} : vector<64x32xf32>, vector<32x64xf32>, vector<64x64xf32> -> vector<64x64xf32>
    %11 = vector.extract_strided_slice %7 {offsets = [0, 0], sizes = [1, 64], strides = [1, 1]} : vector<1x96xf32> to vector<1x64xf32>
    %12 = vector.broadcast %11 : vector<1x64xf32> to vector<64x64xf32>
    %13 = arith.addf %10, %12 : vector<64x64xf32>
    %14 = vector.extract_strided_slice %6 {offsets = [0, 64], sizes = [32, 32], strides = [1, 1]} : vector<32x96xf32> to vector<32x32xf32>
    %cst_12 = arith.constant dense<0.000000e+00> : vector<64x32xf32>
    %15 = tpu.matmul %1, %14, %cst_12 {dimension_numbers = #tpu.dot_dimension_numbers<[1], [0], [0], [1], [0, 0, 1, 1], [], []>} : vector<64x32xf32>, vector<32x32xf32>, vector<64x32xf32> -> vector<64x32xf32>
    %16 = vector.extract_strided_slice %7 {offsets = [0, 64], sizes = [1, 32], strides = [1, 1]} : vector<1x96xf32> to vector<1x32xf32>
    %17 = vector.broadcast %16 : vector<1x32xf32> to vector<64x32xf32>
    %18 = arith.addf %15, %17 : vector<64x32xf32>
    %19 = vector.extract_strided_slice %13 {offsets = [0, 0], sizes = [64, 32], strides = [1, 1]} : vector<64x64xf32> to vector<64x32xf32>
    %20 = vector.extract_strided_slice %13 {offsets = [0, 32], sizes = [64, 32], strides = [1, 1]} : vector<64x64xf32> to vector<64x32xf32>
    %c0_13 = arith.constant 0 : index
    %c0_14 = arith.constant 0 : index
    %21 = vector.load %arg6[%c0_13, %c0_14] : memref<32x32xf32, #tpu.memory_space<vmem>>, vector<32x32xf32>
    %22 = vector.extract_strided_slice %19 {offsets = [0, 0], sizes = [64, 8], strides = [1, 1]} : vector<64x32xf32> to vector<64x8xf32>
    %23 = vector.extract_strided_slice %20 {offsets = [0, 0], sizes = [64, 8], strides = [1, 1]} : vector<64x32xf32> to vector<64x8xf32>
    %cst_15 = arith.constant dense<0.000000e+00> : vector<64x64xf32>
    %24 = tpu.matmul %22, %23, %cst_15 {dimension_numbers = #tpu.dot_dimension_numbers<[1], [1], [0], [0], [0, 0, 1, 0], [], []>} : vector<64x8xf32>, vector<64x8xf32>, vector<64x64xf32> -> vector<64x64xf32>
    %25 = vector.broadcast %5 : vector<1x64xf32> to vector<64x64xf32>
    %26 = arith.addf %24, %25 : vector<64x64xf32>
    %cst_16 = arith.constant dense<0xFF800000> : vector<64xf32>
    %27 = vector.multi_reduction <maximumf>, %26, %cst_16 [1] : vector<64x64xf32> to vector<64xf32>
    %28 = vector.shape_cast %27 : vector<64xf32> to vector<64x1xf32>
    %29 = vector.broadcast %28 : vector<64x1xf32> to vector<64x64xf32>
    %30 = arith.subf %26, %29 : vector<64x64xf32>
    %31 = math.exp %30 : vector<64x64xf32>
    %cst_17 = arith.constant dense<0.000000e+00> : vector<64xf32>
    %32 = vector.multi_reduction <add>, %31, %cst_17 [1] : vector<64x64xf32> to vector<64xf32>
    %33 = vector.shape_cast %32 : vector<64xf32> to vector<64x1xf32>
    %34 = tpu.reciprocal %33 {approx = true} : vector<64x1xf32> -> vector<64x1xf32>
    %35 = vector.broadcast %34 : vector<64x1xf32> to vector<64x64xf32>
    %36 = arith.mulf %31, %35 : vector<64x64xf32>
    %37 = vector.extract_strided_slice %18 {offsets = [0, 0], sizes = [64, 8], strides = [1, 1]} : vector<64x32xf32> to vector<64x8xf32>
    %cst_18 = arith.constant dense<0.000000e+00> : vector<64x8xf32>
    %38 = tpu.matmul %36, %37, %cst_18 {dimension_numbers = #tpu.dot_dimension_numbers<[1], [0], [0], [1], [0, 0, 1, 1], [], []>} : vector<64x64xf32>, vector<64x8xf32>, vector<64x8xf32> -> vector<64x8xf32>
    %39 = vector.extract_strided_slice %21 {offsets = [0, 0], sizes = [8, 32], strides = [1, 1]} : vector<32x32xf32> to vector<8x32xf32>
    %cst_19 = arith.constant dense<0.000000e+00> : vector<64x32xf32>
    %40 = tpu.matmul %38, %39, %cst_19 {dimension_numbers = #tpu.dot_dimension_numbers<[1], [0], [0], [1], [0, 0, 1, 1], [], []>} : vector<64x8xf32>, vector<8x32xf32>, vector<64x32xf32> -> vector<64x32xf32>
    %41 = vector.extract_strided_slice %19 {offsets = [0, 8], sizes = [64, 8], strides = [1, 1]} : vector<64x32xf32> to vector<64x8xf32>
    %42 = vector.extract_strided_slice %20 {offsets = [0, 8], sizes = [64, 8], strides = [1, 1]} : vector<64x32xf32> to vector<64x8xf32>
    %cst_20 = arith.constant dense<0.000000e+00> : vector<64x64xf32>
    %43 = tpu.matmul %41, %42, %cst_20 {dimension_numbers = #tpu.dot_dimension_numbers<[1], [1], [0], [0], [0, 0, 1, 0], [], []>} : vector<64x8xf32>, vector<64x8xf32>, vector<64x64xf32> -> vector<64x64xf32>
    %44 = vector.broadcast %5 : vector<1x64xf32> to vector<64x64xf32>
    %45 = arith.addf %43, %44 : vector<64x64xf32>
    %cst_21 = arith.constant dense<0xFF800000> : vector<64xf32>
    %46 = vector.multi_reduction <maximumf>, %45, %cst_21 [1] : vector<64x64xf32> to vector<64xf32>
    %47 = vector.shape_cast %46 : vector<64xf32> to vector<64x1xf32>
    %48 = vector.broadcast %47 : vector<64x1xf32> to vector<64x64xf32>
    %49 = arith.subf %45, %48 : vector<64x64xf32>
    %50 = math.exp %49 : vector<64x64xf32>
    %cst_22 = arith.constant dense<0.000000e+00> : vector<64xf32>
    %51 = vector.multi_reduction <add>, %50, %cst_22 [1] : vector<64x64xf32> to vector<64xf32>
    %52 = vector.shape_cast %51 : vector<64xf32> to vector<64x1xf32>
    %53 = tpu.reciprocal %52 {approx = true} : vector<64x1xf32> -> vector<64x1xf32>
    %54 = vector.broadcast %53 : vector<64x1xf32> to vector<64x64xf32>
    %55 = arith.mulf %50, %54 : vector<64x64xf32>
    %56 = vector.extract_strided_slice %18 {offsets = [0, 8], sizes = [64, 8], strides = [1, 1]} : vector<64x32xf32> to vector<64x8xf32>
    %cst_23 = arith.constant dense<0.000000e+00> : vector<64x8xf32>
    %57 = tpu.matmul %55, %56, %cst_23 {dimension_numbers = #tpu.dot_dimension_numbers<[1], [0], [0], [1], [0, 0, 1, 1], [], []>} : vector<64x64xf32>, vector<64x8xf32>, vector<64x8xf32> -> vector<64x8xf32>
    %58 = vector.extract_strided_slice %21 {offsets = [8, 0], sizes = [8, 32], strides = [1, 1]} : vector<32x32xf32> to vector<8x32xf32>
    %cst_24 = arith.constant dense<0.000000e+00> : vector<64x32xf32>
    %59 = tpu.matmul %57, %58, %cst_24 {dimension_numbers = #tpu.dot_dimension_numbers<[1], [0], [0], [1], [0, 0, 1, 1], [], []>} : vector<64x8xf32>, vector<8x32xf32>, vector<64x32xf32> -> vector<64x32xf32>
    %60 = arith.addf %40, %59 : vector<64x32xf32>
    %61 = vector.extract_strided_slice %19 {offsets = [0, 16], sizes = [64, 8], strides = [1, 1]} : vector<64x32xf32> to vector<64x8xf32>
    %62 = vector.extract_strided_slice %20 {offsets = [0, 16], sizes = [64, 8], strides = [1, 1]} : vector<64x32xf32> to vector<64x8xf32>
    %cst_25 = arith.constant dense<0.000000e+00> : vector<64x64xf32>
    %63 = tpu.matmul %61, %62, %cst_25 {dimension_numbers = #tpu.dot_dimension_numbers<[1], [1], [0], [0], [0, 0, 1, 0], [], []>} : vector<64x8xf32>, vector<64x8xf32>, vector<64x64xf32> -> vector<64x64xf32>
    %64 = vector.broadcast %5 : vector<1x64xf32> to vector<64x64xf32>
    %65 = arith.addf %63, %64 : vector<64x64xf32>
    %cst_26 = arith.constant dense<0xFF800000> : vector<64xf32>
    %66 = vector.multi_reduction <maximumf>, %65, %cst_26 [1] : vector<64x64xf32> to vector<64xf32>
    %67 = vector.shape_cast %66 : vector<64xf32> to vector<64x1xf32>
    %68 = vector.broadcast %67 : vector<64x1xf32> to vector<64x64xf32>
    %69 = arith.subf %65, %68 : vector<64x64xf32>
    %70 = math.exp %69 : vector<64x64xf32>
    %cst_27 = arith.constant dense<0.000000e+00> : vector<64xf32>
    %71 = vector.multi_reduction <add>, %70, %cst_27 [1] : vector<64x64xf32> to vector<64xf32>
    %72 = vector.shape_cast %71 : vector<64xf32> to vector<64x1xf32>
    %73 = tpu.reciprocal %72 {approx = true} : vector<64x1xf32> -> vector<64x1xf32>
    %74 = vector.broadcast %73 : vector<64x1xf32> to vector<64x64xf32>
    %75 = arith.mulf %70, %74 : vector<64x64xf32>
    %76 = vector.extract_strided_slice %18 {offsets = [0, 16], sizes = [64, 8], strides = [1, 1]} : vector<64x32xf32> to vector<64x8xf32>
    %cst_28 = arith.constant dense<0.000000e+00> : vector<64x8xf32>
    %77 = tpu.matmul %75, %76, %cst_28 {dimension_numbers = #tpu.dot_dimension_numbers<[1], [0], [0], [1], [0, 0, 1, 1], [], []>} : vector<64x64xf32>, vector<64x8xf32>, vector<64x8xf32> -> vector<64x8xf32>
    %78 = vector.extract_strided_slice %21 {offsets = [16, 0], sizes = [8, 32], strides = [1, 1]} : vector<32x32xf32> to vector<8x32xf32>
    %cst_29 = arith.constant dense<0.000000e+00> : vector<64x32xf32>
    %79 = tpu.matmul %77, %78, %cst_29 {dimension_numbers = #tpu.dot_dimension_numbers<[1], [0], [0], [1], [0, 0, 1, 1], [], []>} : vector<64x8xf32>, vector<8x32xf32>, vector<64x32xf32> -> vector<64x32xf32>
    %80 = arith.addf %60, %79 : vector<64x32xf32>
    %81 = vector.extract_strided_slice %19 {offsets = [0, 24], sizes = [64, 8], strides = [1, 1]} : vector<64x32xf32> to vector<64x8xf32>
    %82 = vector.extract_strided_slice %20 {offsets = [0, 24], sizes = [64, 8], strides = [1, 1]} : vector<64x32xf32> to vector<64x8xf32>
    %cst_30 = arith.constant dense<0.000000e+00> : vector<64x64xf32>
    %83 = tpu.matmul %81, %82, %cst_30 {dimension_numbers = #tpu.dot_dimension_numbers<[1], [1], [0], [0], [0, 0, 1, 0], [], []>} : vector<64x8xf32>, vector<64x8xf32>, vector<64x64xf32> -> vector<64x64xf32>
    %84 = vector.broadcast %5 : vector<1x64xf32> to vector<64x64xf32>
    %85 = arith.addf %83, %84 : vector<64x64xf32>
    %cst_31 = arith.constant dense<0xFF800000> : vector<64xf32>
    %86 = vector.multi_reduction <maximumf>, %85, %cst_31 [1] : vector<64x64xf32> to vector<64xf32>
    %87 = vector.shape_cast %86 : vector<64xf32> to vector<64x1xf32>
    %88 = vector.broadcast %87 : vector<64x1xf32> to vector<64x64xf32>
    %89 = arith.subf %85, %88 : vector<64x64xf32>
    %90 = math.exp %89 : vector<64x64xf32>
    %cst_32 = arith.constant dense<0.000000e+00> : vector<64xf32>
    %91 = vector.multi_reduction <add>, %90, %cst_32 [1] : vector<64x64xf32> to vector<64xf32>
    %92 = vector.shape_cast %91 : vector<64xf32> to vector<64x1xf32>
    %93 = tpu.reciprocal %92 {approx = true} : vector<64x1xf32> -> vector<64x1xf32>
    %94 = vector.broadcast %93 : vector<64x1xf32> to vector<64x64xf32>
    %95 = arith.mulf %90, %94 : vector<64x64xf32>
    %96 = vector.extract_strided_slice %18 {offsets = [0, 24], sizes = [64, 8], strides = [1, 1]} : vector<64x32xf32> to vector<64x8xf32>
    %cst_33 = arith.constant dense<0.000000e+00> : vector<64x8xf32>
    %97 = tpu.matmul %95, %96, %cst_33 {dimension_numbers = #tpu.dot_dimension_numbers<[1], [0], [0], [1], [0, 0, 1, 1], [], []>} : vector<64x64xf32>, vector<64x8xf32>, vector<64x8xf32> -> vector<64x8xf32>
    %98 = vector.extract_strided_slice %21 {offsets = [24, 0], sizes = [8, 32], strides = [1, 1]} : vector<32x32xf32> to vector<8x32xf32>
    %cst_34 = arith.constant dense<0.000000e+00> : vector<64x32xf32>
    %99 = tpu.matmul %97, %98, %cst_34 {dimension_numbers = #tpu.dot_dimension_numbers<[1], [0], [0], [1], [0, 0, 1, 1], [], []>} : vector<64x8xf32>, vector<8x32xf32>, vector<64x32xf32> -> vector<64x32xf32>
    %100 = arith.addf %80, %99 : vector<64x32xf32>
    %c0_35 = arith.constant 0 : index
    %c0_36 = arith.constant 0 : index
    %101 = vector.load %arg7[%c0_35, %c0_36] : memref<1x32xf32, #tpu.memory_space<vmem>>, vector<1x32xf32>
    %102 = vector.broadcast %101 : vector<1x32xf32> to vector<64x32xf32>
    %103 = arith.addf %100, %102 : vector<64x32xf32>
    %104 = arith.addf %1, %103 : vector<64x32xf32>
    %c0_37 = arith.constant 0 : index
    %c0_38 = arith.constant 0 : index
    %105 = vector.load %arg8[%c0_37, %c0_38] : memref<1x32xf32, #tpu.memory_space<vmem>>, vector<1x32xf32>
    %c0_39 = arith.constant 0 : index
    %c0_40 = arith.constant 0 : index
    %106 = vector.load %arg9[%c0_39, %c0_40] : memref<1x32xf32, #tpu.memory_space<vmem>>, vector<1x32xf32>
    %cst_41 = arith.constant dense<0.000000e+00> : vector<64xf32>
    %107 = vector.multi_reduction <add>, %104, %cst_41 [1] : vector<64x32xf32> to vector<64xf32>
    %108 = vector.shape_cast %107 : vector<64xf32> to vector<64x1xf32>
    %cst_42 = arith.constant 3.200000e+01 : f32
    %109 = vector.broadcast %cst_42 : f32 to vector<64x1xf32>
    %110 = arith.divf %108, %109 : vector<64x1xf32>
    %111 = vector.broadcast %110 : vector<64x1xf32> to vector<64x32xf32>
    %112 = arith.subf %104, %111 : vector<64x32xf32>
    %113 = arith.mulf %112, %112 : vector<64x32xf32>
    %cst_43 = arith.constant dense<0.000000e+00> : vector<64xf32>
    %114 = vector.multi_reduction <add>, %113, %cst_43 [1] : vector<64x32xf32> to vector<64xf32>
    %115 = vector.shape_cast %114 : vector<64xf32> to vector<64x1xf32>
    %cst_44 = arith.constant 3.200000e+01 : f32
    %116 = vector.broadcast %cst_44 : f32 to vector<64x1xf32>
    %117 = arith.divf %115, %116 : vector<64x1xf32>
    %118 = vector.broadcast %110 : vector<64x1xf32> to vector<64x32xf32>
    %119 = arith.subf %104, %118 : vector<64x32xf32>
    %cst_45 = arith.constant 9.99999974E-6 : f32
    %120 = vector.broadcast %cst_45 : f32 to vector<64x1xf32>
    %121 = arith.addf %117, %120 : vector<64x1xf32>
    %122 = math.rsqrt %121 : vector<64x1xf32>
    %123 = vector.broadcast %122 : vector<64x1xf32> to vector<64x32xf32>
    %124 = arith.mulf %119, %123 : vector<64x32xf32>
    %125 = vector.broadcast %105 : vector<1x32xf32> to vector<64x32xf32>
    %126 = arith.mulf %124, %125 : vector<64x32xf32>
    %127 = vector.broadcast %106 : vector<1x32xf32> to vector<64x32xf32>
    %128 = arith.addf %126, %127 : vector<64x32xf32>
    %c0_46 = arith.constant 0 : index
    %c0_47 = arith.constant 0 : index
    %129 = vector.load %arg10[%c0_46, %c0_47] : memref<32x64xf32, #tpu.memory_space<vmem>>, vector<32x64xf32>
    %cst_48 = arith.constant dense<0.000000e+00> : vector<64x64xf32>
    %130 = tpu.matmul %128, %129, %cst_48 {dimension_numbers = #tpu.dot_dimension_numbers<[1], [0], [0], [1], [0, 0, 1, 1], [], []>} : vector<64x32xf32>, vector<32x64xf32>, vector<64x64xf32> -> vector<64x64xf32>
    %c0_49 = arith.constant 0 : index
    %c0_50 = arith.constant 0 : index
    %131 = vector.load %arg11[%c0_49, %c0_50] : memref<1x64xf32, #tpu.memory_space<vmem>>, vector<1x64xf32>
    %132 = vector.broadcast %131 : vector<1x64xf32> to vector<64x64xf32>
    %133 = arith.addf %130, %132 : vector<64x64xf32>
    %cst_51 = arith.constant 0.000000e+00 : f32
    %134 = vector.broadcast %cst_51 : f32 to vector<64x64xf32>
    %135 = arith.maximumf %133, %134 : vector<64x64xf32>
    %c0_52 = arith.constant 0 : index
    %c0_53 = arith.constant 0 : index
    %136 = vector.load %arg12[%c0_52, %c0_53] : memref<64x32xf32, #tpu.memory_space<vmem>>, vector<64x32xf32>
    %cst_54 = arith.constant dense<0.000000e+00> : vector<64x32xf32>
    %137 = tpu.matmul %135, %136, %cst_54 {dimension_numbers = #tpu.dot_dimension_numbers<[1], [0], [0], [1], [0, 0, 1, 1], [], []>} : vector<64x64xf32>, vector<64x32xf32>, vector<64x32xf32> -> vector<64x32xf32>
    %c0_55 = arith.constant 0 : index
    %c0_56 = arith.constant 0 : index
    %138 = vector.load %arg13[%c0_55, %c0_56] : memref<1x32xf32, #tpu.memory_space<vmem>>, vector<1x32xf32>
    %139 = vector.broadcast %138 : vector<1x32xf32> to vector<64x32xf32>
    %140 = arith.addf %137, %139 : vector<64x32xf32>
    %141 = arith.addf %128, %140 : vector<64x32xf32>
    %c0_57 = arith.constant 0 : index
    %c0_58 = arith.constant 0 : index
    %142 = vector.load %arg14[%c0_57, %c0_58] : memref<1x32xf32, #tpu.memory_space<vmem>>, vector<1x32xf32>
    %c0_59 = arith.constant 0 : index
    %c0_60 = arith.constant 0 : index
    %143 = vector.load %arg15[%c0_59, %c0_60] : memref<1x32xf32, #tpu.memory_space<vmem>>, vector<1x32xf32>
    %cst_61 = arith.constant dense<0.000000e+00> : vector<64xf32>
    %144 = vector.multi_reduction <add>, %141, %cst_61 [1] : vector<64x32xf32> to vector<64xf32>
    %145 = vector.shape_cast %144 : vector<64xf32> to vector<64x1xf32>
    %cst_62 = arith.constant 3.200000e+01 : f32
    %146 = vector.broadcast %cst_62 : f32 to vector<64x1xf32>
    %147 = arith.divf %145, %146 : vector<64x1xf32>
    %148 = vector.broadcast %147 : vector<64x1xf32> to vector<64x32xf32>
    %149 = arith.subf %141, %148 : vector<64x32xf32>
    %150 = arith.mulf %149, %149 : vector<64x32xf32>
    %cst_63 = arith.constant dense<0.000000e+00> : vector<64xf32>
    %151 = vector.multi_reduction <add>, %150, %cst_63 [1] : vector<64x32xf32> to vector<64xf32>
    %152 = vector.shape_cast %151 : vector<64xf32> to vector<64x1xf32>
    %cst_64 = arith.constant 3.200000e+01 : f32
    %153 = vector.broadcast %cst_64 : f32 to vector<64x1xf32>
    %154 = arith.divf %152, %153 : vector<64x1xf32>
    %155 = vector.broadcast %147 : vector<64x1xf32> to vector<64x32xf32>
    %156 = arith.subf %141, %155 : vector<64x32xf32>
    %cst_65 = arith.constant 9.99999974E-6 : f32
    %157 = vector.broadcast %cst_65 : f32 to vector<64x1xf32>
    %158 = arith.addf %154, %157 : vector<64x1xf32>
    %159 = math.rsqrt %158 : vector<64x1xf32>
    %160 = vector.broadcast %159 : vector<64x1xf32> to vector<64x32xf32>
    %161 = arith.mulf %156, %160 : vector<64x32xf32>
    %162 = vector.broadcast %142 : vector<1x32xf32> to vector<64x32xf32>
    %163 = arith.mulf %161, %162 : vector<64x32xf32>
    %164 = vector.broadcast %143 : vector<1x32xf32> to vector<64x32xf32>
    %165 = arith.addf %163, %164 : vector<64x32xf32>
    %c0_66 = arith.constant 0 : index
    %c0_67 = arith.constant 0 : index
    %c0_68 = arith.constant 0 : index
    %166 = vector.load %arg16[%c0_66, %c0_67, %c0_68] : memref<1x64x32xf32, #tpu.memory_space<vmem>>, vector<1x64x32xf32>
    %167 = vector.shape_cast %166 : vector<1x64x32xf32> to vector<64x32xf32>
    %168 = vector.shape_cast %165 : vector<64x32xf32> to vector<1x64x32xf32>
    tpu.vector_store %arg16[%c0_66, %c0_67, %c0_68], %168 {strides = array<i32>} : memref<1x64x32xf32, #tpu.memory_space<vmem>>, vector<1x64x32xf32>,
    return
  }
  func.func @transform_0(%arg0: i32) -> (i32, i32, i32) {
    %c0_i32 = arith.constant 0 : i32
    %c0_i32_0 = arith.constant 0 : i32
    %c0_i32_1 = arith.constant 0 : i32
    return %arg0, %c0_i32, %c0_i32_0 : i32, i32, i32
  }
  func.func @transform_1(%arg0: i32) -> (i32, i32, i32) {
    %c0_i32 = arith.constant 0 : i32
    %c0_i32_0 = arith.constant 0 : i32
    %c0_i32_1 = arith.constant 0 : i32
    return %arg0, %c0_i32, %c0_i32_0 : i32, i32, i32
  }
  func.func @transform_2(%arg0: i32) -> (i32, i32, i32) {
    %c0_i32 = arith.constant 0 : i32
    %c0_i32_0 = arith.constant 0 : i32
    %c0_i32_1 = arith.constant 0 : i32
    return %arg0, %c0_i32, %c0_i32_0 : i32, i32, i32
  }
  func.func @transform_3(%arg0: i32) -> (i32, i32) {
    %c0_i32 = arith.constant 0 : i32
    %c0_i32_0 = arith.constant 0 : i32
    %c0_i32_1 = arith.constant 0 : i32
    return %c0_i32, %c0_i32_0 : i32, i32
  }
  func.func @transform_4(%arg0: i32) -> (i32, i32) {
    %c0_i32 = arith.constant 0 : i32
    %c0_i32_0 = arith.constant 0 : i32
    %c0_i32_1 = arith.constant 0 : i32
    return %c0_i32, %c0_i32_0 : i32, i32
  }
  func.func @transform_5(%arg0: i32) -> (i32, i32) {
    %c0_i32 = arith.constant 0 : i32
    %c0_i32_0 = arith.constant 0 : i32
    %c0_i32_1 = arith.constant 0 : i32
    return %c0_i32, %c0_i32_0 : i32, i32
  }
  func.func @transform_6(%arg0: i32) -> (i32, i32) {
    %c0_i32 = arith.constant 0 : i32
    %c0_i32_0 = arith.constant 0 : i32
    %c0_i32_1 = arith.constant 0 : i32
    return %c0_i32, %c0_i32_0 : i32, i32
  }
  func.func @transform_7(%arg0: i32) -> (i32, i32) {
    %c0_i32 = arith.constant 0 : i32
    %c0_i32_0 = arith.constant 0 : i32
    %c0_i32_1 = arith.constant 0 : i32
    return %c0_i32, %c0_i32_0 : i32, i32
  }
  func.func @transform_8(%arg0: i32) -> (i32, i32) {
    %c0_i32 = arith.constant 0 : i32
    %c0_i32_0 = arith.constant 0 : i32
    %c0_i32_1 = arith.constant 0 : i32
    return %c0_i32, %c0_i32_0 : i32, i32
  }
  func.func @transform_9(%arg0: i32) -> (i32, i32) {
    %c0_i32 = arith.constant 0 : i32
    %c0_i32_0 = arith.constant 0 : i32
    %c0_i32_1 = arith.constant 0 : i32
    return %c0_i32, %c0_i32_0 : i32, i32
  }
  func.func @transform_10(%arg0: i32) -> (i32, i32) {
    %c0_i32 = arith.constant 0 : i32
    %c0_i32_0 = arith.constant 0 : i32
    %c0_i32_1 = arith.constant 0 : i32
    return %c0_i32, %c0_i32_0 : i32, i32
  }
  func.func @transform_11(%arg0: i32) -> (i32, i32) {
    %c0_i32 = arith.constant 0 : i32
    %c0_i32_0 = arith.constant 0 : i32
    %c0_i32_1 = arith.constant 0 : i32
    return %c0_i32, %c0_i32_0 : i32, i32
  }
  func.func @transform_12(%arg0: i32) -> (i32, i32) {
    %c0_i32 = arith.constant 0 : i32
    %c0_i32_0 = arith.constant 0 : i32
    %c0_i32_1 = arith.constant 0 : i32
    return %c0_i32, %c0_i32_0 : i32, i32
  }
  func.func @transform_13(%arg0: i32) -> (i32, i32) {
    %c0_i32 = arith.constant 0 : i32
    %c0_i32_0 = arith.constant 0 : i32
    %c0_i32_1 = arith.constant 0 : i32
    return %c0_i32, %c0_i32_0 : i32, i32
  }
  func.func @transform_14(%arg0: i32) -> (i32, i32) {
    %c0_i32 = arith.constant 0 : i32
    %c0_i32_0 = arith.constant 0 : i32
    %c0_i32_1 = arith.constant 0 : i32
    return %c0_i32, %c0_i32_0 : i32, i32
  }
  func.func @transform_15(%arg0: i32) -> (i32, i32, i32) {
    %c0_i32 = arith.constant 0 : i32
    %c0_i32_0 = arith.constant 0 : i32
    %c0_i32_1 = arith.constant 0 : i32
    return %arg0, %c0_i32, %c0_i32_0 : i32, i32, i32
  }
}

module attributes {stable_mosaic.version = 11 : i64} {
  func.func @_decoder_layer_kernel(%arg0: i32, %arg1: memref<1x16x32xf32, #tpu.memory_space<vmem>>, %arg2: memref<1x16x32xf32, #tpu.memory_space<vmem>>, %arg3: memref<1x64x32xf32, #tpu.memory_space<vmem>>, %arg4: memref<1x64x32xf32, #tpu.memory_space<vmem>>, %arg5: memref<1x1x64xf32, #tpu.memory_space<vmem>>, %arg6: memref<32x96xf32, #tpu.memory_space<vmem>>, %arg7: memref<1x96xf32, #tpu.memory_space<vmem>>, %arg8: memref<32x32xf32, #tpu.memory_space<vmem>>, %arg9: memref<1x32xf32, #tpu.memory_space<vmem>>, %arg10: memref<1x32xf32, #tpu.memory_space<vmem>>, %arg11: memref<1x32xf32, #tpu.memory_space<vmem>>, %arg12: memref<32x96xf32, #tpu.memory_space<vmem>>, %arg13: memref<1x96xf32, #tpu.memory_space<vmem>>, %arg14: memref<32x32xf32, #tpu.memory_space<vmem>>, %arg15: memref<1x32xf32, #tpu.memory_space<vmem>>, %arg16: memref<1x32xf32, #tpu.memory_space<vmem>>, %arg17: memref<1x32xf32, #tpu.memory_space<vmem>>, %arg18: memref<32x64xf32, #tpu.memory_space<vmem>>, %arg19: memref<1x64xf32, #tpu.memory_space<vmem>>, %arg20: memref<64x32xf32, #tpu.memory_space<vmem>>, %arg21: memref<1x32xf32, #tpu.memory_space<vmem>>, %arg22: memref<1x32xf32, #tpu.memory_space<vmem>>, %arg23: memref<1x32xf32, #tpu.memory_space<vmem>>, %arg24: memref<1x16x32xf32, #tpu.memory_space<vmem>>) attributes {dimension_semantics = [#tpu.dimension_semantics<parallel>], iteration_bounds = array<i64: 2>, scalar_prefetch = 0 : i64, scratch_operands = 0 : i64, tpu.core_type = #tpu.core_type<tc>, window_params = [{transform_indices = @transform_0, window_bounds = array<i64: 1, 16, 32>}, {transform_indices = @transform_1, window_bounds = array<i64: 1, 16, 32>}, {transform_indices = @transform_2, window_bounds = array<i64: 1, 64, 32>}, {transform_indices = @transform_3, window_bounds = array<i64: 1, 64, 32>}, {transform_indices = @transform_4, window_bounds = array<i64: 1, 1, 64>}, {pipeline_mode = #tpu.pipeline_mode<synchronous>, transform_indices = @transform_5, window_bounds = array<i64: 32, 96>}, {pipeline_mode = #tpu.pipeline_mode<synchronous>, transform_indices = @transform_6, window_bounds = array<i64: 1, 96>}, {pipeline_mode = #tpu.pipeline_mode<synchronous>, transform_indices = @transform_7, window_bounds = array<i64: 32, 32>}, {pipeline_mode = #tpu.pipeline_mode<synchronous>, transform_indices = @transform_8, window_bounds = array<i64: 1, 32>}, {pipeline_mode = #tpu.pipeline_mode<synchronous>, transform_indices = @transform_9, window_bounds = array<i64: 1, 32>}, {pipeline_mode = #tpu.pipeline_mode<synchronous>, transform_indices = @transform_10, window_bounds = array<i64: 1, 32>}, {pipeline_mode = #tpu.pipeline_mode<synchronous>, transform_indices = @transform_11, window_bounds = array<i64: 32, 96>}, {pipeline_mode = #tpu.pipeline_mode<synchronous>, transform_indices = @transform_12, window_bounds = array<i64: 1, 96>}, {pipeline_mode = #tpu.pipeline_mode<synchronous>, transform_indices = @transform_13, window_bounds = array<i64: 32, 32>}, {pipeline_mode = #tpu.pipeline_mode<synchronous>, transform_indices = @transform_14, window_bounds = array<i64: 1, 32>}, {pipeline_mode = #tpu.pipeline_mode<synchronous>, transform_indices = @transform_15, window_bounds = array<i64: 1, 32>}, {pipeline_mode = #tpu.pipeline_mode<synchronous>, transform_indices = @transform_16, window_bounds = array<i64: 1, 32>}, {pipeline_mode = #tpu.pipeline_mode<synchronous>, transform_indices = @transform_17, window_bounds = array<i64: 32, 64>}, {pipeline_mode = #tpu.pipeline_mode<synchronous>, transform_indices = @transform_18, window_bounds = array<i64: 1, 64>}, {pipeline_mode = #tpu.pipeline_mode<synchronous>, transform_indices = @transform_19, window_bounds = array<i64: 64, 32>}, {pipeline_mode = #tpu.pipeline_mode<synchronous>, transform_indices = @transform_20, window_bounds = array<i64: 1, 32>}, {pipeline_mode = #tpu.pipeline_mode<synchronous>, transform_indices = @transform_21, window_bounds = array<i64: 1, 32>}, {pipeline_mode = #tpu.pipeline_mode<synchronous>, transform_indices = @transform_22, window_bounds = array<i64: 1, 32>}, {transform_indices = @transform_23, window_bounds = array<i64: 1, 16, 32>}]} {
    %c0 = arith.constant 0 : index
    %c0_0 = arith.constant 0 : index
    %c0_1 = arith.constant 0 : index
    %0 = vector.load %arg1[%c0, %c0_0, %c0_1] : memref<1x16x32xf32, #tpu.memory_space<vmem>>, vector<1x16x32xf32>
    %1 = vector.shape_cast %0 : vector<1x16x32xf32> to vector<16x32xf32>
    %c0_2 = arith.constant 0 : index
    %c0_3 = arith.constant 0 : index
    %c0_4 = arith.constant 0 : index
    %2 = vector.load %arg2[%c0_2, %c0_3, %c0_4] : memref<1x16x32xf32, #tpu.memory_space<vmem>>, vector<1x16x32xf32>
    %3 = vector.shape_cast %2 : vector<1x16x32xf32> to vector<16x32xf32>
    %c0_5 = arith.constant 0 : index
    %c0_6 = arith.constant 0 : index
    %c0_7 = arith.constant 0 : index
    %4 = vector.load %arg3[%c0_5, %c0_6, %c0_7] : memref<1x64x32xf32, #tpu.memory_space<vmem>>, vector<1x64x32xf32>
    %5 = vector.shape_cast %4 : vector<1x64x32xf32> to vector<64x32xf32>
    %c0_8 = arith.constant 0 : index
    %c0_9 = arith.constant 0 : index
    %c0_10 = arith.constant 0 : index
    %6 = vector.load %arg4[%c0_8, %c0_9, %c0_10] : memref<1x64x32xf32, #tpu.memory_space<vmem>>, vector<1x64x32xf32>
    %7 = vector.shape_cast %6 : vector<1x64x32xf32> to vector<64x32xf32>
    %c0_11 = arith.constant 0 : index
    %c0_12 = arith.constant 0 : index
    %c0_13 = arith.constant 0 : index
    %8 = vector.load %arg5[%c0_11, %c0_12, %c0_13] : memref<1x1x64xf32, #tpu.memory_space<vmem>>, vector<1x1x64xf32>
    %9 = vector.shape_cast %8 : vector<1x1x64xf32> to vector<1x64xf32>
    %c0_14 = arith.constant 0 : index
    %c0_15 = arith.constant 0 : index
    %10 = vector.load %arg6[%c0_14, %c0_15] : memref<32x96xf32, #tpu.memory_space<vmem>>, vector<32x96xf32>
    %c0_16 = arith.constant 0 : index
    %c0_17 = arith.constant 0 : index
    %11 = vector.load %arg7[%c0_16, %c0_17] : memref<1x96xf32, #tpu.memory_space<vmem>>, vector<1x96xf32>
    %12 = arith.addf %1, %3 : vector<16x32xf32>
    %13 = vector.extract_strided_slice %10 {offsets = [0, 0], sizes = [32, 64], strides = [1, 1]} : vector<32x96xf32> to vector<32x64xf32>
    %cst = arith.constant dense<0.000000e+00> : vector<16x64xf32>
    %14 = tpu.matmul %12, %13, %cst {dimension_numbers = #tpu.dot_dimension_numbers<[1], [0], [0], [1], [0, 0, 1, 1], [], []>} : vector<16x32xf32>, vector<32x64xf32>, vector<16x64xf32> -> vector<16x64xf32>
    %15 = vector.extract_strided_slice %11 {offsets = [0, 0], sizes = [1, 64], strides = [1, 1]} : vector<1x96xf32> to vector<1x64xf32>
    %16 = vector.broadcast %15 : vector<1x64xf32> to vector<16x64xf32>
    %17 = arith.addf %14, %16 : vector<16x64xf32>
    %18 = vector.extract_strided_slice %10 {offsets = [0, 64], sizes = [32, 32], strides = [1, 1]} : vector<32x96xf32> to vector<32x32xf32>
    %cst_18 = arith.constant dense<0.000000e+00> : vector<16x32xf32>
    %19 = tpu.matmul %1, %18, %cst_18 {dimension_numbers = #tpu.dot_dimension_numbers<[1], [0], [0], [1], [0, 0, 1, 1], [], []>} : vector<16x32xf32>, vector<32x32xf32>, vector<16x32xf32> -> vector<16x32xf32>
    %20 = vector.extract_strided_slice %11 {offsets = [0, 64], sizes = [1, 32], strides = [1, 1]} : vector<1x96xf32> to vector<1x32xf32>
    %21 = vector.broadcast %20 : vector<1x32xf32> to vector<16x32xf32>
    %22 = arith.addf %19, %21 : vector<16x32xf32>
    %23 = vector.extract_strided_slice %17 {offsets = [0, 0], sizes = [16, 32], strides = [1, 1]} : vector<16x64xf32> to vector<16x32xf32>
    %24 = vector.extract_strided_slice %17 {offsets = [0, 32], sizes = [16, 32], strides = [1, 1]} : vector<16x64xf32> to vector<16x32xf32>
    %c0_19 = arith.constant 0 : index
    %c0_20 = arith.constant 0 : index
    %25 = vector.load %arg8[%c0_19, %c0_20] : memref<32x32xf32, #tpu.memory_space<vmem>>, vector<32x32xf32>
    %26 = vector.extract_strided_slice %23 {offsets = [0, 0], sizes = [16, 8], strides = [1, 1]} : vector<16x32xf32> to vector<16x8xf32>
    %27 = vector.extract_strided_slice %24 {offsets = [0, 0], sizes = [16, 8], strides = [1, 1]} : vector<16x32xf32> to vector<16x8xf32>
    %cst_21 = arith.constant dense<0.000000e+00> : vector<16x16xf32>
    %28 = tpu.matmul %26, %27, %cst_21 {dimension_numbers = #tpu.dot_dimension_numbers<[1], [1], [0], [0], [0, 0, 1, 0], [], []>} : vector<16x8xf32>, vector<16x8xf32>, vector<16x16xf32> -> vector<16x16xf32>
    %cst_22 = arith.constant dense<0xFF800000> : vector<16xf32>
    %29 = vector.multi_reduction <maximumf>, %28, %cst_22 [1] : vector<16x16xf32> to vector<16xf32>
    %30 = vector.shape_cast %29 : vector<16xf32> to vector<16x1xf32>
    %31 = vector.broadcast %30 : vector<16x1xf32> to vector<16x16xf32>
    %32 = arith.subf %28, %31 : vector<16x16xf32>
    %33 = math.exp %32 : vector<16x16xf32>
    %cst_23 = arith.constant dense<0.000000e+00> : vector<16xf32>
    %34 = vector.multi_reduction <add>, %33, %cst_23 [1] : vector<16x16xf32> to vector<16xf32>
    %35 = vector.shape_cast %34 : vector<16xf32> to vector<16x1xf32>
    %36 = tpu.reciprocal %35 {approx = true} : vector<16x1xf32> -> vector<16x1xf32>
    %37 = vector.broadcast %36 : vector<16x1xf32> to vector<16x16xf32>
    %38 = arith.mulf %33, %37 : vector<16x16xf32>
    %39 = vector.extract_strided_slice %22 {offsets = [0, 0], sizes = [16, 8], strides = [1, 1]} : vector<16x32xf32> to vector<16x8xf32>
    %cst_24 = arith.constant dense<0.000000e+00> : vector<16x8xf32>
    %40 = tpu.matmul %38, %39, %cst_24 {dimension_numbers = #tpu.dot_dimension_numbers<[1], [0], [0], [1], [0, 0, 1, 1], [], []>} : vector<16x16xf32>, vector<16x8xf32>, vector<16x8xf32> -> vector<16x8xf32>
    %41 = vector.extract_strided_slice %25 {offsets = [0, 0], sizes = [8, 32], strides = [1, 1]} : vector<32x32xf32> to vector<8x32xf32>
    %cst_25 = arith.constant dense<0.000000e+00> : vector<16x32xf32>
    %42 = tpu.matmul %40, %41, %cst_25 {dimension_numbers = #tpu.dot_dimension_numbers<[1], [0], [0], [1], [0, 0, 1, 1], [], []>} : vector<16x8xf32>, vector<8x32xf32>, vector<16x32xf32> -> vector<16x32xf32>
    %43 = vector.extract_strided_slice %23 {offsets = [0, 8], sizes = [16, 8], strides = [1, 1]} : vector<16x32xf32> to vector<16x8xf32>
    %44 = vector.extract_strided_slice %24 {offsets = [0, 8], sizes = [16, 8], strides = [1, 1]} : vector<16x32xf32> to vector<16x8xf32>
    %cst_26 = arith.constant dense<0.000000e+00> : vector<16x16xf32>
    %45 = tpu.matmul %43, %44, %cst_26 {dimension_numbers = #tpu.dot_dimension_numbers<[1], [1], [0], [0], [0, 0, 1, 0], [], []>} : vector<16x8xf32>, vector<16x8xf32>, vector<16x16xf32> -> vector<16x16xf32>
    %cst_27 = arith.constant dense<0xFF800000> : vector<16xf32>
    %46 = vector.multi_reduction <maximumf>, %45, %cst_27 [1] : vector<16x16xf32> to vector<16xf32>
    %47 = vector.shape_cast %46 : vector<16xf32> to vector<16x1xf32>
    %48 = vector.broadcast %47 : vector<16x1xf32> to vector<16x16xf32>
    %49 = arith.subf %45, %48 : vector<16x16xf32>
    %50 = math.exp %49 : vector<16x16xf32>
    %cst_28 = arith.constant dense<0.000000e+00> : vector<16xf32>
    %51 = vector.multi_reduction <add>, %50, %cst_28 [1] : vector<16x16xf32> to vector<16xf32>
    %52 = vector.shape_cast %51 : vector<16xf32> to vector<16x1xf32>
    %53 = tpu.reciprocal %52 {approx = true} : vector<16x1xf32> -> vector<16x1xf32>
    %54 = vector.broadcast %53 : vector<16x1xf32> to vector<16x16xf32>
    %55 = arith.mulf %50, %54 : vector<16x16xf32>
    %56 = vector.extract_strided_slice %22 {offsets = [0, 8], sizes = [16, 8], strides = [1, 1]} : vector<16x32xf32> to vector<16x8xf32>
    %cst_29 = arith.constant dense<0.000000e+00> : vector<16x8xf32>
    %57 = tpu.matmul %55, %56, %cst_29 {dimension_numbers = #tpu.dot_dimension_numbers<[1], [0], [0], [1], [0, 0, 1, 1], [], []>} : vector<16x16xf32>, vector<16x8xf32>, vector<16x8xf32> -> vector<16x8xf32>
    %58 = vector.extract_strided_slice %25 {offsets = [8, 0], sizes = [8, 32], strides = [1, 1]} : vector<32x32xf32> to vector<8x32xf32>
    %cst_30 = arith.constant dense<0.000000e+00> : vector<16x32xf32>
    %59 = tpu.matmul %57, %58, %cst_30 {dimension_numbers = #tpu.dot_dimension_numbers<[1], [0], [0], [1], [0, 0, 1, 1], [], []>} : vector<16x8xf32>, vector<8x32xf32>, vector<16x32xf32> -> vector<16x32xf32>
    %60 = arith.addf %42, %59 : vector<16x32xf32>
    %61 = vector.extract_strided_slice %23 {offsets = [0, 16], sizes = [16, 8], strides = [1, 1]} : vector<16x32xf32> to vector<16x8xf32>
    %62 = vector.extract_strided_slice %24 {offsets = [0, 16], sizes = [16, 8], strides = [1, 1]} : vector<16x32xf32> to vector<16x8xf32>
    %cst_31 = arith.constant dense<0.000000e+00> : vector<16x16xf32>
    %63 = tpu.matmul %61, %62, %cst_31 {dimension_numbers = #tpu.dot_dimension_numbers<[1], [1], [0], [0], [0, 0, 1, 0], [], []>} : vector<16x8xf32>, vector<16x8xf32>, vector<16x16xf32> -> vector<16x16xf32>
    %cst_32 = arith.constant dense<0xFF800000> : vector<16xf32>
    %64 = vector.multi_reduction <maximumf>, %63, %cst_32 [1] : vector<16x16xf32> to vector<16xf32>
    %65 = vector.shape_cast %64 : vector<16xf32> to vector<16x1xf32>
    %66 = vector.broadcast %65 : vector<16x1xf32> to vector<16x16xf32>
    %67 = arith.subf %63, %66 : vector<16x16xf32>
    %68 = math.exp %67 : vector<16x16xf32>
    %cst_33 = arith.constant dense<0.000000e+00> : vector<16xf32>
    %69 = vector.multi_reduction <add>, %68, %cst_33 [1] : vector<16x16xf32> to vector<16xf32>
    %70 = vector.shape_cast %69 : vector<16xf32> to vector<16x1xf32>
    %71 = tpu.reciprocal %70 {approx = true} : vector<16x1xf32> -> vector<16x1xf32>
    %72 = vector.broadcast %71 : vector<16x1xf32> to vector<16x16xf32>
    %73 = arith.mulf %68, %72 : vector<16x16xf32>
    %74 = vector.extract_strided_slice %22 {offsets = [0, 16], sizes = [16, 8], strides = [1, 1]} : vector<16x32xf32> to vector<16x8xf32>
    %cst_34 = arith.constant dense<0.000000e+00> : vector<16x8xf32>
    %75 = tpu.matmul %73, %74, %cst_34 {dimension_numbers = #tpu.dot_dimension_numbers<[1], [0], [0], [1], [0, 0, 1, 1], [], []>} : vector<16x16xf32>, vector<16x8xf32>, vector<16x8xf32> -> vector<16x8xf32>
    %76 = vector.extract_strided_slice %25 {offsets = [16, 0], sizes = [8, 32], strides = [1, 1]} : vector<32x32xf32> to vector<8x32xf32>
    %cst_35 = arith.constant dense<0.000000e+00> : vector<16x32xf32>
    %77 = tpu.matmul %75, %76, %cst_35 {dimension_numbers = #tpu.dot_dimension_numbers<[1], [0], [0], [1], [0, 0, 1, 1], [], []>} : vector<16x8xf32>, vector<8x32xf32>, vector<16x32xf32> -> vector<16x32xf32>
    %78 = arith.addf %60, %77 : vector<16x32xf32>
    %79 = vector.extract_strided_slice %23 {offsets = [0, 24], sizes = [16, 8], strides = [1, 1]} : vector<16x32xf32> to vector<16x8xf32>
    %80 = vector.extract_strided_slice %24 {offsets = [0, 24], sizes = [16, 8], strides = [1, 1]} : vector<16x32xf32> to vector<16x8xf32>
    %cst_36 = arith.constant dense<0.000000e+00> : vector<16x16xf32>
    %81 = tpu.matmul %79, %80, %cst_36 {dimension_numbers = #tpu.dot_dimension_numbers<[1], [1], [0], [0], [0, 0, 1, 0], [], []>} : vector<16x8xf32>, vector<16x8xf32>, vector<16x16xf32> -> vector<16x16xf32>
    %cst_37 = arith.constant dense<0xFF800000> : vector<16xf32>
    %82 = vector.multi_reduction <maximumf>, %81, %cst_37 [1] : vector<16x16xf32> to vector<16xf32>
    %83 = vector.shape_cast %82 : vector<16xf32> to vector<16x1xf32>
    %84 = vector.broadcast %83 : vector<16x1xf32> to vector<16x16xf32>
    %85 = arith.subf %81, %84 : vector<16x16xf32>
    %86 = math.exp %85 : vector<16x16xf32>
    %cst_38 = arith.constant dense<0.000000e+00> : vector<16xf32>
    %87 = vector.multi_reduction <add>, %86, %cst_38 [1] : vector<16x16xf32> to vector<16xf32>
    %88 = vector.shape_cast %87 : vector<16xf32> to vector<16x1xf32>
    %89 = tpu.reciprocal %88 {approx = true} : vector<16x1xf32> -> vector<16x1xf32>
    %90 = vector.broadcast %89 : vector<16x1xf32> to vector<16x16xf32>
    %91 = arith.mulf %86, %90 : vector<16x16xf32>
    %92 = vector.extract_strided_slice %22 {offsets = [0, 24], sizes = [16, 8], strides = [1, 1]} : vector<16x32xf32> to vector<16x8xf32>
    %cst_39 = arith.constant dense<0.000000e+00> : vector<16x8xf32>
    %93 = tpu.matmul %91, %92, %cst_39 {dimension_numbers = #tpu.dot_dimension_numbers<[1], [0], [0], [1], [0, 0, 1, 1], [], []>} : vector<16x16xf32>, vector<16x8xf32>, vector<16x8xf32> -> vector<16x8xf32>
    %94 = vector.extract_strided_slice %25 {offsets = [24, 0], sizes = [8, 32], strides = [1, 1]} : vector<32x32xf32> to vector<8x32xf32>
    %cst_40 = arith.constant dense<0.000000e+00> : vector<16x32xf32>
    %95 = tpu.matmul %93, %94, %cst_40 {dimension_numbers = #tpu.dot_dimension_numbers<[1], [0], [0], [1], [0, 0, 1, 1], [], []>} : vector<16x8xf32>, vector<8x32xf32>, vector<16x32xf32> -> vector<16x32xf32>
    %96 = arith.addf %78, %95 : vector<16x32xf32>
    %c0_41 = arith.constant 0 : index
    %c0_42 = arith.constant 0 : index
    %97 = vector.load %arg9[%c0_41, %c0_42] : memref<1x32xf32, #tpu.memory_space<vmem>>, vector<1x32xf32>
    %98 = vector.broadcast %97 : vector<1x32xf32> to vector<16x32xf32>
    %99 = arith.addf %96, %98 : vector<16x32xf32>
    %100 = arith.addf %1, %99 : vector<16x32xf32>
    %c0_43 = arith.constant 0 : index
    %c0_44 = arith.constant 0 : index
    %101 = vector.load %arg10[%c0_43, %c0_44] : memref<1x32xf32, #tpu.memory_space<vmem>>, vector<1x32xf32>
    %c0_45 = arith.constant 0 : index
    %c0_46 = arith.constant 0 : index
    %102 = vector.load %arg11[%c0_45, %c0_46] : memref<1x32xf32, #tpu.memory_space<vmem>>, vector<1x32xf32>
    %cst_47 = arith.constant dense<0.000000e+00> : vector<16xf32>
    %103 = vector.multi_reduction <add>, %100, %cst_47 [1] : vector<16x32xf32> to vector<16xf32>
    %104 = vector.shape_cast %103 : vector<16xf32> to vector<16x1xf32>
    %cst_48 = arith.constant 3.200000e+01 : f32
    %105 = vector.broadcast %cst_48 : f32 to vector<16x1xf32>
    %106 = arith.divf %104, %105 : vector<16x1xf32>
    %107 = vector.broadcast %106 : vector<16x1xf32> to vector<16x32xf32>
    %108 = arith.subf %100, %107 : vector<16x32xf32>
    %109 = arith.mulf %108, %108 : vector<16x32xf32>
    %cst_49 = arith.constant dense<0.000000e+00> : vector<16xf32>
    %110 = vector.multi_reduction <add>, %109, %cst_49 [1] : vector<16x32xf32> to vector<16xf32>
    %111 = vector.shape_cast %110 : vector<16xf32> to vector<16x1xf32>
    %cst_50 = arith.constant 3.200000e+01 : f32
    %112 = vector.broadcast %cst_50 : f32 to vector<16x1xf32>
    %113 = arith.divf %111, %112 : vector<16x1xf32>
    %114 = vector.broadcast %106 : vector<16x1xf32> to vector<16x32xf32>
    %115 = arith.subf %100, %114 : vector<16x32xf32>
    %cst_51 = arith.constant 9.99999974E-6 : f32
    %116 = vector.broadcast %cst_51 : f32 to vector<16x1xf32>
    %117 = arith.addf %113, %116 : vector<16x1xf32>
    %118 = math.rsqrt %117 : vector<16x1xf32>
    %119 = vector.broadcast %118 : vector<16x1xf32> to vector<16x32xf32>
    %120 = arith.mulf %115, %119 : vector<16x32xf32>
    %121 = vector.broadcast %101 : vector<1x32xf32> to vector<16x32xf32>
    %122 = arith.mulf %120, %121 : vector<16x32xf32>
    %123 = vector.broadcast %102 : vector<1x32xf32> to vector<16x32xf32>
    %124 = arith.addf %122, %123 : vector<16x32xf32>
    %c0_52 = arith.constant 0 : index
    %c0_53 = arith.constant 0 : index
    %125 = vector.load %arg12[%c0_52, %c0_53] : memref<32x96xf32, #tpu.memory_space<vmem>>, vector<32x96xf32>
    %c0_54 = arith.constant 0 : index
    %c0_55 = arith.constant 0 : index
    %126 = vector.load %arg13[%c0_54, %c0_55] : memref<1x96xf32, #tpu.memory_space<vmem>>, vector<1x96xf32>
    %127 = arith.addf %124, %3 : vector<16x32xf32>
    %128 = vector.extract_strided_slice %125 {offsets = [0, 0], sizes = [32, 32], strides = [1, 1]} : vector<32x96xf32> to vector<32x32xf32>
    %cst_56 = arith.constant dense<0.000000e+00> : vector<16x32xf32>
    %129 = tpu.matmul %127, %128, %cst_56 {dimension_numbers = #tpu.dot_dimension_numbers<[1], [0], [0], [1], [0, 0, 1, 1], [], []>} : vector<16x32xf32>, vector<32x32xf32>, vector<16x32xf32> -> vector<16x32xf32>
    %130 = vector.extract_strided_slice %126 {offsets = [0, 0], sizes = [1, 32], strides = [1, 1]} : vector<1x96xf32> to vector<1x32xf32>
    %131 = vector.broadcast %130 : vector<1x32xf32> to vector<16x32xf32>
    %132 = arith.addf %129, %131 : vector<16x32xf32>
    %133 = arith.addf %5, %7 : vector<64x32xf32>
    %134 = vector.extract_strided_slice %125 {offsets = [0, 32], sizes = [32, 32], strides = [1, 1]} : vector<32x96xf32> to vector<32x32xf32>
    %cst_57 = arith.constant dense<0.000000e+00> : vector<64x32xf32>
    %135 = tpu.matmul %133, %134, %cst_57 {dimension_numbers = #tpu.dot_dimension_numbers<[1], [0], [0], [1], [0, 0, 1, 1], [], []>} : vector<64x32xf32>, vector<32x32xf32>, vector<64x32xf32> -> vector<64x32xf32>
    %136 = vector.extract_strided_slice %126 {offsets = [0, 32], sizes = [1, 32], strides = [1, 1]} : vector<1x96xf32> to vector<1x32xf32>
    %137 = vector.broadcast %136 : vector<1x32xf32> to vector<64x32xf32>
    %138 = arith.addf %135, %137 : vector<64x32xf32>
    %139 = vector.extract_strided_slice %125 {offsets = [0, 64], sizes = [32, 32], strides = [1, 1]} : vector<32x96xf32> to vector<32x32xf32>
    %cst_58 = arith.constant dense<0.000000e+00> : vector<64x32xf32>
    %140 = tpu.matmul %5, %139, %cst_58 {dimension_numbers = #tpu.dot_dimension_numbers<[1], [0], [0], [1], [0, 0, 1, 1], [], []>} : vector<64x32xf32>, vector<32x32xf32>, vector<64x32xf32> -> vector<64x32xf32>
    %141 = vector.extract_strided_slice %126 {offsets = [0, 64], sizes = [1, 32], strides = [1, 1]} : vector<1x96xf32> to vector<1x32xf32>
    %142 = vector.broadcast %141 : vector<1x32xf32> to vector<64x32xf32>
    %143 = arith.addf %140, %142 : vector<64x32xf32>
    %c0_59 = arith.constant 0 : index
    %c0_60 = arith.constant 0 : index
    %144 = vector.load %arg14[%c0_59, %c0_60] : memref<32x32xf32, #tpu.memory_space<vmem>>, vector<32x32xf32>
    %145 = vector.extract_strided_slice %132 {offsets = [0, 0], sizes = [16, 8], strides = [1, 1]} : vector<16x32xf32> to vector<16x8xf32>
    %146 = vector.extract_strided_slice %138 {offsets = [0, 0], sizes = [64, 8], strides = [1, 1]} : vector<64x32xf32> to vector<64x8xf32>
    %cst_61 = arith.constant dense<0.000000e+00> : vector<16x64xf32>
    %147 = tpu.matmul %145, %146, %cst_61 {dimension_numbers = #tpu.dot_dimension_numbers<[1], [1], [0], [0], [0, 0, 1, 0], [], []>} : vector<16x8xf32>, vector<64x8xf32>, vector<16x64xf32> -> vector<16x64xf32>
    %148 = vector.broadcast %9 : vector<1x64xf32> to vector<16x64xf32>
    %149 = arith.addf %147, %148 : vector<16x64xf32>
    %cst_62 = arith.constant dense<0xFF800000> : vector<16xf32>
    %150 = vector.multi_reduction <maximumf>, %149, %cst_62 [1] : vector<16x64xf32> to vector<16xf32>
    %151 = vector.shape_cast %150 : vector<16xf32> to vector<16x1xf32>
    %152 = vector.broadcast %151 : vector<16x1xf32> to vector<16x64xf32>
    %153 = arith.subf %149, %152 : vector<16x64xf32>
    %154 = math.exp %153 : vector<16x64xf32>
    %cst_63 = arith.constant dense<0.000000e+00> : vector<16xf32>
    %155 = vector.multi_reduction <add>, %154, %cst_63 [1] : vector<16x64xf32> to vector<16xf32>
    %156 = vector.shape_cast %155 : vector<16xf32> to vector<16x1xf32>
    %157 = tpu.reciprocal %156 {approx = true} : vector<16x1xf32> -> vector<16x1xf32>
    %158 = vector.broadcast %157 : vector<16x1xf32> to vector<16x64xf32>
    %159 = arith.mulf %154, %158 : vector<16x64xf32>
    %160 = vector.extract_strided_slice %143 {offsets = [0, 0], sizes = [64, 8], strides = [1, 1]} : vector<64x32xf32> to vector<64x8xf32>
    %cst_64 = arith.constant dense<0.000000e+00> : vector<16x8xf32>
    %161 = tpu.matmul %159, %160, %cst_64 {dimension_numbers = #tpu.dot_dimension_numbers<[1], [0], [0], [1], [0, 0, 1, 1], [], []>} : vector<16x64xf32>, vector<64x8xf32>, vector<16x8xf32> -> vector<16x8xf32>
    %162 = vector.extract_strided_slice %144 {offsets = [0, 0], sizes = [8, 32], strides = [1, 1]} : vector<32x32xf32> to vector<8x32xf32>
    %cst_65 = arith.constant dense<0.000000e+00> : vector<16x32xf32>
    %163 = tpu.matmul %161, %162, %cst_65 {dimension_numbers = #tpu.dot_dimension_numbers<[1], [0], [0], [1], [0, 0, 1, 1], [], []>} : vector<16x8xf32>, vector<8x32xf32>, vector<16x32xf32> -> vector<16x32xf32>
    %164 = vector.extract_strided_slice %132 {offsets = [0, 8], sizes = [16, 8], strides = [1, 1]} : vector<16x32xf32> to vector<16x8xf32>
    %165 = vector.extract_strided_slice %138 {offsets = [0, 8], sizes = [64, 8], strides = [1, 1]} : vector<64x32xf32> to vector<64x8xf32>
    %cst_66 = arith.constant dense<0.000000e+00> : vector<16x64xf32>
    %166 = tpu.matmul %164, %165, %cst_66 {dimension_numbers = #tpu.dot_dimension_numbers<[1], [1], [0], [0], [0, 0, 1, 0], [], []>} : vector<16x8xf32>, vector<64x8xf32>, vector<16x64xf32> -> vector<16x64xf32>
    %167 = vector.broadcast %9 : vector<1x64xf32> to vector<16x64xf32>
    %168 = arith.addf %166, %167 : vector<16x64xf32>
    %cst_67 = arith.constant dense<0xFF800000> : vector<16xf32>
    %169 = vector.multi_reduction <maximumf>, %168, %cst_67 [1] : vector<16x64xf32> to vector<16xf32>
    %170 = vector.shape_cast %169 : vector<16xf32> to vector<16x1xf32>
    %171 = vector.broadcast %170 : vector<16x1xf32> to vector<16x64xf32>
    %172 = arith.subf %168, %171 : vector<16x64xf32>
    %173 = math.exp %172 : vector<16x64xf32>
    %cst_68 = arith.constant dense<0.000000e+00> : vector<16xf32>
    %174 = vector.multi_reduction <add>, %173, %cst_68 [1] : vector<16x64xf32> to vector<16xf32>
    %175 = vector.shape_cast %174 : vector<16xf32> to vector<16x1xf32>
    %176 = tpu.reciprocal %175 {approx = true} : vector<16x1xf32> -> vector<16x1xf32>
    %177 = vector.broadcast %176 : vector<16x1xf32> to vector<16x64xf32>
    %178 = arith.mulf %173, %177 : vector<16x64xf32>
    %179 = vector.extract_strided_slice %143 {offsets = [0, 8], sizes = [64, 8], strides = [1, 1]} : vector<64x32xf32> to vector<64x8xf32>
    %cst_69 = arith.constant dense<0.000000e+00> : vector<16x8xf32>
    %180 = tpu.matmul %178, %179, %cst_69 {dimension_numbers = #tpu.dot_dimension_numbers<[1], [0], [0], [1], [0, 0, 1, 1], [], []>} : vector<16x64xf32>, vector<64x8xf32>, vector<16x8xf32> -> vector<16x8xf32>
    %181 = vector.extract_strided_slice %144 {offsets = [8, 0], sizes = [8, 32], strides = [1, 1]} : vector<32x32xf32> to vector<8x32xf32>
    %cst_70 = arith.constant dense<0.000000e+00> : vector<16x32xf32>
    %182 = tpu.matmul %180, %181, %cst_70 {dimension_numbers = #tpu.dot_dimension_numbers<[1], [0], [0], [1], [0, 0, 1, 1], [], []>} : vector<16x8xf32>, vector<8x32xf32>, vector<16x32xf32> -> vector<16x32xf32>
    %183 = arith.addf %163, %182 : vector<16x32xf32>
    %184 = vector.extract_strided_slice %132 {offsets = [0, 16], sizes = [16, 8], strides = [1, 1]} : vector<16x32xf32> to vector<16x8xf32>
    %185 = vector.extract_strided_slice %138 {offsets = [0, 16], sizes = [64, 8], strides = [1, 1]} : vector<64x32xf32> to vector<64x8xf32>
    %cst_71 = arith.constant dense<0.000000e+00> : vector<16x64xf32>
    %186 = tpu.matmul %184, %185, %cst_71 {dimension_numbers = #tpu.dot_dimension_numbers<[1], [1], [0], [0], [0, 0, 1, 0], [], []>} : vector<16x8xf32>, vector<64x8xf32>, vector<16x64xf32> -> vector<16x64xf32>
    %187 = vector.broadcast %9 : vector<1x64xf32> to vector<16x64xf32>
    %188 = arith.addf %186, %187 : vector<16x64xf32>
    %cst_72 = arith.constant dense<0xFF800000> : vector<16xf32>
    %189 = vector.multi_reduction <maximumf>, %188, %cst_72 [1] : vector<16x64xf32> to vector<16xf32>
    %190 = vector.shape_cast %189 : vector<16xf32> to vector<16x1xf32>
    %191 = vector.broadcast %190 : vector<16x1xf32> to vector<16x64xf32>
    %192 = arith.subf %188, %191 : vector<16x64xf32>
    %193 = math.exp %192 : vector<16x64xf32>
    %cst_73 = arith.constant dense<0.000000e+00> : vector<16xf32>
    %194 = vector.multi_reduction <add>, %193, %cst_73 [1] : vector<16x64xf32> to vector<16xf32>
    %195 = vector.shape_cast %194 : vector<16xf32> to vector<16x1xf32>
    %196 = tpu.reciprocal %195 {approx = true} : vector<16x1xf32> -> vector<16x1xf32>
    %197 = vector.broadcast %196 : vector<16x1xf32> to vector<16x64xf32>
    %198 = arith.mulf %193, %197 : vector<16x64xf32>
    %199 = vector.extract_strided_slice %143 {offsets = [0, 16], sizes = [64, 8], strides = [1, 1]} : vector<64x32xf32> to vector<64x8xf32>
    %cst_74 = arith.constant dense<0.000000e+00> : vector<16x8xf32>
    %200 = tpu.matmul %198, %199, %cst_74 {dimension_numbers = #tpu.dot_dimension_numbers<[1], [0], [0], [1], [0, 0, 1, 1], [], []>} : vector<16x64xf32>, vector<64x8xf32>, vector<16x8xf32> -> vector<16x8xf32>
    %201 = vector.extract_strided_slice %144 {offsets = [16, 0], sizes = [8, 32], strides = [1, 1]} : vector<32x32xf32> to vector<8x32xf32>
    %cst_75 = arith.constant dense<0.000000e+00> : vector<16x32xf32>
    %202 = tpu.matmul %200, %201, %cst_75 {dimension_numbers = #tpu.dot_dimension_numbers<[1], [0], [0], [1], [0, 0, 1, 1], [], []>} : vector<16x8xf32>, vector<8x32xf32>, vector<16x32xf32> -> vector<16x32xf32>
    %203 = arith.addf %183, %202 : vector<16x32xf32>
    %204 = vector.extract_strided_slice %132 {offsets = [0, 24], sizes = [16, 8], strides = [1, 1]} : vector<16x32xf32> to vector<16x8xf32>
    %205 = vector.extract_strided_slice %138 {offsets = [0, 24], sizes = [64, 8], strides = [1, 1]} : vector<64x32xf32> to vector<64x8xf32>
    %cst_76 = arith.constant dense<0.000000e+00> : vector<16x64xf32>
    %206 = tpu.matmul %204, %205, %cst_76 {dimension_numbers = #tpu.dot_dimension_numbers<[1], [1], [0], [0], [0, 0, 1, 0], [], []>} : vector<16x8xf32>, vector<64x8xf32>, vector<16x64xf32> -> vector<16x64xf32>
    %207 = vector.broadcast %9 : vector<1x64xf32> to vector<16x64xf32>
    %208 = arith.addf %206, %207 : vector<16x64xf32>
    %cst_77 = arith.constant dense<0xFF800000> : vector<16xf32>
    %209 = vector.multi_reduction <maximumf>, %208, %cst_77 [1] : vector<16x64xf32> to vector<16xf32>
    %210 = vector.shape_cast %209 : vector<16xf32> to vector<16x1xf32>
    %211 = vector.broadcast %210 : vector<16x1xf32> to vector<16x64xf32>
    %212 = arith.subf %208, %211 : vector<16x64xf32>
    %213 = math.exp %212 : vector<16x64xf32>
    %cst_78 = arith.constant dense<0.000000e+00> : vector<16xf32>
    %214 = vector.multi_reduction <add>, %213, %cst_78 [1] : vector<16x64xf32> to vector<16xf32>
    %215 = vector.shape_cast %214 : vector<16xf32> to vector<16x1xf32>
    %216 = tpu.reciprocal %215 {approx = true} : vector<16x1xf32> -> vector<16x1xf32>
    %217 = vector.broadcast %216 : vector<16x1xf32> to vector<16x64xf32>
    %218 = arith.mulf %213, %217 : vector<16x64xf32>
    %219 = vector.extract_strided_slice %143 {offsets = [0, 24], sizes = [64, 8], strides = [1, 1]} : vector<64x32xf32> to vector<64x8xf32>
    %cst_79 = arith.constant dense<0.000000e+00> : vector<16x8xf32>
    %220 = tpu.matmul %218, %219, %cst_79 {dimension_numbers = #tpu.dot_dimension_numbers<[1], [0], [0], [1], [0, 0, 1, 1], [], []>} : vector<16x64xf32>, vector<64x8xf32>, vector<16x8xf32> -> vector<16x8xf32>
    %221 = vector.extract_strided_slice %144 {offsets = [24, 0], sizes = [8, 32], strides = [1, 1]} : vector<32x32xf32> to vector<8x32xf32>
    %cst_80 = arith.constant dense<0.000000e+00> : vector<16x32xf32>
    %222 = tpu.matmul %220, %221, %cst_80 {dimension_numbers = #tpu.dot_dimension_numbers<[1], [0], [0], [1], [0, 0, 1, 1], [], []>} : vector<16x8xf32>, vector<8x32xf32>, vector<16x32xf32> -> vector<16x32xf32>
    %223 = arith.addf %203, %222 : vector<16x32xf32>
    %c0_81 = arith.constant 0 : index
    %c0_82 = arith.constant 0 : index
    %224 = vector.load %arg15[%c0_81, %c0_82] : memref<1x32xf32, #tpu.memory_space<vmem>>, vector<1x32xf32>
    %225 = vector.broadcast %224 : vector<1x32xf32> to vector<16x32xf32>
    %226 = arith.addf %223, %225 : vector<16x32xf32>
    %227 = arith.addf %124, %226 : vector<16x32xf32>
    %c0_83 = arith.constant 0 : index
    %c0_84 = arith.constant 0 : index
    %228 = vector.load %arg16[%c0_83, %c0_84] : memref<1x32xf32, #tpu.memory_space<vmem>>, vector<1x32xf32>
    %c0_85 = arith.constant 0 : index
    %c0_86 = arith.constant 0 : index
    %229 = vector.load %arg17[%c0_85, %c0_86] : memref<1x32xf32, #tpu.memory_space<vmem>>, vector<1x32xf32>
    %cst_87 = arith.constant dense<0.000000e+00> : vector<16xf32>
    %230 = vector.multi_reduction <add>, %227, %cst_87 [1] : vector<16x32xf32> to vector<16xf32>
    %231 = vector.shape_cast %230 : vector<16xf32> to vector<16x1xf32>
    %cst_88 = arith.constant 3.200000e+01 : f32
    %232 = vector.broadcast %cst_88 : f32 to vector<16x1xf32>
    %233 = arith.divf %231, %232 : vector<16x1xf32>
    %234 = vector.broadcast %233 : vector<16x1xf32> to vector<16x32xf32>
    %235 = arith.subf %227, %234 : vector<16x32xf32>
    %236 = arith.mulf %235, %235 : vector<16x32xf32>
    %cst_89 = arith.constant dense<0.000000e+00> : vector<16xf32>
    %237 = vector.multi_reduction <add>, %236, %cst_89 [1] : vector<16x32xf32> to vector<16xf32>
    %238 = vector.shape_cast %237 : vector<16xf32> to vector<16x1xf32>
    %cst_90 = arith.constant 3.200000e+01 : f32
    %239 = vector.broadcast %cst_90 : f32 to vector<16x1xf32>
    %240 = arith.divf %238, %239 : vector<16x1xf32>
    %241 = vector.broadcast %233 : vector<16x1xf32> to vector<16x32xf32>
    %242 = arith.subf %227, %241 : vector<16x32xf32>
    %cst_91 = arith.constant 9.99999974E-6 : f32
    %243 = vector.broadcast %cst_91 : f32 to vector<16x1xf32>
    %244 = arith.addf %240, %243 : vector<16x1xf32>
    %245 = math.rsqrt %244 : vector<16x1xf32>
    %246 = vector.broadcast %245 : vector<16x1xf32> to vector<16x32xf32>
    %247 = arith.mulf %242, %246 : vector<16x32xf32>
    %248 = vector.broadcast %228 : vector<1x32xf32> to vector<16x32xf32>
    %249 = arith.mulf %247, %248 : vector<16x32xf32>
    %250 = vector.broadcast %229 : vector<1x32xf32> to vector<16x32xf32>
    %251 = arith.addf %249, %250 : vector<16x32xf32>
    %c0_92 = arith.constant 0 : index
    %c0_93 = arith.constant 0 : index
    %252 = vector.load %arg18[%c0_92, %c0_93] : memref<32x64xf32, #tpu.memory_space<vmem>>, vector<32x64xf32>
    %cst_94 = arith.constant dense<0.000000e+00> : vector<16x64xf32>
    %253 = tpu.matmul %251, %252, %cst_94 {dimension_numbers = #tpu.dot_dimension_numbers<[1], [0], [0], [1], [0, 0, 1, 1], [], []>} : vector<16x32xf32>, vector<32x64xf32>, vector<16x64xf32> -> vector<16x64xf32>
    %c0_95 = arith.constant 0 : index
    %c0_96 = arith.constant 0 : index
    %254 = vector.load %arg19[%c0_95, %c0_96] : memref<1x64xf32, #tpu.memory_space<vmem>>, vector<1x64xf32>
    %255 = vector.broadcast %254 : vector<1x64xf32> to vector<16x64xf32>
    %256 = arith.addf %253, %255 : vector<16x64xf32>
    %cst_97 = arith.constant 0.000000e+00 : f32
    %257 = vector.broadcast %cst_97 : f32 to vector<16x64xf32>
    %258 = arith.maximumf %256, %257 : vector<16x64xf32>
    %c0_98 = arith.constant 0 : index
    %c0_99 = arith.constant 0 : index
    %259 = vector.load %arg20[%c0_98, %c0_99] : memref<64x32xf32, #tpu.memory_space<vmem>>, vector<64x32xf32>
    %cst_100 = arith.constant dense<0.000000e+00> : vector<16x32xf32>
    %260 = tpu.matmul %258, %259, %cst_100 {dimension_numbers = #tpu.dot_dimension_numbers<[1], [0], [0], [1], [0, 0, 1, 1], [], []>} : vector<16x64xf32>, vector<64x32xf32>, vector<16x32xf32> -> vector<16x32xf32>
    %c0_101 = arith.constant 0 : index
    %c0_102 = arith.constant 0 : index
    %261 = vector.load %arg21[%c0_101, %c0_102] : memref<1x32xf32, #tpu.memory_space<vmem>>, vector<1x32xf32>
    %262 = vector.broadcast %261 : vector<1x32xf32> to vector<16x32xf32>
    %263 = arith.addf %260, %262 : vector<16x32xf32>
    %264 = arith.addf %251, %263 : vector<16x32xf32>
    %c0_103 = arith.constant 0 : index
    %c0_104 = arith.constant 0 : index
    %265 = vector.load %arg22[%c0_103, %c0_104] : memref<1x32xf32, #tpu.memory_space<vmem>>, vector<1x32xf32>
    %c0_105 = arith.constant 0 : index
    %c0_106 = arith.constant 0 : index
    %266 = vector.load %arg23[%c0_105, %c0_106] : memref<1x32xf32, #tpu.memory_space<vmem>>, vector<1x32xf32>
    %cst_107 = arith.constant dense<0.000000e+00> : vector<16xf32>
    %267 = vector.multi_reduction <add>, %264, %cst_107 [1] : vector<16x32xf32> to vector<16xf32>
    %268 = vector.shape_cast %267 : vector<16xf32> to vector<16x1xf32>
    %cst_108 = arith.constant 3.200000e+01 : f32
    %269 = vector.broadcast %cst_108 : f32 to vector<16x1xf32>
    %270 = arith.divf %268, %269 : vector<16x1xf32>
    %271 = vector.broadcast %270 : vector<16x1xf32> to vector<16x32xf32>
    %272 = arith.subf %264, %271 : vector<16x32xf32>
    %273 = arith.mulf %272, %272 : vector<16x32xf32>
    %cst_109 = arith.constant dense<0.000000e+00> : vector<16xf32>
    %274 = vector.multi_reduction <add>, %273, %cst_109 [1] : vector<16x32xf32> to vector<16xf32>
    %275 = vector.shape_cast %274 : vector<16xf32> to vector<16x1xf32>
    %cst_110 = arith.constant 3.200000e+01 : f32
    %276 = vector.broadcast %cst_110 : f32 to vector<16x1xf32>
    %277 = arith.divf %275, %276 : vector<16x1xf32>
    %278 = vector.broadcast %270 : vector<16x1xf32> to vector<16x32xf32>
    %279 = arith.subf %264, %278 : vector<16x32xf32>
    %cst_111 = arith.constant 9.99999974E-6 : f32
    %280 = vector.broadcast %cst_111 : f32 to vector<16x1xf32>
    %281 = arith.addf %277, %280 : vector<16x1xf32>
    %282 = math.rsqrt %281 : vector<16x1xf32>
    %283 = vector.broadcast %282 : vector<16x1xf32> to vector<16x32xf32>
    %284 = arith.mulf %279, %283 : vector<16x32xf32>
    %285 = vector.broadcast %265 : vector<1x32xf32> to vector<16x32xf32>
    %286 = arith.mulf %284, %285 : vector<16x32xf32>
    %287 = vector.broadcast %266 : vector<1x32xf32> to vector<16x32xf32>
    %288 = arith.addf %286, %287 : vector<16x32xf32>
    %c0_112 = arith.constant 0 : index
    %c0_113 = arith.constant 0 : index
    %c0_114 = arith.constant 0 : index
    %289 = vector.load %arg24[%c0_112, %c0_113, %c0_114] : memref<1x16x32xf32, #tpu.memory_space<vmem>>, vector<1x16x32xf32>
    %290 = vector.shape_cast %289 : vector<1x16x32xf32> to vector<16x32xf32>
    %291 = vector.shape_cast %288 : vector<16x32xf32> to vector<1x16x32xf32>
    tpu.vector_store %arg24[%c0_112, %c0_113, %c0_114], %291 {strides = array<i32>} : memref<1x16x32xf32, #tpu.memory_space<vmem>>, vector<1x16x32xf32>,
    return
  }
  func.func @transform_0(%arg0: i32) -> (i32, i32, i32) {
    %c0_i32 = arith.constant 0 : i32
    %c0_i32_0 = arith.constant 0 : i32
    %c0_i32_1 = arith.constant 0 : i32
    return %arg0, %c0_i32, %c0_i32_0 : i32, i32, i32
  }
  func.func @transform_1(%arg0: i32) -> (i32, i32, i32) {
    %c0_i32 = arith.constant 0 : i32
    %c0_i32_0 = arith.constant 0 : i32
    %c0_i32_1 = arith.constant 0 : i32
    return %arg0, %c0_i32, %c0_i32_0 : i32, i32, i32
  }
  func.func @transform_2(%arg0: i32) -> (i32, i32, i32) {
    %c0_i32 = arith.constant 0 : i32
    %c0_i32_0 = arith.constant 0 : i32
    %c0_i32_1 = arith.constant 0 : i32
    return %arg0, %c0_i32, %c0_i32_0 : i32, i32, i32
  }
  func.func @transform_3(%arg0: i32) -> (i32, i32, i32) {
    %c0_i32 = arith.constant 0 : i32
    %c0_i32_0 = arith.constant 0 : i32
    %c0_i32_1 = arith.constant 0 : i32
    return %arg0, %c0_i32, %c0_i32_0 : i32, i32, i32
  }
  func.func @transform_4(%arg0: i32) -> (i32, i32, i32) {
    %c0_i32 = arith.constant 0 : i32
    %c0_i32_0 = arith.constant 0 : i32
    %c0_i32_1 = arith.constant 0 : i32
    return %arg0, %c0_i32, %c0_i32_0 : i32, i32, i32
  }
  func.func @transform_5(%arg0: i32) -> (i32, i32) {
    %c0_i32 = arith.constant 0 : i32
    %c0_i32_0 = arith.constant 0 : i32
    %c0_i32_1 = arith.constant 0 : i32
    return %c0_i32, %c0_i32_0 : i32, i32
  }
  func.func @transform_6(%arg0: i32) -> (i32, i32) {
    %c0_i32 = arith.constant 0 : i32
    %c0_i32_0 = arith.constant 0 : i32
    %c0_i32_1 = arith.constant 0 : i32
    return %c0_i32, %c0_i32_0 : i32, i32
  }
  func.func @transform_7(%arg0: i32) -> (i32, i32) {
    %c0_i32 = arith.constant 0 : i32
    %c0_i32_0 = arith.constant 0 : i32
    %c0_i32_1 = arith.constant 0 : i32
    return %c0_i32, %c0_i32_0 : i32, i32
  }
  func.func @transform_8(%arg0: i32) -> (i32, i32) {
    %c0_i32 = arith.constant 0 : i32
    %c0_i32_0 = arith.constant 0 : i32
    %c0_i32_1 = arith.constant 0 : i32
    return %c0_i32, %c0_i32_0 : i32, i32
  }
  func.func @transform_9(%arg0: i32) -> (i32, i32) {
    %c0_i32 = arith.constant 0 : i32
    %c0_i32_0 = arith.constant 0 : i32
    %c0_i32_1 = arith.constant 0 : i32
    return %c0_i32, %c0_i32_0 : i32, i32
  }
  func.func @transform_10(%arg0: i32) -> (i32, i32) {
    %c0_i32 = arith.constant 0 : i32
    %c0_i32_0 = arith.constant 0 : i32
    %c0_i32_1 = arith.constant 0 : i32
    return %c0_i32, %c0_i32_0 : i32, i32
  }
  func.func @transform_11(%arg0: i32) -> (i32, i32) {
    %c0_i32 = arith.constant 0 : i32
    %c0_i32_0 = arith.constant 0 : i32
    %c0_i32_1 = arith.constant 0 : i32
    return %c0_i32, %c0_i32_0 : i32, i32
  }
  func.func @transform_12(%arg0: i32) -> (i32, i32) {
    %c0_i32 = arith.constant 0 : i32
    %c0_i32_0 = arith.constant 0 : i32
    %c0_i32_1 = arith.constant 0 : i32
    return %c0_i32, %c0_i32_0 : i32, i32
  }
  func.func @transform_13(%arg0: i32) -> (i32, i32) {
    %c0_i32 = arith.constant 0 : i32
    %c0_i32_0 = arith.constant 0 : i32
    %c0_i32_1 = arith.constant 0 : i32
    return %c0_i32, %c0_i32_0 : i32, i32
  }
  func.func @transform_14(%arg0: i32) -> (i32, i32) {
    %c0_i32 = arith.constant 0 : i32
    %c0_i32_0 = arith.constant 0 : i32
    %c0_i32_1 = arith.constant 0 : i32
    return %c0_i32, %c0_i32_0 : i32, i32
  }
  func.func @transform_15(%arg0: i32) -> (i32, i32) {
    %c0_i32 = arith.constant 0 : i32
    %c0_i32_0 = arith.constant 0 : i32
    %c0_i32_1 = arith.constant 0 : i32
    return %c0_i32, %c0_i32_0 : i32, i32
  }
  func.func @transform_16(%arg0: i32) -> (i32, i32) {
    %c0_i32 = arith.constant 0 : i32
    %c0_i32_0 = arith.constant 0 : i32
    %c0_i32_1 = arith.constant 0 : i32
    return %c0_i32, %c0_i32_0 : i32, i32
  }
  func.func @transform_17(%arg0: i32) -> (i32, i32) {
    %c0_i32 = arith.constant 0 : i32
    %c0_i32_0 = arith.constant 0 : i32
    %c0_i32_1 = arith.constant 0 : i32
    return %c0_i32, %c0_i32_0 : i32, i32
  }
  func.func @transform_18(%arg0: i32) -> (i32, i32) {
    %c0_i32 = arith.constant 0 : i32
    %c0_i32_0 = arith.constant 0 : i32
    %c0_i32_1 = arith.constant 0 : i32
    return %c0_i32, %c0_i32_0 : i32, i32
  }
  func.func @transform_19(%arg0: i32) -> (i32, i32) {
    %c0_i32 = arith.constant 0 : i32
    %c0_i32_0 = arith.constant 0 : i32
    %c0_i32_1 = arith.constant 0 : i32
    return %c0_i32, %c0_i32_0 : i32, i32
  }
  func.func @transform_20(%arg0: i32) -> (i32, i32) {
    %c0_i32 = arith.constant 0 : i32
    %c0_i32_0 = arith.constant 0 : i32
    %c0_i32_1 = arith.constant 0 : i32
    return %c0_i32, %c0_i32_0 : i32, i32
  }
  func.func @transform_21(%arg0: i32) -> (i32, i32) {
    %c0_i32 = arith.constant 0 : i32
    %c0_i32_0 = arith.constant 0 : i32
    %c0_i32_1 = arith.constant 0 : i32
    return %c0_i32, %c0_i32_0 : i32, i32
  }
  func.func @transform_22(%arg0: i32) -> (i32, i32) {
    %c0_i32 = arith.constant 0 : i32
    %c0_i32_0 = arith.constant 0 : i32
    %c0_i32_1 = arith.constant 0 : i32
    return %c0_i32, %c0_i32_0 : i32, i32
  }
  func.func @transform_23(%arg0: i32) -> (i32, i32, i32) {
    %c0_i32 = arith.constant 0 : i32
    %c0_i32_0 = arith.constant 0 : i32
    %c0_i32_1 = arith.constant 0 : i32
    return %arg0, %c0_i32, %c0_i32_0 : i32, i32, i32
  }
}

module attributes {stable_mosaic.version = 11 : i64} {
  func.func @_layernorm_kernel(%arg0: i32, %arg1: memref<32x32xf32, #tpu.memory_space<vmem>>, %arg2: memref<1x32xf32, #tpu.memory_space<vmem>>, %arg3: memref<1x32xf32, #tpu.memory_space<vmem>>, %arg4: memref<32x32xf32, #tpu.memory_space<vmem>>) attributes {dimension_semantics = [#tpu.dimension_semantics<arbitrary>], iteration_bounds = array<i64: 1>, scalar_prefetch = 0 : i64, scratch_operands = 0 : i64, tpu.core_type = #tpu.core_type<tc>, window_params = [{pipeline_mode = #tpu.pipeline_mode<synchronous>, transform_indices = @transform_0, window_bounds = array<i64: 32, 32>}, {pipeline_mode = #tpu.pipeline_mode<synchronous>, transform_indices = @transform_1, window_bounds = array<i64: 1, 32>}, {pipeline_mode = #tpu.pipeline_mode<synchronous>, transform_indices = @transform_2, window_bounds = array<i64: 1, 32>}, {pipeline_mode = #tpu.pipeline_mode<synchronous>, transform_indices = @transform_3, window_bounds = array<i64: 32, 32>}]} {
    %c0 = arith.constant 0 : index
    %c0_0 = arith.constant 0 : index
    %0 = vector.load %arg1[%c0, %c0_0] : memref<32x32xf32, #tpu.memory_space<vmem>>, vector<32x32xf32>
    %c0_1 = arith.constant 0 : index
    %c0_2 = arith.constant 0 : index
    %1 = vector.load %arg2[%c0_1, %c0_2] : memref<1x32xf32, #tpu.memory_space<vmem>>, vector<1x32xf32>
    %c0_3 = arith.constant 0 : index
    %c0_4 = arith.constant 0 : index
    %2 = vector.load %arg3[%c0_3, %c0_4] : memref<1x32xf32, #tpu.memory_space<vmem>>, vector<1x32xf32>
    %cst = arith.constant dense<0.000000e+00> : vector<32xf32>
    %3 = vector.multi_reduction <add>, %0, %cst [1] : vector<32x32xf32> to vector<32xf32>
    %4 = vector.shape_cast %3 : vector<32xf32> to vector<32x1xf32>
    %cst_5 = arith.constant 3.200000e+01 : f32
    %5 = vector.broadcast %cst_5 : f32 to vector<32x1xf32>
    %6 = arith.divf %4, %5 : vector<32x1xf32>
    %7 = vector.broadcast %6 : vector<32x1xf32> to vector<32x32xf32>
    %8 = arith.subf %0, %7 : vector<32x32xf32>
    %9 = arith.mulf %8, %8 : vector<32x32xf32>
    %cst_6 = arith.constant dense<0.000000e+00> : vector<32xf32>
    %10 = vector.multi_reduction <add>, %9, %cst_6 [1] : vector<32x32xf32> to vector<32xf32>
    %11 = vector.shape_cast %10 : vector<32xf32> to vector<32x1xf32>
    %cst_7 = arith.constant 3.200000e+01 : f32
    %12 = vector.broadcast %cst_7 : f32 to vector<32x1xf32>
    %13 = arith.divf %11, %12 : vector<32x1xf32>
    %14 = vector.broadcast %6 : vector<32x1xf32> to vector<32x32xf32>
    %15 = arith.subf %0, %14 : vector<32x32xf32>
    %cst_8 = arith.constant 9.99999974E-6 : f32
    %16 = vector.broadcast %cst_8 : f32 to vector<32x1xf32>
    %17 = arith.addf %13, %16 : vector<32x1xf32>
    %18 = math.rsqrt %17 : vector<32x1xf32>
    %19 = vector.broadcast %18 : vector<32x1xf32> to vector<32x32xf32>
    %20 = arith.mulf %15, %19 : vector<32x32xf32>
    %21 = vector.broadcast %1 : vector<1x32xf32> to vector<32x32xf32>
    %22 = arith.mulf %20, %21 : vector<32x32xf32>
    %23 = vector.broadcast %2 : vector<1x32xf32> to vector<32x32xf32>
    %24 = arith.addf %22, %23 : vector<32x32xf32>
    %c0_9 = arith.constant 0 : index
    %c0_10 = arith.constant 0 : index
    %25 = vector.load %arg4[%c0_9, %c0_10] : memref<32x32xf32, #tpu.memory_space<vmem>>, vector<32x32xf32>
    tpu.vector_store %arg4[%c0_9, %c0_10], %24 {strides = array<i32>} : memref<32x32xf32, #tpu.memory_space<vmem>>, vector<32x32xf32>,
    return
  }
  func.func @transform_0(%arg0: i32) -> (i32, i32) {
    %c0_i32 = arith.constant 0 : i32
    %c0_i32_0 = arith.constant 0 : i32
    %c0_i32_1 = arith.constant 0 : i32
    return %c0_i32, %c0_i32_0 : i32, i32
  }
  func.func @transform_1(%arg0: i32) -> (i32, i32) {
    %c0_i32 = arith.constant 0 : i32
    %c0_i32_0 = arith.constant 0 : i32
    %c0_i32_1 = arith.constant 0 : i32
    return %c0_i32, %c0_i32_0 : i32, i32
  }
  func.func @transform_2(%arg0: i32) -> (i32, i32) {
    %c0_i32 = arith.constant 0 : i32
    %c0_i32_0 = arith.constant 0 : i32
    %c0_i32_1 = arith.constant 0 : i32
    return %c0_i32, %c0_i32_0 : i32, i32
  }
  func.func @transform_3(%arg0: i32) -> (i32, i32) {
    %c0_i32 = arith.constant 0 : i32
    %c0_i32_0 = arith.constant 0 : i32
    %c0_i32_1 = arith.constant 0 : i32
    return %c0_i32, %c0_i32_0 : i32, i32
  }
}

</mosaic_0001>

<bundles_post_ra>
// kernel: transformer_forward.9
= control target key start
LH: loop header
LB: loop body
LE: loop exit
PB: predicated region body
PF: predicated region fallthrough
CT: control target
= control target key end

     0   :  { %vm20_vm0 = vcmask 261120   ;;  %v151_v8 = vmov 32.0   ;;  %s229_s0 = inlined_call_operand.vmem [shape: f32[32,32], index: 0, kind: input, shape index: {}]   ;;  %s230_s1 = inlined_call_operand.vmem [shape: f32[1,32], index: 1, kind: input, shape index: {}]   ;;  %s231_s2 = inlined_call_operand.vmem [shape: f32[1,32], index: 2, kind: input, shape index: {}]   ;;  %s232_s3 = inlined_call_operand.vmem [shape: f32[32,32], index: 3, kind: output, shape index: {}]  }
   0x1   :  { %v16_v0 = vld [vmem:[%s229_s0 + $0x10] sm:$0xff]  ;;  %v14_v1 = vld [vmem:[%s229_s0] sm:$0xff]  ;;  %v17_v4 = vld [vmem:[%s229_s0 + $0x18] sm:$0xff]  ;;  %141 = vrcp.f32 %v151_v8 }
   0x2   :  { %v27_v2 = vsel %vm20_vm0, %v16_v0, 0.0  ;;  %v21_v3 = vsel %vm20_vm0, %v14_v1, 0.0  ;;  %v15_v5 = vld [vmem:[%s229_s0 + $0x8] sm:$0xff]  ;;  %v30_v6 = vsel %vm20_vm0, %v17_v4, 0.0  ;;  %v139_v61 = vld [vmem:[%s230_s1] ss:$0 sm:$0xff] }
   0x3   :  { %28 = vadd.xlane.f32.xlu1 %v27_v2  ;;  %22 = vadd.xlane.f32.xlu0 %v21_v3  ;;  %v24_v7 = vsel %vm20_vm0, %v15_v5, 0.0  ;;  %v140_v2 = vld [vmem:[%s231_s2] ss:$0 sm:$0xff] }
   0x7   :  { %v142_v9 = vpop.eup %141 }
   0x8   :  { %v34_v10 = vmul.f32 32.0, %v142_v9  ;;  %vm38_vm1 = vweird.f32 %v142_v9 }
   0xa   :  { %v35_v11 = vsub.f32 1.0, %v34_v10 }
   0xb   :  { %31 = vadd.xlane.f32.xlu1 %v30_v6  ;;  %25 = vadd.xlane.f32.xlu0 %v24_v7 }
   0xc   :  { %v36_v12 = vmul.f32 %v142_v9, %v35_v11 }
   0xe   :  { %v37_v13 = vadd.f32 %v142_v9, %v36_v12 }
  0x10   :  { %v39_v14 = vsel %vm38_vm1, %v142_v9, %v37_v13 }
  0x76   :  { %v29_v15 = vpop.xlane.xlu1 %28  ;;  %v23_v16 = vpop.xlane.xlu0 %22 }
  0x77   :  { %v42_v17 = vmul.f32 %v39_v14, %v29_v15  ;;  %v40_v18 = vmul.f32 %v39_v14, %v23_v16 }
  0x79   :  { %v188_v19 = vsub.f32 %v16_v0, %v42_v17  ;;  %v44_v20 = vsub.f32 %v14_v1, %v40_v18 }
  0x7b   :  { %v50_v21 = vmul.f32 %v188_v19, %v188_v19  ;;  %v48_v22 = vmul.f32 %v44_v20, %v44_v20 }
  0x7d   :  { %v58_v23 = vsel %vm20_vm0, %v50_v21, 0.0  ;;  %v52_v24 = vsel %vm20_vm0, %v48_v22, 0.0 }
  0x7e   :  { %v32_v25 = vpop.xlane.xlu1 %31  ;;  %59 = vadd.xlane.f32.xlu0 %v58_v23  ;;  %53 = vadd.xlane.f32.xlu2 %v52_v24  ;;  %v26_v26 = vpop.xlane.xlu0 %25 }
  0x7f   :  { %v43_v27 = vmul.f32 %v39_v14, %v32_v25  ;;  %v41_v28 = vmul.f32 %v39_v14, %v26_v26 }
  0x81   :  { %v194_v29 = vsub.f32 %v17_v4, %v43_v27  ;;  %v196_v30 = vsub.f32 %v15_v5, %v41_v28 }
  0x83   :  { %v51_v31 = vmul.f32 %v194_v29, %v194_v29  ;;  %v49_v32 = vmul.f32 %v196_v30, %v196_v30 }
  0x85   :  { %v61_v33 = vsel %vm20_vm0, %v51_v31, 0.0  ;;  %v55_v34 = vsel %vm20_vm0, %v49_v32, 0.0 }
  0x86   :  { %62 = vadd.xlane.f32.xlu1 %v61_v33  ;;  %56 = vadd.xlane.f32.xlu2 %v55_v34 }
  0xf1   :  { %v54_v35 = vpop.xlane.xlu2 %53  ;;  %v60_v36 = vpop.xlane.xlu0 %59 }
  0xf2   :  { %v64_v37 = vmul.f32 %v54_v35, %v39_v14  ;;  %v66_v38 = vmul.f32 %v60_v36, %v39_v14 }
  0xf4   :  { %v68_v39 = vadd.f32 1e-05, %v64_v37  ;;  %v70_v40 = vadd.f32 1e-05, %v66_v38 }
  0xf6   :  { %143 = vrsqrt.f32 %v68_v39  ;;  %vm78_vm4 = vweird.f32 %v68_v39  ;;  %vm98_vm6 = vweird.f32 %v70_v40 }
  0xf7   :  { %145 = vrsqrt.f32 %v70_v40 }
  0xf9   :  { %v63_v41 = vpop.xlane.xlu1 %62  ;;  %v57_v42 = vpop.xlane.xlu2 %56 }
  0xfa   :  { %v67_v43 = vmul.f32 %v63_v41, %v39_v14  ;;  %v65_v44 = vmul.f32 %v57_v42, %v39_v14 }
  0xfc   :  { %v144_v45 = vpop.eup %143  ;;  %v71_v46 = vadd.f32 1e-05, %v67_v43  ;;  %v69_v47 = vadd.f32 1e-05, %v65_v44 }
  0xfd   :  { %v146_v48 = vpop.eup %145  ;;  %v73_v49 = vmul.f32 %v144_v45, %v68_v39  ;;  %vm79_vm2 = vweird.f32 %v144_v45 }
  0xfe   :  { %v93_v50 = vmul.f32 %v146_v48, %v70_v40  ;;  %147 = vrsqrt.f32 %v71_v46  ;;  %vm99_vm3 = vweird.f32 %v146_v48  ;;  %vm80_vm5 = vmor %vm78_vm4, %vm79_vm2  ;;  %vm108_vm10 = vweird.f32 %v71_v46 }
  0xff   :  { %v74_v51 = vmul.f32 %v144_v45, %v73_v49  ;;  %149 = vrsqrt.f32 %v69_v47  ;;  %vm100_vm7 = vmor %vm98_vm6, %vm99_vm3  ;;  %vm88_vm12 = vweird.f32 %v69_v47 }
 0x100   :  { %v94_v52 = vmul.f32 %v146_v48, %v93_v50 }
 0x101   :  { %v75_v53 = vmul.f32 0.5, %v74_v51 }
 0x102   :  { %v95_v54 = vmul.f32 0.5, %v94_v52 }
 0x103   :  { %v76_v55 = vsub.f32 1.5, %v75_v53 }
 0x104   :  { %v148_v56 = vpop.eup %147  ;;  %v96_v57 = vsub.f32 1.5, %v95_v54 }
 0x105   :  { %v150_v58 = vpop.eup %149  ;;  %v77_v59 = vmul.f32 %v144_v45, %v76_v55  ;;  %v103_v60 = vmul.f32 %v148_v56, %v71_v46  ;;  %vm109_vm8 = vweird.f32 %v148_v56 }
 0x106   :  { %v97_v62 = vmul.f32 %v146_v48, %v96_v57  ;;  %v83_v63 = vmul.f32 %v150_v58, %v69_v47  ;;  %vm89_vm9 = vweird.f32 %v150_v58  ;;  %vm110_vm11 = vmor %vm108_vm10, %vm109_vm8 }
 0x107   :  { %v81_v0 = vsel %vm80_vm5, %v144_v45, %v77_v59  ;;  %v104_v1 = vmul.f32 %v148_v56, %v103_v60  ;;  %vm90_vm13 = vmor %vm88_vm12, %vm89_vm9 }
 0x108   :  { %v112_v3 = vmul.f32 %v81_v0, %v44_v20  ;;  %v101_v4 = vsel %vm100_vm7, %v146_v48, %v97_v62  ;;  %v84_v5 = vmul.f32 %v150_v58, %v83_v63 }
 0x109   :  { %v114_v6 = vmul.f32 %v101_v4, %v188_v19  ;;  %v105_v7 = vmul.f32 0.5, %v104_v1 }
 0x10a   :  { %v119_v8 = vmul.f32 %v139_v61, %v112_v3  ;;  %v85_v9 = vmul.f32 0.5, %v84_v5 }
 0x10b   :  { %v121_v10 = vmul.f32 %v139_v61, %v114_v6  ;;  %v106_v11 = vsub.f32 1.5, %v105_v7 }
 0x10c   :  { %v126_v12 = vadd.f32 %v140_v2, %v119_v8  ;;  %v86_v13 = vsub.f32 1.5, %v85_v9 }
 0x10d   :  { %v128_v14 = vadd.f32 %v140_v2, %v121_v10  ;;  %v107_v15 = vmul.f32 %v148_v56, %v106_v11 }
 0x10e   :  { %130 = vst.msk [vmem:[%s232_s3] sm:$0xff] %vm20_vm0, %v126_v12  ;;  %v87_v16 = vmul.f32 %v150_v58, %v86_v13 }
 0x10f   :  { %132 = vst.msk [vmem:[%s232_s3 + $0x10] sm:$0xff] %vm20_vm0, %v128_v14  ;;  %v111_v17 = vsel %vm110_vm11, %v148_v56, %v107_v15 }
 0x110   :  { %v115_v18 = vmul.f32 %v111_v17, %v194_v29  ;;  %v91_v19 = vsel %vm90_vm13, %v150_v58, %v87_v16 }
 0x111   :  { %v113_v20 = vmul.f32 %v91_v19, %v196_v30 }
 0x112   :  { %v122_v21 = vmul.f32 %v139_v61, %v115_v18 }
 0x113   :  { %v120_v22 = vmul.f32 %v139_v61, %v113_v20 }
 0x114   :  { %v129_v23 = vadd.f32 %v140_v2, %v122_v21 }
 0x115   :  { %v127_v24 = vadd.f32 %v140_v2, %v120_v22 }
 0x116   :  { %133 = vst.msk [vmem:[%s232_s3 + $0x18] sm:$0xff] %vm20_vm0, %v129_v23 }
 0x117   :  { %131 = vst.msk [vmem:[%s232_s3 + $0x8] sm:$0xff] %vm20_vm0, %v127_v24 }

// kernel: transformer_forward.6
= control target key start
LH: loop header
LB: loop body
LE: loop exit
PB: predicated region body
PF: predicated region fallthrough
CT: control target
= control target key end

     0   :  { %s3330_s18 = smov 0   ;;  %s4524_s0 = inlined_call_operand.vmem [shape: f32[2,64,32], index: 0, kind: input, shape index: {}]   ;;  %s4525_s1 = inlined_call_operand.vmem [shape: f32[2,64,32], index: 1, kind: input, shape index: {}]   ;;  %s4526_s2 = inlined_call_operand.vmem [shape: f32[2,1,64], index: 2, kind: input, shape index: {}]   ;;  %s4527_s3 = inlined_call_operand.vmem [shape: f32[32,96], index: 3, kind: input, shape index: {}]   ;;  %s4528_s4 = inlined_call_operand.vmem [shape: f32[1,96], index: 4, kind: input, shape index: {}]   ;;  %s4529_s5 = inlined_call_operand.vmem [shape: f32[32,32], index: 5, kind: input, shape index: {}]   ;;  %s4530_s6 = inlined_call_operand.vmem [shape: f32[1,32], index: 6, kind: input, shape index: {}]   ;;  %s4531_s7 = inlined_call_operand.vmem [shape: f32[1,32], index: 7, kind: input, shape index: {}]   ;;  %s4532_s8 = inlined_call_operand.vmem [shape: f32[1,32], index: 8, kind: input, shape index: {}]   ;;  %s4533_s9 = inlined_call_operand.vmem [shape: f32[32,64], index: 9, kind: input, shape index: {}]   ;;  %s4534_s10 = inlined_call_operand.vmem [shape: f32[1,64], index: 10, kind: input, shape index: {}]   ;;  %s4535_s11 = inlined_call_operand.vmem [shape: f32[64,32], index: 11, kind: input, shape index: {}]   ;;  %s4536_s12 = inlined_call_operand.vmem [shape: f32[1,32], index: 12, kind: input, shape index: {}]   ;;  %s4537_s13 = inlined_call_operand.vmem [shape: f32[1,32], index: 13, kind: input, shape index: {}]   ;;  %s4538_s14 = inlined_call_operand.vmem [shape: f32[1,32], index: 14, kind: input, shape index: {}]   ;;  %s4539_s15 = inlined_call_operand.vmem [shape: f32[2,64,32], index: 15, kind: output, shape index: {}]  }
   0x1 LB: > { %s2778_s19 = sadd.s32 4294967295, %s3239_s18   ;;  %p2782_p0 = scmp.ge.s32.totalorder %s3239_s18, 1  ;;  %s3239_s18 = sphi %s3330_s18, %s25_s18  }
   0x2   : > { %p455_p1 = scmp.lt.s32.totalorder %s3239_s18, 3 }
   0x4   : > { %p456_p2 = pnand %p2782_p0, %p455_p1 }
   0x5   : > { %p511_p3 = scmp.lt.s32.totalorder (!%p456_p2), %s2778_s19, 1  ;;  %s3241_s26 = smov (!%p456_p2), 96  }
   0x6   : > { %459 = sbr.rel (%p456_p2) target bundleno = 2549 (0x9f5), region = 80  ;;  %s3242_s27 = smov (!%p456_p2), 64  }
   0x7   : > { %s3243_s29 = smov (!%p456_p2), 88   ;;  %s3244_s30 = smov (!%p456_p2), 120  }
   0x8   : > { %s3245_s17 = smov (!%p456_p2), 80   ;;  %s3246_s20 = smov (!%p456_p2), 112  }
   0x9   : > { %s3247_s22 = smov (!%p456_p2), 72   ;;  %s3248_s23 = smov (!%p456_p2), 104  }
   0xb   : > { %v3341_v0 = vld [vmem:[%s4527_s3 + $0x18] sm:$0xff]  ;;  %v3346_v1 = vld [vmem:[%s4527_s3 + $0x10] sm:$0xff]  ;;  %v3353_v2 = vld [vmem:[%s4527_s3 + $0x8] sm:$0xff]  ;;  %s4541_s19 = smov (!%p511_p3, %s2778_s19), 1  ;;  %vm562_vm0 = vcmask 261120   ;;  %vm743_vm1 = vcmask 64512  }
   0xc   : > { %599 = vmatpush.msra.mxu0 %v3341_v0  ;;  %2954 = vmatpush.msra.mxu1 %v3341_v0  ;;  %v3360_v3 = vld [vmem:[%s4527_s3] sm:$0xff]  ;;  %s3362_s28 = sshll.u32 %s4541_s19, 6  ;;  %s3367_s16 = scalar_lea.vmem %s4526_s2, %s4541_s19  ;;  %v2983_v38 = vpack.i.bf16 %v3346_v1, %v3341_v0  ;;  %vm817_vm2 = vcmask 523264  }
   0xd   : > { %s3374_s21 = scalar_lea.vmem %s4524_s0, %s3362_s28  ;;  %s3380_s24 = scalar_lea.vmem %s4525_s1, %s3362_s28  ;;  %v3054_v29 = vld [vmem:[%s4528_s4] ss:$0 sm:$0xff]  ;;  %v2988_v46 = vpack.i.bf16 %v3360_v3, %v3353_v2 }
   0xe   : > { %600 = vmatpush.msra.mxu0 %v3346_v1  ;;  %2955 = vmatpush.msra.mxu1 %v3346_v1  ;;  %v3384_v4 = vld [vmem:[%s3374_s21] sm:$0xff]  ;;  %v3392_v7 = vld [vmem:[%s3374_s21 + $0x8] sm:$0xff]  ;;  %v3397_v10 = vld [vmem:[%s3374_s21 + $0x38] sm:$0xff] }
   0xf   : > { %v537_v5 = vld [vmem:[%s3380_s24] sm:$0xff]  ;;  %v538_v8 = vld [vmem:[%s3380_s24 + $0x8] sm:$0xff]  ;;  %v544_v11 = vld [vmem:[%s3380_s24 + $0x38] sm:$0xff] }
  0x10   : > { %601 = vmatpush.msra.mxu0 %v3353_v2  ;;  %2956 = vmatpush.msra.mxu1 %v3353_v2  ;;  %v551_v6 = vadd.f32 %v537_v5, %v3384_v4  ;;  %v552_v9 = vadd.f32 %v538_v8, %v3392_v7  ;;  %v558_v12 = vadd.f32 %v544_v11, %v3397_v10  ;;  %v3404_v13 = vld [vmem:[%s3374_s21 + $0x10] sm:$0xff]  ;;  %v3410_v16 = vld [vmem:[%s3374_s21 + $0x18] sm:$0xff]  ;;  %v3416_v19 = vld [vmem:[%s3374_s21 + $0x20] sm:$0xff] }
  0x11   : > { %v539_v14 = vld [vmem:[%s3380_s24 + $0x10] sm:$0xff]  ;;  %v540_v17 = vld [vmem:[%s3380_s24 + $0x18] sm:$0xff]  ;;  %v541_v20 = vld [vmem:[%s3380_s24 + $0x20] sm:$0xff] }
  0x12   : > { %602 = vmatpush.msra.mxu0 %v3360_v3  ;;  %2957 = vmatpush.msra.mxu1 %v3360_v3  ;;  %v553_v15 = vadd.f32 %v539_v14, %v3404_v13  ;;  %v554_v18 = vadd.f32 %v540_v17, %v3410_v16  ;;  %v555_v21 = vadd.f32 %v541_v20, %v3416_v19  ;;  %v3422_v22 = vld [vmem:[%s3374_s21 + $0x28] sm:$0xff]  ;;  %v3428_v25 = vld [vmem:[%s3374_s21 + $0x30] sm:$0xff] }
  0x13   : > { %2789 = vmatmul.msk.f32.vlgmr.msra.gmra.mxu0 %vm562_vm0, %v551_v6  ;;  %2796 = vmatmul.msk.f32.vlgmr.msra.gmra.mxu1 %vm562_vm0, %v558_v12  ;;  %v542_v23 = vld [vmem:[%s3380_s24 + $0x28] sm:$0xff]  ;;  %v543_v26 = vld [vmem:[%s3380_s24 + $0x30] sm:$0xff] }
  0x14   : > { %v556_v24 = vadd.f32 %v542_v23, %v3422_v22  ;;  %v557_v27 = vadd.f32 %v543_v26, %v3428_v25 }
  0x1b   : > { %2790 = vmatmul.msk.f32.gmra.mxu0 %vm562_vm0, %v552_v9 }
  0x23   : > { %2791 = vmatmul.msk.f32.gmra.mxu0 %vm562_vm0, %v553_v15 }
  0x2b   : > { %2792 = vmatmul.msk.f32.gmra.mxu0 %vm562_vm0, %v554_v18  ;;  %v3550_v18 = vld [vmem:[%s3367_s16] ss:$0 sm:$0xff] }
  0x33   : > { %2793 = vmatmul.msk.f32.gmra.mxu0 %vm562_vm0, %v555_v21 }
  0x3b   : > { %2794 = vmatmul.msk.f32.gmra.mxu0 %vm562_vm0, %v556_v24 }
  0x43   : > { %2795 = vmatmul.msk.f32.gmra.mxu0 %vm562_vm0, %v557_v27 }
  0x90   : > { %v604_v28 = vpop.f32.mrf.mxu0  ;;  %v625_v31 = vpop.f32.mrf.mxu1 }
  0x91   : > { %v3436_v32 = vadd.f32 %v3054_v29, %v625_v31  ;;  %v3457_v44 = vadd.f32 %v3054_v29, %v604_v28 }
  0x93   : > { %741 = vrot.lane.b32.xlu0 %v3436_v32, %s3241_s26 }
  0x98   : > { %v607_v30 = vpop.f32.mrf.mxu0 }
  0x99   : > { %v3459_v45 = vadd.f32 %v3054_v29, %v607_v30 }
  0xa0   : > { %v610_v33 = vpop.f32.mrf.mxu0 }
  0xa1   : > { %v3442_v37 = vadd.f32 %v3054_v29, %v610_v33 }
  0xa8   : > { %v613_v34 = vpop.f32.mrf.mxu0 }
  0xa9   : > { %v3439_v35 = vadd.f32 %v3054_v29, %v613_v34 }
  0xab   : > { %733 = vrot.lane.b32.xlu2 %v3439_v35, %s3241_s26 }
  0xb0   : > { %v616_v36 = vpop.f32.mrf.mxu0 }
  0xb1   : > { %v3450_v42 = vadd.f32 %v3054_v29, %v616_v36 }
  0xb3   : > { %731 = vrot.lane.b32.xlu2 %v3442_v37, %s3241_s26 }
  0xb8   : > { %v619_v39 = vpop.f32.mrf.mxu0 }
  0xb9   : > { %v3447_v40 = vadd.f32 %v3054_v29, %v619_v39 }
  0xbb   : > { %737 = vrot.lane.b32.xlu1 %v3447_v40, %s3241_s26  ;;  %2984 = vrot.lane.b32.xlu2 %v2983_v38, %s3242_s27 }
  0xc0   : > { %v622_v41 = vpop.f32.mrf.mxu0 }
  0xc1   : > { %v3452_v43 = vadd.f32 %v3054_v29, %v622_v41 }
  0xc3   : > { %739 = vrot.lane.b32.xlu0 %v3452_v43, %s3241_s26  ;;  %735 = vrot.lane.b32.xlu1 %v3450_v42, %s3241_s26 }
  0xc4   : > { %993 = vrot.lane.b32.xlu2 %v3439_v35, %s3243_s29 }
  0xcb   : > { %729 = vrot.lane.b32.xlu0 %v3459_v45, %s3241_s26  ;;  %727 = vrot.lane.b32.xlu1 %v3457_v44, %s3241_s26 }
  0xcc   : > { %975 = vrot.lane.b32.xlu2 %v3442_v37, %s3244_s30 }
  0xd3   : > { %2989 = vrot.lane.b32.xlu0 %v2988_v46, %s3242_s27  ;;  %1001 = vrot.lane.b32.xlu1 %v3436_v32, %s3243_s29 }
  0xd4   : > { %1417 = vrot.lane.b32.xlu2 %v3447_v40, %s3245_s17 }
  0xdb   : > { %644 = vrot.lane.b32.xlu0 %v3054_v29, %s3242_s27  ;;  %997 = vrot.lane.b32.xlu1 %v3447_v40, %s3243_s29 }
  0xdc   : > { %999 = vrot.lane.b32.xlu2 %v3452_v43, %s3243_s29 }
  0xe3   : > { %995 = vrot.lane.b32.xlu0 %v3450_v42, %s3243_s29  ;;  %971 = vrot.lane.b32.xlu1 %v3457_v44, %s3244_s30 }
  0xeb   : > { %991 = vrot.lane.b32.xlu0 %v3442_v37, %s3243_s29  ;;  %1421 = vrot.lane.b32.xlu1 %v3436_v32, %s3245_s17 }
  0xf3   : > { %989 = vrot.lane.b32.xlu0 %v3459_v45, %s3243_s29  ;;  %981 = vrot.lane.b32.xlu1 %v3447_v40, %s3244_s30 }
  0xfb   : > { %987 = vrot.lane.b32.xlu0 %v3457_v44, %s3243_s29 }
 0x103   : > { %973 = vrot.lane.b32.xlu0 %v3459_v45, %s3244_s30 }
 0x105   : > { %v734_v47 = vpop.permute.xlu2 %733  ;;  %v742_v48 = vpop.permute.xlu0 %741 }
 0x106   : > { %2805 = vmatpush.xpose.msk.msra.mxu2 %vm743_vm1, %v742_v48 }
 0x10b   : > { %977 = vrot.lane.b32.xlu0 %v3439_v35, %s3244_s30 }
 0x10d   : > { %v732_v49 = vpop.permute.xlu2 %731 }
 0x113   : > { %979 = vrot.lane.b32.xlu0 %v3450_v42, %s3244_s30 }
 0x115   : > { %v2985_v50 = vpop.permute.xlu2 %2984 }
 0x116   : > { %v2986_v51 = vunpack.i.l.bf16 %v2985_v50  ;;  %v2987_v52 = vunpack.i.h.bf16 %v2985_v50 }
 0x118   : > { %683 = vmatpush.msrb.mxu1 %v2986_v51 }
 0x11a   : > { %684 = vmatpush.msrb.mxu1 %v2987_v52 }
 0x11b   : > { %1419 = vrot.lane.b32.xlu0 %v3452_v43, %s3245_s17 }
 0x11e   : > { %v994_v53 = vpop.permute.xlu2 %993 }
 0x126   : > { %v976_v57 = vpop.permute.xlu2 %975 }
 0x12d   : > { %v738_v54 = vpop.permute.xlu1 %737 }
 0x12e   : > { %v1418_v60 = vpop.permute.xlu2 %1417 }
 0x135   : > { %v740_v55 = vpop.permute.xlu0 %739  ;;  %v736_v56 = vpop.permute.xlu1 %735 }
 0x136   : > { %2806 = vmatpush.xpose.msk.msra.mxu2 %vm743_vm1, %v740_v55  ;;  %v1000_v1 = vpop.permute.xlu2 %999 }
 0x13a   : > { %2807 = vmatpush.xpose.msk.msra.mxu2 %vm743_vm1, %v738_v54 }
 0x13d   : > { %v730_v58 = vpop.permute.xlu0 %729  ;;  %v728_v59 = vpop.permute.xlu1 %727 }
 0x13e   : > { %2808 = vmatpush.xpose.msk.msra.mxu2 %vm743_vm1, %v736_v56 }
 0x142   : > { %2809 = vmatpush.xpose.msk.msra.mxu2 %vm743_vm1, %v734_v47 }
 0x145   : > { %v2990_v61 = vpop.permute.xlu0 %2989  ;;  %v1002_v62 = vpop.permute.xlu1 %1001 }
 0x146   : > { %2810 = vmatpush.xpose.msk.msra.mxu2 %vm743_vm1, %v732_v49  ;;  %2829 = vmatpush.xpose.msk.msrb.mxu0 %vm743_vm1, %v1002_v62  ;;  %v2991_v63 = vunpack.i.l.bf16 %v2990_v61  ;;  %v2992_v0 = vunpack.i.h.bf16 %v2990_v61 }
 0x148   : > { %685 = vmatpush.msrb.mxu1 %v2991_v63 }
 0x14a   : > { %686 = vmatpush.msrb.mxu1 %v2992_v0  ;;  %2811 = vmatpush.xpose.msk.msra.mxu2 %vm743_vm1, %v730_v58 }
 0x14b   : > { %2830 = vmatpush.xpose.msk.msrb.mxu0 %vm743_vm1, %v1000_v1  ;;  %2797 = vmatmul.msk.f32.vlgmr.msrb.gmra.mxu1 %vm562_vm0, %v3384_v4 }
 0x14d   : > { %v3501_v2 = vpop.permute.xlu0 %644  ;;  %v998_v3 = vpop.permute.xlu1 %997 }
 0x14e   : > { %2812 = vmatpush.xpose.msk.msra.mxu2 %vm743_vm1, %v728_v59 }
 0x14f   : > { %2831 = vmatpush.xpose.msk.msrb.mxu0 %vm743_vm1, %v998_v3 }
 0x151   : > { %2813 = vmatmul.msk.f32.vlgmr.msra.gmra.mxu2 %vm743_vm1, %v3457_v44 }
 0x153   : > { %2798 = vmatmul.msk.f32.gmra.mxu1 %vm562_vm0, %v3392_v7 }
 0x155   : > { %v996_v5 = vpop.permute.xlu0 %995  ;;  %v972_v6 = vpop.permute.xlu1 %971 }
 0x156   : > { %2832 = vmatpush.xpose.msk.msrb.mxu0 %vm743_vm1, %v996_v5 }
 0x159   : > { %2814 = vmatmul.msk.f32.gmra.mxu2 %vm743_vm1, %v3459_v45 }
 0x15a   : > { %2833 = vmatpush.xpose.msk.msrb.mxu0 %vm743_vm1, %v994_v53 }
 0x15b   : > { %2799 = vmatmul.msk.f32.gmra.mxu1 %vm562_vm0, %v3404_v13 }
 0x15d   : > { %v992_v4 = vpop.permute.xlu0 %991  ;;  %v1422_v9 = vpop.permute.xlu1 %1421 }
 0x15e   : > { %2834 = vmatpush.xpose.msk.msrb.mxu0 %vm743_vm1, %v992_v4 }
 0x161   : > { %2815 = vmatmul.msk.f32.gmra.mxu2 %vm743_vm1, %v3442_v37 }
 0x163   : > { %2800 = vmatmul.msk.f32.gmra.mxu1 %vm562_vm0, %v3410_v16 }
 0x165   : > { %v990_v7 = vpop.permute.xlu0 %989  ;;  %v982_v15 = vpop.permute.xlu1 %981 }
 0x166   : > { %2835 = vmatpush.xpose.msk.msrb.mxu0 %vm743_vm1, %v990_v7 }
 0x169   : > { %2816 = vmatmul.msk.f32.gmra.mxu2 %vm743_vm1, %v3439_v35 }
 0x16b   : > { %2801 = vmatmul.msk.f32.gmra.mxu1 %vm562_vm0, %v3416_v19 }
 0x16d   : > { %v988_v8 = vpop.permute.xlu0 %987 }
 0x16e   : > { %2836 = vmatpush.xpose.msk.msrb.mxu0 %vm743_vm1, %v988_v8 }
 0x171   : > { %2817 = vmatmul.msk.f32.gmra.mxu2 %vm743_vm1, %v3450_v42  ;;  %2837 = vmatmul.msk.f32.vlgmr.msrb.gmra.mxu0 %vm743_vm1, %v972_v6 }
 0x172   : > { %2869 = vmatpush.xpose.msk.msra.mxu0 %vm743_vm1, %v1422_v9 }
 0x173   : > { %2802 = vmatmul.msk.f32.gmra.mxu1 %vm562_vm0, %v3422_v22 }
 0x175   : > { %v974_v11 = vpop.permute.xlu0 %973 }
 0x179   : > { %2818 = vmatmul.msk.f32.gmra.mxu2 %vm743_vm1, %v3447_v40  ;;  %2838 = vmatmul.msk.f32.gmra.mxu0 %vm743_vm1, %v974_v11 }
 0x17b   : > { %2803 = vmatmul.msk.f32.gmra.mxu1 %vm562_vm0, %v3428_v25 }
 0x17d   : > { %v978_v12 = vpop.permute.xlu0 %977 }
 0x181   : > { %2819 = vmatmul.msk.f32.gmra.mxu2 %vm743_vm1, %v3452_v43  ;;  %2839 = vmatmul.msk.f32.gmra.mxu0 %vm743_vm1, %v976_v57 }
 0x183   : > { %2804 = vmatmul.msk.f32.gmra.mxu1 %vm562_vm0, %v3397_v10 }
 0x185   : > { %v980_v13 = vpop.permute.xlu0 %979 }
 0x189   : > { %2820 = vmatmul.msk.f32.gmra.mxu2 %vm743_vm1, %v3436_v32  ;;  %2840 = vmatmul.msk.f32.gmra.mxu0 %vm743_vm1, %v978_v12 }
 0x18d   : > { %v1420_v14 = vpop.permute.xlu0 %1419 }
 0x18e   : > { %2870 = vmatpush.xpose.msk.msra.mxu0 %vm743_vm1, %v1420_v14 }
 0x191   : > { %2841 = vmatmul.msk.f32.gmra.mxu0 %vm743_vm1, %v980_v13 }
 0x192   : > { %2871 = vmatpush.xpose.msk.msra.mxu0 %vm743_vm1, %v1418_v60 }
 0x199   : > { %2842 = vmatmul.msk.f32.gmra.mxu0 %vm743_vm1, %v982_v15 }
 0x1c8   : > { %v688_v16 = vpop.f32.mrf.mxu1 }
 0x1c9   : > { %v689_v24 = vadd.f32 %v688_v16, %v3501_v2 }
 0x1d0   : > { %v691_v17 = vpop.f32.mrf.mxu1 }
 0x1d1   : > { %v692_v25 = vadd.f32 %v691_v17, %v3501_v2 }
 0x1d3   : > { %v3560_v30 = vpack.i.bf16 %v689_v24, %v692_v25 }
 0x1d4   : > { %v793_v10 = vpop.f32.mrf.mxu2 }
 0x1d5   : > { %v794_v19 = vadd.f32 %v3550_v18, %v793_v10 }
 0x1d7   : > { %v818_v20 = vsel %vm817_vm2, %v794_v19, -inf }
 0x1d8   : > { %v694_v21 = vpop.f32.mrf.mxu1  ;;  %819 = vmax.xlane.f32.xlu1 %v818_v20 }
 0x1d9   : > { %v695_v26 = vadd.f32 %v694_v21, %v3501_v2 }
 0x1dc   : > { %v796_v22 = vpop.f32.mrf.mxu2 }
 0x1dd   : > { %v797_v23 = vadd.f32 %v3550_v18, %v796_v22 }
 0x1df   : > { %v821_v27 = vsel %vm817_vm2, %v797_v23, -inf }
 0x1e0   : > { %v697_v28 = vpop.f32.mrf.mxu1  ;;  %822 = vmax.xlane.f32.xlu2 %v821_v27 }
 0x1e1   : > { %v698_v29 = vadd.f32 %v697_v28, %v3501_v2 }
 0x1e3   : > { %v3562_v31 = vpack.i.bf16 %v695_v26, %v698_v29 }
 0x1e4   : > { %v799_v33 = vpop.f32.mrf.mxu2 }
 0x1e5   : > { %v800_v34 = vadd.f32 %v3550_v18, %v799_v33 }
 0x1e7   : > { %v824_v36 = vsel %vm817_vm2, %v800_v34, -inf }
 0x1e8   : > { %v700_v38 = vpop.f32.mrf.mxu1  ;;  %825 = vmax.xlane.f32.xlu0 %v824_v36 }
 0x1e9   : > { %v701_v46 = vadd.f32 %v700_v38, %v3501_v2 }
 0x1ec   : > { %v802_v39 = vpop.f32.mrf.mxu2 }
 0x1ed   : > { %v803_v41 = vadd.f32 %v3550_v18, %v802_v39 }
 0x1ef   : > { %v827_v47 = vsel %vm817_vm2, %v803_v41, -inf }
 0x1f0   : > { %v703_v48 = vpop.f32.mrf.mxu1  ;;  %828 = vmax.xlane.f32.xlu2 %v827_v47 }
 0x1f1   : > { %v704_v49 = vadd.f32 %v703_v48, %v3501_v2 }
 0x1f3   : > { %v3570_v50 = vpack.i.bf16 %v701_v46, %v704_v49 }
 0x1f4   : > { %v805_v51 = vpop.f32.mrf.mxu2 }
 0x1f5   : > { %v3573_v52 = vadd.f32 %v3550_v18, %v805_v51 }
 0x1f7   : > { %v830_v53 = vsel %vm817_vm2, %v3573_v52, -inf }
 0x1f8   : > { %v706_v54 = vpop.f32.mrf.mxu1  ;;  %831 = vmax.xlane.f32.xlu1 %v830_v53 }
 0x1f9   : > { %v707_v57 = vadd.f32 %v706_v54, %v3501_v2 }
 0x1fc   : > { %v808_v55 = vpop.f32.mrf.mxu2  ;;  %1415 = vrot.lane.b32.xlu0 %v3450_v42, %s3245_s17 }
 0x1fd   : > { %v3580_v56 = vadd.f32 %v3550_v18, %v808_v55 }
 0x1ff   : > { %v833_v58 = vsel %vm817_vm2, %v3580_v56, -inf }
 0x200   : > { %v709_v59 = vpop.f32.mrf.mxu1  ;;  %834 = vmax.xlane.f32.xlu2 %v833_v58 }
 0x201   : > { %v710_v60 = vadd.f32 %v709_v59, %v3501_v2 }
 0x203   : > { %938 = vmatpush.msra.mxu3 %v710_v60  ;;  %v3586_v61 = vpack.i.bf16 %v707_v57, %v710_v60 }
 0x204   : > { %v811_v62 = vpop.f32.mrf.mxu2 }
 0x205   : > { %v812_v63 = vadd.f32 %v3550_v18, %v811_v62  ;;  %939 = vmatpush.msra.mxu3 %v707_v57 }
 0x207   : > { %940 = vmatpush.msra.mxu3 %v704_v49  ;;  %v836_v0 = vsel %vm817_vm2, %v812_v63, -inf }
 0x208   : > { %837 = vmax.xlane.f32.xlu1 %v836_v0 }
 0x209   : > { %941 = vmatpush.msra.mxu3 %v701_v46 }
 0x20b   : > { %942 = vmatpush.msra.mxu3 %v698_v29 }
 0x20c   : > { %v814_v1 = vpop.f32.mrf.mxu2 }
 0x20d   : > { %v3591_v3 = vadd.f32 %v3550_v18, %v814_v1  ;;  %943 = vmatpush.msra.mxu3 %v695_v26 }
 0x20f   : > { %944 = vmatpush.msra.mxu3 %v692_v25  ;;  %v839_v2 = vsel %vm817_vm2, %v3591_v3, -inf }
 0x210   : > { %840 = vmax.xlane.f32.xlu1 %v839_v2 }
 0x211   : > { %945 = vmatpush.msra.mxu3 %v689_v24 }
 0x24b   : > { %v820_v5 = vpop.xlane.xlu1 %819 }
 0x24c   : > { %v842_v4 = vsub.f32 %v794_v19, %v820_v5 }
 0x24e   : > { %v850_v6 = vmul.f32 1.442695, %v842_v4 }
 0x250   : > { %3062 = vpow2.f32 %v850_v6 }
 0x253   : > { %v823_v7 = vpop.xlane.xlu2 %822 }
 0x254   : > { %v843_v8 = vsub.f32 %v797_v23, %v823_v7 }
 0x256   : > { %v3595_v9 = vpop.eup %3062  ;;  %v852_v11 = vmul.f32 1.442695, %v843_v8  ;;  %v712_v8 = vld [vmem:[%s4529_s5] sm:$0xff] }
 0x257   : > { %v866_v12 = vsel %vm817_vm2, %v3595_v9, 0.0  ;;  %1365 = vmatpush.msrb.mxu2 %v712_v8 }
 0x258   : > { %3064 = vpow2.f32 %v852_v11  ;;  %867 = vadd.xlane.f32.xlu2 %v866_v12 }
 0x25b   : > { %v826_v13 = vpop.xlane.xlu0 %825 }
 0x25c   : > { %v844_v14 = vsub.f32 %v800_v34, %v826_v13 }
 0x25e   : > { %v3599_v15 = vpop.eup %3064  ;;  %v854_v16 = vmul.f32 1.442695, %v844_v14 }
 0x25f   : > { %v869_v17 = vsel %vm817_vm2, %v3599_v15, 0.0 }
 0x260   : > { %3066 = vpow2.f32 %v854_v16  ;;  %870 = vadd.xlane.f32.xlu2 %v869_v17 }
 0x263   : > { %v829_v10 = vpop.xlane.xlu2 %828 }
 0x264   : > { %v845_v19 = vsub.f32 %v803_v41, %v829_v10 }
 0x266   : > { %v3603_v20 = vpop.eup %3066  ;;  %v856_v21 = vmul.f32 1.442695, %v845_v19 }
 0x267   : > { %v872_v22 = vsel %vm817_vm2, %v3603_v20, 0.0 }
 0x268   : > { %3068 = vpow2.f32 %v856_v21  ;;  %873 = vadd.xlane.f32.xlu1 %v872_v22 }
 0x26b   : > { %v832_v26 = vpop.xlane.xlu1 %831 }
 0x26c   : > { %v846_v27 = vsub.f32 %v3573_v52, %v832_v26  ;;  %v3648_v52 = vpop.f32.mrf.mxu0 }
 0x26e   : > { %v3607_v23 = vpop.eup %3068  ;;  %v1416_v24 = vpop.permute.xlu0 %1415  ;;  %v858_v28 = vmul.f32 1.442695, %v846_v27 }
 0x26f   : > { %2872 = vmatpush.xpose.msk.msra.mxu0 %vm743_vm1, %v1416_v24  ;;  %v875_v25 = vsel %vm817_vm2, %v3607_v23, 0.0 }
 0x270   : > { %876 = vadd.xlane.f32.xlu0 %v875_v25  ;;  %3070 = vpow2.f32 %v858_v28 }
 0x273   : > { %v835_v29 = vpop.xlane.xlu2 %834 }
 0x274   : > { %v847_v34 = vsub.f32 %v3580_v56, %v835_v29  ;;  %v3660_v54 = vpop.f32.mrf.mxu0  ;;  %v3729_v29 = vadd.f32 %v3550_v18, %v3648_v52 }
 0x276   : > { %v860_v38 = vmul.f32 1.442695, %v847_v34  ;;  %v3626_v39 = vpop.eup %3070 }
 0x277   : > { %v878_v46 = vsel %vm817_vm2, %v3626_v39, 0.0 }
 0x278   : > { %1413 = vrot.lane.b32.xlu2 %v3439_v35, %s3245_s17  ;;  %3072 = vpow2.f32 %v860_v38 }
 0x27b   : > { %v838_v33 = vpop.xlane.xlu1 %837 }
 0x27c   : > { %v848_v36 = vsub.f32 %v812_v63, %v838_v33  ;;  %v1076_v33 = vsel %vm817_vm2, %v3729_v29, -inf }
 0x27e   : > { %v862_v41 = vmul.f32 1.442695, %v848_v36  ;;  %v3632_v47 = vpop.eup %3072 }
 0x27f   : > { %v881_v49 = vsel %vm817_vm2, %v3632_v47, 0.0 }
 0x280   : > { %3074 = vpow2.f32 %v862_v41 }
 0x281   : > { %983 = vrot.lane.b32.xlu1 %v3452_v43, %s3244_s30 }
 0x283   : > { %v841_v56 = vpop.xlane.xlu1 %840 }
 0x284   : > { %1411 = vrot.lane.b32.xlu0 %v3442_v37, %s3245_s17  ;;  %v849_v0 = vsub.f32 %v3591_v3, %v841_v56 }
 0x286   : > { %v3634_v48 = vpop.eup %3074  ;;  %v864_v6 = vmul.f32 1.442695, %v849_v0 }
 0x287   : > { %v884_v51 = vsel %vm817_vm2, %v3634_v48, 0.0 }
 0x28c   : > { %1407 = vrot.lane.b32.xlu0 %v3457_v44, %s3245_s17 }
 0x294   : > { %1395 = vrot.lane.b32.xlu0 %v3442_v37, %s3246_s20 }
 0x29c   : > { %1776 = vrot.lane.b32.xlu0 %v3436_v32, %s3247_s22 }
 0x2a1   : > { %879 = vadd.xlane.f32.xlu2 %v878_v46 }
 0x2a4   : > { %1772 = vrot.lane.b32.xlu0 %v3447_v40, %s3247_s22 }
 0x2a9   : > { %882 = vadd.xlane.f32.xlu2 %v881_v49  ;;  %v3767_v49 = vadd.f32 %v3550_v18, %v3660_v54 }
 0x2ab   : > { %885 = vadd.xlane.f32.xlu1 %v884_v51 }
 0x2ac   : > { %1768 = vrot.lane.b32.xlu0 %v3439_v35, %s3247_s22 }
 0x2b4   : > { %1764 = vrot.lane.b32.xlu0 %v3459_v45, %s3247_s22 }
 0x2bc   : > { %1748 = vrot.lane.b32.xlu0 %v3459_v45, %s3248_s23 }
 0x2c1   : > { %1409 = vrot.lane.b32.xlu2 %v3459_v45, %s3245_s17 }
 0x2c4   : > { %1754 = vrot.lane.b32.xlu0 %v3450_v42, %s3248_s23  ;;  %985 = vrot.lane.b32.xlu1 %v3436_v32, %s3244_s30 }
 0x2c9   : > { %1393 = vrot.lane.b32.xlu2 %v3459_v45, %s3246_s20  ;;  %v1058_v45 = vpop.f32.mrf.mxu0 }
 0x2ca   : > { %v3690_v12 = vadd.f32 %v3550_v18, %v1058_v45 }
 0x2cb   : > { %v868_v53 = vpop.xlane.xlu2 %867 }
 0x2cc   : > { %3076 = vrcp.f32 %v868_v53  ;;  %1760 = vrot.lane.b32.xlu0 %v3436_v32, %s3248_s23  ;;  %1391 = vrot.lane.b32.xlu1 %v3457_v44, %s3246_s20  ;;  %v1079_v53 = vsel %vm817_vm2, %v3767_v49, -inf }
 0x2d1   : > { %v3672_v2 = vpop.f32.mrf.mxu0 }
 0x2d2   : > { %v3077_v55 = vpop.eup %3076  ;;  %v3741_v34 = vadd.f32 %v3550_v18, %v3672_v2 }
 0x2d3   : > { %v871_v57 = vpop.xlane.xlu2 %870  ;;  %v898_v58 = vmul.f32 %v3077_v55, %v3595_v9 }
 0x2d4   : > { %3078 = vrcp.f32 %v871_v57  ;;  %1397 = vrot.lane.b32.xlu1 %v3439_v35, %s3246_s20  ;;  %v1085_v36 = vsel %vm817_vm2, %v3741_v34, -inf }
 0x2d5   : > { %2821 = vmatmul.msk.f32.vlgmr.msra.gmra.mxu3 %vm817_vm2, %v898_v58 }
 0x2d9   : > { %v3682_v9 = vpop.f32.mrf.mxu0 }
 0x2da   : > { %v3079_v59 = vpop.eup %3078  ;;  %v3778_v54 = vadd.f32 %v3550_v18, %v3682_v9 }
 0x2db   : > { %v1414_v60 = vpop.permute.xlu2 %1413  ;;  %v874_v62 = vpop.xlane.xlu1 %873  ;;  %v899_v63 = vmul.f32 %v3079_v59, %v3599_v15  ;;  %v1082_v15 = vsel %vm817_vm2, %v3690_v12, -inf }
 0x2dc   : > { %3080 = vrcp.f32 %v874_v62  ;;  %2873 = vmatpush.xpose.msk.msra.mxu0 %vm743_vm1, %v1414_v60  ;;  %1774 = vrot.lane.b32.xlu1 %v3452_v43, %s3247_s22  ;;  %v1088_v45 = vsel %vm817_vm2, %v3778_v54, -inf }
 0x2dd   : > { %2822 = vmatmul.msk.f32.gmra.mxu3 %vm817_vm2, %v899_v63 }
 0x2e1   : > { %v1067_v16 = vpop.f32.mrf.mxu0 }
 0x2e2   : > { %v3081_v1 = vpop.eup %3080  ;;  %v3701_v10 = vadd.f32 %v3550_v18, %v1067_v16 }
 0x2e3   : > { %v877_v5 = vpop.xlane.xlu0 %876  ;;  %v900_v4 = vmul.f32 %v3081_v1, %v3603_v20 }
 0x2e4   : > { %3082 = vrcp.f32 %v877_v5  ;;  %1770 = vrot.lane.b32.xlu1 %v3450_v42, %s3247_s22  ;;  %v1091_v19 = vsel %vm817_vm2, %v3701_v10, -inf }
 0x2e5   : > { %2823 = vmatmul.msk.f32.gmra.mxu3 %vm817_vm2, %v900_v4  ;;  %3084 = vpow2.f32 %v864_v6 }
 0x2ea   : > { %v3083_v7 = vpop.eup %3082 }
 0x2eb   : > { %v901_v3 = vmul.f32 %v3083_v7, %v3607_v23  ;;  %v3687_v11 = vpop.eup %3084 }
 0x2ec   : > { %1766 = vrot.lane.b32.xlu1 %v3442_v37, %s3247_s22  ;;  %v887_v13 = vsel %vm817_vm2, %v3687_v11, 0.0 }
 0x2ed   : > { %2824 = vmatmul.msk.f32.gmra.mxu3 %vm817_vm2, %v901_v3 }
 0x2f2   : > { %888 = vadd.xlane.f32.xlu2 %v887_v13 }
 0x2f3   : > { %v984_v14 = vpop.permute.xlu1 %983 }
 0x2f4   : > { %1762 = vrot.lane.b32.xlu1 %v3457_v44, %s3247_s22  ;;  %2843 = vmatmul.msk.f32.gmra.mxu0 %vm743_vm1, %v984_v14 }
 0x2f6   : > { %v1412_v17 = vpop.permute.xlu0 %1411  ;;  %1083 = vmax.xlane.f32.xlu0 %v1082_v15 }
 0x2f7   : > { %2874 = vmatpush.xpose.msk.msra.mxu0 %vm743_vm1, %v1412_v17 }
 0x2fc   : > { %1750 = vrot.lane.b32.xlu1 %v3442_v37, %s3248_s23 }
 0x2fe   : > { %v1408_v20 = vpop.permute.xlu0 %1407  ;;  %1092 = vmax.xlane.f32.xlu0 %v1091_v19 }
 0x304   : > { %1756 = vrot.lane.b32.xlu1 %v3447_v40, %s3248_s23 }
 0x306   : > { %v1396_v21 = vpop.permute.xlu0 %1395 }
 0x30a   : > { %1399 = vrot.lane.b32.xlu2 %v3450_v42, %s3246_s20 }
 0x30e   : > { %v1777_v22 = vpop.permute.xlu0 %1776 }
 0x30f   : > { %2958 = vmatpush.xpose.msk.msra.mxu2 %vm743_vm1, %v1777_v22 }
 0x312   : > { %2999 = vrot.lane.b32.xlu0 %v3570_v50, %s3244_s30  ;;  %1401 = vrot.lane.b32.xlu2 %v3447_v40, %s3246_s20 }
 0x314   : > { %v880_v37 = vpop.xlane.xlu2 %879 }
 0x315   : > { %3086 = vrcp.f32 %v880_v37 }
 0x31a   : > { %3009 = vrot.lane.b32.xlu0 %v3560_v30, %s3244_s30  ;;  %1403 = vrot.lane.b32.xlu2 %v3452_v43, %s3246_s20 }
 0x31b   : > { %v3087_v23 = vpop.eup %3086 }
 0x31c   : > { %v883_v24 = vpop.xlane.xlu2 %882  ;;  %v902_v42 = vmul.f32 %v3087_v23, %v3626_v39 }
 0x31d   : > { %3088 = vrcp.f32 %v883_v24 }
 0x31e   : > { %2825 = vmatmul.msk.f32.gmra.mxu3 %vm817_vm2, %v902_v42  ;;  %v886_v25 = vpop.xlane.xlu1 %885 }
 0x31f   : > { %3090 = vrcp.f32 %v886_v25 }
 0x322   : > { %1405 = vrot.lane.b32.xlu2 %v3436_v32, %s3246_s20 }
 0x323   : > { %v3089_v40 = vpop.eup %3088 }
 0x324   : > { %v1410_v26 = vpop.permute.xlu2 %1409  ;;  %v903_v27 = vmul.f32 %v3089_v40, %v3632_v47  ;;  %v1773_v47 = vpop.permute.xlu0 %1772 }
 0x325   : > { %2875 = vmatpush.xpose.msk.msra.mxu0 %vm743_vm1, %v1410_v26  ;;  %v3091_v28 = vpop.eup %3090 }
 0x326   : > { %2826 = vmatmul.msk.f32.gmra.mxu3 %vm817_vm2, %v903_v27  ;;  %v904_v32 = vmul.f32 %v3091_v28, %v3634_v48 }
 0x329   : > { %2876 = vmatpush.xpose.msk.msra.mxu0 %vm743_vm1, %v1408_v20 }
 0x32a   : > { %1746 = vrot.lane.b32.xlu2 %v3457_v44, %s3248_s23 }
 0x32c   : > { %v1394_v39 = vpop.permute.xlu2 %1393  ;;  %v1769_v48 = vpop.permute.xlu0 %1768 }
 0x32d   : > { %2901 = vmatpush.xpose.msk.msrb.mxu0 %vm743_vm1, %v1777_v22 }
 0x32e   : > { %1077 = vmax.xlane.f32.xlu1 %v1076_v33  ;;  %2827 = vmatmul.msk.f32.gmra.mxu3 %vm817_vm2, %v904_v32 }
 0x332   : > { %1752 = vrot.lane.b32.xlu2 %v3439_v35, %s3248_s23 }
 0x334   : > { %v1765_v55 = vpop.permute.xlu0 %1764 }
 0x336   : > { %1086 = vmax.xlane.f32.xlu1 %v1085_v36  ;;  %v986_v44 = vpop.permute.xlu1 %985 }
 0x337   : > { %2844 = vmatmul.msk.f32.gmra.mxu0 %vm743_vm1, %v986_v44 }
 0x33a   : > { %1758 = vrot.lane.b32.xlu2 %v3452_v43, %s3248_s23 }
 0x33c   : > { %v1749_v8 = vpop.permute.xlu0 %1748 }
 0x33e   : > { %v1392_v38 = vpop.permute.xlu1 %1391 }
 0x33f   : > { %2877 = vmatmul.msk.f32.vlgmr.msra.gmra.mxu0 %vm743_vm1, %v1392_v38 }
 0x344   : > { %v3801_v9 = vpop.permute.xlu0 %1754 }
 0x346   : > { %v1398_v41 = vpop.permute.xlu1 %1397 }
 0x347   : > { %2878 = vmatmul.msk.f32.gmra.mxu0 %vm743_vm1, %v1394_v39 }
 0x34c   : > { %v3807_v16 = vpop.permute.xlu0 %1760 }
 0x34e   : > { %v1775_v46 = vpop.permute.xlu1 %1774 }
 0x34f   : > { %2994 = vrot.lane.b32.xlu1 %v3586_v61, %s3244_s30  ;;  %2879 = vmatmul.msk.f32.gmra.mxu0 %vm743_vm1, %v1396_v21 }
 0x350   : > { %2902 = vmatpush.xpose.msk.msrb.mxu0 %vm743_vm1, %v1775_v46  ;;  %2959 = vmatpush.xpose.msk.msra.mxu2 %vm743_vm1, %v1775_v46 }
 0x354   : > { %2903 = vmatpush.xpose.msk.msrb.mxu0 %vm743_vm1, %v1773_v47  ;;  %2960 = vmatpush.xpose.msk.msra.mxu2 %vm743_vm1, %v1773_v47 }
 0x356   : > { %v1771_v35 = vpop.permute.xlu1 %1770 }
 0x357   : > { %2880 = vmatmul.msk.f32.gmra.mxu0 %vm743_vm1, %v1398_v41 }
 0x358   : > { %2904 = vmatpush.xpose.msk.msrb.mxu0 %vm743_vm1, %v1771_v35  ;;  %2961 = vmatpush.xpose.msk.msra.mxu2 %vm743_vm1, %v1771_v35  ;;  %v947_v43 = vpop.f32.mrf.mxu3 }
 0x359   : > { %2861 = vmatmul.msk.f32.vlgmr.msrb.gmra.mxu2 %vm743_vm1, %v947_v43 }
 0x35c   : > { %2905 = vmatpush.xpose.msk.msrb.mxu0 %vm743_vm1, %v1769_v48  ;;  %2962 = vmatpush.xpose.msk.msra.mxu2 %vm743_vm1, %v1769_v48 }
 0x35e   : > { %v1767_v51 = vpop.permute.xlu1 %1766 }
 0x360   : > { %2906 = vmatpush.xpose.msk.msrb.mxu0 %vm743_vm1, %v1767_v51  ;;  %2963 = vmatpush.xpose.msk.msra.mxu2 %vm743_vm1, %v1767_v51  ;;  %v950_v52 = vpop.f32.mrf.mxu3 }
 0x361   : > { %2862 = vmatmul.msk.f32.gmra.mxu2 %vm743_vm1, %v950_v52 }
 0x363   : > { %1080 = vmax.xlane.f32.xlu2 %v1079_v53 }
 0x364   : > { %2907 = vmatpush.xpose.msk.msrb.mxu0 %vm743_vm1, %v1765_v55  ;;  %2964 = vmatpush.xpose.msk.msra.mxu2 %vm743_vm1, %v1765_v55 }
 0x365   : > { %v889_v56 = vpop.xlane.xlu2 %888 }
 0x366   : > { %3092 = vrcp.f32 %v889_v56  ;;  %v1763_v57 = vpop.permute.xlu1 %1762 }
 0x368   : > { %2908 = vmatpush.xpose.msk.msrb.mxu0 %vm743_vm1, %v1763_v57  ;;  %2965 = vmatpush.xpose.msk.msra.mxu2 %vm743_vm1, %v1763_v57  ;;  %v953_v58 = vpop.f32.mrf.mxu3 }
 0x369   : > { %2863 = vmatmul.msk.f32.gmra.mxu2 %vm743_vm1, %v953_v58  ;;  %v1084_v20 = vpop.xlane.xlu0 %1083 }
 0x36a   : > { %v1102_v37 = vsub.f32 %v3690_v12, %v1084_v20 }
 0x36b   : > { %1089 = vmax.xlane.f32.xlu2 %v1088_v45 }
 0x36c   : > { %v3093_v59 = vpop.eup %3092  ;;  %v1112_v24 = vmul.f32 1.442695, %v1102_v37 }
 0x36d   : > { %v1400_v60 = vpop.permute.xlu2 %1399  ;;  %v905_v62 = vmul.f32 %v3093_v59, %v3687_v11 }
 0x36e   : > { %2881 = vmatmul.msk.f32.gmra.mxu0 %vm743_vm1, %v1400_v60  ;;  %v3798_v3 = vpop.permute.xlu1 %1750 }
 0x36f   : > { %2828 = vmatmul.msk.f32.gmra.mxu3 %vm817_vm2, %v905_v62 }
 0x370   : > { %v956_v63 = vpop.f32.mrf.mxu3 }
 0x371   : > { %v1070_v0 = vpop.f32.mrf.mxu0  ;;  %2864 = vmatmul.msk.f32.gmra.mxu2 %vm743_vm1, %v956_v63  ;;  %v1093_v27 = vpop.xlane.xlu0 %1092 }
 0x372   : > { %v3790_v1 = vadd.f32 %v3550_v18, %v1070_v0  ;;  %v1105_v60 = vsub.f32 %v3701_v10, %v1093_v27 }
 0x374   : > { %v1094_v2 = vsel %vm817_vm2, %v3790_v1, -inf }
 0x375   : > { %v1402_v5 = vpop.permute.xlu2 %1401  ;;  %1095 = vmax.xlane.f32.xlu2 %v1094_v2  ;;  %v1118_v2 = vmul.f32 1.442695, %v1105_v60 }
 0x376   : > { %2882 = vmatmul.msk.f32.gmra.mxu0 %vm743_vm1, %v1402_v5  ;;  %v3803_v11 = vpop.permute.xlu1 %1756 }
 0x37d   : > { %v1404_v4 = vpop.permute.xlu2 %1403 }
 0x37e   : > { %2883 = vmatmul.msk.f32.gmra.mxu0 %vm743_vm1, %v1404_v4 }
 0x384   : > { %v3000_v38 = vpop.permute.xlu0 %2999 }
 0x385   : > { %v1406_v6 = vpop.permute.xlu2 %1405  ;;  %v3001_v35 = vunpack.i.l.bf16 %v3000_v38  ;;  %v3002_v43 = vunpack.i.h.bf16 %v3000_v38 }
 0x386   : > { %2884 = vmatmul.msk.f32.gmra.mxu0 %vm743_vm1, %v1406_v6 }
 0x38d   : > { %v1747_v7 = vpop.permute.xlu2 %1746 }
 0x38e   : > { %2909 = vmatmul.msk.f32.vlgmr.msrb.gmra.mxu0 %vm743_vm1, %v1747_v7 }
 0x395   : > { %v1753_v39 = vpop.permute.xlu2 %1752 }
 0x396   : > { %2910 = vmatmul.msk.f32.gmra.mxu0 %vm743_vm1, %v1749_v8 }
 0x39d   : > { %v1759_v51 = vpop.permute.xlu2 %1758 }
 0x3a1   : > { %v959_v13 = vpop.f32.mrf.mxu3  ;;  %v1078_v14 = vpop.xlane.xlu1 %1077 }
 0x3a2   : > { %v1100_v15 = vsub.f32 %v3729_v29, %v1078_v14  ;;  %2865 = vmatmul.msk.f32.gmra.mxu2 %vm743_vm1, %v959_v13 }
 0x3a4   : > { %v1108_v17 = vmul.f32 1.442695, %v1100_v15 }
 0x3a6   : > { %3094 = vpow2.f32 %v1108_v17 }
 0x3a7   : > { %3096 = vpow2.f32 %v1112_v24 }
 0x3a9   : > { %v962_v19 = vpop.f32.mrf.mxu3  ;;  %v1087_v26 = vpop.xlane.xlu1 %1086 }
 0x3aa   : > { %2866 = vmatmul.msk.f32.gmra.mxu2 %vm743_vm1, %v962_v19  ;;  %v1103_v12 = vsub.f32 %v3741_v34, %v1087_v26 }
 0x3ac   : > { %v3810_v21 = vpop.eup %3094  ;;  %v1114_v36 = vmul.f32 1.442695, %v1103_v12 }
 0x3ad   : > { %v1124_v22 = vsel %vm817_vm2, %v3810_v21, 0.0  ;;  %v3821_v28 = vpop.eup %3096 }
 0x3ae   : > { %1125 = vadd.xlane.f32.xlu2 %v1124_v22  ;;  %v1130_v32 = vsel %vm817_vm2, %v3821_v28, 0.0  ;;  %3098 = vpow2.f32 %v1114_v36 }
 0x3b1   : > { %v965_v23 = vpop.f32.mrf.mxu3 }
 0x3b2   : > { %2867 = vmatmul.msk.f32.gmra.mxu2 %vm743_vm1, %v965_v23 }
 0x3b4   : > { %v1073_v42 = vpop.f32.mrf.mxu0  ;;  %v3833_v48 = vpop.eup %3098 }
 0x3b5   : > { %v3817_v25 = vadd.f32 %v3550_v18, %v1073_v42  ;;  %v1133_v52 = vsel %vm817_vm2, %v3833_v48, 0.0 }
 0x3b7   : > { %v1097_v40 = vsel %vm817_vm2, %v3817_v25, -inf }
 0x3b8   : > { %1098 = vmax.xlane.f32.xlu1 %v1097_v40 }
 0x3bc   : > { %v1472_v29 = vpop.f32.mrf.mxu0 }
 0x3c0   : > { %1131 = vadd.xlane.f32.xlu1 %v1130_v32 }
 0x3c1   : > { %v2995_v33 = vpop.permute.xlu1 %2994 }
 0x3c2   : > { %v2996_v44 = vunpack.i.l.bf16 %v2995_v33  ;;  %v2997_v41 = vunpack.i.h.bf16 %v2995_v33 }
 0x3c4   : > { %1228 = vmatpush.msra.mxu1 %v2996_v44  ;;  %v1475_v46 = vpop.f32.mrf.mxu0 }
 0x3c5   : > { %v3827_v47 = vadd.f32 %v3550_v18, %v1475_v46 }
 0x3c6   : > { %3004 = vrot.lane.b32.xlu2 %v3562_v31, %s3244_s30  ;;  %1229 = vmatpush.msra.mxu1 %v2997_v41  ;;  %v3010_v41 = vpop.permute.xlu0 %3009 }
 0x3c7   : > { %v1499_v34 = vsel %vm817_vm2, %v3827_v47, -inf }
 0x3c8   : > { %1500 = vmax.xlane.f32.xlu1 %v1499_v34  ;;  %1230 = vmatpush.msra.mxu1 %v3001_v35 }
 0x3ca   : > { %1231 = vmatpush.msra.mxu1 %v3002_v43 }
 0x3cc   : > { %v1478_v56 = vpop.f32.mrf.mxu0 }
 0x3cd   : > { %v3876_v42 = vadd.f32 %v3550_v18, %v1478_v56 }
 0x3d0   : > { %1134 = vadd.xlane.f32.xlu1 %v1133_v52 }
 0x3d4   : > { %v1481_v0 = vpop.f32.mrf.mxu0 }
 0x3d5   : > { %v3888_v27 = vadd.f32 %v3550_v18, %v1481_v0 }
 0x3d6   : > { %v1081_v53 = vpop.xlane.xlu2 %1080 }
 0x3d7   : > { %v1101_v55 = vsub.f32 %v3767_v49, %v1081_v53  ;;  %v3012_v53 = vunpack.i.h.bf16 %v3010_v41 }
 0x3d9   : > { %v1110_v57 = vmul.f32 1.442695, %v1101_v55 }
 0x3db   : > { %3100 = vpow2.f32 %v1110_v57 }
 0x3dc   : > { %v3913_v56 = vpop.f32.mrf.mxu2 }
 0x3de   : > { %v1090_v58 = vpop.xlane.xlu2 %1089 }
 0x3df   : > { %v1104_v45 = vsub.f32 %v3778_v54, %v1090_v58  ;;  %v3848_v54 = vadd.f32 %v3550_v18, %v1472_v29 }
 0x3e1   : > { %v3839_v59 = vpop.eup %3100  ;;  %v1116_v62 = vmul.f32 1.442695, %v1104_v45  ;;  %v1496_v8 = vsel %vm817_vm2, %v3848_v54, -inf }
 0x3e2   : > { %v1127_v63 = vsel %vm817_vm2, %v3839_v59, 0.0 }
 0x3e3   : > { %3102 = vpow2.f32 %v1116_v62  ;;  %1128 = vadd.xlane.f32.xlu0 %v1127_v63 }
 0x3e4   : > { %3104 = vpow2.f32 %v1118_v2  ;;  %v3921_v58 = vpop.f32.mrf.mxu2 }
 0x3e8   : > { %v1096_v5 = vpop.xlane.xlu2 %1095 }
 0x3e9   : > { %v3844_v49 = vpop.eup %3102  ;;  %v1106_v4 = vsub.f32 %v3790_v1, %v1096_v5 }
 0x3ea   : > { %v1136_v10 = vsel %vm817_vm2, %v3844_v49, 0.0  ;;  %v3854_v13 = vpop.eup %3104 }
 0x3eb   : > { %v1484_v6 = vpop.f32.mrf.mxu0  ;;  %1137 = vadd.xlane.f32.xlu1 %v1136_v10  ;;  %v1120_v7 = vmul.f32 1.442695, %v1106_v4  ;;  %v1139_v1 = vsel %vm817_vm2, %v3854_v13, 0.0 }
 0x3ec   : > { %v3899_v33 = vadd.f32 %v3550_v18, %v1484_v6 }
 0x3ed   : > { %3106 = vpow2.f32 %v1120_v7 }
 0x3ee   : > { %v1508_v36 = vsel %vm817_vm2, %v3899_v33, -inf }
 0x3ef   : > { %1497 = vmax.xlane.f32.xlu2 %v1496_v8 }
 0x3f2   : > { %v968_v14 = vpop.f32.mrf.mxu3 }
 0x3f3   : > { %2868 = vmatmul.msk.f32.gmra.mxu2 %vm743_vm1, %v968_v14  ;;  %v1487_v15 = vpop.f32.mrf.mxu0  ;;  %1140 = vadd.xlane.f32.xlu1 %v1139_v1  ;;  %v3859_v17 = vpop.eup %3106 }
 0x3f4   : > { %v1142_v19 = vsel %vm817_vm2, %v3859_v17, 0.0  ;;  %v3906_v38 = vadd.f32 %v3550_v18, %v1487_v15 }
 0x3fb   : > { %v1490_v20 = vpop.f32.mrf.mxu0  ;;  %2911 = vmatmul.msk.f32.vlgmr.msra.gmra.mxu2 %vm743_vm1, %v3798_v3  ;;  %1143 = vadd.xlane.f32.xlu1 %v1142_v19 }
 0x3fc   : > { %v3891_v29 = vadd.f32 %v3550_v18, %v1490_v20 }
 0x3fe   : > { %v1514_v12 = vsel %vm817_vm2, %v3891_v29, -inf }
 0x403   : > { %v3865_v22 = vpop.f32.mrf.mxu0  ;;  %2912 = vmatmul.msk.f32.gmra.mxu2 %vm743_vm1, %v1753_v39 }
 0x404   : > { %v3952_v1 = vadd.f32 %v3550_v18, %v3865_v22 }
 0x406   : > { %v1517_v19 = vsel %vm817_vm2, %v3952_v1, -inf }
 0x40b   : > { %v1827_v37 = vpop.f32.mrf.mxu0  ;;  %2913 = vmatmul.msk.f32.gmra.mxu2 %vm743_vm1, %v3801_v9  ;;  %v1502_v9 = vsel %vm817_vm2, %v3876_v42, -inf }
 0x40c   : > { %v3871_v23 = vadd.f32 %v3550_v18, %v1827_v37 }
 0x40e   : > { %v1851_v24 = vsel %vm817_vm2, %v3871_v23, -inf }
 0x40f   : > { %1852 = vmax.xlane.f32.xlu0 %v1851_v24 }
 0x413   : > { %v1830_v3 = vpop.f32.mrf.mxu0  ;;  %2914 = vmatmul.msk.f32.gmra.mxu2 %vm743_vm1, %v3803_v11  ;;  %v1505_v11 = vsel %vm817_vm2, %v3888_v27, -inf }
 0x414   : > { %v3881_v40 = vadd.f32 %v3550_v18, %v1830_v3 }
 0x416   : > { %v1854_v26 = vsel %vm817_vm2, %v3881_v40, -inf }
 0x417   : > { %1503 = vmax.xlane.f32.xlu0 %v1502_v9  ;;  %1855 = vmax.xlane.f32.xlu2 %v1854_v26 }
 0x41b   : > { %2915 = vmatmul.msk.f32.gmra.mxu2 %vm743_vm1, %v1759_v51  ;;  %v3011_v51 = vunpack.i.l.bf16 %v3010_v41 }
 0x41f   : > { %1506 = vmax.xlane.f32.xlu0 %v1505_v11  ;;  %1515 = vmax.xlane.f32.xlu2 %v1514_v12 }
 0x421   : > { %v1126_v32 = vpop.xlane.xlu2 %1125 }
 0x422   : > { %3108 = vrcp.f32 %v1126_v32 }
 0x423   : > { %2916 = vmatmul.msk.f32.gmra.mxu2 %vm743_vm1, %v3807_v16  ;;  %v1511_v16 = vsel %vm817_vm2, %v3906_v38, -inf }
 0x427   : > { %1509 = vmax.xlane.f32.xlu0 %v1508_v36 }
 0x428   : > { %v3109_v43 = vpop.eup %3108 }
 0x429   : > { %v3005_v44 = vpop.permute.xlu2 %3004  ;;  %v1156_v55 = vmul.f32 %v3109_v43, %v3810_v21  ;;  %v3925_v21 = vpop.f32.mrf.mxu2 }
 0x42a   : > { %v3006_v39 = vunpack.i.l.bf16 %v3005_v44  ;;  %v3007_v35 = vunpack.i.h.bf16 %v3005_v44 }
 0x42b   : > { %v1099_v46 = vpop.xlane.xlu1 %1098 }
 0x42c   : > { %v1107_v34 = vsub.f32 %v3817_v25, %v1099_v46  ;;  %1232 = vmatpush.msra.mxu1 %v3006_v39 }
 0x42e   : > { %v1122_v52 = vmul.f32 1.442695, %v1107_v34  ;;  %1233 = vmatpush.msra.mxu1 %v3007_v35 }
 0x42f   : > { %1512 = vmax.xlane.f32.xlu0 %v1511_v16  ;;  %v713_v16 = vld [vmem:[%s4529_s5 + $0x8] sm:$0xff] }
 0x430   : > { %3110 = vpow2.f32 %v1122_v52  ;;  %1234 = vmatpush.msra.mxu1 %v3011_v51  ;;  %1300 = vmatpush.msrb.mxu3 %v713_v16 }
 0x431   : > { %v3931_v60 = vpop.f32.mrf.mxu2 }
 0x432   : > { %1235 = vmatpush.msra.mxu1 %v3012_v53 }
 0x433   : > { %2845 = vmatmul.msk.f32.vlgmr.msra.gmra.mxu1 %vm817_vm2, %v1156_v55  ;;  %v1132_v45 = vpop.xlane.xlu1 %1131 }
 0x436   : > { %v3915_v25 = vpop.eup %3110 }
 0x437   : > { %3019 = vrot.lane.b32.xlu2 %v3570_v50, %s3246_s20  ;;  %v1145_v57 = vsel %vm817_vm2, %v3915_v25, 0.0 }
 0x438   : > { %1146 = vadd.xlane.f32.xlu1 %v1145_v57 }
 0x439   : > { %v3937_v0 = vpop.f32.mrf.mxu2 }
 0x43b   : > { %v3933_v62 = vpop.xlane.xlu1 %1500 }
 0x43c   : > { %v1521_v52 = vsub.f32 %v3827_v47, %v3933_v62 }
 0x43e   : > { %v1530_v57 = vmul.f32 1.442695, %v1521_v52 }
 0x441   : > { %v3943_v10 = vpop.f32.mrf.mxu2 }
 0x443   : > { %3014 = vrot.lane.b32.xlu0 %v3586_v61, %s3246_s20  ;;  %v1135_v5 = vpop.xlane.xlu1 %1134 }
 0x449   : > { %v3947_v14 = vpop.f32.mrf.mxu2 }
 0x44b   : > { %3024 = vrot.lane.b32.xlu0 %v3562_v31, %s3246_s20 }
 0x451   : > { %3029 = vrot.lane.b32.xlu1 %v3586_v61, %s3248_s23 }
 0x456   : > { %v1129_v63 = vpop.xlane.xlu0 %1128 }
 0x457   : > { %3112 = vrcp.f32 %v1129_v63  ;;  %v3224_v63 = vld [vmem:[%s3367_s16] ss:$0 sm:$0xff] }
 0x458   : > { %3114 = vrcp.f32 %v1132_v45 }
 0x459   : > { %3034 = vrot.lane.b32.xlu1 %v3560_v30, %s3246_s20  ;;  %3116 = vrcp.f32 %v1135_v5  ;;  %s4468_s20 = scalar_lea.vmem %s4539_s15, %s3362_s28 }
 0x45d   : > { %v3113_v2 = vpop.eup %3112 }
 0x45e   : > { %v1157_v4 = vmul.f32 %v3113_v2, %v3839_v59  ;;  %v3115_v61 = vpop.eup %3114  ;;  %v1138_v6 = vpop.xlane.xlu1 %1137 }
 0x45f   : > { %v1158_v7 = vmul.f32 %v3115_v61, %v3821_v28  ;;  %v3117_v8 = vpop.eup %3116  ;;  %3118 = vrcp.f32 %v1138_v6 }
 0x460   : > { %2846 = vmatmul.msk.f32.gmra.mxu1 %vm817_vm2, %v1157_v4  ;;  %v1159_v59 = vmul.f32 %v3117_v8, %v3833_v48 }
 0x461   : > { %3039 = vrot.lane.b32.xlu1 %v3570_v50, %s3248_s23 }
 0x462   : > { %v1498_v28 = vpop.xlane.xlu2 %1497 }
 0x463   : > { %v1520_v48 = vsub.f32 %v3848_v54, %v1498_v28 }
 0x465   : > { %v3119_v15 = vpop.eup %3118  ;;  %v1528_v3 = vmul.f32 1.442695, %v1520_v48 }
 0x466   : > { %v1141_v50 = vpop.xlane.xlu1 %1140  ;;  %v1160_v37 = vmul.f32 %v3119_v15, %v3844_v49 }
 0x467   : > { %3120 = vrcp.f32 %v1141_v50 }
 0x468   : > { %2847 = vmatmul.msk.f32.gmra.mxu1 %vm817_vm2, %v1158_v7 }
 0x46d   : > { %v3121_v24 = vpop.eup %3120 }
 0x46e   : > { %v1144_v22 = vpop.xlane.xlu1 %1143  ;;  %v1161_v26 = vmul.f32 %v3121_v24, %v3854_v13 }
 0x46f   : > { %3122 = vrcp.f32 %v1144_v22 }
 0x470   : > { %2848 = vmatmul.msk.f32.gmra.mxu1 %vm817_vm2, %v1159_v59  ;;  %3124 = vpow2.f32 %v1528_v3 }
 0x475   : > { %1518 = vmax.xlane.f32.xlu0 %v1517_v19  ;;  %v3123_v32 = vpop.eup %3122 }
 0x476   : > { %v3957_v20 = vpop.f32.mrf.mxu2  ;;  %v1162_v39 = vmul.f32 %v3123_v32, %v3859_v17  ;;  %v3971_v41 = vpop.eup %3124 }
 0x478   : > { %2849 = vmatmul.msk.f32.gmra.mxu1 %vm817_vm2, %v1160_v37 }
 0x47e   : > { %v1833_v9 = vpop.f32.mrf.mxu2 }
 0x47f   : > { %v3964_v11 = vadd.f32 %v3550_v18, %v1833_v9 }
 0x480   : > { %2850 = vmatmul.msk.f32.gmra.mxu1 %vm817_vm2, %v1161_v26 }
 0x481   : > { %v1857_v49 = vsel %vm817_vm2, %v3964_v11, -inf }
 0x482   : > { %v1853_v12 = vpop.xlane.xlu0 %1852  ;;  %1858 = vmax.xlane.f32.xlu2 %v1857_v49 }
 0x483   : > { %v1875_v54 = vsub.f32 %v3871_v23, %v1853_v12  ;;  %v1544_v23 = vsel %vm817_vm2, %v3971_v41, 0.0 }
 0x485   : > { %v1883_v36 = vmul.f32 1.442695, %v1875_v54 }
 0x486   : > { %v1836_v44 = vpop.f32.mrf.mxu2 }
 0x487   : > { %3126 = vpow2.f32 %v1883_v36  ;;  %v3974_v13 = vadd.f32 %v3550_v18, %v1836_v44 }
 0x488   : > { %2851 = vmatmul.msk.f32.gmra.mxu1 %vm817_vm2, %v1162_v39  ;;  %3128 = vpow2.f32 %v1530_v57 }
 0x489   : > { %v1860_v46 = vsel %vm817_vm2, %v3974_v13, -inf }
 0x48a   : > { %v3979_v35 = vpop.xlane.xlu0 %1503  ;;  %1861 = vmax.xlane.f32.xlu2 %v1860_v46  ;;  %v1856_v59 = vpop.xlane.xlu2 %1855 }
 0x48b   : > { %1545 = vadd.xlane.f32.xlu1 %v1544_v23 }
 0x48d   : > { %v3983_v17 = vpop.eup %3126 }
 0x48e   : > { %v1839_v34 = vpop.f32.mrf.mxu2  ;;  %v1899_v43 = vsel %vm817_vm2, %v3983_v17, 0.0  ;;  %v4003_v4 = vpop.eup %3128 }
 0x48f   : > { %v3988_v51 = vadd.f32 %v3550_v18, %v1839_v34  ;;  %1900 = vadd.xlane.f32.xlu0 %v1899_v43 }
 0x491   : > { %v1863_v53 = vsel %vm817_vm2, %v3988_v51, -inf }
 0x492   : > { %1864 = vmax.xlane.f32.xlu2 %v1863_v53  ;;  %v1507_v55 = vpop.xlane.xlu0 %1506  ;;  %v4018_v28 = vpop.xlane.xlu2 %1515 }
 0x493   : > { %v1523_v18 = vsub.f32 %v3888_v27, %v1507_v55  ;;  %v1547_v27 = vsel %vm817_vm2, %v4003_v4, 0.0 }
 0x495   : > { %v1534_v62 = vmul.f32 1.442695, %v1523_v18 }
 0x496   : > { %v1842_v45 = vpop.f32.mrf.mxu2 }
 0x497   : > { %v3998_v2 = vadd.f32 %v3224_v63, %v1842_v45  ;;  %3130 = vpow2.f32 %v1534_v62  ;;  %v1522_v45 = vsub.f32 %v3876_v42, %v3979_v35 }
 0x499   : > { %v1866_v47 = vsel %vm817_vm2, %v3998_v2, -inf  ;;  %v1532_v62 = vmul.f32 1.442695, %v1522_v45 }
 0x49a   : > { %1867 = vmax.xlane.f32.xlu1 %v1866_v47  ;;  %v1510_v5 = vpop.xlane.xlu0 %1509  ;;  %v3020_v49 = vpop.permute.xlu2 %3019 }
 0x49b   : > { %v1524_v7 = vsub.f32 %v3899_v33, %v1510_v5  ;;  %v3021_v32 = vunpack.i.l.bf16 %v3020_v49  ;;  %v3022_v54 = vunpack.i.h.bf16 %v3020_v49 }
 0x49d   : > { %v1536_v50 = vmul.f32 1.442695, %v1524_v7  ;;  %v4014_v15 = vpop.eup %3130 }
 0x49e   : > { %v1845_v61 = vpop.f32.mrf.mxu2  ;;  %v1553_v19 = vsel %vm817_vm2, %v4014_v15, 0.0 }
 0x49f   : > { %v4005_v6 = vadd.f32 %v3224_v63, %v1845_v61  ;;  %3132 = vpow2.f32 %v1536_v50 }
 0x4a1   : > { %v1869_v8 = vsel %vm817_vm2, %v4005_v6, -inf }
 0x4a2   : > { %1870 = vmax.xlane.f32.xlu2 %v1869_v8  ;;  %1548 = vadd.xlane.f32.xlu1 %v1547_v27  ;;  %v4020_v37 = vpop.xlane.xlu0 %1512 }
 0x4a3   : > { %3049 = vrot.lane.b32.xlu0 %v3560_v30, %s3248_s23 }
 0x4a5   : > { %v4022_v48 = vpop.eup %3132 }
 0x4a6   : > { %v1556_v30 = vsel %vm817_vm2, %v4022_v48, 0.0  ;;  %v1848_v34 = vpop.f32.mrf.mxu2 }
 0x4a7   : > { %v4032_v16 = vadd.f32 %v3224_v63, %v1848_v34 }
 0x4a9   : > { %v1872_v55 = vsel %vm817_vm2, %v4032_v16, -inf }
 0x4aa   : > { %1554 = vadd.xlane.f32.xlu1 %v1553_v19 }
 0x4ab   : > { %v1147_v33 = vpop.xlane.xlu1 %1146 }
 0x4ac   : > { %3134 = vrcp.f32 %v1147_v33 }
 0x4b0   : > { %v1237_v22 = vpop.f32.mrf.mxu1 }
 0x4b1   : > { %2853 = vmatmul.msk.f32.vlgmr.msrb.gmra.mxu3 %vm743_vm1, %v1237_v22 }
 0x4b2   : > { %v3135_v24 = vpop.eup %3134  ;;  %1557 = vadd.xlane.f32.xlu1 %v1556_v30 }
 0x4b3   : > { %v1163_v3 = vmul.f32 %v3135_v24, %v3915_v25  ;;  %v1876_v25 = vsub.f32 %v3881_v40, %v1856_v59 }
 0x4b5   : > { %v3015_v9 = vpop.permute.xlu0 %3014  ;;  %2852 = vmatmul.msk.f32.gmra.mxu1 %vm817_vm2, %v1163_v3  ;;  %v1885_v52 = vmul.f32 1.442695, %v1876_v25 }
 0x4b6   : > { %v3016_v26 = vunpack.i.l.bf16 %v3015_v9  ;;  %v3017_v12 = vunpack.i.h.bf16 %v3015_v9 }
 0x4b7   : > { %3136 = vpow2.f32 %v1885_v52 }
 0x4b8   : > { %1640 = vmatpush.msrb.mxu1 %v3016_v26  ;;  %3138 = vpow2.f32 %v1532_v62 }
 0x4ba   : > { %3044 = vrot.lane.b32.xlu2 %v3562_v31, %s3248_s23  ;;  %1641 = vmatpush.msrb.mxu1 %v3017_v12 }
 0x4bc   : > { %1642 = vmatpush.msrb.mxu1 %v3021_v32  ;;  %v1525_v32 = vsub.f32 %v3906_v38, %v4020_v37  ;;  %v1526_v38 = vsub.f32 %v3891_v29, %v4018_v28 }
 0x4bd   : > { %v3025_v36 = vpop.permute.xlu0 %3024  ;;  %v4036_v40 = vpop.eup %3136 }
 0x4be   : > { %v3026_v44 = vunpack.i.l.bf16 %v3025_v36  ;;  %1643 = vmatpush.msrb.mxu1 %v3022_v54  ;;  %v3027_v39 = vunpack.i.h.bf16 %v3025_v36  ;;  %v1902_v63 = vsel %vm817_vm2, %v4036_v40, 0.0  ;;  %v4043_v7 = vpop.eup %3138  ;;  %v1538_v36 = vmul.f32 1.442695, %v1525_v32 }
 0x4bf   : > { %v1550_v8 = vsel %vm817_vm2, %v4043_v7, 0.0 }
 0x4c0   : > { %1644 = vmatpush.msrb.mxu1 %v3026_v44 }
 0x4c2   : > { %1645 = vmatpush.msrb.mxu1 %v3027_v39 }
 0x4c3   : > { %v3030_v46 = vpop.permute.xlu1 %3029 }
 0x4c4   : > { %v3031_v23 = vunpack.i.l.bf16 %v3030_v46  ;;  %v3032_v43 = vunpack.i.h.bf16 %v3030_v46 }
 0x4c6   : > { %1995 = vmatpush.msra.mxu0 %v3031_v23 }
 0x4c8   : > { %1996 = vmatpush.msra.mxu0 %v3032_v43  ;;  %v1540_v43 = vmul.f32 1.442695, %v1526_v38 }
 0x4cb   : > { %v3035_v31 = vpop.permute.xlu1 %3034 }
 0x4cc   : > { %v3036_v53 = vunpack.i.l.bf16 %v3035_v31  ;;  %v3037_v57 = vunpack.i.h.bf16 %v3035_v31 }
 0x4cd   : > { %1873 = vmax.xlane.f32.xlu0 %v1872_v55 }
 0x4ce   : > { %1646 = vmatpush.msrb.mxu1 %v3036_v53 }
 0x4d0   : > { %1647 = vmatpush.msrb.mxu1 %v3037_v57 }
 0x4d3   : > { %v3040_v18 = vpop.permute.xlu1 %3039 }
 0x4d4   : > { %v3041_v47 = vunpack.i.l.bf16 %v3040_v18  ;;  %v3042_v5 = vunpack.i.h.bf16 %v3040_v18 }
 0x4d5   : > { %1903 = vadd.xlane.f32.xlu0 %v1902_v63 }
 0x4d6   : > { %1997 = vmatpush.msra.mxu0 %v3041_v47 }
 0x4d8   : > { %1998 = vmatpush.msra.mxu0 %v3042_v5 }
 0x4dd   : > { %v1240_v61 = vpop.f32.mrf.mxu1 }
 0x4de   : > { %2854 = vmatmul.msk.f32.gmra.mxu3 %vm743_vm1, %v1240_v61 }
 0x4e3   : > { %1551 = vadd.xlane.f32.xlu2 %v1550_v8 }
 0x4e5   : > { %v1243_v42 = vpop.f32.mrf.mxu1 }
 0x4e6   : > { %2855 = vmatmul.msk.f32.gmra.mxu3 %vm743_vm1, %v1243_v42 }
 0x4e8   : > { %v1519_v35 = vpop.xlane.xlu0 %1518 }
 0x4e9   : > { %v1527_v27 = vsub.f32 %v3952_v1, %v1519_v35 }
 0x4eb   : > { %v1542_v59 = vmul.f32 1.442695, %v1527_v27 }
 0x4ed   : > { %3140 = vpow2.f32 %v1542_v59  ;;  %v1246_v50 = vpop.f32.mrf.mxu1 }
 0x4ee   : > { %2856 = vmatmul.msk.f32.gmra.mxu3 %vm743_vm1, %v1246_v50 }
 0x4f3   : > { %v4050_v19 = vpop.eup %3140 }
 0x4f4   : > { %v1565_v33 = vsel %vm817_vm2, %v4050_v19, 0.0 }
 0x4f5   : > { %1566 = vadd.xlane.f32.xlu0 %v1565_v33  ;;  %v1859_v22 = vpop.xlane.xlu2 %1858  ;;  %v1249_v30 = vpop.f32.mrf.mxu1 }
 0x4f6   : > { %v1877_v24 = vsub.f32 %v3964_v11, %v1859_v22  ;;  %2857 = vmatmul.msk.f32.gmra.mxu3 %vm743_vm1, %v1249_v30 }
 0x4f8   : > { %v1887_v3 = vmul.f32 1.442695, %v1877_v24 }
 0x4fa   : > { %3142 = vpow2.f32 %v1887_v3 }
 0x4fd   : > { %v1862_v1 = vpop.xlane.xlu2 %1861  ;;  %v1252_v9 = vpop.f32.mrf.mxu1 }
 0x4fe   : > { %v1878_v26 = vsub.f32 %v3974_v13, %v1862_v1  ;;  %v1546_v49 = vpop.xlane.xlu1 %1545  ;;  %2858 = vmatmul.msk.f32.gmra.mxu3 %vm743_vm1, %v1252_v9 }
 0x4ff   : > { %3144 = vrcp.f32 %v1546_v49 }
 0x500   : > { %v4058_v12 = vpop.eup %3142  ;;  %v1889_v54 = vmul.f32 1.442695, %v1878_v26 }
 0x501   : > { %v1905_v11 = vsel %vm817_vm2, %v4058_v12, 0.0 }
 0x502   : > { %3146 = vpow2.f32 %v1889_v54  ;;  %1906 = vadd.xlane.f32.xlu1 %v1905_v11 }
 0x503   : > { %3148 = vpow2.f32 %v1538_v36 }
 0x505   : > { %v3145_v44 = vpop.eup %3144  ;;  %v1865_v39 = vpop.xlane.xlu2 %1864 }
 0x506   : > { %v1255_v25 = vpop.f32.mrf.mxu1  ;;  %v1576_v13 = vmul.f32 %v3145_v44, %v3971_v41  ;;  %v1879_v46 = vsub.f32 %v3988_v51, %v1865_v39 }
 0x507   : > { %2859 = vmatmul.msk.f32.gmra.mxu3 %vm743_vm1, %v1255_v25 }
 0x508   : > { %v4067_v23 = vpop.eup %3146  ;;  %v1891_v37 = vmul.f32 1.442695, %v1879_v46  ;;  %2885 = vmatmul.msk.f32.vlgmr.msrb.gmra.mxu1 %vm817_vm2, %v1576_v13  ;;  %v715_v46 = vld [vmem:[%s4529_s5 + $0x18] sm:$0xff] }
 0x509   : > { %v1908_v34 = vsel %vm817_vm2, %v4067_v23, 0.0  ;;  %v4074_v52 = vpop.eup %3148  ;;  %2067 = vmatpush.msra.mxu1 %v715_v46  ;;  %v4163_v46 = vld [vmem:[%s4530_s6] ss:$0 sm:$0xff] }
 0x50a   : > { %3150 = vpow2.f32 %v1891_v37  ;;  %1909 = vadd.xlane.f32.xlu1 %v1908_v34  ;;  %v1559_v28 = vsel %vm817_vm2, %v4074_v52, 0.0 }
 0x50b   : > { %3152 = vpow2.f32 %v1540_v43 }
 0x50d   : > { %v1868_v41 = vpop.xlane.xlu1 %1867 }
 0x50e   : > { %v1880_v51 = vsub.f32 %v3998_v2, %v1868_v41  ;;  %v1901_v2 = vpop.xlane.xlu0 %1900 }
 0x510   : > { %v4077_v31 = vpop.eup %3150  ;;  %v1893_v53 = vmul.f32 1.442695, %v1880_v51 }
 0x511   : > { %v1911_v29 = vsel %vm817_vm2, %v4077_v31, 0.0  ;;  %v4083_v57 = vpop.eup %3152 }
 0x512   : > { %3154 = vpow2.f32 %v1893_v53  ;;  %1912 = vadd.xlane.f32.xlu2 %v1911_v29  ;;  %1560 = vadd.xlane.f32.xlu1 %v1559_v28  ;;  %v1562_v62 = vsel %vm817_vm2, %v4083_v57, 0.0 }
 0x515   : > { %v1871_v55 = vpop.xlane.xlu2 %1870  ;;  %v1549_v18 = vpop.xlane.xlu1 %1548 }
 0x516   : > { %v1881_v45 = vsub.f32 %v4005_v6, %v1871_v55  ;;  %3156 = vrcp.f32 %v1549_v18  ;;  %v3050_v35 = vpop.permute.xlu0 %3049 }
 0x517   : > { %v3051_v22 = vunpack.i.l.bf16 %v3050_v35  ;;  %v3052_v30 = vunpack.i.h.bf16 %v3050_v35 }
 0x518   : > { %v4086_v47 = vpop.eup %3154  ;;  %v1895_v63 = vmul.f32 1.442695, %v1881_v45 }
 0x519   : > { %v1914_v5 = vsel %vm817_vm2, %v4086_v47, 0.0 }
 0x51a   : > { %3158 = vpow2.f32 %v1895_v63  ;;  %1563 = vadd.xlane.f32.xlu1 %v1562_v62  ;;  %1915 = vadd.xlane.f32.xlu2 %v1914_v5 }
 0x51b   : > { %3160 = vrcp.f32 %v1901_v2 }
 0x51c   : > { %v3157_v61 = vpop.eup %3156 }
 0x51d   : > { %v3045_v8 = vpop.permute.xlu2 %3044  ;;  %v1577_v6 = vmul.f32 %v3157_v61, %v4003_v4  ;;  %v1555_v36 = vpop.xlane.xlu1 %1554 }
 0x51e   : > { %v3046_v42 = vunpack.i.l.bf16 %v3045_v8  ;;  %v3047_v59 = vunpack.i.h.bf16 %v3045_v8 }
 0x51f   : > { %2886 = vmatmul.msk.f32.gmra.mxu1 %vm817_vm2, %v1577_v6 }
 0x520   : > { %v4093_v27 = vpop.eup %3158  ;;  %1999 = vmatpush.msra.mxu0 %v3046_v42 }
 0x521   : > { %v1917_v50 = vsel %vm817_vm2, %v4093_v27, 0.0  ;;  %v3161_v33 = vpop.eup %3160 }
 0x522   : > { %1918 = vadd.xlane.f32.xlu1 %v1917_v50  ;;  %2000 = vmatpush.msra.mxu0 %v3047_v59  ;;  %v1931_v24 = vmul.f32 %v3161_v33, %v3983_v17 }
 0x524   : > { %2001 = vmatpush.msra.mxu0 %v3051_v22 }
 0x525   : > { %v1558_v25 = vpop.xlane.xlu1 %1557 }
 0x526   : > { %2002 = vmatpush.msra.mxu0 %v3052_v30 }
 0x527   : > { %2917 = vmatmul.msk.f32.vlgmr.msra.gmra.mxu0 %vm817_vm2, %v1931_v24 }
 0x532   : > { %v1258_v4 = vpop.f32.mrf.mxu1 }
 0x533   : > { %2860 = vmatmul.msk.f32.gmra.mxu3 %vm743_vm1, %v1258_v4 }
 0x540   : > { %v1874_v3 = vpop.xlane.xlu0 %1873 }
 0x541   : > { %v1882_v1 = vsub.f32 %v4032_v16, %v1874_v3  ;;  %v714_v16 = vld [vmem:[%s4529_s5 + $0x10] sm:$0xff] }
 0x542   : > { %1712 = vmatpush.msra.mxu3 %v714_v16 }
 0x543   : > { %v1897_v9 = vmul.f32 1.442695, %v1882_v1 }
 0x545   : > { %3162 = vpow2.f32 %v1897_v9 }
 0x548   : > { %v1904_v26 = vpop.xlane.xlu0 %1903 }
 0x549   : > { %3164 = vrcp.f32 %v1904_v26 }
 0x54b   : > { %v4102_v49 = vpop.eup %3162 }
 0x54c   : > { %v1920_v32 = vsel %vm817_vm2, %v4102_v49, 0.0 }
 0x54d   : > { %1921 = vadd.xlane.f32.xlu2 %v1920_v32 }
 0x54f   : > { %v3165_v17 = vpop.eup %3164 }
 0x550   : > { %v1932_v54 = vmul.f32 %v3165_v17, %v4036_v40 }
 0x552   : > { %2918 = vmatmul.msk.f32.gmra.mxu0 %vm817_vm2, %v1932_v54 }
 0x556   : > { %v1552_v11 = vpop.xlane.xlu2 %1551 }
 0x557   : > { %3166 = vrcp.f32 %v1552_v11 }
 0x558   : > { %3168 = vrcp.f32 %v1555_v36 }
 0x559   : > { %3170 = vrcp.f32 %v1558_v25 }
 0x55d   : > { %v3167_v44 = vpop.eup %3166 }
 0x55e   : > { %v1578_v39 = vmul.f32 %v3167_v44, %v4043_v7  ;;  %v3169_v13 = vpop.eup %3168 }
 0x55f   : > { %v1579_v40 = vmul.f32 %v3169_v13, %v4014_v15  ;;  %v3171_v38 = vpop.eup %3170 }
 0x560   : > { %2887 = vmatmul.msk.f32.gmra.mxu1 %vm817_vm2, %v1578_v39  ;;  %v1580_v37 = vmul.f32 %v3171_v38, %v4022_v48 }
 0x568   : > { %2888 = vmatmul.msk.f32.gmra.mxu1 %vm817_vm2, %v1579_v40 }
 0x570   : > { %2889 = vmatmul.msk.f32.gmra.mxu1 %vm817_vm2, %v1580_v37 }
 0x575   : > { %v1907_v7 = vpop.xlane.xlu1 %1906 }
 0x576   : > { %3172 = vrcp.f32 %v1907_v7 }
 0x57c   : > { %v3173_v34 = vpop.eup %3172 }
 0x57d   : > { %v1910_v43 = vpop.xlane.xlu1 %1909  ;;  %v1933_v41 = vmul.f32 %v3173_v34, %v4058_v12  ;;  %v3225_v34 = vld [vmem:[%s3374_s21] sm:$0xff] }
 0x57e   : > { %3174 = vrcp.f32 %v1910_v43 }
 0x57f   : > { %2919 = vmatmul.msk.f32.gmra.mxu0 %vm817_vm2, %v1933_v41 }
 0x584   : > { %v3175_v15 = vpop.eup %3174 }
 0x585   : > { %v1913_v51 = vpop.xlane.xlu2 %1912  ;;  %v1561_v53 = vpop.xlane.xlu1 %1560  ;;  %v1934_v29 = vmul.f32 %v3175_v15, %v4067_v23 }
 0x586   : > { %3176 = vrcp.f32 %v1913_v51  ;;  %v1649_v28 = vpop.f32.mrf.mxu1  ;;  %v1567_v23 = vpop.xlane.xlu0 %1566 }
 0x587   : > { %3178 = vrcp.f32 %v1561_v53  ;;  %2893 = vmatmul.msk.f32.vlgmr.msra.gmra.mxu3 %vm743_vm1, %v1649_v28  ;;  %2920 = vmatmul.msk.f32.gmra.mxu0 %vm817_vm2, %v1934_v29 }
 0x58c   : > { %v3177_v48 = vpop.eup %3176 }
 0x58d   : > { %v3179_v55 = vpop.eup %3178  ;;  %v1916_v45 = vpop.xlane.xlu2 %1915  ;;  %v1935_v12 = vmul.f32 %v3177_v48, %v4077_v31 }
 0x58e   : > { %v1564_v18 = vpop.xlane.xlu1 %1563  ;;  %3180 = vrcp.f32 %v1916_v45  ;;  %v1581_v2 = vmul.f32 %v3179_v55, %v4074_v52  ;;  %v3226_v55 = vld [vmem:[%s3374_s21 + $0x8] sm:$0xff] }
 0x58f   : > { %3182 = vrcp.f32 %v1564_v18  ;;  %2921 = vmatmul.msk.f32.gmra.mxu0 %vm817_vm2, %v1935_v12 }
 0x590   : > { %2890 = vmatmul.msk.f32.gmra.mxu1 %vm817_vm2, %v1581_v2  ;;  %3184 = vrcp.f32 %v1567_v23 }
 0x594   : > { %v3181_v63 = vpop.eup %3180 }
 0x595   : > { %v3183_v62 = vpop.eup %3182  ;;  %v1936_v61 = vmul.f32 %v3181_v63, %v4086_v47 }
 0x596   : > { %v1919_v5 = vpop.xlane.xlu1 %1918  ;;  %v1582_v8 = vmul.f32 %v3183_v62, %v4083_v57  ;;  %v3185_v52 = vpop.eup %3184 }
 0x597   : > { %3186 = vrcp.f32 %v1919_v5  ;;  %2922 = vmatmul.msk.f32.gmra.mxu0 %vm817_vm2, %v1936_v61  ;;  %v1583_v35 = vmul.f32 %v3185_v52, %v4050_v19 }
 0x598   : > { %2891 = vmatmul.msk.f32.gmra.mxu1 %vm817_vm2, %v1582_v8  ;;  %v3227_v8 = vld [vmem:[%s3374_s21 + $0x10] sm:$0xff] }
 0x59c   : > { %v1652_v42 = vpop.f32.mrf.mxu1 }
 0x59d   : > { %v3187_v31 = vpop.eup %3186  ;;  %2894 = vmatmul.msk.f32.gmra.mxu3 %vm743_vm1, %v1652_v42 }
 0x59e   : > { %v1937_v6 = vmul.f32 %v3187_v31, %v4093_v27  ;;  %v1302_v27 = vpop.f32.mrf.mxu3 }
 0x59f   : > { %v1368_v13 = vadd.f32 %v3913_v56, %v1302_v27 }
 0x5a0   : > { %2923 = vmatmul.msk.f32.gmra.mxu0 %vm817_vm2, %v1937_v6  ;;  %2892 = vmatmul.msk.f32.gmra.mxu1 %vm817_vm2, %v1583_v35 }
 0x5a4   : > { %v2004_v47 = vpop.f32.mrf.mxu0 }
 0x5a6   : > { %v1305_v19 = vpop.f32.mrf.mxu3 }
 0x5a7   : > { %v1371_v51 = vadd.f32 %v3921_v58, %v1305_v19 }
 0x5a8   : > { %2925 = vmatmul.msk.f32.vlgmr.msra.gmra.mxu1 %vm743_vm1, %v2004_v47  ;;  %v3249_v47 = vmov 32.0  }
 0x5ae   : > { %v1308_v24 = vpop.f32.mrf.mxu3 }
 0x5af   : > { %v1374_v2 = vadd.f32 %v3925_v21, %v1308_v24 }
 0x5b6   : > { %v1311_v3 = vpop.f32.mrf.mxu3 }
 0x5b7   : > { %v1377_v61 = vadd.f32 %v3931_v60, %v1311_v3  ;;  %v3229_v3 = vld [vmem:[%s3374_s21 + $0x20] sm:$0xff] }
 0x5be   : > { %v1314_v9 = vpop.f32.mrf.mxu3 }
 0x5c0   : > { %v1922_v57 = vpop.xlane.xlu2 %1921 }
 0x5c1   : > { %3188 = vrcp.f32 %v1922_v57 }
 0x5c2   : > { %3190 = vrcp.f32 %v3249_v47 }
 0x5c7   : > { %v3189_v59 = vpop.eup %3188 }
 0x5c8   : > { %v1938_v50 = vmul.f32 %v3189_v59, %v4102_v49  ;;  %v4147_v49 = vpop.f32.mrf.mxu3  ;;  %v1380_v59 = vadd.f32 %v3937_v0, %v1314_v9  ;;  %v3191_v19 = vpop.eup %3190 }
 0x5c9   : > { %v1383_v0 = vadd.f32 %v3943_v10, %v4147_v49  ;;  %vm2152_vm3 = vweird.f32 %v3191_v19 }
 0x5ca   : > { %2924 = vmatmul.msk.f32.gmra.mxu0 %vm817_vm2, %v1938_v50  ;;  %v3228_v50 = vld [vmem:[%s3374_s21 + $0x18] sm:$0xff] }
 0x5cf   : > { %v2007_v33 = vpop.f32.mrf.mxu0 }
 0x5d0   : > { %2926 = vmatmul.msk.f32.gmra.mxu1 %vm743_vm1, %v2007_v33  ;;  %v4151_v54 = vpop.f32.mrf.mxu3 }
 0x5d8   : > { %v4155_v16 = vpop.f32.mrf.mxu3 }
 0x5dd   : > { %v1655_v22 = vpop.f32.mrf.mxu1 }
 0x5de   : > { %2895 = vmatmul.msk.f32.gmra.mxu3 %vm743_vm1, %v1655_v22 }
 0x5e5   : > { %v1658_v30 = vpop.f32.mrf.mxu1 }
 0x5e6   : > { %2896 = vmatmul.msk.f32.gmra.mxu3 %vm743_vm1, %v1658_v30 }
 0x5ed   : > { %v1661_v4 = vpop.f32.mrf.mxu1 }
 0x5ee   : > { %2897 = vmatmul.msk.f32.gmra.mxu3 %vm743_vm1, %v1661_v4  ;;  %v2148_v4 = vmul.f32 32.0, %v3191_v19 }
 0x5fc   : > { %v2010_v1 = vpop.f32.mrf.mxu0 }
 0x5fd   : > { %2927 = vmatmul.msk.f32.gmra.mxu1 %vm743_vm1, %v2010_v1 }
 0x604   : > { %v2013_v26 = vpop.f32.mrf.mxu0 }
 0x605   : > { %2928 = vmatmul.msk.f32.gmra.mxu1 %vm743_vm1, %v2013_v26 }
 0x60a   : > { %v1714_v25 = vpop.f32.mrf.mxu3 }
 0x60b   : > { %v1738_v40 = vadd.f32 %v1714_v25, %v1368_v13  ;;  %v1386_v25 = vadd.f32 %v3947_v14, %v4151_v54  ;;  %v3230_v13 = vld [vmem:[%s3374_s21 + $0x28] sm:$0xff] }
 0x60c   : > { %v2016_v32 = vpop.f32.mrf.mxu0 }
 0x60d   : > { %v1664_v17 = vpop.f32.mrf.mxu1  ;;  %2929 = vmatmul.msk.f32.gmra.mxu1 %vm743_vm1, %v2016_v32 }
 0x60e   : > { %2898 = vmatmul.msk.f32.gmra.mxu3 %vm743_vm1, %v1664_v17 }
 0x614   : > { %v2019_v11 = vpop.f32.mrf.mxu0 }
 0x615   : > { %v1667_v36 = vpop.f32.mrf.mxu1  ;;  %2930 = vmatmul.msk.f32.gmra.mxu1 %vm743_vm1, %v2019_v11  ;;  %v2149_v11 = vsub.f32 1.0, %v2148_v4  ;;  %v2330_v4 = vld [vmem:[%s4533_s9 + $0x10] sm:$0xff] }
 0x616   : > { %2899 = vmatmul.msk.f32.gmra.mxu3 %vm743_vm1, %v1667_v36 }
 0x61d   : > { %v2022_v44 = vpop.f32.mrf.mxu0  ;;  %v1670_v39 = vpop.f32.mrf.mxu1 }
 0x61e   : > { %2931 = vmatmul.msk.f32.gmra.mxu1 %vm743_vm1, %v2022_v44  ;;  %2900 = vmatmul.msk.f32.gmra.mxu3 %vm743_vm1, %v1670_v39  ;;  %v2150_v39 = vmul.f32 %v3191_v19, %v2149_v11 }
 0x620   : > { %v1717_v56 = vpop.f32.mrf.mxu3 }
 0x621   : > { %v1739_v53 = vadd.f32 %v1717_v56, %v1371_v51  ;;  %v3231_v51 = vld [vmem:[%s3374_s21 + $0x30] sm:$0xff] }
 0x625   : > { %v2069_v38 = vpop.f32.mrf.mxu1 }
 0x626   : > { %v2093_v37 = vadd.f32 %v2069_v38, %v1738_v40 }
 0x628   : > { %v2105_v7 = vadd.f32 %v4163_v46, %v2093_v37 }
 0x62a   : > { %v4167_v43 = vadd.f32 %v3225_v34, %v2105_v7  ;;  %v2151_v7 = vadd.f32 %v3191_v19, %v2150_v39 }
 0x62c   : > { %v2123_v41 = vsel %vm562_vm0, %v4167_v43, 0.0 }
 0x62d   : > { %2124 = vadd.xlane.f32.xlu0 %v2123_v41 }
 0x647   : > { %v2025_v15 = vpop.f32.mrf.mxu0 }
 0x648   : > { %2932 = vmatmul.msk.f32.gmra.mxu1 %vm743_vm1, %v2025_v15  ;;  %v4208_v15 = vsel %vm2152_vm3, %v3191_v19, %v2151_v7  ;;  %v4283_v7 = vld [vmem:[%s4531_s7] ss:$0 sm:$0xff] }
 0x64d   : > { %v2072_v29 = vpop.f32.mrf.mxu1 }
 0x64e   : > { %v2094_v28 = vadd.f32 %v2072_v29, %v1739_v53 }
 0x650   : > { %v2106_v48 = vadd.f32 %v4163_v46, %v2094_v28 }
 0x652   : > { %v4175_v45 = vadd.f32 %v3226_v55, %v2106_v48 }
 0x654   : > { %v2126_v18 = vsel %vm562_vm0, %v4175_v45, 0.0 }
 0x655   : > { %2127 = vadd.xlane.f32.xlu1 %v2126_v18  ;;  %v1389_v18 = vadd.f32 %v3957_v20, %v4155_v16 }
 0x661   : > { %v1720_v12 = vpop.f32.mrf.mxu3 }
 0x662   : > { %v1740_v23 = vadd.f32 %v1720_v12, %v1374_v2 }
 0x669   : > { %v1723_v58 = vpop.f32.mrf.mxu3 }
 0x66a   : > { %v1741_v31 = vadd.f32 %v1723_v58, %v1377_v61  ;;  %v3232_v58 = vld [vmem:[%s3374_s21 + $0x38] sm:$0xff] }
 0x671   : > { %v1726_v57 = vpop.f32.mrf.mxu3 }
 0x672   : > { %v1742_v33 = vadd.f32 %v1726_v57, %v1380_v59 }
 0x67a   : > { %v2075_v63 = vpop.f32.mrf.mxu1 }
 0x67b   : > { %v2095_v62 = vadd.f32 %v2075_v63, %v1740_v23 }
 0x67d   : > { %v2107_v5 = vadd.f32 %v4163_v46, %v2095_v62 }
 0x67f   : > { %v4183_v52 = vadd.f32 %v3227_v8, %v2107_v5 }
 0x681   : > { %v2129_v42 = vsel %vm562_vm0, %v4183_v52, 0.0 }
 0x682   : > { %v2078_v6 = vpop.f32.mrf.mxu1  ;;  %2130 = vadd.xlane.f32.xlu2 %v2129_v42 }
 0x683   : > { %v2096_v35 = vadd.f32 %v2078_v6, %v1741_v31 }
 0x685   : > { %v2108_v21 = vadd.f32 %v4163_v46, %v2096_v35 }
 0x687   : > { %v4190_v60 = vadd.f32 %v3228_v50, %v2108_v21 }
 0x689   : > { %v2132_v27 = vsel %vm562_vm0, %v4190_v60, 0.0 }
 0x68a   : > { %v2081_v22 = vpop.f32.mrf.mxu1  ;;  %2133 = vadd.xlane.f32.xlu0 %v2132_v27 }
 0x68b   : > { %v2097_v30 = vadd.f32 %v2081_v22, %v1742_v33 }
 0x68d   : > { %v2109_v24 = vadd.f32 %v4163_v46, %v2097_v30  ;;  %v2331_v30 = vld [vmem:[%s4533_s9 + $0x18] sm:$0xff] }
 0x68e   : > { %2372 = vmatpush.msrb.mxu3 %v2331_v30 }
 0x68f   : > { %v4196_v1 = vadd.f32 %v3229_v3, %v2109_v24 }
 0x690   : > { %2373 = vmatpush.msrb.mxu3 %v2330_v4 }
 0x691   : > { %v1729_v9 = vpop.f32.mrf.mxu3  ;;  %v2135_v26 = vsel %vm562_vm0, %v4196_v1, 0.0 }
 0x692   : > { %v1743_v32 = vadd.f32 %v1729_v9, %v1383_v0  ;;  %v2084_v17 = vpop.f32.mrf.mxu1  ;;  %2136 = vadd.xlane.f32.xlu1 %v2135_v26  ;;  %v2328_v26 = vld [vmem:[%s4533_s9] sm:$0xff] }
 0x694   : > { %v2098_v36 = vadd.f32 %v2084_v17, %v1743_v32 }
 0x696   : > { %v2110_v44 = vadd.f32 %v4163_v46, %v2098_v36 }
 0x698   : > { %v2118_v40 = vadd.f32 %v3230_v13, %v2110_v44 }
 0x699   : > { %v1732_v38 = vpop.f32.mrf.mxu3 }
 0x69a   : > { %v1744_v10 = vadd.f32 %v1732_v38, %v1386_v25  ;;  %v2138_v37 = vsel %vm562_vm0, %v2118_v40, 0.0 }
 0x69b   : > { %v2087_v49 = vpop.f32.mrf.mxu1  ;;  %2139 = vadd.xlane.f32.xlu2 %v2138_v37 }
 0x69c   : > { %v2099_v34 = vadd.f32 %v2087_v49, %v1744_v10 }
 0x69e   : > { %v2111_v41 = vadd.f32 %v4163_v46, %v2099_v34 }
 0x6a0   : > { %v2125_v56 = vpop.xlane.xlu0 %2124  ;;  %v2119_v53 = vadd.f32 %v3231_v51, %v2111_v41  ;;  %v4288_v41 = vld [vmem:[%s4532_s8] ss:$0 sm:$0xff] }
 0x6a1   : > { %v2154_v14 = vmul.f32 %v4208_v15, %v2125_v56  ;;  %v1735_v55 = vpop.f32.mrf.mxu3 }
 0x6a2   : > { %v2141_v54 = vsel %vm562_vm0, %v2119_v53, 0.0  ;;  %v1745_v12 = vadd.f32 %v1735_v55, %v1389_v18 }
 0x6a3   : > { %v4214_v29 = vsub.f32 %v4167_v43, %v2154_v14  ;;  %2142 = vadd.xlane.f32.xlu1 %v2141_v54 }
 0x6a5   : > { %v2170_v28 = vmul.f32 %v4214_v29, %v4214_v29 }
 0x6a7   : > { %v2178_v48 = vsel %vm562_vm0, %v2170_v28, 0.0 }
 0x6a8   : > { %2179 = vadd.xlane.f32.xlu0 %v2178_v48 }
 0x6c5   : > { %v2090_v2 = vpop.f32.mrf.mxu1 }
 0x6c6   : > { %v2100_v23 = vadd.f32 %v2090_v2, %v1745_v12 }
 0x6c8   : > { %v2112_v63 = vadd.f32 %v4163_v46, %v2100_v23  ;;  %v2128_v62 = vpop.xlane.xlu1 %2127 }
 0x6c9   : > { %v2155_v43 = vmul.f32 %v4208_v15, %v2128_v62 }
 0x6ca   : > { %v4224_v5 = vadd.f32 %v3232_v58, %v2112_v63 }
 0x6cb   : > { %v4227_v61 = vsub.f32 %v4175_v45, %v2155_v43 }
 0x6cc   : > { %v2144_v8 = vsel %vm562_vm0, %v4224_v5, 0.0 }
 0x6cd   : > { %2145 = vadd.xlane.f32.xlu0 %v2144_v8  ;;  %v2171_v20 = vmul.f32 %v4227_v61, %v4227_v61 }
 0x6cf   : > { %v2181_v16 = vsel %vm562_vm0, %v2171_v20, 0.0 }
 0x6d0   : > { %2182 = vadd.xlane.f32.xlu2 %v2181_v16 }
 0x6f5   : > { %v2131_v46 = vpop.xlane.xlu2 %2130 }
 0x6f6   : > { %v2156_v31 = vmul.f32 %v4208_v15, %v2131_v46 }
 0x6f8   : > { %v4236_v42 = vsub.f32 %v4183_v52, %v2156_v31 }
 0x6fa   : > { %v2172_v45 = vmul.f32 %v4236_v42, %v4236_v42 }
 0x6fc   : > { %v2184_v6 = vsel %vm562_vm0, %v2172_v45, 0.0 }
 0x6fd   : > { %v2134_v35 = vpop.xlane.xlu0 %2133  ;;  %2185 = vadd.xlane.f32.xlu1 %v2184_v6 }
 0x6fe   : > { %v2157_v21 = vmul.f32 %v4208_v15, %v2134_v35 }
 0x700   : > { %v4243_v47 = vsub.f32 %v4190_v60, %v2157_v21 }
 0x702   : > { %v2173_v57 = vmul.f32 %v4243_v47, %v4243_v47 }
 0x704   : > { %v2187_v59 = vsel %vm562_vm0, %v2173_v57, 0.0 }
 0x705   : > { %v2137_v50 = vpop.xlane.xlu1 %2136  ;;  %2188 = vadd.xlane.f32.xlu2 %v2187_v59 }
 0x706   : > { %v2158_v52 = vmul.f32 %v4208_v15, %v2137_v50 }
 0x708   : > { %v4250_v33 = vsub.f32 %v4196_v1, %v2158_v52  ;;  %v2329_v1 = vld [vmem:[%s4533_s9 + $0x8] sm:$0xff] }
 0x709   : > { %2374 = vmatpush.msrb.mxu3 %v2329_v1 }
 0x70a   : > { %v2174_v27 = vmul.f32 %v4250_v33, %v4250_v33 }
 0x70b   : > { %2375 = vmatpush.msrb.mxu3 %v2328_v26 }
 0x70c   : > { %v2190_v22 = vsel %vm562_vm0, %v2174_v27, 0.0 }
 0x70d   : > { %2191 = vadd.xlane.f32.xlu0 %v2190_v22 }
 0x70e   : > { %v2140_v60 = vpop.xlane.xlu2 %2139 }
 0x70f   : > { %v2159_v19 = vmul.f32 %v4208_v15, %v2140_v60 }
 0x711   : > { %v4259_v24 = vsub.f32 %v2118_v40, %v2159_v19 }
 0x713   : > { %v2175_v3 = vmul.f32 %v4259_v24, %v4259_v24 }
 0x715   : > { %v2193_v0 = vsel %vm562_vm0, %v2175_v3, 0.0 }
 0x716   : > { %2194 = vadd.xlane.f32.xlu1 %v2193_v0  ;;  %v2143_v9 = vpop.xlane.xlu1 %2142 }
 0x717   : > { %v2160_v32 = vmul.f32 %v4208_v15, %v2143_v9 }
 0x719   : > { %v4274_v17 = vsub.f32 %v2119_v53, %v2160_v32 }
 0x71b   : > { %v2180_v11 = vpop.xlane.xlu0 %2179  ;;  %v2176_v36 = vmul.f32 %v4274_v17, %v4274_v17 }
 0x71c   : > { %v2202_v44 = vmul.f32 %v2180_v11, %v4208_v15 }
 0x71d   : > { %v2196_v39 = vsel %vm562_vm0, %v2176_v36, 0.0 }
 0x71e   : > { %v2210_v25 = vadd.f32 1e-05, %v2202_v44  ;;  %2197 = vadd.xlane.f32.xlu2 %v2196_v39 }
 0x720   : > { %3192 = vrsqrt.f32 %v2210_v25  ;;  %vm2224_vm5 = vweird.f32 %v2210_v25 }
 0x726   : > { %v3193_v13 = vpop.eup %3192 }
 0x727   : > { %v2219_v40 = vmul.f32 %v3193_v13, %v2210_v25  ;;  %vm2225_vm4 = vweird.f32 %v3193_v13 }
 0x728   : > { %vm2226_vm6 = vmor %vm2224_vm5, %vm2225_vm4 }
 0x729   : > { %v2220_v38 = vmul.f32 %v3193_v13, %v2219_v40 }
 0x72b   : > { %v2221_v10 = vmul.f32 0.5, %v2220_v38 }
 0x72d   : > { %v2222_v49 = vsub.f32 1.5, %v2221_v10  ;;  %v2416_v10 = vld [vmem:[%s4535_s11 + $0x38] sm:$0xff] }
 0x72e   : > { %2453 = vmatpush.msrb.mxu2 %v2416_v10 }
 0x72f   : > { %v2223_v37 = vmul.f32 %v3193_v13, %v2222_v49  ;;  %v2415_v49 = vld [vmem:[%s4535_s11 + $0x30] sm:$0xff] }
 0x730   : > { %2454 = vmatpush.msrb.mxu2 %v2415_v49 }
 0x731   : > { %v2227_v34 = vsel %vm2226_vm6, %v3193_v13, %v2223_v37 }
 0x732   : > { %v2298_v56 = vmul.f32 %v2227_v34, %v4214_v29 }
 0x734   : > { %v2309_v51 = vmul.f32 %v4283_v7, %v2298_v56  ;;  %v2414_v56 = vld [vmem:[%s4535_s11 + $0x28] sm:$0xff] }
 0x735   : > { %2455 = vmatpush.msrb.mxu2 %v2414_v56 }
 0x736   : > { %v4293_v53 = vadd.f32 %v4288_v41, %v2309_v51 }
 0x738   : > { %2933 = vmatmul.msk.f32.vlgmr.msrb.gmra.mxu3 %vm562_vm0, %v4293_v53 }
 0x740   : > { %v2146_v14 = vpop.xlane.xlu0 %2145 }
 0x741   : > { %v2161_v54 = vmul.f32 %v4208_v15, %v2146_v14 }
 0x743   : > { %v4299_v28 = vsub.f32 %v4224_v5, %v2161_v54  ;;  %v2183_v48 = vpop.xlane.xlu2 %2182 }
 0x744   : > { %v2203_v55 = vmul.f32 %v2183_v48, %v4208_v15 }
 0x745   : > { %v2177_v29 = vmul.f32 %v4299_v28, %v4299_v28 }
 0x746   : > { %v2211_v18 = vadd.f32 1e-05, %v2203_v55  ;;  %v2413_v55 = vld [vmem:[%s4535_s11 + $0x20] sm:$0xff] }
 0x747   : > { %v2199_v12 = vsel %vm562_vm0, %v2177_v29, 0.0  ;;  %2456 = vmatpush.msrb.mxu2 %v2413_v55 }
 0x748   : > { %3194 = vrsqrt.f32 %v2211_v18  ;;  %2200 = vadd.xlane.f32.xlu0 %v2199_v12  ;;  %vm2234_vm8 = vweird.f32 %v2211_v18 }
 0x74e   : > { %v3195_v2 = vpop.eup %3194 }
 0x74f   : > { %v2229_v23 = vmul.f32 %v3195_v2, %v2211_v18  ;;  %vm2235_vm7 = vweird.f32 %v3195_v2 }
 0x750   : > { %vm2236_vm9 = vmor %vm2234_vm8, %vm2235_vm7 }
 0x751   : > { %v2230_v63 = vmul.f32 %v3195_v2, %v2229_v23 }
 0x753   : > { %v2231_v62 = vmul.f32 0.5, %v2230_v63 }
 0x755   : > { %v2232_v43 = vsub.f32 1.5, %v2231_v62 }
 0x757   : > { %v2233_v58 = vmul.f32 %v3195_v2, %v2232_v43 }
 0x759   : > { %v2237_v5 = vsel %vm2236_vm9, %v3195_v2, %v2233_v58  ;;  %v2412_v2 = vld [vmem:[%s4535_s11 + $0x18] sm:$0xff] }
 0x75a   : > { %v2299_v8 = vmul.f32 %v2237_v5, %v4227_v61  ;;  %2457 = vmatpush.msrb.mxu2 %v2412_v2 }
 0x75c   : > { %v2310_v20 = vmul.f32 %v4283_v7, %v2299_v8  ;;  %v2411_v8 = vld [vmem:[%s4535_s11 + $0x10] sm:$0xff] }
 0x75d   : > { %2458 = vmatpush.msrb.mxu2 %v2411_v8 }
 0x75e   : > { %v4308_v16 = vadd.f32 %v4288_v41, %v2310_v20 }
 0x760   : > { %2934 = vmatmul.msk.f32.gmra.mxu3 %vm562_vm0, %v4308_v16 }
 0x770   : > { %v2186_v46 = vpop.xlane.xlu1 %2185 }
 0x771   : > { %v2204_v31 = vmul.f32 %v2186_v46, %v4208_v15 }
 0x773   : > { %v2212_v45 = vadd.f32 1e-05, %v2204_v31 }
 0x775   : > { %3196 = vrsqrt.f32 %v2212_v45  ;;  %vm2244_vm11 = vweird.f32 %v2212_v45 }
 0x778   : > { %v2189_v6 = vpop.xlane.xlu2 %2188 }
 0x779   : > { %v2205_v35 = vmul.f32 %v2189_v6, %v4208_v15 }
 0x77b   : > { %v3197_v21 = vpop.eup %3196  ;;  %v2213_v57 = vadd.f32 1e-05, %v2205_v35  ;;  %v2409_v35 = vld [vmem:[%s4535_s11] sm:$0xff] }
 0x77c   : > { %v2239_v59 = vmul.f32 %v3197_v21, %v2212_v45  ;;  %vm2245_vm10 = vweird.f32 %v3197_v21 }
 0x77d   : > { %3198 = vrsqrt.f32 %v2213_v57  ;;  %vm2246_vm12 = vmor %vm2244_vm11, %vm2245_vm10  ;;  %vm2254_vm14 = vweird.f32 %v2213_v57 }
 0x77e   : > { %v2240_v61 = vmul.f32 %v3197_v21, %v2239_v59 }
 0x780   : > { %v2241_v50 = vmul.f32 0.5, %v2240_v61  ;;  %v2192_v52 = vpop.xlane.xlu0 %2191 }
 0x781   : > { %v2206_v27 = vmul.f32 %v2192_v52, %v4208_v15 }
 0x782   : > { %v2242_v22 = vsub.f32 1.5, %v2241_v50 }
 0x783   : > { %v3199_v60 = vpop.eup %3198  ;;  %v2214_v19 = vadd.f32 1e-05, %v2206_v27 }
 0x784   : > { %v2243_v30 = vmul.f32 %v3197_v21, %v2242_v22  ;;  %v2249_v4 = vmul.f32 %v3199_v60, %v2213_v57  ;;  %vm2255_vm13 = vweird.f32 %v3199_v60 }
 0x785   : > { %3200 = vrsqrt.f32 %v2214_v19  ;;  %vm2256_vm15 = vmor %vm2254_vm14, %vm2255_vm13  ;;  %vm2264_vm3 = vweird.f32 %v2214_v19 }
 0x786   : > { %v2247_v3 = vsel %vm2246_vm12, %v3197_v21, %v2243_v30  ;;  %v2250_v1 = vmul.f32 %v3199_v60, %v2249_v4  ;;  %v3058_v4 = vld [vmem:[%s4534_s10] ss:$0 sm:$0xff] }
 0x787   : > { %v2300_v0 = vmul.f32 %v2247_v3, %v4236_v42 }
 0x788   : > { %v2251_v9 = vmul.f32 0.5, %v2250_v1 }
 0x789   : > { %v2195_v26 = vpop.xlane.xlu1 %2194  ;;  %v2311_v32 = vmul.f32 %v4283_v7, %v2300_v0 }
 0x78a   : > { %v2252_v11 = vsub.f32 1.5, %v2251_v9  ;;  %v2207_v36 = vmul.f32 %v2195_v26, %v4208_v15 }
 0x78b   : > { %v3201_v44 = vpop.eup %3200  ;;  %v4319_v39 = vadd.f32 %v4288_v41, %v2311_v32 }
 0x78c   : > { %v2253_v25 = vmul.f32 %v3199_v60, %v2252_v11  ;;  %v2259_v13 = vmul.f32 %v3201_v44, %v2214_v19  ;;  %v2215_v40 = vadd.f32 1e-05, %v2207_v36  ;;  %vm2265_vm1 = vweird.f32 %v3201_v44 }
 0x78d   : > { %2935 = vmatmul.msk.f32.gmra.mxu3 %vm562_vm0, %v4319_v39  ;;  %vm2266_vm4 = vmor %vm2264_vm3, %vm2265_vm1 }
 0x78e   : > { %v2257_v42 = vsel %vm2256_vm15, %v3199_v60, %v2253_v25  ;;  %v2260_v38 = vmul.f32 %v3201_v44, %v2259_v13  ;;  %3202 = vrsqrt.f32 %v2215_v40  ;;  %vm2274_vm6 = vweird.f32 %v2215_v40 }
 0x78f   : > { %v2301_v37 = vmul.f32 %v2257_v42, %v4243_v47 }
 0x790   : > { %v2261_v34 = vmul.f32 0.5, %v2260_v38 }
 0x791   : > { %v2198_v51 = vpop.xlane.xlu2 %2197  ;;  %v2312_v14 = vmul.f32 %v4283_v7, %v2301_v37 }
 0x792   : > { %v2262_v54 = vsub.f32 1.5, %v2261_v34  ;;  %v2208_v48 = vmul.f32 %v2198_v51, %v4208_v15 }
 0x793   : > { %v4339_v47 = vadd.f32 %v4288_v41, %v2312_v14 }
 0x794   : > { %v3203_v29 = vpop.eup %3202  ;;  %v2263_v18 = vmul.f32 %v3201_v44, %v2262_v54  ;;  %v2216_v12 = vadd.f32 1e-05, %v2208_v48 }
 0x795   : > { %v2269_v23 = vmul.f32 %v3203_v29, %v2215_v40  ;;  %2936 = vmatmul.msk.f32.gmra.mxu3 %vm562_vm0, %v4339_v47  ;;  %vm2275_vm5 = vweird.f32 %v3203_v29 }
 0x796   : > { %v2267_v63 = vsel %vm2266_vm4, %v3201_v44, %v2263_v18  ;;  %3204 = vrsqrt.f32 %v2216_v12  ;;  %vm2276_vm7 = vmor %vm2274_vm6, %vm2275_vm5  ;;  %vm2284_vm9 = vweird.f32 %v2216_v12 }
 0x797   : > { %v2302_v62 = vmul.f32 %v2267_v63, %v4250_v33  ;;  %v2270_v43 = vmul.f32 %v3203_v29, %v2269_v23  ;;  %v2410_v33 = vld [vmem:[%s4535_s11 + $0x8] sm:$0xff] }
 0x798   : > { %2459 = vmatpush.msrb.mxu2 %v2410_v33 }
 0x799   : > { %v2271_v58 = vmul.f32 0.5, %v2270_v43  ;;  %v2313_v5 = vmul.f32 %v4283_v7, %v2302_v62  ;;  %v3059_v62 = vld [vmem:[%s4536_s12] ss:$0 sm:$0xff] }
 0x79a   : > { %2460 = vmatpush.msrb.mxu2 %v2409_v35 }
 0x79b   : > { %v2272_v20 = vsub.f32 1.5, %v2271_v58  ;;  %v4352_v46 = vadd.f32 %v4288_v41, %v2313_v5 }
 0x79c   : > { %v3205_v31 = vpop.eup %3204 }
 0x79d   : > { %v2273_v45 = vmul.f32 %v3203_v29, %v2272_v20  ;;  %v2279_v6 = vmul.f32 %v3205_v31, %v2216_v12  ;;  %2937 = vmatmul.msk.f32.gmra.mxu3 %vm562_vm0, %v4352_v46  ;;  %vm2285_vm8 = vweird.f32 %v3205_v31 }
 0x79e   : > { %vm2286_vm10 = vmor %vm2284_vm9, %vm2285_vm8 }
 0x79f   : > { %v2277_v21 = vsel %vm2276_vm7, %v3203_v29, %v2273_v45  ;;  %v2280_v57 = vmul.f32 %v3205_v31, %v2279_v6 }
 0x7a0   : > { %v2303_v59 = vmul.f32 %v2277_v21, %v4259_v24 }
 0x7a1   : > { %v2281_v61 = vmul.f32 0.5, %v2280_v57 }
 0x7a2   : > { %v2314_v50 = vmul.f32 %v4283_v7, %v2303_v59 }
 0x7a3   : > { %v2282_v52 = vsub.f32 1.5, %v2281_v61 }
 0x7a4   : > { %v4365_v27 = vadd.f32 %v4288_v41, %v2314_v50 }
 0x7a5   : > { %v2283_v22 = vmul.f32 %v3205_v31, %v2282_v52 }
 0x7a6   : > { %2938 = vmatmul.msk.f32.gmra.mxu3 %vm562_vm0, %v4365_v27 }
 0x7a7   : > { %v2287_v60 = vsel %vm2286_vm10, %v3205_v31, %v2283_v22 }
 0x7a8   : > { %v2304_v19 = vmul.f32 %v2287_v60, %v4274_v17 }
 0x7aa   : > { %v2315_v30 = vmul.f32 %v4283_v7, %v2304_v19 }
 0x7ac   : > { %v4372_v24 = vadd.f32 %v4288_v41, %v2315_v30 }
 0x7ae   : > { %2939 = vmatmul.msk.f32.gmra.mxu3 %vm562_vm0, %v4372_v24 }
 0x7bb   : > { %v2377_v3 = vpop.f32.mrf.mxu3  ;;  %v2201_v1 = vpop.xlane.xlu0 %2200 }
 0x7bc   : > { %v2378_v0 = vadd.f32 %v3058_v4, %v2377_v3  ;;  %v2209_v9 = vmul.f32 %v2201_v1, %v4208_v15 }
 0x7be   : > { %v2401_v26 = vmax.f32 %v2378_v0, 0.0  ;;  %v2217_v32 = vadd.f32 1e-05, %v2209_v9 }
 0x7c0   : > { %3206 = vrsqrt.f32 %v2217_v32  ;;  %2941 = vmatmul.msk.f32.vlgmr.msrb.gmra.mxu2 %vm817_vm2, %v2401_v26  ;;  %vm2294_vm12 = vweird.f32 %v2217_v32 }
 0x7c6   : > { %v3207_v17 = vpop.eup %3206 }
 0x7c7   : > { %v2289_v11 = vmul.f32 %v3207_v17, %v2217_v32  ;;  %vm2295_vm11 = vweird.f32 %v3207_v17 }
 0x7c8   : > { %vm2296_vm13 = vmor %vm2294_vm12, %vm2295_vm11 }
 0x7c9   : > { %v2290_v36 = vmul.f32 %v3207_v17, %v2289_v11 }
 0x7cb   : > { %v2291_v44 = vmul.f32 0.5, %v2290_v36 }
 0x7cd   : > { %v2292_v25 = vsub.f32 1.5, %v2291_v44 }
 0x7cf   : > { %v2293_v13 = vmul.f32 %v3207_v17, %v2292_v25 }
 0x7d1   : > { %v2297_v40 = vsel %vm2296_vm13, %v3207_v17, %v2293_v13 }
 0x7d2   : > { %v2305_v42 = vmul.f32 %v2297_v40, %v4299_v28 }
 0x7d4   : > { %v2316_v38 = vmul.f32 %v4283_v7, %v2305_v42 }
 0x7d6   : > { %v4384_v10 = vadd.f32 %v4288_v41, %v2316_v38 }
 0x7d8   : > { %2940 = vmatmul.msk.f32.gmra.mxu3 %vm562_vm0, %v4384_v10 }
 0x7e3   : > { %v2380_v49 = vpop.f32.mrf.mxu3 }
 0x7e4   : > { %v2381_v37 = vadd.f32 %v3058_v4, %v2380_v49 }
 0x7e6   : > { %v2402_v34 = vmax.f32 %v2381_v37, 0.0 }
 0x7e8   : > { %2942 = vmatmul.msk.f32.gmra.mxu2 %vm817_vm2, %v2402_v34 }
 0x810   : > { %v2383_v56 = vpop.f32.mrf.mxu3 }
 0x811   : > { %v2384_v51 = vadd.f32 %v3058_v4, %v2383_v56 }
 0x813   : > { %v2403_v14 = vmax.f32 %v2384_v51, 0.0 }
 0x815   : > { %2943 = vmatmul.msk.f32.gmra.mxu2 %vm817_vm2, %v2403_v14 }
 0x818   : > { %v2386_v54 = vpop.f32.mrf.mxu3 }
 0x819   : > { %v2387_v28 = vadd.f32 %v3058_v4, %v2386_v54 }
 0x81b   : > { %v2404_v48 = vmax.f32 %v2387_v28, 0.0 }
 0x81d   : > { %2944 = vmatmul.msk.f32.gmra.mxu2 %vm817_vm2, %v2404_v48 }
 0x820   : > { %v2389_v7 = vpop.f32.mrf.mxu3 }
 0x821   : > { %v2390_v41 = vadd.f32 %v3058_v4, %v2389_v7 }
 0x823   : > { %v2405_v55 = vmax.f32 %v2390_v41, 0.0 }
 0x825   : > { %2945 = vmatmul.msk.f32.gmra.mxu2 %vm817_vm2, %v2405_v55 }
 0x829   : > { %v2392_v29 = vpop.f32.mrf.mxu3 }
 0x82a   : > { %v2393_v18 = vadd.f32 %v3058_v4, %v2392_v29 }
 0x82c   : > { %v2406_v12 = vmax.f32 %v2393_v18, 0.0 }
 0x82e   : > { %2946 = vmatmul.msk.f32.gmra.mxu2 %vm817_vm2, %v2406_v12 }
 0x831   : > { %v2395_v2 = vpop.f32.mrf.mxu3 }
 0x832   : > { %v2396_v23 = vadd.f32 %v3058_v4, %v2395_v2 }
 0x834   : > { %v2407_v63 = vmax.f32 %v2396_v23, 0.0 }
 0x836   : > { %2947 = vmatmul.msk.f32.gmra.mxu2 %vm817_vm2, %v2407_v63 }
 0x843   : > { %v2462_v43 = vpop.f32.mrf.mxu2 }
 0x844   : > { %v2463_v58 = vadd.f32 %v3059_v62, %v2462_v43 }
 0x846   : > { %v2486_v5 = vadd.f32 %v2463_v58, %v4293_v53 }
 0x848   : > { %v2496_v8 = vsel %vm562_vm0, %v2486_v5, 0.0 }
 0x849   : > { %2497 = vadd.xlane.f32.xlu1 %v2496_v8 }
 0x85b   : > { %v2398_v20 = vpop.f32.mrf.mxu3 }
 0x85c   : > { %v2399_v31 = vadd.f32 %v3058_v4, %v2398_v20 }
 0x85e   : > { %v2408_v33 = vmax.f32 %v2399_v31, 0.0 }
 0x860   : > { %2948 = vmatmul.msk.f32.gmra.mxu2 %vm817_vm2, %v2408_v33 }
 0x86b   : > { %v2465_v45 = vpop.f32.mrf.mxu2 }
 0x86c   : > { %v2466_v6 = vadd.f32 %v3059_v62, %v2465_v45 }
 0x86e   : > { %v2487_v35 = vadd.f32 %v2466_v6, %v4308_v16 }
 0x870   : > { %v2499_v21 = vsel %vm562_vm0, %v2487_v35, 0.0 }
 0x871   : > { %2500 = vadd.xlane.f32.xlu2 %v2499_v21 }
 0x898   : > { %v2468_v57 = vpop.f32.mrf.mxu2 }
 0x899   : > { %v2469_v59 = vadd.f32 %v3059_v62, %v2468_v57 }
 0x89b   : > { %v2488_v61 = vadd.f32 %v2469_v59, %v4319_v39 }
 0x89d   : > { %v2502_v53 = vsel %vm562_vm0, %v2488_v61, 0.0 }
 0x89e   : > { %2503 = vadd.xlane.f32.xlu0 %v2502_v53 }
 0x8a0   : > { %v2471_v50 = vpop.f32.mrf.mxu2 }
 0x8a1   : > { %v2472_v52 = vadd.f32 %v3059_v62, %v2471_v50 }
 0x8a3   : > { %v2489_v22 = vadd.f32 %v2472_v52, %v4339_v47  ;;  %v4456_v52 = vld [vmem:[%s4537_s13] ss:$0 sm:$0xff] }
 0x8a5   : > { %v2505_v60 = vsel %vm562_vm0, %v2489_v22, 0.0 }
 0x8a6   : > { %2506 = vadd.xlane.f32.xlu1 %v2505_v60  ;;  %v4461_v60 = vld [vmem:[%s4538_s14] ss:$0 sm:$0xff] }
 0x8a8   : > { %v2474_v19 = vpop.f32.mrf.mxu2 }
 0x8a9   : > { %v2475_v30 = vadd.f32 %v3059_v62, %v2474_v19 }
 0x8ab   : > { %v2490_v16 = vadd.f32 %v2475_v30, %v4352_v46 }
 0x8ad   : > { %v2508_v4 = vsel %vm562_vm0, %v2490_v16, 0.0 }
 0x8ae   : > { %2509 = vadd.xlane.f32.xlu2 %v2508_v4 }
 0x8b1   : > { %v2477_v3 = vpop.f32.mrf.mxu2 }
 0x8b2   : > { %v2478_v1 = vadd.f32 %v3059_v62, %v2477_v3 }
 0x8b4   : > { %v2491_v39 = vadd.f32 %v2478_v1, %v4365_v27 }
 0x8b6   : > { %v2511_v0 = vsel %vm562_vm0, %v2491_v39, 0.0 }
 0x8b7   : > { %2512 = vadd.xlane.f32.xlu0 %v2511_v0 }
 0x8b9   : > { %v2480_v9 = vpop.f32.mrf.mxu2 }
 0x8ba   : > { %v2481_v26 = vadd.f32 %v3059_v62, %v2480_v9 }
 0x8bc   : > { %v2492_v47 = vadd.f32 %v2481_v26, %v4372_v24  ;;  %v2498_v32 = vpop.xlane.xlu1 %2497 }
 0x8bd   : > { %v2520_v17 = vmul.f32 %v2498_v32, %v4208_v15 }
 0x8be   : > { %v2514_v11 = vsel %vm562_vm0, %v2492_v47, 0.0 }
 0x8bf   : > { %v2528_v46 = vsub.f32 %v2486_v5, %v2520_v17  ;;  %2515 = vadd.xlane.f32.xlu1 %v2514_v11 }
 0x8c1   : > { %v2536_v36 = vmul.f32 %v2528_v46, %v2528_v46 }
 0x8c3   : > { %v2544_v44 = vsel %vm562_vm0, %v2536_v36, 0.0 }
 0x8c4   : > { %2545 = vadd.xlane.f32.xlu0 %v2544_v44 }
 0x8e3   : > { %v2483_v25 = vpop.f32.mrf.mxu2 }
 0x8e4   : > { %v2484_v27 = vadd.f32 %v3059_v62, %v2483_v25  ;;  %v2501_v13 = vpop.xlane.xlu2 %2500 }
 0x8e5   : > { %v2521_v40 = vmul.f32 %v2501_v13, %v4208_v15 }
 0x8e6   : > { %v2493_v42 = vadd.f32 %v2484_v27, %v4384_v10 }
 0x8e7   : > { %v4416_v38 = vsub.f32 %v2487_v35, %v2521_v40 }
 0x8e8   : > { %v2517_v24 = vsel %vm562_vm0, %v2493_v42, 0.0 }
 0x8e9   : > { %2518 = vadd.xlane.f32.xlu2 %v2517_v24  ;;  %v2537_v49 = vmul.f32 %v4416_v38, %v4416_v38 }
 0x8eb   : > { %v2547_v37 = vsel %vm562_vm0, %v2537_v49, 0.0 }
 0x8ec   : > { %2548 = vadd.xlane.f32.xlu1 %v2547_v37 }
 0x911   : > { %v2504_v34 = vpop.xlane.xlu0 %2503 }
 0x912   : > { %v2522_v56 = vmul.f32 %v2504_v34, %v4208_v15 }
 0x914   : > { %v4423_v51 = vsub.f32 %v2488_v61, %v2522_v56 }
 0x916   : > { %v2538_v14 = vmul.f32 %v4423_v51, %v4423_v51 }
 0x918   : > { %v2550_v10 = vsel %vm562_vm0, %v2538_v14, 0.0 }
 0x919   : > { %v2507_v54 = vpop.xlane.xlu1 %2506  ;;  %2551 = vadd.xlane.f32.xlu2 %v2550_v10 }
 0x91a   : > { %v2523_v28 = vmul.f32 %v2507_v54, %v4208_v15 }
 0x91c   : > { %v4429_v48 = vsub.f32 %v2489_v22, %v2523_v28 }
 0x91e   : > { %v2539_v7 = vmul.f32 %v4429_v48, %v4429_v48 }
 0x920   : > { %v2553_v41 = vsel %vm562_vm0, %v2539_v7, 0.0 }
 0x921   : > { %2554 = vadd.xlane.f32.xlu0 %v2553_v41  ;;  %v2510_v55 = vpop.xlane.xlu2 %2509 }
 0x922   : > { %v2524_v29 = vmul.f32 %v2510_v55, %v4208_v15 }
 0x924   : > { %v4435_v18 = vsub.f32 %v2490_v16, %v2524_v29 }
 0x926   : > { %v2540_v12 = vmul.f32 %v4435_v18, %v4435_v18 }
 0x928   : > { %v2556_v2 = vsel %vm562_vm0, %v2540_v12, 0.0 }
 0x929   : > { %2557 = vadd.xlane.f32.xlu1 %v2556_v2 }
 0x92a   : > { %v2513_v23 = vpop.xlane.xlu0 %2512 }
 0x92b   : > { %v2525_v63 = vmul.f32 %v2513_v23, %v4208_v15 }
 0x92d   : > { %v4441_v62 = vsub.f32 %v2491_v39, %v2525_v63 }
 0x92f   : > { %v2541_v43 = vmul.f32 %v4441_v62, %v4441_v62 }
 0x931   : > { %v2559_v58 = vsel %vm562_vm0, %v2541_v43, 0.0 }
 0x932   : > { %v2516_v5 = vpop.xlane.xlu1 %2515  ;;  %2560 = vadd.xlane.f32.xlu2 %v2559_v58 }
 0x933   : > { %v2526_v8 = vmul.f32 %v2516_v5, %v4208_v15 }
 0x935   : > { %v4447_v20 = vsub.f32 %v2492_v47, %v2526_v8 }
 0x937   : > { %v2546_v31 = vpop.xlane.xlu0 %2545  ;;  %v2542_v33 = vmul.f32 %v4447_v20, %v4447_v20 }
 0x938   : > { %v2568_v45 = vmul.f32 %v2546_v31, %v4208_v15 }
 0x939   : > { %v2562_v6 = vsel %vm562_vm0, %v2542_v33, 0.0 }
 0x93a   : > { %v2576_v35 = vadd.f32 1e-05, %v2568_v45  ;;  %2563 = vadd.xlane.f32.xlu0 %v2562_v6 }
 0x93c   : > { %3208 = vrsqrt.f32 %v2576_v35  ;;  %vm2590_vm14 = vweird.f32 %v2576_v35 }
 0x942   : > { %v3209_v21 = vpop.eup %3208 }
 0x943   : > { %v2585_v57 = vmul.f32 %v3209_v21, %v2576_v35  ;;  %vm2591_vm2 = vweird.f32 %v3209_v21 }
 0x944   : > { %vm2592_vm15 = vmor %vm2590_vm14, %vm2591_vm2 }
 0x945   : > { %v2586_v59 = vmul.f32 %v3209_v21, %v2585_v57 }
 0x947   : > { %v2587_v61 = vmul.f32 0.5, %v2586_v59 }
 0x949   : > { %v2588_v53 = vsub.f32 1.5, %v2587_v61 }
 0x94b   : > { %v2589_v50 = vmul.f32 %v3209_v21, %v2588_v53 }
 0x94d   : > { %v2593_v22 = vsel %vm2592_vm15, %v3209_v21, %v2589_v50 }
 0x94e   : > { %v2664_v19 = vmul.f32 %v2593_v22, %v2528_v46 }
 0x950   : > { %v2675_v30 = vmul.f32 %v4456_v52, %v2664_v19 }
 0x952   : > { %v2686_v16 = vadd.f32 %v4461_v60, %v2675_v30 }
 0x954   : > { %2694 = vst.msk [vmem:[%s4468_s20] sm:$0xff] %vm562_vm0, %v2686_v16 }
 0x95c   : > { %v2519_v4 = vpop.xlane.xlu2 %2518 }
 0x95d   : > { %v2527_v3 = vmul.f32 %v2519_v4, %v4208_v15 }
 0x95f   : > { %v4474_v1 = vsub.f32 %v2493_v42, %v2527_v3  ;;  %v2549_v39 = vpop.xlane.xlu1 %2548 }
 0x960   : > { %v2569_v0 = vmul.f32 %v2549_v39, %v4208_v15 }
 0x961   : > { %v2543_v9 = vmul.f32 %v4474_v1, %v4474_v1 }
 0x962   : > { %v2577_v26 = vadd.f32 1e-05, %v2569_v0 }
 0x963   : > { %v2565_v47 = vsel %vm562_vm0, %v2543_v9, 0.0 }
 0x964   : > { %3210 = vrsqrt.f32 %v2577_v26  ;;  %2566 = vadd.xlane.f32.xlu1 %v2565_v47  ;;  %vm2600_vm3 = vweird.f32 %v2577_v26 }
 0x96a   : > { %v3211_v32 = vpop.eup %3210 }
 0x96b   : > { %v2595_v17 = vmul.f32 %v3211_v32, %v2577_v26  ;;  %vm2601_vm1 = vweird.f32 %v3211_v32 }
 0x96c   : > { %vm2602_vm4 = vmor %vm2600_vm3, %vm2601_vm1 }
 0x96d   : > { %v2596_v11 = vmul.f32 %v3211_v32, %v2595_v17 }
 0x96f   : > { %v2597_v46 = vmul.f32 0.5, %v2596_v11 }
 0x971   : > { %v2598_v36 = vsub.f32 1.5, %v2597_v46 }
 0x973   : > { %v2599_v44 = vmul.f32 %v3211_v32, %v2598_v36 }
 0x975   : > { %v2603_v25 = vsel %vm2602_vm4, %v3211_v32, %v2599_v44 }
 0x976   : > { %v2665_v27 = vmul.f32 %v2603_v25, %v4416_v38 }
 0x978   : > { %v2676_v13 = vmul.f32 %v4456_v52, %v2665_v27 }
 0x97a   : > { %v2687_v40 = vadd.f32 %v4461_v60, %v2676_v13 }
 0x97c   : > { %2695 = vst.msk [vmem:[%s4468_s20 + $0x8] sm:$0xff] %vm562_vm0, %v2687_v40 }
 0x98c   : > { %v2552_v42 = vpop.xlane.xlu2 %2551 }
 0x98d   : > { %v2570_v24 = vmul.f32 %v2552_v42, %v4208_v15 }
 0x98f   : > { %v2578_v49 = vadd.f32 1e-05, %v2570_v24 }
 0x991   : > { %3212 = vrsqrt.f32 %v2578_v49  ;;  %vm2610_vm6 = vweird.f32 %v2578_v49 }
 0x994   : > { %v2555_v37 = vpop.xlane.xlu0 %2554 }
 0x995   : > { %v2571_v34 = vmul.f32 %v2555_v37, %v4208_v15 }
 0x997   : > { %v3213_v56 = vpop.eup %3212  ;;  %v2579_v14 = vadd.f32 1e-05, %v2571_v34 }
 0x998   : > { %v2605_v10 = vmul.f32 %v3213_v56, %v2578_v49  ;;  %vm2611_vm5 = vweird.f32 %v3213_v56 }
 0x999   : > { %3214 = vrsqrt.f32 %v2579_v14  ;;  %vm2612_vm7 = vmor %vm2610_vm6, %vm2611_vm5  ;;  %vm2620_vm9 = vweird.f32 %v2579_v14 }
 0x99a   : > { %v2606_v54 = vmul.f32 %v3213_v56, %v2605_v10 }
 0x99c   : > { %v2607_v38 = vmul.f32 0.5, %v2606_v54  ;;  %v2558_v28 = vpop.xlane.xlu1 %2557 }
 0x99d   : > { %v2572_v7 = vmul.f32 %v2558_v28, %v4208_v15 }
 0x99e   : > { %v2608_v41 = vsub.f32 1.5, %v2607_v38 }
 0x99f   : > { %v3215_v55 = vpop.eup %3214  ;;  %v2580_v29 = vadd.f32 1e-05, %v2572_v7 }
 0x9a0   : > { %v2609_v12 = vmul.f32 %v3213_v56, %v2608_v41  ;;  %v2615_v2 = vmul.f32 %v3215_v55, %v2579_v14  ;;  %vm2621_vm8 = vweird.f32 %v3215_v55 }
 0x9a1   : > { %3216 = vrsqrt.f32 %v2580_v29  ;;  %vm2622_vm10 = vmor %vm2620_vm9, %vm2621_vm8  ;;  %vm2630_vm12 = vweird.f32 %v2580_v29 }
 0x9a2   : > { %v2613_v23 = vsel %vm2612_vm7, %v3213_v56, %v2609_v12  ;;  %v2616_v63 = vmul.f32 %v3215_v55, %v2615_v2 }
 0x9a3   : > { %v2666_v43 = vmul.f32 %v2613_v23, %v4423_v51 }
 0x9a4   : > { %v2617_v58 = vmul.f32 0.5, %v2616_v63 }
 0x9a5   : > { %v2677_v5 = vmul.f32 %v4456_v52, %v2666_v43  ;;  %v2561_v8 = vpop.xlane.xlu2 %2560 }
 0x9a6   : > { %v2618_v31 = vsub.f32 1.5, %v2617_v58  ;;  %v2573_v33 = vmul.f32 %v2561_v8, %v4208_v15 }
 0x9a7   : > { %v3217_v45 = vpop.eup %3216  ;;  %v2688_v6 = vadd.f32 %v4461_v60, %v2677_v5 }
 0x9a8   : > { %v2619_v35 = vmul.f32 %v3215_v55, %v2618_v31  ;;  %v2625_v21 = vmul.f32 %v3217_v45, %v2580_v29  ;;  %v2581_v57 = vadd.f32 1e-05, %v2573_v33  ;;  %vm2631_vm11 = vweird.f32 %v3217_v45 }
 0x9a9   : > { %2696 = vst.msk [vmem:[%s4468_s20 + $0x10] sm:$0xff] %vm562_vm0, %v2688_v6  ;;  %vm2632_vm13 = vmor %vm2630_vm12, %vm2631_vm11 }
 0x9aa   : > { %v2623_v51 = vsel %vm2622_vm10, %v3215_v55, %v2619_v35  ;;  %v2626_v59 = vmul.f32 %v3217_v45, %v2625_v21  ;;  %3218 = vrsqrt.f32 %v2581_v57  ;;  %vm2640_vm14 = vweird.f32 %v2581_v57 }
 0x9ab   : > { %v2667_v61 = vmul.f32 %v2623_v51, %v4429_v48 }
 0x9ac   : > { %v2627_v53 = vmul.f32 0.5, %v2626_v59 }
 0x9ad   : > { %v2678_v50 = vmul.f32 %v4456_v52, %v2667_v61  ;;  %v2564_v22 = vpop.xlane.xlu0 %2563 }
 0x9ae   : > { %v2628_v19 = vsub.f32 1.5, %v2627_v53  ;;  %v2574_v30 = vmul.f32 %v2564_v22, %v4208_v15 }
 0x9af   : > { %v2689_v16 = vadd.f32 %v4461_v60, %v2678_v50 }
 0x9b0   : > { %v3219_v4 = vpop.eup %3218  ;;  %v2629_v3 = vmul.f32 %v3217_v45, %v2628_v19  ;;  %v2582_v39 = vadd.f32 1e-05, %v2574_v30 }
 0x9b1   : > { %2697 = vst.msk [vmem:[%s4468_s20 + $0x18] sm:$0xff] %vm562_vm0, %v2689_v16  ;;  %v2635_v0 = vmul.f32 %v3219_v4, %v2581_v57  ;;  %vm2641_vm2 = vweird.f32 %v3219_v4 }
 0x9b2   : > { %v2633_v48 = vsel %vm2632_vm13, %v3217_v45, %v2629_v3  ;;  %3220 = vrsqrt.f32 %v2582_v39  ;;  %vm2642_vm15 = vmor %vm2640_vm14, %vm2641_vm2  ;;  %vm2650_vm3 = vweird.f32 %v2582_v39 }
 0x9b3   : > { %v2668_v9 = vmul.f32 %v2633_v48, %v4435_v18  ;;  %v2636_v26 = vmul.f32 %v3219_v4, %v2635_v0 }
 0x9b5   : > { %v2679_v47 = vmul.f32 %v4456_v52, %v2668_v9  ;;  %v2637_v32 = vmul.f32 0.5, %v2636_v26 }
 0x9b7   : > { %v2690_v17 = vadd.f32 %v4461_v60, %v2679_v47  ;;  %v2638_v11 = vsub.f32 1.5, %v2637_v32 }
 0x9b8   : > { %v3221_v46 = vpop.eup %3220 }
 0x9b9   : > { %2698 = vst.msk [vmem:[%s4468_s20 + $0x20] sm:$0xff] %vm562_vm0, %v2690_v17  ;;  %v2639_v36 = vmul.f32 %v3219_v4, %v2638_v11  ;;  %v2645_v44 = vmul.f32 %v3221_v46, %v2582_v39  ;;  %vm2651_vm1 = vweird.f32 %v3221_v46 }
 0x9ba   : > { %vm2652_vm4 = vmor %vm2650_vm3, %vm2651_vm1 }
 0x9bb   : > { %v2643_v25 = vsel %vm2642_vm15, %v3219_v4, %v2639_v36  ;;  %v2646_v27 = vmul.f32 %v3221_v46, %v2645_v44 }
 0x9bc   : > { %v2669_v18 = vmul.f32 %v2643_v25, %v4441_v62 }
 0x9bd   : > { %v2647_v13 = vmul.f32 0.5, %v2646_v27 }
 0x9be   : > { %v2680_v40 = vmul.f32 %v4456_v52, %v2669_v18 }
 0x9bf   : > { %v2648_v42 = vsub.f32 1.5, %v2647_v13 }
 0x9c0   : > { %v2691_v24 = vadd.f32 %v4461_v60, %v2680_v40 }
 0x9c1   : > { %v2649_v49 = vmul.f32 %v3221_v46, %v2648_v42 }
 0x9c2   : > { %2699 = vst.msk [vmem:[%s4468_s20 + $0x28] sm:$0xff] %vm562_vm0, %v2691_v24 }
 0x9c3   : > { %v2653_v37 = vsel %vm2652_vm4, %v3221_v46, %v2649_v49 }
 0x9c4   : > { %v2670_v34 = vmul.f32 %v2653_v37, %v4447_v20 }
 0x9c6   : > { %v2681_v56 = vmul.f32 %v4456_v52, %v2670_v34 }
 0x9c8   : > { %v2692_v14 = vadd.f32 %v4461_v60, %v2681_v56 }
 0x9ca   : > { %2700 = vst.msk [vmem:[%s4468_s20 + $0x30] sm:$0xff] %vm562_vm0, %v2692_v14 }
 0x9d7   : > { %v2567_v62 = vpop.xlane.xlu1 %2566 }
 0x9d8   : > { %v2575_v10 = vmul.f32 %v2567_v62, %v4208_v15 }
 0x9da   : > { %v2583_v54 = vadd.f32 1e-05, %v2575_v10 }
 0x9dc   : > { %3222 = vrsqrt.f32 %v2583_v54  ;;  %vm2660_vm6 = vweird.f32 %v2583_v54 }
 0x9e2   : > { %v3223_v38 = vpop.eup %3222 }
 0x9e3   : > { %v2655_v28 = vmul.f32 %v3223_v38, %v2583_v54  ;;  %vm2661_vm5 = vweird.f32 %v3223_v38 }
 0x9e4   : > { %vm2662_vm7 = vmor %vm2660_vm6, %vm2661_vm5 }
 0x9e5   : > { %v2656_v7 = vmul.f32 %v3223_v38, %v2655_v28 }
 0x9e7   : > { %v2657_v41 = vmul.f32 0.5, %v2656_v7 }
 0x9e9   : > { %v2658_v55 = vsub.f32 1.5, %v2657_v41 }
 0x9eb   : > { %v2659_v29 = vmul.f32 %v3223_v38, %v2658_v55 }
 0x9ed   : > { %v2663_v20 = vsel %vm2662_vm7, %v3223_v38, %v2659_v29 }
 0x9ee   : > { %v2671_v12 = vmul.f32 %v2663_v20, %v4474_v1 }
 0x9f0   : > { %v2682_v2 = vmul.f32 %v4456_v52, %v2671_v12 }
 0x9f2   : > { %v2693_v23 = vadd.f32 %v4461_v60, %v2682_v2 }
 0x9f4   : > { %2701 = vst.msk [vmem:[%s4468_s20 + $0x38] sm:$0xff] %vm562_vm0, %v2693_v23 }
 0x9f5 PF: > { %s25_s18 = sadd.s32 1, %s3239_s18  }
 0x9f6   : > { %p22_p4 = scmp.ge.s32.totalorder %s25_s18, 4  }
 0x9f8   :  { %24 = sbr.rel (!%p22_p4) target bundleno = 1 (0x1), region = 116 }

// kernel: transformer_forward.5
= control target key start
LH: loop header
LB: loop body
LE: loop exit
PB: predicated region body
PF: predicated region fallthrough
CT: control target
= control target key end

     0   :  { %s4842_s0 = inlined_call_operand.hbm [shape: f32[2,64,32], index: 0, kind: input, shape index: {}]   ;;  %s4843_s1 = inlined_call_operand.hbm [shape: f32[2,64,32], index: 1, kind: input, shape index: {}]   ;;  %s4844_s2 = inlined_call_operand.vmem [shape: f32[2,1,64], index: 2, kind: input, shape index: {}]   ;;  %s4845_s3 = inlined_call_operand.vmem [shape: f32[32,96], index: 3, kind: input, shape index: {}]   ;;  %s4846_s4 = inlined_call_operand.vmem [shape: f32[1,96], index: 4, kind: input, shape index: {}]   ;;  %s4847_s5 = inlined_call_operand.vmem [shape: f32[32,32], index: 5, kind: input, shape index: {}]   ;;  %s4848_s6 = inlined_call_operand.vmem [shape: f32[1,32], index: 6, kind: input, shape index: {}]   ;;  %s4849_s7 = inlined_call_operand.vmem [shape: f32[1,32], index: 7, kind: input, shape index: {}]   ;;  %s4850_s8 = inlined_call_operand.vmem [shape: f32[1,32], index: 8, kind: input, shape index: {}]   ;;  %s4851_s9 = inlined_call_operand.vmem [shape: f32[32,64], index: 9, kind: input, shape index: {}]   ;;  %s4852_s10 = inlined_call_operand.vmem [shape: f32[1,64], index: 10, kind: input, shape index: {}]   ;;  %s4853_s11 = inlined_call_operand.vmem [shape: f32[64,32], index: 11, kind: input, shape index: {}]   ;;  %s4854_s12 = inlined_call_operand.vmem [shape: f32[1,32], index: 12, kind: input, shape index: {}]   ;;  %s4855_s13 = inlined_call_operand.vmem [shape: f32[1,32], index: 13, kind: input, shape index: {}]   ;;  %s4856_s14 = inlined_call_operand.vmem [shape: f32[1,32], index: 14, kind: input, shape index: {}]   ;;  %s4857_s15 = inlined_call_operand.vmem [shape: f32[2,64,32], index: 15, kind: output, shape index: {}]  }
   0x1   :  { %4864 = sst [smem:[#allocation11_spill]] %s4842_s0 }
   0x2   :  { %4865 = sst [smem:[#allocation12_spill]] %s4852_s10 }
   0x3   :  { %4866 = sst [smem:[#allocation13_spill]] %s4853_s11 }
   0x4   :  { %4867 = sst [smem:[#allocation14_spill]] %s4854_s12 }
   0x5   :  { %4868 = sst [smem:[#allocation15_spill]] %s4855_s13 }
   0x6   :  { %4869 = sst [smem:[#allocation16_spill]] %s4856_s14 }
   0x7   :  { %4870 = sst [smem:[#allocation17_spill]] %s4857_s15 }
   0x8   :  { %20 = vsyncpa [#allocation3], 0 }
   0x9   :  { %22 = vsyncpa [#allocation3 + $0x1], 0 }
   0xa   :  { %23 = vsyncpa [#allocation5], 0 }
   0xb   :  { %25 = vsyncpa [#allocation5 + $0x1], 0  ;;  %s3532_s18 = smov 0   ;;  %s3534_s19 = smov 0  }
   0xc   :  { %s3536_s20 = smov 0   ;;  %s3538_s21 = smov 0  }
   0xd LB: > { %4871 = sst [smem:[#allocation8_spill]] %s3435_s20  ;;  %s3551_s22 = sadd.s32 4294967295, %s3439_s21   ;;  %s3439_s21 = sphi %s3538_s21, %s4887_s21   ;;  %s3435_s20 = sphi %s3536_s20, %s4889_s20   ;;  %s3431_s19 = sphi %s3534_s19, %s4891_s19   ;;  %s3427_s18 = sphi %s3532_s18, %s4890_s18  }
   0xe   : > { %s3554_s23 = sadd.s32 1, %s3439_s21   ;;  %s38_s25 = sadd.s32 1, %s3435_s20 }
   0xf   : > { %4872 = sst [smem:[#allocation9_spill]] %s3554_s23  ;;  %s35_s24 = ssub.s32 %s3439_s21, %s3554_s23 }
  0x10   : > { %p36_p0 = scmp.eq.s32.totalorder %s35_s24, 0  ;;  %p45_p1 = scmp.ne.s32.totalorder %s3435_s20, %s3431_s19 }
  0x11   : > { %p46_p2 = scmp.eq.s32.totalorder %s3439_s21, 0  ;;  %p51_p3 = scmp.ne.s32.totalorder %s3431_s19, %s3427_s18 }
  0x12   : > { %s3564_s26 = scalar_select %p36_p0, %s3435_s20, %s38_s25  }
  0x13   : > { %p3566_p4 = por %p46_p2, %p45_p1  ;;  %p52_p5 = scmp.eq.s32.totalorder %s3551_s22, 0 }
  0x14   : > { %4873 = sst [smem:[#allocation10_spill]] %s3564_s26  ;;  %p3047_p6 = scmp.lt.s32.totalorder %s3439_s21, 2 }
  0x15   : > { %p3572_p7 = por %p52_p5, %p51_p3  ;;  %s3577_s29 = sand.u32 1, %s3435_s20  }
  0x16   : > { %s4861_s30 = sshll.u32 %s3577_s29, 6  ;;  %s4862_s16 = sshll.u32 %s3439_s21, 6 }
  0x17   : > { %s4876_s0 = sld [smem:[#allocation11_spill]]  ;;  %s445_s25 = scalar_lea.vmem [#allocation2], %s4861_s30 }
  0x18   : > { %s453_s26 = sshll.u32 %s445_s25, 4  ;;  %p3590_p8 = pnand %p3047_p6, %p3566_p4  ;;  %s454_s26 = int_to_ptr.vmem [resolvable:$true] %s453_s26 }
  0x19   : > { %p2854_p9 = scmp.ge.s32.totalorder %s3439_s21, 1  ;;  %s442_s15 = scalar_lea.sflag [#allocation3], %s3577_s29 }
  0x1a   : > { %p3345_p11 = pneg %p3590_p8 }
  0x1d   : > { %s450_s24 = scalar_lea.hbm %s4876_s0, %s4862_s16  ;;  %s3348_s18 = scalar_lea.hbm %s4876_s0, 128 }
  0x1e   : > { %s451_s23 = sshll.u32 %s450_s24, 4  ;;  %s452_s23 = int_to_ptr.hbm [resolvable:$true] %s451_s23 }
  0x1f   : > { %s3341_s14 = sshra.s32 %s452_s23, 4  ;;  %s3342_s14 = int_to_ptr.hbm [resolvable:$true] %s3341_s14 }
  0x20   : > { %s3343_s13 = scalar_lea.hbm %s3342_s14, 64  ;;  %p3349_p0 = scmp.lt.s32.totalorder %s3342_s14, %s4876_s0 }
  0x21   : > { %p3344_p10 = scmp.ne.s32.totalorder %s3342_s14, %s3343_s13  ;;  %p3350_p1 = scmp.lt.s32.totalorder %s3348_s18, %s3343_s13 }
  0x23   : > { %p3346_p12 = pnand %p3345_p11, %p3344_p10  ;;  %p3351_p2 = por %p3350_p1, %p3349_p0 }
  0x25   : > { %p3347_p13 = pneg %p3346_p12 }
  0x27   : > { %p3352_p3 = pnand %p3351_p2, %p3347_p13 }
  0x29   : > { %3355 = shalt.err (!%p3352_p3)
}
  0x2a   : > { %s3441_s30 = smov 128   ;;  %s3442_s16 = smov 8  }
  0x2b   : > { %3043 = dma.hbm_to_vmem [thread:$0]  (!%p3590_p8), %s452_s23, 1024, %s454_s26, %s442_s15, %s3441_s30, %s3441_s30, %s3442_s16  }
  0x2c   : > { %p489_p4 = scmp.lt.s32.totalorder %s3439_s21, 3  ;;  %s4878_s17 = sshll.u32 %s3439_s21, 6 }
  0x2d   : > { %s472_s13 = scalar_lea.hbm %s4843_s1, %s4878_s17  ;;  %s4880_s25 = sshll.u32 %s3577_s29, 6 }
  0x2e   : > { %p3617_p5 = pnand %p2854_p9, %p489_p4  ;;  %s473_s18 = sshll.u32 %s472_s13, 4  ;;  %s474_s18 = int_to_ptr.hbm [resolvable:$true] %s473_s18 }
  0x2f   : > { %s467_s0 = scalar_lea.vmem [#allocation4], %s4880_s25  ;;  %s464_s10 = scalar_lea.sflag [#allocation5], %s3577_s29 }
  0x30   : > { %s475_s12 = sshll.u32 %s467_s0, 4  ;;  %s3371_s11 = sshra.s32 %s474_s18, 4  ;;  %s476_s12 = int_to_ptr.vmem [resolvable:$true] %s475_s12  ;;  %s3372_s11 = int_to_ptr.hbm [resolvable:$true] %s3371_s11 }
  0x31   : > { %s3373_s15 = scalar_lea.hbm %s3372_s11, 64  ;;  %s3378_s26 = scalar_lea.hbm %s4843_s1, 128 }
  0x32   : > { %p3374_p6 = scmp.ne.s32.totalorder %s3372_s11, %s3373_s15  ;;  %p3379_p9 = scmp.lt.s32.totalorder %s3372_s11, %s4843_s1 }
  0x33   : > { %p3380_p13 = scmp.lt.s32.totalorder %s3378_s26, %s3373_s15 }
  0x34   : > { %p3376_p10 = pnand %p3374_p6, %p3345_p11 }
  0x35   : > { %p3381_p0 = por %p3380_p13, %p3379_p9 }
  0x36   : > { %p3377_p12 = pneg %p3376_p10 }
  0x38   : > { %p3382_p1 = pnand %p3381_p0, %p3377_p12 }
  0x3a   : > { %3385 = shalt.err (!%p3382_p1)
}
  0x3b   : > { %3046 = dma.hbm_to_vmem [thread:$0]  (!%p3590_p8), %s474_s18, 1024, %s476_s12, %s464_s10, %s3441_s30, %s3441_s30, %s3442_s16  }
  0x3c   : > { %493 = sbr.rel (%p3617_p5) target bundleno = 2606 (0xa2e), region = 80  ;;  %s495_s0 = sand.u32 (!%p3617_p5), 1, %s3431_s19  }
  0x3d   : > { %s2855_s29 = sshll.u32 (!%p3617_p5), %s495_s0, 6  ;;  %s496_s24 = scalar_lea.sflag (!%p3617_p5), [#allocation3], %s495_s0 }
  0x3e   : > { %s3638_s13 = scalar_lea.vmem (!%p3617_p5), [#allocation2], %s2855_s29 }
  0x41   : > { %3418 = dma.done.wait (%p3572_p7), %s496_s24, 1024  }
  0x42   : > { %3420 = vsyncadd (%p3572_p7), %s496_s24, 4294966272  ;;  %s506_s11 = scalar_lea.sflag [#allocation5], %s495_s0  ;;  %s3644_s25 = scalar_lea.vmem [#allocation4], %s2855_s29 }
  0x43   : > { %3422 = dma.done.wait (%p3572_p7), %s506_s11, 1024  }
  0x44   : > { %3424 = vsyncadd (%p3572_p7), %s506_s11, 4294966272  ;;  %v3653_v0 = vld [vmem:[%s4845_s3 + $0x18] sm:$0xff]  ;;  %v3658_v1 = vld [vmem:[%s4845_s3 + $0x10] sm:$0xff]  ;;  %vm606_vm0 = vcmask 261120   ;;  %s3443_s23 = smov 96   ;;  %s3444_s26 = smov 64  }
  0x45   : > { %643 = vmatpush.msra.mxu0 %v3653_v0  ;;  %v3662_v2 = vld [vmem:[%s3638_s13] sm:$0xff]  ;;  %3024 = vmatpush.msra.mxu1 %v3653_v0  ;;  %v3669_v4 = vld [vmem:[%s4845_s3 + $0x8] sm:$0xff]  ;;  %v3690_v10 = vld [vmem:[%s3638_s13 + $0x38] sm:$0xff]  ;;  %v3091_v38 = vpack.i.bf16 %v3658_v1, %v3653_v0  ;;  %s3445_s17 = smov 88   ;;  %s3446_s27 = smov 120   ;;  %vm787_vm1 = vcmask 64512  }
  0x46   : > { %v581_v3 = vld [vmem:[%s3644_s25] sm:$0xff]  ;;  %v3685_v7 = vld [vmem:[%s3638_s13 + $0x8] sm:$0xff]  ;;  %v588_v11 = vld [vmem:[%s3644_s25 + $0x38] sm:$0xff]  ;;  %s3447_s0 = smov 80   ;;  %p565_p7 = scmp.lt.s32.totalorder %s3551_s22, 1  ;;  %vm861_vm2 = vcmask 523264  }
  0x47   : > { %644 = vmatpush.msra.mxu0 %v3658_v1  ;;  %3025 = vmatpush.msra.mxu1 %v3658_v1  ;;  %v3676_v5 = vld [vmem:[%s4845_s3] sm:$0xff]  ;;  %v595_v6 = vadd.f32 %v581_v3, %v3662_v2  ;;  %v582_v8 = vld [vmem:[%s3644_s25 + $0x8] sm:$0xff]  ;;  %v602_v12 = vadd.f32 %v588_v11, %v3690_v10  ;;  %v3697_v13 = vld [vmem:[%s3638_s13 + $0x10] sm:$0xff]  ;;  %s3449_s10 = smov 72   ;;  %s3450_s12 = smov 104  }
  0x48   : > { %v596_v9 = vadd.f32 %v582_v8, %v3685_v7  ;;  %v583_v14 = vld [vmem:[%s3644_s25 + $0x10] sm:$0xff]  ;;  %v3703_v16 = vld [vmem:[%s3638_s13 + $0x18] sm:$0xff]  ;;  %v3709_v19 = vld [vmem:[%s3638_s13 + $0x20] sm:$0xff]  ;;  %v3096_v46 = vpack.i.bf16 %v3676_v5, %v3669_v4  ;;  %s4893_s22 = smov (!%p565_p7, %s3551_s22), 1  ;;  %s4881_s14 = sld [smem:[#allocation13_spill]] }
  0x49   : > { %645 = vmatpush.msra.mxu0 %v3669_v4  ;;  %3026 = vmatpush.msra.mxu1 %v3669_v4  ;;  %v597_v15 = vadd.f32 %v583_v14, %v3697_v13  ;;  %v584_v17 = vld [vmem:[%s3644_s25 + $0x18] sm:$0xff]  ;;  %v585_v20 = vld [vmem:[%s3644_s25 + $0x20] sm:$0xff]  ;;  %v3715_v22 = vld [vmem:[%s3638_s13 + $0x28] sm:$0xff]  ;;  %s3810_s11 = scalar_lea.vmem %s4844_s2, %s4893_s22  ;;  %s4882_s30 = sld [smem:[#allocation12_spill]] }
  0x4a   : > { %v598_v18 = vadd.f32 %v584_v17, %v3703_v16  ;;  %v599_v21 = vadd.f32 %v585_v20, %v3709_v19  ;;  %v586_v23 = vld [vmem:[%s3644_s25 + $0x28] sm:$0xff]  ;;  %v3721_v25 = vld [vmem:[%s3638_s13 + $0x30] sm:$0xff]  ;;  %v3161_v29 = vld [vmem:[%s4846_s4] ss:$0 sm:$0xff]  ;;  %s4883_s18 = sld [smem:[#allocation14_spill]] }
  0x4b   : > { %646 = vmatpush.msra.mxu0 %v3676_v5  ;;  %3027 = vmatpush.msra.mxu1 %v3676_v5  ;;  %v600_v24 = vadd.f32 %v586_v23, %v3715_v22  ;;  %v587_v26 = vld [vmem:[%s3644_s25 + $0x30] sm:$0xff]  ;;  %s3448_s25 = smov 112   ;;  %s4886_s24 = sld [smem:[#allocation17_spill]] }
  0x4c   : > { %2859 = vmatmul.msk.f32.vlgmr.msra.gmra.mxu0 %vm606_vm0, %v595_v6  ;;  %2866 = vmatmul.msk.f32.vlgmr.msra.gmra.mxu1 %vm606_vm0, %v602_v12  ;;  %v601_v27 = vadd.f32 %v587_v26, %v3721_v25 }
  0x54   : > { %2860 = vmatmul.msk.f32.gmra.mxu0 %vm606_vm0, %v596_v9 }
  0x5c   : > { %2861 = vmatmul.msk.f32.gmra.mxu0 %vm606_vm0, %v597_v15 }
  0x64   : > { %2862 = vmatmul.msk.f32.gmra.mxu0 %vm606_vm0, %v598_v18  ;;  %v3853_v18 = vld [vmem:[%s3810_s11] ss:$0 sm:$0xff] }
  0x6c   : > { %2863 = vmatmul.msk.f32.gmra.mxu0 %vm606_vm0, %v599_v21 }
  0x74   : > { %2864 = vmatmul.msk.f32.gmra.mxu0 %vm606_vm0, %v600_v24 }
  0x7c   : > { %2865 = vmatmul.msk.f32.gmra.mxu0 %vm606_vm0, %v601_v27 }
  0xc9   : > { %v648_v28 = vpop.f32.mrf.mxu0  ;;  %v669_v31 = vpop.f32.mrf.mxu1 }
  0xca   : > { %v3729_v32 = vadd.f32 %v3161_v29, %v669_v31  ;;  %v3750_v44 = vadd.f32 %v3161_v29, %v648_v28 }
  0xcc   : > { %785 = vrot.lane.b32.xlu0 %v3729_v32, %s3443_s23 }
  0xd1   : > { %v651_v30 = vpop.f32.mrf.mxu0 }
  0xd2   : > { %v3752_v45 = vadd.f32 %v3161_v29, %v651_v30 }
  0xd9   : > { %v654_v33 = vpop.f32.mrf.mxu0 }
  0xda   : > { %v3735_v37 = vadd.f32 %v3161_v29, %v654_v33 }
  0xe1   : > { %v657_v34 = vpop.f32.mrf.mxu0 }
  0xe2   : > { %v3732_v35 = vadd.f32 %v3161_v29, %v657_v34 }
  0xe4   : > { %777 = vrot.lane.b32.xlu2 %v3732_v35, %s3443_s23 }
  0xe9   : > { %v660_v36 = vpop.f32.mrf.mxu0 }
  0xea   : > { %v3743_v42 = vadd.f32 %v3161_v29, %v660_v36 }
  0xec   : > { %775 = vrot.lane.b32.xlu2 %v3735_v37, %s3443_s23 }
  0xf1   : > { %v663_v39 = vpop.f32.mrf.mxu0 }
  0xf2   : > { %v3740_v40 = vadd.f32 %v3161_v29, %v663_v39 }
  0xf4   : > { %781 = vrot.lane.b32.xlu1 %v3740_v40, %s3443_s23  ;;  %3092 = vrot.lane.b32.xlu2 %v3091_v38, %s3444_s26 }
  0xf9   : > { %v666_v41 = vpop.f32.mrf.mxu0 }
  0xfa   : > { %v3745_v43 = vadd.f32 %v3161_v29, %v666_v41 }
  0xfc   : > { %783 = vrot.lane.b32.xlu0 %v3745_v43, %s3443_s23  ;;  %779 = vrot.lane.b32.xlu1 %v3743_v42, %s3443_s23 }
  0xfd   : > { %1037 = vrot.lane.b32.xlu2 %v3732_v35, %s3445_s17 }
 0x104   : > { %773 = vrot.lane.b32.xlu0 %v3752_v45, %s3443_s23  ;;  %771 = vrot.lane.b32.xlu1 %v3750_v44, %s3443_s23  ;;  %s4884_s23 = sld [smem:[#allocation15_spill]] }
 0x105   : > { %1019 = vrot.lane.b32.xlu2 %v3735_v37, %s3446_s27 }
 0x10c   : > { %3097 = vrot.lane.b32.xlu0 %v3096_v46, %s3444_s26  ;;  %1045 = vrot.lane.b32.xlu1 %v3729_v32, %s3445_s17 }
 0x10d   : > { %1461 = vrot.lane.b32.xlu2 %v3740_v40, %s3447_s0 }
 0x114   : > { %688 = vrot.lane.b32.xlu0 %v3161_v29, %s3444_s26  ;;  %1041 = vrot.lane.b32.xlu1 %v3740_v40, %s3445_s17  ;;  %s3023_s26 = sshll.u32 %s4893_s22, 6 }
 0x115   : > { %1043 = vrot.lane.b32.xlu2 %v3745_v43, %s3445_s17 }
 0x11c   : > { %1039 = vrot.lane.b32.xlu0 %v3743_v42, %s3445_s17  ;;  %1015 = vrot.lane.b32.xlu1 %v3750_v44, %s3446_s27 }
 0x124   : > { %1035 = vrot.lane.b32.xlu0 %v3735_v37, %s3445_s17  ;;  %1465 = vrot.lane.b32.xlu1 %v3729_v32, %s3447_s0 }
 0x12c   : > { %1033 = vrot.lane.b32.xlu0 %v3752_v45, %s3445_s17  ;;  %1025 = vrot.lane.b32.xlu1 %v3740_v40, %s3446_s27 }
 0x134   : > { %1031 = vrot.lane.b32.xlu0 %v3750_v44, %s3445_s17 }
 0x13c   : > { %1017 = vrot.lane.b32.xlu0 %v3752_v45, %s3446_s27 }
 0x13e   : > { %v778_v47 = vpop.permute.xlu2 %777  ;;  %v786_v48 = vpop.permute.xlu0 %785 }
 0x13f   : > { %2875 = vmatpush.xpose.msk.msra.mxu2 %vm787_vm1, %v786_v48 }
 0x144   : > { %1021 = vrot.lane.b32.xlu0 %v3732_v35, %s3446_s27 }
 0x146   : > { %v776_v49 = vpop.permute.xlu2 %775 }
 0x14c   : > { %1023 = vrot.lane.b32.xlu0 %v3743_v42, %s3446_s27 }
 0x14e   : > { %v3093_v50 = vpop.permute.xlu2 %3092 }
 0x14f   : > { %v3094_v51 = vunpack.i.l.bf16 %v3093_v50  ;;  %v3095_v52 = vunpack.i.h.bf16 %v3093_v50 }
 0x151   : > { %727 = vmatpush.msrb.mxu1 %v3094_v51 }
 0x153   : > { %728 = vmatpush.msrb.mxu1 %v3095_v52 }
 0x154   : > { %1463 = vrot.lane.b32.xlu0 %v3745_v43, %s3447_s0 }
 0x157   : > { %v1038_v53 = vpop.permute.xlu2 %1037 }
 0x15f   : > { %v1020_v57 = vpop.permute.xlu2 %1019 }
 0x166   : > { %v782_v54 = vpop.permute.xlu1 %781 }
 0x167   : > { %v1462_v60 = vpop.permute.xlu2 %1461 }
 0x16e   : > { %v784_v55 = vpop.permute.xlu0 %783  ;;  %v780_v56 = vpop.permute.xlu1 %779 }
 0x16f   : > { %2876 = vmatpush.xpose.msk.msra.mxu2 %vm787_vm1, %v784_v55  ;;  %v1044_v1 = vpop.permute.xlu2 %1043 }
 0x173   : > { %2877 = vmatpush.xpose.msk.msra.mxu2 %vm787_vm1, %v782_v54 }
 0x176   : > { %v774_v58 = vpop.permute.xlu0 %773  ;;  %v772_v59 = vpop.permute.xlu1 %771 }
 0x177   : > { %2878 = vmatpush.xpose.msk.msra.mxu2 %vm787_vm1, %v780_v56 }
 0x17b   : > { %2879 = vmatpush.xpose.msk.msra.mxu2 %vm787_vm1, %v778_v47 }
 0x17e   : > { %v3098_v61 = vpop.permute.xlu0 %3097  ;;  %v1046_v62 = vpop.permute.xlu1 %1045 }
 0x17f   : > { %2880 = vmatpush.xpose.msk.msra.mxu2 %vm787_vm1, %v776_v49  ;;  %2899 = vmatpush.xpose.msk.msrb.mxu0 %vm787_vm1, %v1046_v62  ;;  %v3099_v63 = vunpack.i.l.bf16 %v3098_v61  ;;  %v3100_v0 = vunpack.i.h.bf16 %v3098_v61 }
 0x181   : > { %729 = vmatpush.msrb.mxu1 %v3099_v63 }
 0x183   : > { %730 = vmatpush.msrb.mxu1 %v3100_v0  ;;  %2881 = vmatpush.xpose.msk.msra.mxu2 %vm787_vm1, %v774_v58 }
 0x184   : > { %2900 = vmatpush.xpose.msk.msrb.mxu0 %vm787_vm1, %v1044_v1  ;;  %2867 = vmatmul.msk.f32.vlgmr.msrb.gmra.mxu1 %vm606_vm0, %v3662_v2 }
 0x186   : > { %v3794_v3 = vpop.permute.xlu0 %688  ;;  %v1042_v4 = vpop.permute.xlu1 %1041 }
 0x187   : > { %2882 = vmatpush.xpose.msk.msra.mxu2 %vm787_vm1, %v772_v59 }
 0x188   : > { %2901 = vmatpush.xpose.msk.msrb.mxu0 %vm787_vm1, %v1042_v4 }
 0x18a   : > { %2883 = vmatmul.msk.f32.vlgmr.msra.gmra.mxu2 %vm787_vm1, %v3750_v44 }
 0x18c   : > { %2868 = vmatmul.msk.f32.gmra.mxu1 %vm606_vm0, %v3685_v7 }
 0x18e   : > { %v1040_v2 = vpop.permute.xlu0 %1039  ;;  %v1016_v6 = vpop.permute.xlu1 %1015 }
 0x18f   : > { %2902 = vmatpush.xpose.msk.msrb.mxu0 %vm787_vm1, %v1040_v2 }
 0x192   : > { %2884 = vmatmul.msk.f32.gmra.mxu2 %vm787_vm1, %v3752_v45 }
 0x193   : > { %2903 = vmatpush.xpose.msk.msrb.mxu0 %vm787_vm1, %v1038_v53 }
 0x194   : > { %2869 = vmatmul.msk.f32.gmra.mxu1 %vm606_vm0, %v3697_v13 }
 0x196   : > { %v1036_v5 = vpop.permute.xlu0 %1035  ;;  %v1466_v9 = vpop.permute.xlu1 %1465 }
 0x197   : > { %2904 = vmatpush.xpose.msk.msrb.mxu0 %vm787_vm1, %v1036_v5 }
 0x19a   : > { %2885 = vmatmul.msk.f32.gmra.mxu2 %vm787_vm1, %v3735_v37 }
 0x19c   : > { %2870 = vmatmul.msk.f32.gmra.mxu1 %vm606_vm0, %v3703_v16 }
 0x19e   : > { %v1034_v7 = vpop.permute.xlu0 %1033  ;;  %v1026_v15 = vpop.permute.xlu1 %1025 }
 0x19f   : > { %2905 = vmatpush.xpose.msk.msrb.mxu0 %vm787_vm1, %v1034_v7 }
 0x1a2   : > { %2886 = vmatmul.msk.f32.gmra.mxu2 %vm787_vm1, %v3732_v35 }
 0x1a4   : > { %2871 = vmatmul.msk.f32.gmra.mxu1 %vm606_vm0, %v3709_v19 }
 0x1a6   : > { %v1032_v8 = vpop.permute.xlu0 %1031 }
 0x1a7   : > { %2906 = vmatpush.xpose.msk.msrb.mxu0 %vm787_vm1, %v1032_v8 }
 0x1aa   : > { %2887 = vmatmul.msk.f32.gmra.mxu2 %vm787_vm1, %v3743_v42  ;;  %2907 = vmatmul.msk.f32.vlgmr.msrb.gmra.mxu0 %vm787_vm1, %v1016_v6 }
 0x1ab   : > { %2939 = vmatpush.xpose.msk.msra.mxu0 %vm787_vm1, %v1466_v9 }
 0x1ac   : > { %2872 = vmatmul.msk.f32.gmra.mxu1 %vm606_vm0, %v3715_v22 }
 0x1ae   : > { %v1018_v11 = vpop.permute.xlu0 %1017 }
 0x1b2   : > { %2888 = vmatmul.msk.f32.gmra.mxu2 %vm787_vm1, %v3740_v40  ;;  %2908 = vmatmul.msk.f32.gmra.mxu0 %vm787_vm1, %v1018_v11 }
 0x1b4   : > { %2873 = vmatmul.msk.f32.gmra.mxu1 %vm606_vm0, %v3721_v25 }
 0x1b6   : > { %v1022_v12 = vpop.permute.xlu0 %1021 }
 0x1ba   : > { %2889 = vmatmul.msk.f32.gmra.mxu2 %vm787_vm1, %v3745_v43  ;;  %2909 = vmatmul.msk.f32.gmra.mxu0 %vm787_vm1, %v1020_v57 }
 0x1bc   : > { %2874 = vmatmul.msk.f32.gmra.mxu1 %vm606_vm0, %v3690_v10 }
 0x1be   : > { %v1024_v13 = vpop.permute.xlu0 %1023 }
 0x1c2   : > { %2890 = vmatmul.msk.f32.gmra.mxu2 %vm787_vm1, %v3729_v32  ;;  %2910 = vmatmul.msk.f32.gmra.mxu0 %vm787_vm1, %v1022_v12 }
 0x1c6   : > { %v1464_v14 = vpop.permute.xlu0 %1463 }
 0x1c7   : > { %2940 = vmatpush.xpose.msk.msra.mxu0 %vm787_vm1, %v1464_v14 }
 0x1ca   : > { %2911 = vmatmul.msk.f32.gmra.mxu0 %vm787_vm1, %v1024_v13 }
 0x1cb   : > { %2941 = vmatpush.xpose.msk.msra.mxu0 %vm787_vm1, %v1462_v60 }
 0x1d2   : > { %2912 = vmatmul.msk.f32.gmra.mxu0 %vm787_vm1, %v1026_v15 }
 0x201   : > { %v732_v16 = vpop.f32.mrf.mxu1 }
 0x202   : > { %v733_v24 = vadd.f32 %v732_v16, %v3794_v3 }
 0x209   : > { %v735_v17 = vpop.f32.mrf.mxu1 }
 0x20a   : > { %v736_v25 = vadd.f32 %v735_v17, %v3794_v3 }
 0x20c   : > { %v3863_v30 = vpack.i.bf16 %v733_v24, %v736_v25 }
 0x20d   : > { %v837_v10 = vpop.f32.mrf.mxu2 }
 0x20e   : > { %v838_v19 = vadd.f32 %v3853_v18, %v837_v10 }
 0x210   : > { %v862_v20 = vsel %vm861_vm2, %v838_v19, -inf }
 0x211   : > { %v738_v21 = vpop.f32.mrf.mxu1  ;;  %863 = vmax.xlane.f32.xlu1 %v862_v20 }
 0x212   : > { %v739_v26 = vadd.f32 %v738_v21, %v3794_v3 }
 0x215   : > { %v840_v22 = vpop.f32.mrf.mxu2 }
 0x216   : > { %v841_v23 = vadd.f32 %v3853_v18, %v840_v22 }
 0x218   : > { %v865_v27 = vsel %vm861_vm2, %v841_v23, -inf }
 0x219   : > { %v741_v28 = vpop.f32.mrf.mxu1  ;;  %866 = vmax.xlane.f32.xlu2 %v865_v27 }
 0x21a   : > { %v742_v29 = vadd.f32 %v741_v28, %v3794_v3 }
 0x21c   : > { %v3865_v31 = vpack.i.bf16 %v739_v26, %v742_v29 }
 0x21d   : > { %v843_v33 = vpop.f32.mrf.mxu2 }
 0x21e   : > { %v844_v34 = vadd.f32 %v3853_v18, %v843_v33 }
 0x220   : > { %v868_v36 = vsel %vm861_vm2, %v844_v34, -inf }
 0x221   : > { %v744_v38 = vpop.f32.mrf.mxu1  ;;  %869 = vmax.xlane.f32.xlu0 %v868_v36 }
 0x222   : > { %v745_v46 = vadd.f32 %v744_v38, %v3794_v3 }
 0x225   : > { %v846_v39 = vpop.f32.mrf.mxu2 }
 0x226   : > { %v847_v41 = vadd.f32 %v3853_v18, %v846_v39 }
 0x228   : > { %v871_v47 = vsel %vm861_vm2, %v847_v41, -inf }
 0x229   : > { %v747_v48 = vpop.f32.mrf.mxu1  ;;  %872 = vmax.xlane.f32.xlu2 %v871_v47 }
 0x22a   : > { %v748_v49 = vadd.f32 %v747_v48, %v3794_v3 }
 0x22c   : > { %v3873_v50 = vpack.i.bf16 %v745_v46, %v748_v49 }
 0x22d   : > { %v849_v51 = vpop.f32.mrf.mxu2 }
 0x22e   : > { %v3876_v52 = vadd.f32 %v3853_v18, %v849_v51 }
 0x230   : > { %v874_v53 = vsel %vm861_vm2, %v3876_v52, -inf }
 0x231   : > { %v750_v54 = vpop.f32.mrf.mxu1  ;;  %875 = vmax.xlane.f32.xlu1 %v874_v53 }
 0x232   : > { %v751_v57 = vadd.f32 %v750_v54, %v3794_v3 }
 0x235   : > { %v852_v55 = vpop.f32.mrf.mxu2  ;;  %1459 = vrot.lane.b32.xlu0 %v3743_v42, %s3447_s0 }
 0x236   : > { %v3883_v56 = vadd.f32 %v3853_v18, %v852_v55 }
 0x238   : > { %v877_v58 = vsel %vm861_vm2, %v3883_v56, -inf }
 0x239   : > { %v753_v59 = vpop.f32.mrf.mxu1  ;;  %878 = vmax.xlane.f32.xlu2 %v877_v58 }
 0x23a   : > { %v754_v60 = vadd.f32 %v753_v59, %v3794_v3 }
 0x23c   : > { %982 = vmatpush.msra.mxu3 %v754_v60  ;;  %v3889_v61 = vpack.i.bf16 %v751_v57, %v754_v60 }
 0x23d   : > { %v855_v62 = vpop.f32.mrf.mxu2 }
 0x23e   : > { %v856_v63 = vadd.f32 %v3853_v18, %v855_v62  ;;  %983 = vmatpush.msra.mxu3 %v751_v57 }
 0x240   : > { %984 = vmatpush.msra.mxu3 %v748_v49  ;;  %v880_v0 = vsel %vm861_vm2, %v856_v63, -inf }
 0x241   : > { %881 = vmax.xlane.f32.xlu1 %v880_v0 }
 0x242   : > { %985 = vmatpush.msra.mxu3 %v745_v46 }
 0x244   : > { %986 = vmatpush.msra.mxu3 %v742_v29 }
 0x245   : > { %v858_v1 = vpop.f32.mrf.mxu2 }
 0x246   : > { %v3894_v4 = vadd.f32 %v3853_v18, %v858_v1  ;;  %987 = vmatpush.msra.mxu3 %v739_v26 }
 0x248   : > { %988 = vmatpush.msra.mxu3 %v736_v25  ;;  %v883_v3 = vsel %vm861_vm2, %v3894_v4, -inf }
 0x249   : > { %884 = vmax.xlane.f32.xlu1 %v883_v3 }
 0x24a   : > { %989 = vmatpush.msra.mxu3 %v733_v24 }
 0x284   : > { %v864_v2 = vpop.xlane.xlu1 %863 }
 0x285   : > { %v886_v5 = vsub.f32 %v838_v19, %v864_v2 }
 0x287   : > { %v894_v6 = vmul.f32 1.442695, %v886_v5 }
 0x289   : > { %3170 = vpow2.f32 %v894_v6 }
 0x28c   : > { %v867_v7 = vpop.xlane.xlu2 %866 }
 0x28d   : > { %v887_v8 = vsub.f32 %v841_v23, %v867_v7 }
 0x28f   : > { %v3898_v9 = vpop.eup %3170  ;;  %v896_v11 = vmul.f32 1.442695, %v887_v8  ;;  %v756_v8 = vld [vmem:[%s4847_s5] sm:$0xff] }
 0x290   : > { %v910_v12 = vsel %vm861_vm2, %v3898_v9, 0.0  ;;  %1409 = vmatpush.msrb.mxu2 %v756_v8 }
 0x291   : > { %3172 = vpow2.f32 %v896_v11  ;;  %911 = vadd.xlane.f32.xlu2 %v910_v12 }
 0x294   : > { %v870_v13 = vpop.xlane.xlu0 %869 }
 0x295   : > { %v888_v14 = vsub.f32 %v844_v34, %v870_v13 }
 0x297   : > { %v3902_v15 = vpop.eup %3172  ;;  %v898_v16 = vmul.f32 1.442695, %v888_v14 }
 0x298   : > { %v913_v17 = vsel %vm861_vm2, %v3902_v15, 0.0 }
 0x299   : > { %3174 = vpow2.f32 %v898_v16  ;;  %914 = vadd.xlane.f32.xlu2 %v913_v17 }
 0x29c   : > { %v873_v10 = vpop.xlane.xlu2 %872 }
 0x29d   : > { %v889_v19 = vsub.f32 %v847_v41, %v873_v10 }
 0x29f   : > { %v3906_v20 = vpop.eup %3174  ;;  %v900_v21 = vmul.f32 1.442695, %v889_v19 }
 0x2a0   : > { %v916_v22 = vsel %vm861_vm2, %v3906_v20, 0.0 }
 0x2a1   : > { %3176 = vpow2.f32 %v900_v21  ;;  %917 = vadd.xlane.f32.xlu1 %v916_v22 }
 0x2a4   : > { %v876_v26 = vpop.xlane.xlu1 %875 }
 0x2a5   : > { %v890_v27 = vsub.f32 %v3876_v52, %v876_v26  ;;  %v3951_v52 = vpop.f32.mrf.mxu0 }
 0x2a7   : > { %v3910_v23 = vpop.eup %3176  ;;  %v1460_v24 = vpop.permute.xlu0 %1459  ;;  %v902_v28 = vmul.f32 1.442695, %v890_v27 }
 0x2a8   : > { %2942 = vmatpush.xpose.msk.msra.mxu0 %vm787_vm1, %v1460_v24  ;;  %v919_v25 = vsel %vm861_vm2, %v3910_v23, 0.0 }
 0x2a9   : > { %920 = vadd.xlane.f32.xlu0 %v919_v25  ;;  %3178 = vpow2.f32 %v902_v28 }
 0x2ac   : > { %v879_v29 = vpop.xlane.xlu2 %878 }
 0x2ad   : > { %v891_v34 = vsub.f32 %v3883_v56, %v879_v29  ;;  %v3963_v54 = vpop.f32.mrf.mxu0  ;;  %v4032_v29 = vadd.f32 %v3853_v18, %v3951_v52 }
 0x2af   : > { %v904_v38 = vmul.f32 1.442695, %v891_v34  ;;  %v3929_v39 = vpop.eup %3178 }
 0x2b0   : > { %v922_v46 = vsel %vm861_vm2, %v3929_v39, 0.0 }
 0x2b1   : > { %1457 = vrot.lane.b32.xlu2 %v3732_v35, %s3447_s0  ;;  %3180 = vpow2.f32 %v904_v38 }
 0x2b4   : > { %v882_v33 = vpop.xlane.xlu1 %881 }
 0x2b5   : > { %v892_v36 = vsub.f32 %v856_v63, %v882_v33  ;;  %v1120_v33 = vsel %vm861_vm2, %v4032_v29, -inf }
 0x2b7   : > { %v906_v41 = vmul.f32 1.442695, %v892_v36  ;;  %v3935_v47 = vpop.eup %3180 }
 0x2b8   : > { %v925_v49 = vsel %vm861_vm2, %v3935_v47, 0.0 }
 0x2b9   : > { %3182 = vpow2.f32 %v906_v41 }
 0x2ba   : > { %1027 = vrot.lane.b32.xlu1 %v3745_v43, %s3446_s27 }
 0x2bc   : > { %v885_v56 = vpop.xlane.xlu1 %884 }
 0x2bd   : > { %1455 = vrot.lane.b32.xlu0 %v3735_v37, %s3447_s0  ;;  %v893_v0 = vsub.f32 %v3894_v4, %v885_v56 }
 0x2bf   : > { %v3937_v48 = vpop.eup %3182  ;;  %v908_v6 = vmul.f32 1.442695, %v893_v0 }
 0x2c0   : > { %v928_v51 = vsel %vm861_vm2, %v3937_v48, 0.0 }
 0x2c5   : > { %1451 = vrot.lane.b32.xlu0 %v3750_v44, %s3447_s0 }
 0x2cd   : > { %1439 = vrot.lane.b32.xlu0 %v3735_v37, %s3448_s25 }
 0x2d5   : > { %1820 = vrot.lane.b32.xlu0 %v3729_v32, %s3449_s10 }
 0x2da   : > { %923 = vadd.xlane.f32.xlu2 %v922_v46 }
 0x2dd   : > { %1816 = vrot.lane.b32.xlu0 %v3740_v40, %s3449_s10 }
 0x2e2   : > { %926 = vadd.xlane.f32.xlu2 %v925_v49  ;;  %v4070_v49 = vadd.f32 %v3853_v18, %v3963_v54 }
 0x2e4   : > { %929 = vadd.xlane.f32.xlu1 %v928_v51 }
 0x2e5   : > { %1812 = vrot.lane.b32.xlu0 %v3732_v35, %s3449_s10 }
 0x2ed   : > { %1808 = vrot.lane.b32.xlu0 %v3752_v45, %s3449_s10 }
 0x2f5   : > { %1792 = vrot.lane.b32.xlu0 %v3752_v45, %s3450_s12 }
 0x2fa   : > { %1453 = vrot.lane.b32.xlu2 %v3752_v45, %s3447_s0 }
 0x2fd   : > { %1798 = vrot.lane.b32.xlu0 %v3743_v42, %s3450_s12  ;;  %1029 = vrot.lane.b32.xlu1 %v3729_v32, %s3446_s27 }
 0x302   : > { %1437 = vrot.lane.b32.xlu2 %v3752_v45, %s3448_s25  ;;  %v1102_v45 = vpop.f32.mrf.mxu0 }
 0x303   : > { %v3993_v12 = vadd.f32 %v3853_v18, %v1102_v45 }
 0x304   : > { %v912_v53 = vpop.xlane.xlu2 %911 }
 0x305   : > { %3184 = vrcp.f32 %v912_v53  ;;  %1804 = vrot.lane.b32.xlu0 %v3729_v32, %s3450_s12  ;;  %1435 = vrot.lane.b32.xlu1 %v3750_v44, %s3448_s25  ;;  %v1123_v53 = vsel %vm861_vm2, %v4070_v49, -inf }
 0x30a   : > { %v3975_v3 = vpop.f32.mrf.mxu0 }
 0x30b   : > { %v3185_v55 = vpop.eup %3184  ;;  %v4044_v34 = vadd.f32 %v3853_v18, %v3975_v3 }
 0x30c   : > { %v915_v57 = vpop.xlane.xlu2 %914  ;;  %v942_v58 = vmul.f32 %v3185_v55, %v3898_v9 }
 0x30d   : > { %3186 = vrcp.f32 %v915_v57  ;;  %1441 = vrot.lane.b32.xlu1 %v3732_v35, %s3448_s25  ;;  %v1129_v36 = vsel %vm861_vm2, %v4044_v34, -inf }
 0x30e   : > { %2891 = vmatmul.msk.f32.vlgmr.msra.gmra.mxu3 %vm861_vm2, %v942_v58 }
 0x312   : > { %v3985_v9 = vpop.f32.mrf.mxu0 }
 0x313   : > { %v3187_v59 = vpop.eup %3186  ;;  %v4081_v54 = vadd.f32 %v3853_v18, %v3985_v9 }
 0x314   : > { %v1458_v60 = vpop.permute.xlu2 %1457  ;;  %v918_v62 = vpop.xlane.xlu1 %917  ;;  %v943_v63 = vmul.f32 %v3187_v59, %v3902_v15  ;;  %v1126_v15 = vsel %vm861_vm2, %v3993_v12, -inf }
 0x315   : > { %3188 = vrcp.f32 %v918_v62  ;;  %2943 = vmatpush.xpose.msk.msra.mxu0 %vm787_vm1, %v1458_v60  ;;  %1818 = vrot.lane.b32.xlu1 %v3745_v43, %s3449_s10  ;;  %v1132_v45 = vsel %vm861_vm2, %v4081_v54, -inf }
 0x316   : > { %2892 = vmatmul.msk.f32.gmra.mxu3 %vm861_vm2, %v943_v63 }
 0x31a   : > { %v1111_v16 = vpop.f32.mrf.mxu0 }
 0x31b   : > { %v3189_v1 = vpop.eup %3188  ;;  %v4004_v10 = vadd.f32 %v3853_v18, %v1111_v16 }
 0x31c   : > { %v921_v2 = vpop.xlane.xlu0 %920  ;;  %v944_v5 = vmul.f32 %v3189_v1, %v3906_v20 }
 0x31d   : > { %3190 = vrcp.f32 %v921_v2  ;;  %1814 = vrot.lane.b32.xlu1 %v3743_v42, %s3449_s10  ;;  %v1135_v19 = vsel %vm861_vm2, %v4004_v10, -inf }
 0x31e   : > { %2893 = vmatmul.msk.f32.gmra.mxu3 %vm861_vm2, %v944_v5  ;;  %3192 = vpow2.f32 %v908_v6 }
 0x323   : > { %v3191_v7 = vpop.eup %3190 }
 0x324   : > { %v945_v4 = vmul.f32 %v3191_v7, %v3910_v23  ;;  %v3990_v11 = vpop.eup %3192 }
 0x325   : > { %1810 = vrot.lane.b32.xlu1 %v3735_v37, %s3449_s10  ;;  %v931_v13 = vsel %vm861_vm2, %v3990_v11, 0.0 }
 0x326   : > { %2894 = vmatmul.msk.f32.gmra.mxu3 %vm861_vm2, %v945_v4 }
 0x32b   : > { %932 = vadd.xlane.f32.xlu2 %v931_v13 }
 0x32c   : > { %v1028_v14 = vpop.permute.xlu1 %1027 }
 0x32d   : > { %1806 = vrot.lane.b32.xlu1 %v3750_v44, %s3449_s10  ;;  %2913 = vmatmul.msk.f32.gmra.mxu0 %vm787_vm1, %v1028_v14 }
 0x32f   : > { %v1456_v17 = vpop.permute.xlu0 %1455  ;;  %1127 = vmax.xlane.f32.xlu0 %v1126_v15 }
 0x330   : > { %2944 = vmatpush.xpose.msk.msra.mxu0 %vm787_vm1, %v1456_v17 }
 0x335   : > { %1794 = vrot.lane.b32.xlu1 %v3735_v37, %s3450_s12 }
 0x337   : > { %v1452_v20 = vpop.permute.xlu0 %1451  ;;  %1136 = vmax.xlane.f32.xlu0 %v1135_v19 }
 0x33d   : > { %1800 = vrot.lane.b32.xlu1 %v3740_v40, %s3450_s12 }
 0x33f   : > { %v1440_v21 = vpop.permute.xlu0 %1439 }
 0x343   : > { %1443 = vrot.lane.b32.xlu2 %v3743_v42, %s3448_s25 }
 0x347   : > { %v1821_v22 = vpop.permute.xlu0 %1820 }
 0x348   : > { %3028 = vmatpush.xpose.msk.msra.mxu2 %vm787_vm1, %v1821_v22 }
 0x34b   : > { %3107 = vrot.lane.b32.xlu0 %v3873_v50, %s3446_s27  ;;  %1445 = vrot.lane.b32.xlu2 %v3740_v40, %s3448_s25 }
 0x34d   : > { %v924_v37 = vpop.xlane.xlu2 %923 }
 0x34e   : > { %3194 = vrcp.f32 %v924_v37 }
 0x353   : > { %3117 = vrot.lane.b32.xlu0 %v3863_v30, %s3446_s27  ;;  %1447 = vrot.lane.b32.xlu2 %v3745_v43, %s3448_s25 }
 0x354   : > { %v3195_v23 = vpop.eup %3194 }
 0x355   : > { %v927_v24 = vpop.xlane.xlu2 %926  ;;  %v946_v42 = vmul.f32 %v3195_v23, %v3929_v39 }
 0x356   : > { %3196 = vrcp.f32 %v927_v24 }
 0x357   : > { %2895 = vmatmul.msk.f32.gmra.mxu3 %vm861_vm2, %v946_v42  ;;  %v930_v25 = vpop.xlane.xlu1 %929 }
 0x358   : > { %3198 = vrcp.f32 %v930_v25 }
 0x35b   : > { %1449 = vrot.lane.b32.xlu2 %v3729_v32, %s3448_s25 }
 0x35c   : > { %v3197_v40 = vpop.eup %3196 }
 0x35d   : > { %v1454_v26 = vpop.permute.xlu2 %1453  ;;  %v947_v27 = vmul.f32 %v3197_v40, %v3935_v47  ;;  %v1817_v47 = vpop.permute.xlu0 %1816 }
 0x35e   : > { %2945 = vmatpush.xpose.msk.msra.mxu0 %vm787_vm1, %v1454_v26  ;;  %v3199_v28 = vpop.eup %3198 }
 0x35f   : > { %2896 = vmatmul.msk.f32.gmra.mxu3 %vm861_vm2, %v947_v27  ;;  %v948_v32 = vmul.f32 %v3199_v28, %v3937_v48 }
 0x362   : > { %2946 = vmatpush.xpose.msk.msra.mxu0 %vm787_vm1, %v1452_v20 }
 0x363   : > { %1790 = vrot.lane.b32.xlu2 %v3750_v44, %s3450_s12 }
 0x365   : > { %v1438_v39 = vpop.permute.xlu2 %1437  ;;  %v1813_v48 = vpop.permute.xlu0 %1812 }
 0x366   : > { %2971 = vmatpush.xpose.msk.msrb.mxu0 %vm787_vm1, %v1821_v22 }
 0x367   : > { %1121 = vmax.xlane.f32.xlu1 %v1120_v33  ;;  %2897 = vmatmul.msk.f32.gmra.mxu3 %vm861_vm2, %v948_v32 }
 0x36b   : > { %1796 = vrot.lane.b32.xlu2 %v3732_v35, %s3450_s12 }
 0x36d   : > { %v1809_v55 = vpop.permute.xlu0 %1808 }
 0x36f   : > { %1130 = vmax.xlane.f32.xlu1 %v1129_v36  ;;  %v1030_v44 = vpop.permute.xlu1 %1029 }
 0x370   : > { %2914 = vmatmul.msk.f32.gmra.mxu0 %vm787_vm1, %v1030_v44 }
 0x373   : > { %1802 = vrot.lane.b32.xlu2 %v3745_v43, %s3450_s12 }
 0x375   : > { %v1793_v8 = vpop.permute.xlu0 %1792 }
 0x377   : > { %v1436_v38 = vpop.permute.xlu1 %1435 }
 0x378   : > { %2947 = vmatmul.msk.f32.vlgmr.msra.gmra.mxu0 %vm787_vm1, %v1436_v38 }
 0x37d   : > { %v4104_v9 = vpop.permute.xlu0 %1798 }
 0x37f   : > { %v1442_v41 = vpop.permute.xlu1 %1441 }
 0x380   : > { %2948 = vmatmul.msk.f32.gmra.mxu0 %vm787_vm1, %v1438_v39 }
 0x385   : > { %v4110_v16 = vpop.permute.xlu0 %1804 }
 0x387   : > { %v1819_v46 = vpop.permute.xlu1 %1818 }
 0x388   : > { %3102 = vrot.lane.b32.xlu1 %v3889_v61, %s3446_s27  ;;  %2949 = vmatmul.msk.f32.gmra.mxu0 %vm787_vm1, %v1440_v21 }
 0x389   : > { %2972 = vmatpush.xpose.msk.msrb.mxu0 %vm787_vm1, %v1819_v46  ;;  %3029 = vmatpush.xpose.msk.msra.mxu2 %vm787_vm1, %v1819_v46 }
 0x38d   : > { %2973 = vmatpush.xpose.msk.msrb.mxu0 %vm787_vm1, %v1817_v47  ;;  %3030 = vmatpush.xpose.msk.msra.mxu2 %vm787_vm1, %v1817_v47 }
 0x38f   : > { %v1815_v35 = vpop.permute.xlu1 %1814 }
 0x390   : > { %2950 = vmatmul.msk.f32.gmra.mxu0 %vm787_vm1, %v1442_v41 }
 0x391   : > { %2974 = vmatpush.xpose.msk.msrb.mxu0 %vm787_vm1, %v1815_v35  ;;  %3031 = vmatpush.xpose.msk.msra.mxu2 %vm787_vm1, %v1815_v35  ;;  %v991_v43 = vpop.f32.mrf.mxu3 }
 0x392   : > { %2931 = vmatmul.msk.f32.vlgmr.msrb.gmra.mxu2 %vm787_vm1, %v991_v43 }
 0x395   : > { %2975 = vmatpush.xpose.msk.msrb.mxu0 %vm787_vm1, %v1813_v48  ;;  %3032 = vmatpush.xpose.msk.msra.mxu2 %vm787_vm1, %v1813_v48 }
 0x397   : > { %v1811_v51 = vpop.permute.xlu1 %1810 }
 0x399   : > { %2976 = vmatpush.xpose.msk.msrb.mxu0 %vm787_vm1, %v1811_v51  ;;  %3033 = vmatpush.xpose.msk.msra.mxu2 %vm787_vm1, %v1811_v51  ;;  %v994_v52 = vpop.f32.mrf.mxu3 }
 0x39a   : > { %2932 = vmatmul.msk.f32.gmra.mxu2 %vm787_vm1, %v994_v52 }
 0x39c   : > { %1124 = vmax.xlane.f32.xlu2 %v1123_v53 }
 0x39d   : > { %2977 = vmatpush.xpose.msk.msrb.mxu0 %vm787_vm1, %v1809_v55  ;;  %3034 = vmatpush.xpose.msk.msra.mxu2 %vm787_vm1, %v1809_v55 }
 0x39e   : > { %v933_v56 = vpop.xlane.xlu2 %932 }
 0x39f   : > { %3200 = vrcp.f32 %v933_v56  ;;  %v1807_v57 = vpop.permute.xlu1 %1806 }
 0x3a1   : > { %2978 = vmatpush.xpose.msk.msrb.mxu0 %vm787_vm1, %v1807_v57  ;;  %3035 = vmatpush.xpose.msk.msra.mxu2 %vm787_vm1, %v1807_v57  ;;  %v997_v58 = vpop.f32.mrf.mxu3 }
 0x3a2   : > { %2933 = vmatmul.msk.f32.gmra.mxu2 %vm787_vm1, %v997_v58  ;;  %v1128_v20 = vpop.xlane.xlu0 %1127 }
 0x3a3   : > { %v1146_v37 = vsub.f32 %v3993_v12, %v1128_v20 }
 0x3a4   : > { %1133 = vmax.xlane.f32.xlu2 %v1132_v45 }
 0x3a5   : > { %v3201_v59 = vpop.eup %3200  ;;  %v1156_v24 = vmul.f32 1.442695, %v1146_v37 }
 0x3a6   : > { %v1444_v60 = vpop.permute.xlu2 %1443  ;;  %v949_v62 = vmul.f32 %v3201_v59, %v3990_v11 }
 0x3a7   : > { %2951 = vmatmul.msk.f32.gmra.mxu0 %vm787_vm1, %v1444_v60  ;;  %v4101_v4 = vpop.permute.xlu1 %1794 }
 0x3a8   : > { %2898 = vmatmul.msk.f32.gmra.mxu3 %vm861_vm2, %v949_v62 }
 0x3a9   : > { %v1000_v63 = vpop.f32.mrf.mxu3 }
 0x3aa   : > { %v1114_v0 = vpop.f32.mrf.mxu0  ;;  %2934 = vmatmul.msk.f32.gmra.mxu2 %vm787_vm1, %v1000_v63  ;;  %v1137_v27 = vpop.xlane.xlu0 %1136 }
 0x3ab   : > { %v4093_v1 = vadd.f32 %v3853_v18, %v1114_v0  ;;  %v1149_v60 = vsub.f32 %v4004_v10, %v1137_v27 }
 0x3ad   : > { %v1138_v3 = vsel %vm861_vm2, %v4093_v1, -inf }
 0x3ae   : > { %v1446_v2 = vpop.permute.xlu2 %1445  ;;  %1139 = vmax.xlane.f32.xlu2 %v1138_v3  ;;  %v1162_v3 = vmul.f32 1.442695, %v1149_v60 }
 0x3af   : > { %2952 = vmatmul.msk.f32.gmra.mxu0 %vm787_vm1, %v1446_v2  ;;  %v4106_v11 = vpop.permute.xlu1 %1800 }
 0x3b6   : > { %v1448_v5 = vpop.permute.xlu2 %1447 }
 0x3b7   : > { %2953 = vmatmul.msk.f32.gmra.mxu0 %vm787_vm1, %v1448_v5 }
 0x3bd   : > { %v3108_v38 = vpop.permute.xlu0 %3107 }
 0x3be   : > { %v1450_v6 = vpop.permute.xlu2 %1449  ;;  %v3109_v35 = vunpack.i.l.bf16 %v3108_v38  ;;  %v3110_v43 = vunpack.i.h.bf16 %v3108_v38 }
 0x3bf   : > { %2954 = vmatmul.msk.f32.gmra.mxu0 %vm787_vm1, %v1450_v6 }
 0x3c6   : > { %v1791_v7 = vpop.permute.xlu2 %1790 }
 0x3c7   : > { %2979 = vmatmul.msk.f32.vlgmr.msrb.gmra.mxu0 %vm787_vm1, %v1791_v7 }
 0x3ce   : > { %v1797_v39 = vpop.permute.xlu2 %1796 }
 0x3cf   : > { %2980 = vmatmul.msk.f32.gmra.mxu0 %vm787_vm1, %v1793_v8 }
 0x3d6   : > { %v1803_v51 = vpop.permute.xlu2 %1802 }
 0x3da   : > { %v1003_v13 = vpop.f32.mrf.mxu3  ;;  %v1122_v14 = vpop.xlane.xlu1 %1121 }
 0x3db   : > { %v1144_v15 = vsub.f32 %v4032_v29, %v1122_v14  ;;  %2935 = vmatmul.msk.f32.gmra.mxu2 %vm787_vm1, %v1003_v13 }
 0x3dd   : > { %v1152_v17 = vmul.f32 1.442695, %v1144_v15 }
 0x3df   : > { %3202 = vpow2.f32 %v1152_v17 }
 0x3e0   : > { %3204 = vpow2.f32 %v1156_v24 }
 0x3e2   : > { %v1006_v19 = vpop.f32.mrf.mxu3  ;;  %v1131_v26 = vpop.xlane.xlu1 %1130 }
 0x3e3   : > { %2936 = vmatmul.msk.f32.gmra.mxu2 %vm787_vm1, %v1006_v19  ;;  %v1147_v12 = vsub.f32 %v4044_v34, %v1131_v26 }
 0x3e5   : > { %v4113_v21 = vpop.eup %3202  ;;  %v1158_v36 = vmul.f32 1.442695, %v1147_v12 }
 0x3e6   : > { %v1168_v22 = vsel %vm861_vm2, %v4113_v21, 0.0  ;;  %v4124_v28 = vpop.eup %3204 }
 0x3e7   : > { %1169 = vadd.xlane.f32.xlu2 %v1168_v22  ;;  %v1174_v32 = vsel %vm861_vm2, %v4124_v28, 0.0  ;;  %3206 = vpow2.f32 %v1158_v36 }
 0x3ea   : > { %v1009_v23 = vpop.f32.mrf.mxu3 }
 0x3eb   : > { %2937 = vmatmul.msk.f32.gmra.mxu2 %vm787_vm1, %v1009_v23 }
 0x3ed   : > { %v1117_v42 = vpop.f32.mrf.mxu0  ;;  %v4136_v48 = vpop.eup %3206 }
 0x3ee   : > { %v4120_v25 = vadd.f32 %v3853_v18, %v1117_v42  ;;  %v1177_v52 = vsel %vm861_vm2, %v4136_v48, 0.0 }
 0x3f0   : > { %v1141_v40 = vsel %vm861_vm2, %v4120_v25, -inf }
 0x3f1   : > { %1142 = vmax.xlane.f32.xlu1 %v1141_v40 }
 0x3f5   : > { %v1516_v29 = vpop.f32.mrf.mxu0 }
 0x3f9   : > { %1175 = vadd.xlane.f32.xlu1 %v1174_v32 }
 0x3fa   : > { %v3103_v33 = vpop.permute.xlu1 %3102 }
 0x3fb   : > { %v3104_v44 = vunpack.i.l.bf16 %v3103_v33  ;;  %v3105_v41 = vunpack.i.h.bf16 %v3103_v33 }
 0x3fd   : > { %1272 = vmatpush.msra.mxu1 %v3104_v44  ;;  %v1519_v46 = vpop.f32.mrf.mxu0 }
 0x3fe   : > { %v4130_v47 = vadd.f32 %v3853_v18, %v1519_v46 }
 0x3ff   : > { %3112 = vrot.lane.b32.xlu2 %v3865_v31, %s3446_s27  ;;  %1273 = vmatpush.msra.mxu1 %v3105_v41  ;;  %v3118_v41 = vpop.permute.xlu0 %3117  ;;  %s4885_s27 = sld [smem:[#allocation16_spill]] }
 0x400   : > { %v1543_v34 = vsel %vm861_vm2, %v4130_v47, -inf }
 0x401   : > { %1544 = vmax.xlane.f32.xlu1 %v1543_v34  ;;  %1274 = vmatpush.msra.mxu1 %v3109_v35 }
 0x403   : > { %1275 = vmatpush.msra.mxu1 %v3110_v43 }
 0x405   : > { %v1522_v56 = vpop.f32.mrf.mxu0 }
 0x406   : > { %v4179_v42 = vadd.f32 %v3853_v18, %v1522_v56 }
 0x409   : > { %1178 = vadd.xlane.f32.xlu1 %v1177_v52 }
 0x40d   : > { %v1525_v0 = vpop.f32.mrf.mxu0 }
 0x40e   : > { %v4191_v27 = vadd.f32 %v3853_v18, %v1525_v0 }
 0x40f   : > { %v1125_v53 = vpop.xlane.xlu2 %1124 }
 0x410   : > { %v1145_v55 = vsub.f32 %v4070_v49, %v1125_v53  ;;  %v3120_v53 = vunpack.i.h.bf16 %v3118_v41 }
 0x412   : > { %v1154_v57 = vmul.f32 1.442695, %v1145_v55 }
 0x414   : > { %3208 = vpow2.f32 %v1154_v57 }
 0x415   : > { %v4216_v56 = vpop.f32.mrf.mxu2 }
 0x417   : > { %v1134_v58 = vpop.xlane.xlu2 %1133 }
 0x418   : > { %v1148_v45 = vsub.f32 %v4081_v54, %v1134_v58  ;;  %v4151_v54 = vadd.f32 %v3853_v18, %v1516_v29 }
 0x41a   : > { %v4142_v59 = vpop.eup %3208  ;;  %v1160_v62 = vmul.f32 1.442695, %v1148_v45  ;;  %v1540_v8 = vsel %vm861_vm2, %v4151_v54, -inf }
 0x41b   : > { %v1171_v63 = vsel %vm861_vm2, %v4142_v59, 0.0 }
 0x41c   : > { %3210 = vpow2.f32 %v1160_v62  ;;  %1172 = vadd.xlane.f32.xlu0 %v1171_v63 }
 0x41d   : > { %3212 = vpow2.f32 %v1162_v3  ;;  %v4224_v58 = vpop.f32.mrf.mxu2 }
 0x421   : > { %v1140_v2 = vpop.xlane.xlu2 %1139 }
 0x422   : > { %v4147_v49 = vpop.eup %3210  ;;  %v1150_v5 = vsub.f32 %v4093_v1, %v1140_v2 }
 0x423   : > { %v1180_v10 = vsel %vm861_vm2, %v4147_v49, 0.0  ;;  %v4157_v13 = vpop.eup %3212 }
 0x424   : > { %v1528_v6 = vpop.f32.mrf.mxu0  ;;  %1181 = vadd.xlane.f32.xlu1 %v1180_v10  ;;  %v1164_v7 = vmul.f32 1.442695, %v1150_v5  ;;  %v1183_v1 = vsel %vm861_vm2, %v4157_v13, 0.0 }
 0x425   : > { %v4202_v33 = vadd.f32 %v3853_v18, %v1528_v6 }
 0x426   : > { %3214 = vpow2.f32 %v1164_v7 }
 0x427   : > { %v1552_v36 = vsel %vm861_vm2, %v4202_v33, -inf }
 0x428   : > { %1541 = vmax.xlane.f32.xlu2 %v1540_v8 }
 0x42b   : > { %v1012_v14 = vpop.f32.mrf.mxu3 }
 0x42c   : > { %2938 = vmatmul.msk.f32.gmra.mxu2 %vm787_vm1, %v1012_v14  ;;  %v1531_v15 = vpop.f32.mrf.mxu0  ;;  %1184 = vadd.xlane.f32.xlu1 %v1183_v1  ;;  %v4162_v17 = vpop.eup %3214 }
 0x42d   : > { %v1186_v19 = vsel %vm861_vm2, %v4162_v17, 0.0  ;;  %v4209_v38 = vadd.f32 %v3853_v18, %v1531_v15 }
 0x434   : > { %v1534_v20 = vpop.f32.mrf.mxu0  ;;  %2981 = vmatmul.msk.f32.vlgmr.msra.gmra.mxu2 %vm787_vm1, %v4101_v4  ;;  %1187 = vadd.xlane.f32.xlu1 %v1186_v19 }
 0x435   : > { %v4194_v29 = vadd.f32 %v3853_v18, %v1534_v20 }
 0x437   : > { %v1558_v12 = vsel %vm861_vm2, %v4194_v29, -inf }
 0x43c   : > { %v4168_v22 = vpop.f32.mrf.mxu0  ;;  %2982 = vmatmul.msk.f32.gmra.mxu2 %vm787_vm1, %v1797_v39 }
 0x43d   : > { %v4255_v1 = vadd.f32 %v3853_v18, %v4168_v22 }
 0x43f   : > { %v1561_v19 = vsel %vm861_vm2, %v4255_v1, -inf }
 0x444   : > { %v1871_v37 = vpop.f32.mrf.mxu0  ;;  %2983 = vmatmul.msk.f32.gmra.mxu2 %vm787_vm1, %v4104_v9  ;;  %v1546_v9 = vsel %vm861_vm2, %v4179_v42, -inf }
 0x445   : > { %v4174_v23 = vadd.f32 %v3853_v18, %v1871_v37 }
 0x447   : > { %v1895_v24 = vsel %vm861_vm2, %v4174_v23, -inf }
 0x448   : > { %1896 = vmax.xlane.f32.xlu0 %v1895_v24 }
 0x44c   : > { %v1874_v4 = vpop.f32.mrf.mxu0  ;;  %2984 = vmatmul.msk.f32.gmra.mxu2 %vm787_vm1, %v4106_v11  ;;  %v1549_v11 = vsel %vm861_vm2, %v4191_v27, -inf }
 0x44d   : > { %v4184_v40 = vadd.f32 %v3853_v18, %v1874_v4 }
 0x44f   : > { %v1898_v26 = vsel %vm861_vm2, %v4184_v40, -inf }
 0x450   : > { %1547 = vmax.xlane.f32.xlu0 %v1546_v9  ;;  %1899 = vmax.xlane.f32.xlu2 %v1898_v26 }
 0x454   : > { %2985 = vmatmul.msk.f32.gmra.mxu2 %vm787_vm1, %v1803_v51  ;;  %v3119_v51 = vunpack.i.l.bf16 %v3118_v41 }
 0x458   : > { %1550 = vmax.xlane.f32.xlu0 %v1549_v11  ;;  %1559 = vmax.xlane.f32.xlu2 %v1558_v12 }
 0x45a   : > { %v1170_v32 = vpop.xlane.xlu2 %1169 }
 0x45b   : > { %3216 = vrcp.f32 %v1170_v32 }
 0x45c   : > { %2986 = vmatmul.msk.f32.gmra.mxu2 %vm787_vm1, %v4110_v16  ;;  %v1555_v16 = vsel %vm861_vm2, %v4209_v38, -inf }
 0x460   : > { %1553 = vmax.xlane.f32.xlu0 %v1552_v36 }
 0x461   : > { %v3217_v43 = vpop.eup %3216 }
 0x462   : > { %v3113_v44 = vpop.permute.xlu2 %3112  ;;  %v1200_v55 = vmul.f32 %v3217_v43, %v4113_v21  ;;  %v4228_v21 = vpop.f32.mrf.mxu2 }
 0x463   : > { %v3114_v39 = vunpack.i.l.bf16 %v3113_v44  ;;  %v3115_v35 = vunpack.i.h.bf16 %v3113_v44 }
 0x464   : > { %v1143_v46 = vpop.xlane.xlu1 %1142 }
 0x465   : > { %v1151_v34 = vsub.f32 %v4120_v25, %v1143_v46  ;;  %1276 = vmatpush.msra.mxu1 %v3114_v39 }
 0x467   : > { %v1166_v52 = vmul.f32 1.442695, %v1151_v34  ;;  %1277 = vmatpush.msra.mxu1 %v3115_v35 }
 0x468   : > { %1556 = vmax.xlane.f32.xlu0 %v1555_v16  ;;  %v757_v16 = vld [vmem:[%s4847_s5 + $0x8] sm:$0xff] }
 0x469   : > { %3218 = vpow2.f32 %v1166_v52  ;;  %1278 = vmatpush.msra.mxu1 %v3119_v51  ;;  %1344 = vmatpush.msrb.mxu3 %v757_v16 }
 0x46a   : > { %v4234_v60 = vpop.f32.mrf.mxu2 }
 0x46b   : > { %1279 = vmatpush.msra.mxu1 %v3120_v53 }
 0x46c   : > { %2915 = vmatmul.msk.f32.vlgmr.msra.gmra.mxu1 %vm861_vm2, %v1200_v55  ;;  %v1176_v45 = vpop.xlane.xlu1 %1175 }
 0x46f   : > { %v4218_v25 = vpop.eup %3218 }
 0x470   : > { %3127 = vrot.lane.b32.xlu2 %v3873_v50, %s3448_s25  ;;  %v1189_v57 = vsel %vm861_vm2, %v4218_v25, 0.0 }
 0x471   : > { %1190 = vadd.xlane.f32.xlu1 %v1189_v57 }
 0x472   : > { %v4240_v0 = vpop.f32.mrf.mxu2 }
 0x474   : > { %v4236_v62 = vpop.xlane.xlu1 %1544 }
 0x475   : > { %v1565_v52 = vsub.f32 %v4130_v47, %v4236_v62 }
 0x477   : > { %v1574_v57 = vmul.f32 1.442695, %v1565_v52 }
 0x47a   : > { %v4246_v10 = vpop.f32.mrf.mxu2 }
 0x47c   : > { %3122 = vrot.lane.b32.xlu0 %v3889_v61, %s3448_s25  ;;  %v1179_v2 = vpop.xlane.xlu1 %1178 }
 0x482   : > { %v4250_v14 = vpop.f32.mrf.mxu2 }
 0x484   : > { %3132 = vrot.lane.b32.xlu0 %v3865_v31, %s3448_s25 }
 0x48a   : > { %3137 = vrot.lane.b32.xlu1 %v3889_v61, %s3450_s12 }
 0x48f   : > { %v1173_v63 = vpop.xlane.xlu0 %1172 }
 0x490   : > { %3220 = vrcp.f32 %v1173_v63  ;;  %v3332_v63 = vld [vmem:[%s3810_s11] ss:$0 sm:$0xff]  ;;  %s4776_s11 = scalar_lea.vmem %s4886_s24, %s3023_s26 }
 0x491   : > { %3222 = vrcp.f32 %v1176_v45 }
 0x492   : > { %3142 = vrot.lane.b32.xlu1 %v3863_v30, %s3448_s25  ;;  %3224 = vrcp.f32 %v1179_v2 }
 0x496   : > { %v3221_v3 = vpop.eup %3220 }
 0x497   : > { %v1201_v5 = vmul.f32 %v3221_v3, %v4142_v59  ;;  %v3223_v61 = vpop.eup %3222  ;;  %v1182_v6 = vpop.xlane.xlu1 %1181 }
 0x498   : > { %v1202_v7 = vmul.f32 %v3223_v61, %v4124_v28  ;;  %v3225_v8 = vpop.eup %3224  ;;  %3226 = vrcp.f32 %v1182_v6 }
 0x499   : > { %2916 = vmatmul.msk.f32.gmra.mxu1 %vm861_vm2, %v1201_v5  ;;  %v1203_v59 = vmul.f32 %v3225_v8, %v4136_v48 }
 0x49a   : > { %3147 = vrot.lane.b32.xlu1 %v3873_v50, %s3450_s12 }
 0x49b   : > { %v1542_v28 = vpop.xlane.xlu2 %1541 }
 0x49c   : > { %v1564_v48 = vsub.f32 %v4151_v54, %v1542_v28 }
 0x49e   : > { %v3227_v15 = vpop.eup %3226  ;;  %v1572_v4 = vmul.f32 1.442695, %v1564_v48 }
 0x49f   : > { %v1185_v50 = vpop.xlane.xlu1 %1184  ;;  %v1204_v37 = vmul.f32 %v3227_v15, %v4147_v49 }
 0x4a0   : > { %3228 = vrcp.f32 %v1185_v50 }
 0x4a1   : > { %2917 = vmatmul.msk.f32.gmra.mxu1 %vm861_vm2, %v1202_v7 }
 0x4a6   : > { %v3229_v24 = vpop.eup %3228 }
 0x4a7   : > { %v1188_v22 = vpop.xlane.xlu1 %1187  ;;  %v1205_v26 = vmul.f32 %v3229_v24, %v4157_v13 }
 0x4a8   : > { %3230 = vrcp.f32 %v1188_v22 }
 0x4a9   : > { %2918 = vmatmul.msk.f32.gmra.mxu1 %vm861_vm2, %v1203_v59  ;;  %3232 = vpow2.f32 %v1572_v4 }
 0x4ae   : > { %1562 = vmax.xlane.f32.xlu0 %v1561_v19  ;;  %v3231_v32 = vpop.eup %3230 }
 0x4af   : > { %v4260_v20 = vpop.f32.mrf.mxu2  ;;  %v1206_v39 = vmul.f32 %v3231_v32, %v4162_v17  ;;  %v4274_v41 = vpop.eup %3232 }
 0x4b1   : > { %2919 = vmatmul.msk.f32.gmra.mxu1 %vm861_vm2, %v1204_v37 }
 0x4b7   : > { %v1877_v9 = vpop.f32.mrf.mxu2 }
 0x4b8   : > { %v4267_v11 = vadd.f32 %v3853_v18, %v1877_v9 }
 0x4b9   : > { %2920 = vmatmul.msk.f32.gmra.mxu1 %vm861_vm2, %v1205_v26 }
 0x4ba   : > { %v1901_v49 = vsel %vm861_vm2, %v4267_v11, -inf }
 0x4bb   : > { %v1897_v12 = vpop.xlane.xlu0 %1896  ;;  %1902 = vmax.xlane.f32.xlu2 %v1901_v49 }
 0x4bc   : > { %v1919_v54 = vsub.f32 %v4174_v23, %v1897_v12  ;;  %v1588_v23 = vsel %vm861_vm2, %v4274_v41, 0.0 }
 0x4be   : > { %v1927_v36 = vmul.f32 1.442695, %v1919_v54 }
 0x4bf   : > { %v1880_v44 = vpop.f32.mrf.mxu2 }
 0x4c0   : > { %3234 = vpow2.f32 %v1927_v36  ;;  %v4277_v13 = vadd.f32 %v3853_v18, %v1880_v44 }
 0x4c1   : > { %2921 = vmatmul.msk.f32.gmra.mxu1 %vm861_vm2, %v1206_v39  ;;  %3236 = vpow2.f32 %v1574_v57 }
 0x4c2   : > { %v1904_v46 = vsel %vm861_vm2, %v4277_v13, -inf }
 0x4c3   : > { %v4282_v35 = vpop.xlane.xlu0 %1547  ;;  %1905 = vmax.xlane.f32.xlu2 %v1904_v46  ;;  %v1900_v59 = vpop.xlane.xlu2 %1899 }
 0x4c4   : > { %1589 = vadd.xlane.f32.xlu1 %v1588_v23 }
 0x4c6   : > { %v4286_v17 = vpop.eup %3234 }
 0x4c7   : > { %v1883_v34 = vpop.f32.mrf.mxu2  ;;  %v1943_v43 = vsel %vm861_vm2, %v4286_v17, 0.0  ;;  %v4306_v5 = vpop.eup %3236 }
 0x4c8   : > { %v4291_v51 = vadd.f32 %v3853_v18, %v1883_v34  ;;  %1944 = vadd.xlane.f32.xlu0 %v1943_v43 }
 0x4ca   : > { %v1907_v53 = vsel %vm861_vm2, %v4291_v51, -inf }
 0x4cb   : > { %1908 = vmax.xlane.f32.xlu2 %v1907_v53  ;;  %v1551_v55 = vpop.xlane.xlu0 %1550  ;;  %v4321_v28 = vpop.xlane.xlu2 %1559 }
 0x4cc   : > { %v1567_v18 = vsub.f32 %v4191_v27, %v1551_v55  ;;  %v1591_v27 = vsel %vm861_vm2, %v4306_v5, 0.0 }
 0x4ce   : > { %v1578_v62 = vmul.f32 1.442695, %v1567_v18 }
 0x4cf   : > { %v1886_v45 = vpop.f32.mrf.mxu2 }
 0x4d0   : > { %v4301_v3 = vadd.f32 %v3332_v63, %v1886_v45  ;;  %3238 = vpow2.f32 %v1578_v62  ;;  %v1566_v45 = vsub.f32 %v4179_v42, %v4282_v35 }
 0x4d2   : > { %v1910_v47 = vsel %vm861_vm2, %v4301_v3, -inf  ;;  %v1576_v62 = vmul.f32 1.442695, %v1566_v45 }
 0x4d3   : > { %1911 = vmax.xlane.f32.xlu1 %v1910_v47  ;;  %v1554_v2 = vpop.xlane.xlu0 %1553  ;;  %v3128_v49 = vpop.permute.xlu2 %3127 }
 0x4d4   : > { %v1568_v7 = vsub.f32 %v4202_v33, %v1554_v2  ;;  %v3129_v32 = vunpack.i.l.bf16 %v3128_v49  ;;  %v3130_v54 = vunpack.i.h.bf16 %v3128_v49 }
 0x4d6   : > { %v1580_v50 = vmul.f32 1.442695, %v1568_v7  ;;  %v4317_v15 = vpop.eup %3238 }
 0x4d7   : > { %v1889_v61 = vpop.f32.mrf.mxu2  ;;  %v1597_v19 = vsel %vm861_vm2, %v4317_v15, 0.0 }
 0x4d8   : > { %v4308_v6 = vadd.f32 %v3332_v63, %v1889_v61  ;;  %3240 = vpow2.f32 %v1580_v50 }
 0x4da   : > { %v1913_v8 = vsel %vm861_vm2, %v4308_v6, -inf }
 0x4db   : > { %1914 = vmax.xlane.f32.xlu2 %v1913_v8  ;;  %1592 = vadd.xlane.f32.xlu1 %v1591_v27  ;;  %v4323_v37 = vpop.xlane.xlu0 %1556 }
 0x4dc   : > { %3157 = vrot.lane.b32.xlu0 %v3863_v30, %s3450_s12 }
 0x4de   : > { %v4325_v48 = vpop.eup %3240 }
 0x4df   : > { %v1600_v30 = vsel %vm861_vm2, %v4325_v48, 0.0  ;;  %v1892_v34 = vpop.f32.mrf.mxu2 }
 0x4e0   : > { %v4335_v16 = vadd.f32 %v3332_v63, %v1892_v34 }
 0x4e2   : > { %v1916_v55 = vsel %vm861_vm2, %v4335_v16, -inf }
 0x4e3   : > { %1598 = vadd.xlane.f32.xlu1 %v1597_v19 }
 0x4e4   : > { %v1191_v33 = vpop.xlane.xlu1 %1190 }
 0x4e5   : > { %3242 = vrcp.f32 %v1191_v33 }
 0x4e9   : > { %v1281_v22 = vpop.f32.mrf.mxu1 }
 0x4ea   : > { %2923 = vmatmul.msk.f32.vlgmr.msrb.gmra.mxu3 %vm787_vm1, %v1281_v22 }
 0x4eb   : > { %v3243_v24 = vpop.eup %3242  ;;  %1601 = vadd.xlane.f32.xlu1 %v1600_v30 }
 0x4ec   : > { %v1207_v4 = vmul.f32 %v3243_v24, %v4218_v25  ;;  %v1920_v25 = vsub.f32 %v4184_v40, %v1900_v59 }
 0x4ee   : > { %v3123_v9 = vpop.permute.xlu0 %3122  ;;  %2922 = vmatmul.msk.f32.gmra.mxu1 %vm861_vm2, %v1207_v4  ;;  %v1929_v52 = vmul.f32 1.442695, %v1920_v25 }
 0x4ef   : > { %v3124_v26 = vunpack.i.l.bf16 %v3123_v9  ;;  %v3125_v12 = vunpack.i.h.bf16 %v3123_v9 }
 0x4f0   : > { %3244 = vpow2.f32 %v1929_v52 }
 0x4f1   : > { %1684 = vmatpush.msrb.mxu1 %v3124_v26  ;;  %3246 = vpow2.f32 %v1576_v62 }
 0x4f3   : > { %3152 = vrot.lane.b32.xlu2 %v3865_v31, %s3450_s12  ;;  %1685 = vmatpush.msrb.mxu1 %v3125_v12 }
 0x4f5   : > { %1686 = vmatpush.msrb.mxu1 %v3129_v32  ;;  %v1569_v32 = vsub.f32 %v4209_v38, %v4323_v37  ;;  %v1570_v38 = vsub.f32 %v4194_v29, %v4321_v28 }
 0x4f6   : > { %v3133_v36 = vpop.permute.xlu0 %3132  ;;  %v4339_v40 = vpop.eup %3244 }
 0x4f7   : > { %v3134_v44 = vunpack.i.l.bf16 %v3133_v36  ;;  %1687 = vmatpush.msrb.mxu1 %v3130_v54  ;;  %v3135_v39 = vunpack.i.h.bf16 %v3133_v36  ;;  %v1946_v63 = vsel %vm861_vm2, %v4339_v40, 0.0  ;;  %v4346_v7 = vpop.eup %3246  ;;  %v1582_v36 = vmul.f32 1.442695, %v1569_v32 }
 0x4f8   : > { %v1594_v8 = vsel %vm861_vm2, %v4346_v7, 0.0 }
 0x4f9   : > { %1688 = vmatpush.msrb.mxu1 %v3134_v44 }
 0x4fb   : > { %1689 = vmatpush.msrb.mxu1 %v3135_v39 }
 0x4fc   : > { %v3138_v46 = vpop.permute.xlu1 %3137 }
 0x4fd   : > { %v3139_v23 = vunpack.i.l.bf16 %v3138_v46  ;;  %v3140_v43 = vunpack.i.h.bf16 %v3138_v46 }
 0x4ff   : > { %2039 = vmatpush.msra.mxu0 %v3139_v23 }
 0x501   : > { %2040 = vmatpush.msra.mxu0 %v3140_v43  ;;  %v1584_v43 = vmul.f32 1.442695, %v1570_v38 }
 0x504   : > { %v3143_v31 = vpop.permute.xlu1 %3142 }
 0x505   : > { %v3144_v53 = vunpack.i.l.bf16 %v3143_v31  ;;  %v3145_v57 = vunpack.i.h.bf16 %v3143_v31 }
 0x506   : > { %1917 = vmax.xlane.f32.xlu0 %v1916_v55 }
 0x507   : > { %1690 = vmatpush.msrb.mxu1 %v3144_v53 }
 0x509   : > { %1691 = vmatpush.msrb.mxu1 %v3145_v57 }
 0x50c   : > { %v3148_v18 = vpop.permute.xlu1 %3147 }
 0x50d   : > { %v3149_v47 = vunpack.i.l.bf16 %v3148_v18  ;;  %v3150_v2 = vunpack.i.h.bf16 %v3148_v18 }
 0x50e   : > { %1947 = vadd.xlane.f32.xlu0 %v1946_v63 }
 0x50f   : > { %2041 = vmatpush.msra.mxu0 %v3149_v47 }
 0x511   : > { %2042 = vmatpush.msra.mxu0 %v3150_v2 }
 0x516   : > { %v1284_v61 = vpop.f32.mrf.mxu1 }
 0x517   : > { %2924 = vmatmul.msk.f32.gmra.mxu3 %vm787_vm1, %v1284_v61 }
 0x51c   : > { %1595 = vadd.xlane.f32.xlu2 %v1594_v8 }
 0x51e   : > { %v1287_v42 = vpop.f32.mrf.mxu1 }
 0x51f   : > { %2925 = vmatmul.msk.f32.gmra.mxu3 %vm787_vm1, %v1287_v42 }
 0x521   : > { %v1563_v35 = vpop.xlane.xlu0 %1562 }
 0x522   : > { %v1571_v27 = vsub.f32 %v4255_v1, %v1563_v35 }
 0x524   : > { %v1586_v59 = vmul.f32 1.442695, %v1571_v27 }
 0x526   : > { %3248 = vpow2.f32 %v1586_v59  ;;  %v1290_v50 = vpop.f32.mrf.mxu1 }
 0x527   : > { %2926 = vmatmul.msk.f32.gmra.mxu3 %vm787_vm1, %v1290_v50 }
 0x52c   : > { %v4353_v19 = vpop.eup %3248 }
 0x52d   : > { %v1609_v33 = vsel %vm861_vm2, %v4353_v19, 0.0 }
 0x52e   : > { %1610 = vadd.xlane.f32.xlu0 %v1609_v33  ;;  %v1903_v22 = vpop.xlane.xlu2 %1902  ;;  %v1293_v30 = vpop.f32.mrf.mxu1 }
 0x52f   : > { %v1921_v24 = vsub.f32 %v4267_v11, %v1903_v22  ;;  %2927 = vmatmul.msk.f32.gmra.mxu3 %vm787_vm1, %v1293_v30 }
 0x531   : > { %v1931_v4 = vmul.f32 1.442695, %v1921_v24 }
 0x533   : > { %3250 = vpow2.f32 %v1931_v4 }
 0x536   : > { %v1906_v1 = vpop.xlane.xlu2 %1905  ;;  %v1296_v9 = vpop.f32.mrf.mxu1 }
 0x537   : > { %v1922_v26 = vsub.f32 %v4277_v13, %v1906_v1  ;;  %v1590_v49 = vpop.xlane.xlu1 %1589  ;;  %2928 = vmatmul.msk.f32.gmra.mxu3 %vm787_vm1, %v1296_v9 }
 0x538   : > { %3252 = vrcp.f32 %v1590_v49 }
 0x539   : > { %v4361_v12 = vpop.eup %3250  ;;  %v1933_v54 = vmul.f32 1.442695, %v1922_v26 }
 0x53a   : > { %v1949_v11 = vsel %vm861_vm2, %v4361_v12, 0.0 }
 0x53b   : > { %3254 = vpow2.f32 %v1933_v54  ;;  %1950 = vadd.xlane.f32.xlu1 %v1949_v11 }
 0x53c   : > { %3256 = vpow2.f32 %v1582_v36 }
 0x53e   : > { %v3253_v44 = vpop.eup %3252  ;;  %v1909_v39 = vpop.xlane.xlu2 %1908 }
 0x53f   : > { %v1299_v25 = vpop.f32.mrf.mxu1  ;;  %v1620_v13 = vmul.f32 %v3253_v44, %v4274_v41  ;;  %v1923_v46 = vsub.f32 %v4291_v51, %v1909_v39 }
 0x540   : > { %2929 = vmatmul.msk.f32.gmra.mxu3 %vm787_vm1, %v1299_v25 }
 0x541   : > { %v4370_v23 = vpop.eup %3254  ;;  %v1935_v37 = vmul.f32 1.442695, %v1923_v46  ;;  %2955 = vmatmul.msk.f32.vlgmr.msrb.gmra.mxu1 %vm861_vm2, %v1620_v13  ;;  %v759_v46 = vld [vmem:[%s4847_s5 + $0x18] sm:$0xff] }
 0x542   : > { %v1952_v34 = vsel %vm861_vm2, %v4370_v23, 0.0  ;;  %v4377_v52 = vpop.eup %3256  ;;  %2111 = vmatpush.msra.mxu1 %v759_v46  ;;  %v4466_v46 = vld [vmem:[%s4848_s6] ss:$0 sm:$0xff] }
 0x543   : > { %3258 = vpow2.f32 %v1935_v37  ;;  %1953 = vadd.xlane.f32.xlu1 %v1952_v34  ;;  %v1603_v28 = vsel %vm861_vm2, %v4377_v52, 0.0 }
 0x544   : > { %3260 = vpow2.f32 %v1584_v43 }
 0x546   : > { %v1912_v41 = vpop.xlane.xlu1 %1911 }
 0x547   : > { %v1924_v51 = vsub.f32 %v4301_v3, %v1912_v41  ;;  %v1945_v3 = vpop.xlane.xlu0 %1944 }
 0x549   : > { %v4380_v31 = vpop.eup %3258  ;;  %v1937_v53 = vmul.f32 1.442695, %v1924_v51 }
 0x54a   : > { %v1955_v29 = vsel %vm861_vm2, %v4380_v31, 0.0  ;;  %v4386_v57 = vpop.eup %3260 }
 0x54b   : > { %3262 = vpow2.f32 %v1937_v53  ;;  %1956 = vadd.xlane.f32.xlu2 %v1955_v29  ;;  %1604 = vadd.xlane.f32.xlu1 %v1603_v28  ;;  %v1606_v62 = vsel %vm861_vm2, %v4386_v57, 0.0 }
 0x54e   : > { %v1915_v55 = vpop.xlane.xlu2 %1914  ;;  %v1593_v18 = vpop.xlane.xlu1 %1592 }
 0x54f   : > { %v1925_v45 = vsub.f32 %v4308_v6, %v1915_v55  ;;  %3264 = vrcp.f32 %v1593_v18  ;;  %v3158_v35 = vpop.permute.xlu0 %3157 }
 0x550   : > { %v3159_v22 = vunpack.i.l.bf16 %v3158_v35  ;;  %v3160_v30 = vunpack.i.h.bf16 %v3158_v35 }
 0x551   : > { %v4389_v47 = vpop.eup %3262  ;;  %v1939_v63 = vmul.f32 1.442695, %v1925_v45 }
 0x552   : > { %v1958_v2 = vsel %vm861_vm2, %v4389_v47, 0.0 }
 0x553   : > { %3266 = vpow2.f32 %v1939_v63  ;;  %1607 = vadd.xlane.f32.xlu1 %v1606_v62  ;;  %1959 = vadd.xlane.f32.xlu2 %v1958_v2 }
 0x554   : > { %3268 = vrcp.f32 %v1945_v3 }
 0x555   : > { %v3265_v61 = vpop.eup %3264 }
 0x556   : > { %v3153_v8 = vpop.permute.xlu2 %3152  ;;  %v1621_v6 = vmul.f32 %v3265_v61, %v4306_v5  ;;  %v1599_v36 = vpop.xlane.xlu1 %1598 }
 0x557   : > { %v3154_v42 = vunpack.i.l.bf16 %v3153_v8  ;;  %v3155_v59 = vunpack.i.h.bf16 %v3153_v8 }
 0x558   : > { %2956 = vmatmul.msk.f32.gmra.mxu1 %vm861_vm2, %v1621_v6 }
 0x559   : > { %v4396_v27 = vpop.eup %3266  ;;  %2043 = vmatpush.msra.mxu0 %v3154_v42 }
 0x55a   : > { %v1961_v50 = vsel %vm861_vm2, %v4396_v27, 0.0  ;;  %v3269_v33 = vpop.eup %3268 }
 0x55b   : > { %1962 = vadd.xlane.f32.xlu1 %v1961_v50  ;;  %2044 = vmatpush.msra.mxu0 %v3155_v59  ;;  %v1975_v24 = vmul.f32 %v3269_v33, %v4286_v17 }
 0x55d   : > { %2045 = vmatpush.msra.mxu0 %v3159_v22 }
 0x55e   : > { %v1602_v25 = vpop.xlane.xlu1 %1601 }
 0x55f   : > { %2046 = vmatpush.msra.mxu0 %v3160_v30 }
 0x560   : > { %2987 = vmatmul.msk.f32.vlgmr.msra.gmra.mxu0 %vm861_vm2, %v1975_v24 }
 0x56b   : > { %v1302_v5 = vpop.f32.mrf.mxu1 }
 0x56c   : > { %2930 = vmatmul.msk.f32.gmra.mxu3 %vm787_vm1, %v1302_v5 }
 0x579   : > { %v1918_v4 = vpop.xlane.xlu0 %1917 }
 0x57a   : > { %v1926_v1 = vsub.f32 %v4335_v16, %v1918_v4  ;;  %v758_v16 = vld [vmem:[%s4847_s5 + $0x10] sm:$0xff] }
 0x57b   : > { %1756 = vmatpush.msra.mxu3 %v758_v16 }
 0x57c   : > { %v1941_v9 = vmul.f32 1.442695, %v1926_v1 }
 0x57e   : > { %3270 = vpow2.f32 %v1941_v9 }
 0x581   : > { %v1948_v26 = vpop.xlane.xlu0 %1947 }
 0x582   : > { %3272 = vrcp.f32 %v1948_v26 }
 0x584   : > { %v4405_v49 = vpop.eup %3270 }
 0x585   : > { %v1964_v32 = vsel %vm861_vm2, %v4405_v49, 0.0 }
 0x586   : > { %1965 = vadd.xlane.f32.xlu2 %v1964_v32 }
 0x588   : > { %v3273_v17 = vpop.eup %3272 }
 0x589   : > { %v1976_v54 = vmul.f32 %v3273_v17, %v4339_v40 }
 0x58b   : > { %2988 = vmatmul.msk.f32.gmra.mxu0 %vm861_vm2, %v1976_v54 }
 0x58f   : > { %v1596_v11 = vpop.xlane.xlu2 %1595 }
 0x590   : > { %3274 = vrcp.f32 %v1596_v11 }
 0x591   : > { %3276 = vrcp.f32 %v1599_v36 }
 0x592   : > { %3278 = vrcp.f32 %v1602_v25 }
 0x596   : > { %v3275_v44 = vpop.eup %3274 }
 0x597   : > { %v1622_v39 = vmul.f32 %v3275_v44, %v4346_v7  ;;  %v3277_v13 = vpop.eup %3276 }
 0x598   : > { %v1623_v40 = vmul.f32 %v3277_v13, %v4317_v15  ;;  %v3279_v38 = vpop.eup %3278 }
 0x599   : > { %2957 = vmatmul.msk.f32.gmra.mxu1 %vm861_vm2, %v1622_v39  ;;  %v1624_v37 = vmul.f32 %v3279_v38, %v4325_v48 }
 0x5a1   : > { %2958 = vmatmul.msk.f32.gmra.mxu1 %vm861_vm2, %v1623_v40 }
 0x5a9   : > { %2959 = vmatmul.msk.f32.gmra.mxu1 %vm861_vm2, %v1624_v37 }
 0x5ae   : > { %v1951_v7 = vpop.xlane.xlu1 %1950 }
 0x5af   : > { %3280 = vrcp.f32 %v1951_v7 }
 0x5b5   : > { %v3281_v34 = vpop.eup %3280 }
 0x5b6   : > { %v1954_v43 = vpop.xlane.xlu1 %1953  ;;  %v1977_v41 = vmul.f32 %v3281_v34, %v4361_v12  ;;  %v3333_v34 = vld [vmem:[%s3638_s13] sm:$0xff] }
 0x5b7   : > { %3282 = vrcp.f32 %v1954_v43 }
 0x5b8   : > { %2989 = vmatmul.msk.f32.gmra.mxu0 %vm861_vm2, %v1977_v41 }
 0x5bd   : > { %v3283_v15 = vpop.eup %3282 }
 0x5be   : > { %v1957_v51 = vpop.xlane.xlu2 %1956  ;;  %v1605_v53 = vpop.xlane.xlu1 %1604  ;;  %v1978_v29 = vmul.f32 %v3283_v15, %v4370_v23 }
 0x5bf   : > { %3284 = vrcp.f32 %v1957_v51  ;;  %v1693_v28 = vpop.f32.mrf.mxu1  ;;  %v1611_v23 = vpop.xlane.xlu0 %1610 }
 0x5c0   : > { %3286 = vrcp.f32 %v1605_v53  ;;  %2963 = vmatmul.msk.f32.vlgmr.msra.gmra.mxu3 %vm787_vm1, %v1693_v28  ;;  %2990 = vmatmul.msk.f32.gmra.mxu0 %vm861_vm2, %v1978_v29 }
 0x5c5   : > { %v3285_v48 = vpop.eup %3284 }
 0x5c6   : > { %v3287_v55 = vpop.eup %3286  ;;  %v1960_v45 = vpop.xlane.xlu2 %1959  ;;  %v1979_v12 = vmul.f32 %v3285_v48, %v4380_v31 }
 0x5c7   : > { %v1608_v18 = vpop.xlane.xlu1 %1607  ;;  %3288 = vrcp.f32 %v1960_v45  ;;  %v1625_v3 = vmul.f32 %v3287_v55, %v4377_v52  ;;  %v3334_v55 = vld [vmem:[%s3638_s13 + $0x8] sm:$0xff] }
 0x5c8   : > { %3290 = vrcp.f32 %v1608_v18  ;;  %2991 = vmatmul.msk.f32.gmra.mxu0 %vm861_vm2, %v1979_v12 }
 0x5c9   : > { %2960 = vmatmul.msk.f32.gmra.mxu1 %vm861_vm2, %v1625_v3  ;;  %3292 = vrcp.f32 %v1611_v23 }
 0x5cd   : > { %v3289_v63 = vpop.eup %3288 }
 0x5ce   : > { %v3291_v62 = vpop.eup %3290  ;;  %v1980_v61 = vmul.f32 %v3289_v63, %v4389_v47 }
 0x5cf   : > { %v1963_v2 = vpop.xlane.xlu1 %1962  ;;  %v1626_v8 = vmul.f32 %v3291_v62, %v4386_v57  ;;  %v3293_v52 = vpop.eup %3292 }
 0x5d0   : > { %3294 = vrcp.f32 %v1963_v2  ;;  %2992 = vmatmul.msk.f32.gmra.mxu0 %vm861_vm2, %v1980_v61  ;;  %v1627_v35 = vmul.f32 %v3293_v52, %v4353_v19 }
 0x5d1   : > { %2961 = vmatmul.msk.f32.gmra.mxu1 %vm861_vm2, %v1626_v8  ;;  %v3335_v8 = vld [vmem:[%s3638_s13 + $0x10] sm:$0xff] }
 0x5d5   : > { %v1696_v42 = vpop.f32.mrf.mxu1 }
 0x5d6   : > { %v3295_v31 = vpop.eup %3294  ;;  %2964 = vmatmul.msk.f32.gmra.mxu3 %vm787_vm1, %v1696_v42 }
 0x5d7   : > { %v1981_v6 = vmul.f32 %v3295_v31, %v4396_v27  ;;  %v1346_v27 = vpop.f32.mrf.mxu3 }
 0x5d8   : > { %v1412_v13 = vadd.f32 %v4216_v56, %v1346_v27 }
 0x5d9   : > { %2993 = vmatmul.msk.f32.gmra.mxu0 %vm861_vm2, %v1981_v6  ;;  %2962 = vmatmul.msk.f32.gmra.mxu1 %vm861_vm2, %v1627_v35 }
 0x5dd   : > { %v2048_v47 = vpop.f32.mrf.mxu0 }
 0x5df   : > { %v1349_v19 = vpop.f32.mrf.mxu3 }
 0x5e0   : > { %v1415_v51 = vadd.f32 %v4224_v58, %v1349_v19 }
 0x5e1   : > { %2995 = vmatmul.msk.f32.vlgmr.msra.gmra.mxu1 %vm787_vm1, %v2048_v47  ;;  %v3451_v47 = vmov 32.0  }
 0x5e7   : > { %v1352_v24 = vpop.f32.mrf.mxu3 }
 0x5e8   : > { %v1418_v3 = vadd.f32 %v4228_v21, %v1352_v24 }
 0x5ef   : > { %v1355_v4 = vpop.f32.mrf.mxu3 }
 0x5f0   : > { %v1421_v61 = vadd.f32 %v4234_v60, %v1355_v4  ;;  %v3337_v4 = vld [vmem:[%s3638_s13 + $0x20] sm:$0xff] }
 0x5f7   : > { %v1358_v9 = vpop.f32.mrf.mxu3 }
 0x5f9   : > { %v1966_v57 = vpop.xlane.xlu2 %1965 }
 0x5fa   : > { %3296 = vrcp.f32 %v1966_v57 }
 0x5fb   : > { %3298 = vrcp.f32 %v3451_v47 }
 0x600   : > { %v3297_v59 = vpop.eup %3296 }
 0x601   : > { %v1982_v50 = vmul.f32 %v3297_v59, %v4405_v49  ;;  %v4450_v49 = vpop.f32.mrf.mxu3  ;;  %v1424_v59 = vadd.f32 %v4240_v0, %v1358_v9  ;;  %v3299_v19 = vpop.eup %3298 }
 0x602   : > { %v1427_v0 = vadd.f32 %v4246_v10, %v4450_v49  ;;  %vm2196_vm3 = vweird.f32 %v3299_v19 }
 0x603   : > { %2994 = vmatmul.msk.f32.gmra.mxu0 %vm861_vm2, %v1982_v50  ;;  %v3336_v50 = vld [vmem:[%s3638_s13 + $0x18] sm:$0xff] }
 0x608   : > { %v2051_v33 = vpop.f32.mrf.mxu0 }
 0x609   : > { %2996 = vmatmul.msk.f32.gmra.mxu1 %vm787_vm1, %v2051_v33  ;;  %v4454_v54 = vpop.f32.mrf.mxu3 }
 0x611   : > { %v4458_v16 = vpop.f32.mrf.mxu3 }
 0x616   : > { %v1699_v22 = vpop.f32.mrf.mxu1 }
 0x617   : > { %2965 = vmatmul.msk.f32.gmra.mxu3 %vm787_vm1, %v1699_v22 }
 0x61e   : > { %v1702_v30 = vpop.f32.mrf.mxu1 }
 0x61f   : > { %2966 = vmatmul.msk.f32.gmra.mxu3 %vm787_vm1, %v1702_v30 }
 0x626   : > { %v1705_v5 = vpop.f32.mrf.mxu1 }
 0x627   : > { %2967 = vmatmul.msk.f32.gmra.mxu3 %vm787_vm1, %v1705_v5  ;;  %v2192_v5 = vmul.f32 32.0, %v3299_v19 }
 0x635   : > { %v2054_v1 = vpop.f32.mrf.mxu0 }
 0x636   : > { %2997 = vmatmul.msk.f32.gmra.mxu1 %vm787_vm1, %v2054_v1 }
 0x63d   : > { %v2057_v26 = vpop.f32.mrf.mxu0 }
 0x63e   : > { %2998 = vmatmul.msk.f32.gmra.mxu1 %vm787_vm1, %v2057_v26 }
 0x643   : > { %v1758_v25 = vpop.f32.mrf.mxu3 }
 0x644   : > { %v1782_v40 = vadd.f32 %v1758_v25, %v1412_v13  ;;  %v1430_v25 = vadd.f32 %v4250_v14, %v4454_v54  ;;  %v3338_v13 = vld [vmem:[%s3638_s13 + $0x28] sm:$0xff] }
 0x645   : > { %v2060_v32 = vpop.f32.mrf.mxu0 }
 0x646   : > { %v1708_v17 = vpop.f32.mrf.mxu1  ;;  %2999 = vmatmul.msk.f32.gmra.mxu1 %vm787_vm1, %v2060_v32 }
 0x647   : > { %2968 = vmatmul.msk.f32.gmra.mxu3 %vm787_vm1, %v1708_v17 }
 0x64d   : > { %v2063_v11 = vpop.f32.mrf.mxu0 }
 0x64e   : > { %v1711_v36 = vpop.f32.mrf.mxu1  ;;  %3000 = vmatmul.msk.f32.gmra.mxu1 %vm787_vm1, %v2063_v11  ;;  %v2193_v11 = vsub.f32 1.0, %v2192_v5  ;;  %v2374_v5 = vld [vmem:[%s4851_s9 + $0x10] sm:$0xff] }
 0x64f   : > { %2969 = vmatmul.msk.f32.gmra.mxu3 %vm787_vm1, %v1711_v36 }
 0x656   : > { %v2066_v44 = vpop.f32.mrf.mxu0  ;;  %v1714_v39 = vpop.f32.mrf.mxu1 }
 0x657   : > { %3001 = vmatmul.msk.f32.gmra.mxu1 %vm787_vm1, %v2066_v44  ;;  %2970 = vmatmul.msk.f32.gmra.mxu3 %vm787_vm1, %v1714_v39  ;;  %v2194_v39 = vmul.f32 %v3299_v19, %v2193_v11 }
 0x659   : > { %v1761_v56 = vpop.f32.mrf.mxu3 }
 0x65a   : > { %v1783_v53 = vadd.f32 %v1761_v56, %v1415_v51  ;;  %v3339_v51 = vld [vmem:[%s3638_s13 + $0x30] sm:$0xff] }
 0x65e   : > { %v2113_v38 = vpop.f32.mrf.mxu1 }
 0x65f   : > { %v2137_v37 = vadd.f32 %v2113_v38, %v1782_v40 }
 0x661   : > { %v2149_v7 = vadd.f32 %v4466_v46, %v2137_v37 }
 0x663   : > { %v4470_v43 = vadd.f32 %v3333_v34, %v2149_v7  ;;  %v2195_v7 = vadd.f32 %v3299_v19, %v2194_v39 }
 0x665   : > { %v2167_v41 = vsel %vm606_vm0, %v4470_v43, 0.0 }
 0x666   : > { %2168 = vadd.xlane.f32.xlu0 %v2167_v41 }
 0x680   : > { %v2069_v15 = vpop.f32.mrf.mxu0 }
 0x681   : > { %3002 = vmatmul.msk.f32.gmra.mxu1 %vm787_vm1, %v2069_v15  ;;  %v4511_v15 = vsel %vm2196_vm3, %v3299_v19, %v2195_v7  ;;  %v4586_v7 = vld [vmem:[%s4849_s7] ss:$0 sm:$0xff] }
 0x686   : > { %v2116_v29 = vpop.f32.mrf.mxu1 }
 0x687   : > { %v2138_v28 = vadd.f32 %v2116_v29, %v1783_v53 }
 0x689   : > { %v2150_v48 = vadd.f32 %v4466_v46, %v2138_v28 }
 0x68b   : > { %v4478_v45 = vadd.f32 %v3334_v55, %v2150_v48 }
 0x68d   : > { %v2170_v18 = vsel %vm606_vm0, %v4478_v45, 0.0 }
 0x68e   : > { %2171 = vadd.xlane.f32.xlu1 %v2170_v18  ;;  %v1433_v18 = vadd.f32 %v4260_v20, %v4458_v16 }
 0x69a   : > { %v1764_v12 = vpop.f32.mrf.mxu3 }
 0x69b   : > { %v1784_v23 = vadd.f32 %v1764_v12, %v1418_v3 }
 0x6a2   : > { %v1767_v58 = vpop.f32.mrf.mxu3 }
 0x6a3   : > { %v1785_v31 = vadd.f32 %v1767_v58, %v1421_v61  ;;  %v3340_v58 = vld [vmem:[%s3638_s13 + $0x38] sm:$0xff] }
 0x6aa   : > { %v1770_v57 = vpop.f32.mrf.mxu3 }
 0x6ab   : > { %v1786_v33 = vadd.f32 %v1770_v57, %v1424_v59 }
 0x6b3   : > { %v2119_v63 = vpop.f32.mrf.mxu1 }
 0x6b4   : > { %v2139_v62 = vadd.f32 %v2119_v63, %v1784_v23 }
 0x6b6   : > { %v2151_v2 = vadd.f32 %v4466_v46, %v2139_v62 }
 0x6b8   : > { %v4486_v52 = vadd.f32 %v3335_v8, %v2151_v2 }
 0x6ba   : > { %v2173_v42 = vsel %vm606_vm0, %v4486_v52, 0.0 }
 0x6bb   : > { %v2122_v6 = vpop.f32.mrf.mxu1  ;;  %2174 = vadd.xlane.f32.xlu2 %v2173_v42 }
 0x6bc   : > { %v2140_v35 = vadd.f32 %v2122_v6, %v1785_v31 }
 0x6be   : > { %v2152_v21 = vadd.f32 %v4466_v46, %v2140_v35 }
 0x6c0   : > { %v4493_v60 = vadd.f32 %v3336_v50, %v2152_v21 }
 0x6c2   : > { %v2176_v27 = vsel %vm606_vm0, %v4493_v60, 0.0 }
 0x6c3   : > { %v2125_v22 = vpop.f32.mrf.mxu1  ;;  %2177 = vadd.xlane.f32.xlu0 %v2176_v27 }
 0x6c4   : > { %v2141_v30 = vadd.f32 %v2125_v22, %v1786_v33 }
 0x6c6   : > { %v2153_v24 = vadd.f32 %v4466_v46, %v2141_v30  ;;  %v2375_v30 = vld [vmem:[%s4851_s9 + $0x18] sm:$0xff] }
 0x6c7   : > { %2416 = vmatpush.msrb.mxu3 %v2375_v30 }
 0x6c8   : > { %v4499_v1 = vadd.f32 %v3337_v4, %v2153_v24 }
 0x6c9   : > { %2417 = vmatpush.msrb.mxu3 %v2374_v5 }
 0x6ca   : > { %v1773_v9 = vpop.f32.mrf.mxu3  ;;  %v2179_v26 = vsel %vm606_vm0, %v4499_v1, 0.0 }
 0x6cb   : > { %v1787_v32 = vadd.f32 %v1773_v9, %v1427_v0  ;;  %v2128_v17 = vpop.f32.mrf.mxu1  ;;  %2180 = vadd.xlane.f32.xlu1 %v2179_v26  ;;  %v2372_v26 = vld [vmem:[%s4851_s9] sm:$0xff] }
 0x6cd   : > { %v2142_v36 = vadd.f32 %v2128_v17, %v1787_v32 }
 0x6cf   : > { %v2154_v44 = vadd.f32 %v4466_v46, %v2142_v36 }
 0x6d1   : > { %v2162_v40 = vadd.f32 %v3338_v13, %v2154_v44 }
 0x6d2   : > { %v1776_v38 = vpop.f32.mrf.mxu3 }
 0x6d3   : > { %v1788_v10 = vadd.f32 %v1776_v38, %v1430_v25  ;;  %v2182_v37 = vsel %vm606_vm0, %v2162_v40, 0.0 }
 0x6d4   : > { %v2131_v49 = vpop.f32.mrf.mxu1  ;;  %2183 = vadd.xlane.f32.xlu2 %v2182_v37 }
 0x6d5   : > { %v2143_v34 = vadd.f32 %v2131_v49, %v1788_v10 }
 0x6d7   : > { %v2155_v41 = vadd.f32 %v4466_v46, %v2143_v34 }
 0x6d9   : > { %v2169_v56 = vpop.xlane.xlu0 %2168  ;;  %v2163_v53 = vadd.f32 %v3339_v51, %v2155_v41  ;;  %v4591_v41 = vld [vmem:[%s4850_s8] ss:$0 sm:$0xff] }
 0x6da   : > { %v2198_v14 = vmul.f32 %v4511_v15, %v2169_v56  ;;  %v1779_v55 = vpop.f32.mrf.mxu3 }
 0x6db   : > { %v2185_v54 = vsel %vm606_vm0, %v2163_v53, 0.0  ;;  %v1789_v12 = vadd.f32 %v1779_v55, %v1433_v18 }
 0x6dc   : > { %v4517_v29 = vsub.f32 %v4470_v43, %v2198_v14  ;;  %2186 = vadd.xlane.f32.xlu1 %v2185_v54 }
 0x6de   : > { %v2214_v28 = vmul.f32 %v4517_v29, %v4517_v29 }
 0x6e0   : > { %v2222_v48 = vsel %vm606_vm0, %v2214_v28, 0.0 }
 0x6e1   : > { %2223 = vadd.xlane.f32.xlu0 %v2222_v48 }
 0x6fe   : > { %v2134_v3 = vpop.f32.mrf.mxu1 }
 0x6ff   : > { %v2144_v23 = vadd.f32 %v2134_v3, %v1789_v12 }
 0x701   : > { %v2156_v63 = vadd.f32 %v4466_v46, %v2144_v23  ;;  %v2172_v62 = vpop.xlane.xlu1 %2171 }
 0x702   : > { %v2199_v43 = vmul.f32 %v4511_v15, %v2172_v62 }
 0x703   : > { %v4527_v2 = vadd.f32 %v3340_v58, %v2156_v63 }
 0x704   : > { %v4530_v61 = vsub.f32 %v4478_v45, %v2199_v43 }
 0x705   : > { %v2188_v8 = vsel %vm606_vm0, %v4527_v2, 0.0 }
 0x706   : > { %2189 = vadd.xlane.f32.xlu0 %v2188_v8  ;;  %v2215_v20 = vmul.f32 %v4530_v61, %v4530_v61 }
 0x708   : > { %v2225_v16 = vsel %vm606_vm0, %v2215_v20, 0.0 }
 0x709   : > { %2226 = vadd.xlane.f32.xlu2 %v2225_v16 }
 0x72e   : > { %v2175_v46 = vpop.xlane.xlu2 %2174 }
 0x72f   : > { %v2200_v31 = vmul.f32 %v4511_v15, %v2175_v46 }
 0x731   : > { %v4539_v42 = vsub.f32 %v4486_v52, %v2200_v31 }
 0x733   : > { %v2216_v45 = vmul.f32 %v4539_v42, %v4539_v42 }
 0x735   : > { %v2228_v6 = vsel %vm606_vm0, %v2216_v45, 0.0 }
 0x736   : > { %v2178_v35 = vpop.xlane.xlu0 %2177  ;;  %2229 = vadd.xlane.f32.xlu1 %v2228_v6 }
 0x737   : > { %v2201_v21 = vmul.f32 %v4511_v15, %v2178_v35 }
 0x739   : > { %v4546_v47 = vsub.f32 %v4493_v60, %v2201_v21 }
 0x73b   : > { %v2217_v57 = vmul.f32 %v4546_v47, %v4546_v47 }
 0x73d   : > { %v2231_v59 = vsel %vm606_vm0, %v2217_v57, 0.0 }
 0x73e   : > { %v2181_v50 = vpop.xlane.xlu1 %2180  ;;  %2232 = vadd.xlane.f32.xlu2 %v2231_v59 }
 0x73f   : > { %v2202_v52 = vmul.f32 %v4511_v15, %v2181_v50 }
 0x741   : > { %v4553_v33 = vsub.f32 %v4499_v1, %v2202_v52  ;;  %v2373_v1 = vld [vmem:[%s4851_s9 + $0x8] sm:$0xff] }
 0x742   : > { %2418 = vmatpush.msrb.mxu3 %v2373_v1 }
 0x743   : > { %v2218_v27 = vmul.f32 %v4553_v33, %v4553_v33 }
 0x744   : > { %2419 = vmatpush.msrb.mxu3 %v2372_v26 }
 0x745   : > { %v2234_v22 = vsel %vm606_vm0, %v2218_v27, 0.0 }
 0x746   : > { %2235 = vadd.xlane.f32.xlu0 %v2234_v22 }
 0x747   : > { %v2184_v60 = vpop.xlane.xlu2 %2183 }
 0x748   : > { %v2203_v19 = vmul.f32 %v4511_v15, %v2184_v60 }
 0x74a   : > { %v4562_v24 = vsub.f32 %v2162_v40, %v2203_v19 }
 0x74c   : > { %v2219_v4 = vmul.f32 %v4562_v24, %v4562_v24 }
 0x74e   : > { %v2237_v0 = vsel %vm606_vm0, %v2219_v4, 0.0 }
 0x74f   : > { %2238 = vadd.xlane.f32.xlu1 %v2237_v0  ;;  %v2187_v9 = vpop.xlane.xlu1 %2186 }
 0x750   : > { %v2204_v32 = vmul.f32 %v4511_v15, %v2187_v9 }
 0x752   : > { %v4577_v17 = vsub.f32 %v2163_v53, %v2204_v32 }
 0x754   : > { %v2224_v11 = vpop.xlane.xlu0 %2223  ;;  %v2220_v36 = vmul.f32 %v4577_v17, %v4577_v17 }
 0x755   : > { %v2246_v44 = vmul.f32 %v2224_v11, %v4511_v15 }
 0x756   : > { %v2240_v39 = vsel %vm606_vm0, %v2220_v36, 0.0 }
 0x757   : > { %v2254_v25 = vadd.f32 1e-05, %v2246_v44  ;;  %2241 = vadd.xlane.f32.xlu2 %v2240_v39 }
 0x759   : > { %3300 = vrsqrt.f32 %v2254_v25  ;;  %vm2268_vm5 = vweird.f32 %v2254_v25 }
 0x75f   : > { %v3301_v13 = vpop.eup %3300 }
 0x760   : > { %v2263_v40 = vmul.f32 %v3301_v13, %v2254_v25  ;;  %vm2269_vm4 = vweird.f32 %v3301_v13 }
 0x761   : > { %vm2270_vm6 = vmor %vm2268_vm5, %vm2269_vm4 }
 0x762   : > { %v2264_v38 = vmul.f32 %v3301_v13, %v2263_v40 }
 0x764   : > { %v2265_v10 = vmul.f32 0.5, %v2264_v38 }
 0x766   : > { %v2266_v49 = vsub.f32 1.5, %v2265_v10  ;;  %v2460_v10 = vld [vmem:[%s4881_s14 + $0x38] sm:$0xff] }
 0x767   : > { %2497 = vmatpush.msrb.mxu2 %v2460_v10 }
 0x768   : > { %v2267_v37 = vmul.f32 %v3301_v13, %v2266_v49  ;;  %v2459_v49 = vld [vmem:[%s4881_s14 + $0x30] sm:$0xff] }
 0x769   : > { %2498 = vmatpush.msrb.mxu2 %v2459_v49 }
 0x76a   : > { %v2271_v34 = vsel %vm2270_vm6, %v3301_v13, %v2267_v37 }
 0x76b   : > { %v2342_v56 = vmul.f32 %v2271_v34, %v4517_v29 }
 0x76d   : > { %v2353_v51 = vmul.f32 %v4586_v7, %v2342_v56  ;;  %v2458_v56 = vld [vmem:[%s4881_s14 + $0x28] sm:$0xff] }
 0x76e   : > { %2499 = vmatpush.msrb.mxu2 %v2458_v56 }
 0x76f   : > { %v4596_v53 = vadd.f32 %v4591_v41, %v2353_v51 }
 0x771   : > { %3003 = vmatmul.msk.f32.vlgmr.msrb.gmra.mxu3 %vm606_vm0, %v4596_v53 }
 0x779   : > { %v2190_v14 = vpop.xlane.xlu0 %2189 }
 0x77a   : > { %v2205_v54 = vmul.f32 %v4511_v15, %v2190_v14 }
 0x77c   : > { %v4602_v28 = vsub.f32 %v4527_v2, %v2205_v54  ;;  %v2227_v48 = vpop.xlane.xlu2 %2226 }
 0x77d   : > { %v2247_v55 = vmul.f32 %v2227_v48, %v4511_v15 }
 0x77e   : > { %v2221_v29 = vmul.f32 %v4602_v28, %v4602_v28 }
 0x77f   : > { %v2255_v18 = vadd.f32 1e-05, %v2247_v55  ;;  %v2457_v55 = vld [vmem:[%s4881_s14 + $0x20] sm:$0xff] }
 0x780   : > { %v2243_v12 = vsel %vm606_vm0, %v2221_v29, 0.0  ;;  %2500 = vmatpush.msrb.mxu2 %v2457_v55 }
 0x781   : > { %3302 = vrsqrt.f32 %v2255_v18  ;;  %2244 = vadd.xlane.f32.xlu0 %v2243_v12  ;;  %vm2278_vm8 = vweird.f32 %v2255_v18 }
 0x787   : > { %v3303_v3 = vpop.eup %3302 }
 0x788   : > { %v2273_v23 = vmul.f32 %v3303_v3, %v2255_v18  ;;  %vm2279_vm7 = vweird.f32 %v3303_v3 }
 0x789   : > { %vm2280_vm9 = vmor %vm2278_vm8, %vm2279_vm7 }
 0x78a   : > { %v2274_v63 = vmul.f32 %v3303_v3, %v2273_v23 }
 0x78c   : > { %v2275_v62 = vmul.f32 0.5, %v2274_v63 }
 0x78e   : > { %v2276_v43 = vsub.f32 1.5, %v2275_v62 }
 0x790   : > { %v2277_v58 = vmul.f32 %v3303_v3, %v2276_v43 }
 0x792   : > { %v2281_v2 = vsel %vm2280_vm9, %v3303_v3, %v2277_v58  ;;  %v2456_v3 = vld [vmem:[%s4881_s14 + $0x18] sm:$0xff] }
 0x793   : > { %v2343_v8 = vmul.f32 %v2281_v2, %v4530_v61  ;;  %2501 = vmatpush.msrb.mxu2 %v2456_v3 }
 0x795   : > { %v2354_v20 = vmul.f32 %v4586_v7, %v2343_v8  ;;  %v2455_v8 = vld [vmem:[%s4881_s14 + $0x10] sm:$0xff] }
 0x796   : > { %2502 = vmatpush.msrb.mxu2 %v2455_v8 }
 0x797   : > { %v4611_v16 = vadd.f32 %v4591_v41, %v2354_v20 }
 0x799   : > { %3004 = vmatmul.msk.f32.gmra.mxu3 %vm606_vm0, %v4611_v16 }
 0x7a9   : > { %v2230_v46 = vpop.xlane.xlu1 %2229 }
 0x7aa   : > { %v2248_v31 = vmul.f32 %v2230_v46, %v4511_v15 }
 0x7ac   : > { %v2256_v45 = vadd.f32 1e-05, %v2248_v31 }
 0x7ae   : > { %3304 = vrsqrt.f32 %v2256_v45  ;;  %vm2288_vm11 = vweird.f32 %v2256_v45 }
 0x7b1   : > { %v2233_v6 = vpop.xlane.xlu2 %2232 }
 0x7b2   : > { %v2249_v35 = vmul.f32 %v2233_v6, %v4511_v15 }
 0x7b4   : > { %v3305_v21 = vpop.eup %3304  ;;  %v2257_v57 = vadd.f32 1e-05, %v2249_v35  ;;  %v2453_v35 = vld [vmem:[%s4881_s14] sm:$0xff] }
 0x7b5   : > { %v2283_v59 = vmul.f32 %v3305_v21, %v2256_v45  ;;  %vm2289_vm10 = vweird.f32 %v3305_v21 }
 0x7b6   : > { %3306 = vrsqrt.f32 %v2257_v57  ;;  %vm2290_vm12 = vmor %vm2288_vm11, %vm2289_vm10  ;;  %vm2298_vm14 = vweird.f32 %v2257_v57 }
 0x7b7   : > { %v2284_v61 = vmul.f32 %v3305_v21, %v2283_v59 }
 0x7b9   : > { %v2285_v50 = vmul.f32 0.5, %v2284_v61  ;;  %v2236_v52 = vpop.xlane.xlu0 %2235 }
 0x7ba   : > { %v2250_v27 = vmul.f32 %v2236_v52, %v4511_v15 }
 0x7bb   : > { %v2286_v22 = vsub.f32 1.5, %v2285_v50 }
 0x7bc   : > { %v3307_v60 = vpop.eup %3306  ;;  %v2258_v19 = vadd.f32 1e-05, %v2250_v27 }
 0x7bd   : > { %v2287_v30 = vmul.f32 %v3305_v21, %v2286_v22  ;;  %v2293_v5 = vmul.f32 %v3307_v60, %v2257_v57  ;;  %vm2299_vm13 = vweird.f32 %v3307_v60 }
 0x7be   : > { %3308 = vrsqrt.f32 %v2258_v19  ;;  %vm2300_vm15 = vmor %vm2298_vm14, %vm2299_vm13  ;;  %vm2308_vm3 = vweird.f32 %v2258_v19 }
 0x7bf   : > { %v2291_v4 = vsel %vm2290_vm12, %v3305_v21, %v2287_v30  ;;  %v2294_v1 = vmul.f32 %v3307_v60, %v2293_v5  ;;  %v3166_v5 = vld [vmem:[%s4882_s30] ss:$0 sm:$0xff] }
 0x7c0   : > { %v2344_v0 = vmul.f32 %v2291_v4, %v4539_v42 }
 0x7c1   : > { %v2295_v9 = vmul.f32 0.5, %v2294_v1 }
 0x7c2   : > { %v2239_v26 = vpop.xlane.xlu1 %2238  ;;  %v2355_v32 = vmul.f32 %v4586_v7, %v2344_v0 }
 0x7c3   : > { %v2296_v11 = vsub.f32 1.5, %v2295_v9  ;;  %v2251_v36 = vmul.f32 %v2239_v26, %v4511_v15 }
 0x7c4   : > { %v3309_v44 = vpop.eup %3308  ;;  %v4622_v39 = vadd.f32 %v4591_v41, %v2355_v32 }
 0x7c5   : > { %v2297_v25 = vmul.f32 %v3307_v60, %v2296_v11  ;;  %v2303_v13 = vmul.f32 %v3309_v44, %v2258_v19  ;;  %v2259_v40 = vadd.f32 1e-05, %v2251_v36  ;;  %vm2309_vm1 = vweird.f32 %v3309_v44 }
 0x7c6   : > { %3005 = vmatmul.msk.f32.gmra.mxu3 %vm606_vm0, %v4622_v39  ;;  %vm2310_vm4 = vmor %vm2308_vm3, %vm2309_vm1 }
 0x7c7   : > { %v2301_v42 = vsel %vm2300_vm15, %v3307_v60, %v2297_v25  ;;  %v2304_v38 = vmul.f32 %v3309_v44, %v2303_v13  ;;  %3310 = vrsqrt.f32 %v2259_v40  ;;  %vm2318_vm6 = vweird.f32 %v2259_v40 }
 0x7c8   : > { %v2345_v37 = vmul.f32 %v2301_v42, %v4546_v47 }
 0x7c9   : > { %v2305_v34 = vmul.f32 0.5, %v2304_v38 }
 0x7ca   : > { %v2242_v51 = vpop.xlane.xlu2 %2241  ;;  %v2356_v14 = vmul.f32 %v4586_v7, %v2345_v37 }
 0x7cb   : > { %v2306_v54 = vsub.f32 1.5, %v2305_v34  ;;  %v2252_v48 = vmul.f32 %v2242_v51, %v4511_v15 }
 0x7cc   : > { %v4642_v47 = vadd.f32 %v4591_v41, %v2356_v14 }
 0x7cd   : > { %v3311_v29 = vpop.eup %3310  ;;  %v2307_v18 = vmul.f32 %v3309_v44, %v2306_v54  ;;  %v2260_v12 = vadd.f32 1e-05, %v2252_v48 }
 0x7ce   : > { %v2313_v23 = vmul.f32 %v3311_v29, %v2259_v40  ;;  %3006 = vmatmul.msk.f32.gmra.mxu3 %vm606_vm0, %v4642_v47  ;;  %vm2319_vm5 = vweird.f32 %v3311_v29 }
 0x7cf   : > { %v2311_v63 = vsel %vm2310_vm4, %v3309_v44, %v2307_v18  ;;  %3312 = vrsqrt.f32 %v2260_v12  ;;  %vm2320_vm7 = vmor %vm2318_vm6, %vm2319_vm5  ;;  %vm2328_vm9 = vweird.f32 %v2260_v12 }
 0x7d0   : > { %v2346_v62 = vmul.f32 %v2311_v63, %v4553_v33  ;;  %v2314_v43 = vmul.f32 %v3311_v29, %v2313_v23  ;;  %v2454_v33 = vld [vmem:[%s4881_s14 + $0x8] sm:$0xff] }
 0x7d1   : > { %2503 = vmatpush.msrb.mxu2 %v2454_v33 }
 0x7d2   : > { %v2315_v58 = vmul.f32 0.5, %v2314_v43  ;;  %v2357_v2 = vmul.f32 %v4586_v7, %v2346_v62  ;;  %v3167_v62 = vld [vmem:[%s4883_s18] ss:$0 sm:$0xff] }
 0x7d3   : > { %2504 = vmatpush.msrb.mxu2 %v2453_v35 }
 0x7d4   : > { %v2316_v20 = vsub.f32 1.5, %v2315_v58  ;;  %v4655_v46 = vadd.f32 %v4591_v41, %v2357_v2 }
 0x7d5   : > { %v3313_v31 = vpop.eup %3312 }
 0x7d6   : > { %v2317_v45 = vmul.f32 %v3311_v29, %v2316_v20  ;;  %v2323_v6 = vmul.f32 %v3313_v31, %v2260_v12  ;;  %3007 = vmatmul.msk.f32.gmra.mxu3 %vm606_vm0, %v4655_v46  ;;  %vm2329_vm8 = vweird.f32 %v3313_v31 }
 0x7d7   : > { %vm2330_vm10 = vmor %vm2328_vm9, %vm2329_vm8 }
 0x7d8   : > { %v2321_v21 = vsel %vm2320_vm7, %v3311_v29, %v2317_v45  ;;  %v2324_v57 = vmul.f32 %v3313_v31, %v2323_v6 }
 0x7d9   : > { %v2347_v59 = vmul.f32 %v2321_v21, %v4562_v24 }
 0x7da   : > { %v2325_v61 = vmul.f32 0.5, %v2324_v57 }
 0x7db   : > { %v2358_v50 = vmul.f32 %v4586_v7, %v2347_v59 }
 0x7dc   : > { %v2326_v52 = vsub.f32 1.5, %v2325_v61 }
 0x7dd   : > { %v4668_v27 = vadd.f32 %v4591_v41, %v2358_v50 }
 0x7de   : > { %v2327_v22 = vmul.f32 %v3313_v31, %v2326_v52 }
 0x7df   : > { %3008 = vmatmul.msk.f32.gmra.mxu3 %vm606_vm0, %v4668_v27 }
 0x7e0   : > { %v2331_v60 = vsel %vm2330_vm10, %v3313_v31, %v2327_v22 }
 0x7e1   : > { %v2348_v19 = vmul.f32 %v2331_v60, %v4577_v17 }
 0x7e3   : > { %v2359_v30 = vmul.f32 %v4586_v7, %v2348_v19 }
 0x7e5   : > { %v4675_v24 = vadd.f32 %v4591_v41, %v2359_v30 }
 0x7e7   : > { %3009 = vmatmul.msk.f32.gmra.mxu3 %vm606_vm0, %v4675_v24 }
 0x7f4   : > { %v2421_v4 = vpop.f32.mrf.mxu3  ;;  %v2245_v1 = vpop.xlane.xlu0 %2244 }
 0x7f5   : > { %v2422_v0 = vadd.f32 %v3166_v5, %v2421_v4  ;;  %v2253_v9 = vmul.f32 %v2245_v1, %v4511_v15 }
 0x7f7   : > { %v2445_v26 = vmax.f32 %v2422_v0, 0.0  ;;  %v2261_v32 = vadd.f32 1e-05, %v2253_v9 }
 0x7f9   : > { %3314 = vrsqrt.f32 %v2261_v32  ;;  %3011 = vmatmul.msk.f32.vlgmr.msrb.gmra.mxu2 %vm861_vm2, %v2445_v26  ;;  %vm2338_vm12 = vweird.f32 %v2261_v32 }
 0x7ff   : > { %v3315_v17 = vpop.eup %3314 }
 0x800   : > { %v2333_v11 = vmul.f32 %v3315_v17, %v2261_v32  ;;  %vm2339_vm11 = vweird.f32 %v3315_v17 }
 0x801   : > { %vm2340_vm13 = vmor %vm2338_vm12, %vm2339_vm11 }
 0x802   : > { %v2334_v36 = vmul.f32 %v3315_v17, %v2333_v11 }
 0x804   : > { %v2335_v44 = vmul.f32 0.5, %v2334_v36 }
 0x806   : > { %v2336_v25 = vsub.f32 1.5, %v2335_v44 }
 0x808   : > { %v2337_v13 = vmul.f32 %v3315_v17, %v2336_v25 }
 0x80a   : > { %v2341_v40 = vsel %vm2340_vm13, %v3315_v17, %v2337_v13 }
 0x80b   : > { %v2349_v42 = vmul.f32 %v2341_v40, %v4602_v28 }
 0x80d   : > { %v2360_v38 = vmul.f32 %v4586_v7, %v2349_v42 }
 0x80f   : > { %v4687_v10 = vadd.f32 %v4591_v41, %v2360_v38 }
 0x811   : > { %3010 = vmatmul.msk.f32.gmra.mxu3 %vm606_vm0, %v4687_v10 }
 0x81c   : > { %v2424_v49 = vpop.f32.mrf.mxu3 }
 0x81d   : > { %v2425_v37 = vadd.f32 %v3166_v5, %v2424_v49 }
 0x81f   : > { %v2446_v34 = vmax.f32 %v2425_v37, 0.0 }
 0x821   : > { %3012 = vmatmul.msk.f32.gmra.mxu2 %vm861_vm2, %v2446_v34 }
 0x849   : > { %v2427_v56 = vpop.f32.mrf.mxu3 }
 0x84a   : > { %v2428_v51 = vadd.f32 %v3166_v5, %v2427_v56 }
 0x84c   : > { %v2447_v14 = vmax.f32 %v2428_v51, 0.0 }
 0x84e   : > { %3013 = vmatmul.msk.f32.gmra.mxu2 %vm861_vm2, %v2447_v14 }
 0x851   : > { %v2430_v54 = vpop.f32.mrf.mxu3 }
 0x852   : > { %v2431_v28 = vadd.f32 %v3166_v5, %v2430_v54 }
 0x854   : > { %v2448_v48 = vmax.f32 %v2431_v28, 0.0 }
 0x856   : > { %3014 = vmatmul.msk.f32.gmra.mxu2 %vm861_vm2, %v2448_v48 }
 0x859   : > { %v2433_v7 = vpop.f32.mrf.mxu3 }
 0x85a   : > { %v2434_v41 = vadd.f32 %v3166_v5, %v2433_v7 }
 0x85c   : > { %v2449_v55 = vmax.f32 %v2434_v41, 0.0 }
 0x85e   : > { %3015 = vmatmul.msk.f32.gmra.mxu2 %vm861_vm2, %v2449_v55 }
 0x862   : > { %v2436_v29 = vpop.f32.mrf.mxu3 }
 0x863   : > { %v2437_v18 = vadd.f32 %v3166_v5, %v2436_v29 }
 0x865   : > { %v2450_v12 = vmax.f32 %v2437_v18, 0.0 }
 0x867   : > { %3016 = vmatmul.msk.f32.gmra.mxu2 %vm861_vm2, %v2450_v12 }
 0x86a   : > { %v2439_v3 = vpop.f32.mrf.mxu3 }
 0x86b   : > { %v2440_v23 = vadd.f32 %v3166_v5, %v2439_v3 }
 0x86d   : > { %v2451_v63 = vmax.f32 %v2440_v23, 0.0 }
 0x86f   : > { %3017 = vmatmul.msk.f32.gmra.mxu2 %vm861_vm2, %v2451_v63 }
 0x87c   : > { %v2506_v43 = vpop.f32.mrf.mxu2 }
 0x87d   : > { %v2507_v58 = vadd.f32 %v3167_v62, %v2506_v43 }
 0x87f   : > { %v2530_v2 = vadd.f32 %v2507_v58, %v4596_v53 }
 0x881   : > { %v2540_v8 = vsel %vm606_vm0, %v2530_v2, 0.0 }
 0x882   : > { %2541 = vadd.xlane.f32.xlu1 %v2540_v8 }
 0x894   : > { %v2442_v20 = vpop.f32.mrf.mxu3 }
 0x895   : > { %v2443_v31 = vadd.f32 %v3166_v5, %v2442_v20 }
 0x897   : > { %v2452_v33 = vmax.f32 %v2443_v31, 0.0 }
 0x899   : > { %3018 = vmatmul.msk.f32.gmra.mxu2 %vm861_vm2, %v2452_v33 }
 0x8a4   : > { %v2509_v45 = vpop.f32.mrf.mxu2 }
 0x8a5   : > { %v2510_v6 = vadd.f32 %v3167_v62, %v2509_v45 }
 0x8a7   : > { %v2531_v35 = vadd.f32 %v2510_v6, %v4611_v16 }
 0x8a9   : > { %v2543_v21 = vsel %vm606_vm0, %v2531_v35, 0.0 }
 0x8aa   : > { %2544 = vadd.xlane.f32.xlu2 %v2543_v21 }
 0x8d1   : > { %v2512_v57 = vpop.f32.mrf.mxu2 }
 0x8d2   : > { %v2513_v59 = vadd.f32 %v3167_v62, %v2512_v57 }
 0x8d4   : > { %v2532_v61 = vadd.f32 %v2513_v59, %v4622_v39 }
 0x8d6   : > { %v2546_v53 = vsel %vm606_vm0, %v2532_v61, 0.0 }
 0x8d7   : > { %2547 = vadd.xlane.f32.xlu0 %v2546_v53 }
 0x8d9   : > { %v2515_v50 = vpop.f32.mrf.mxu2 }
 0x8da   : > { %v2516_v52 = vadd.f32 %v3167_v62, %v2515_v50 }
 0x8dc   : > { %v2533_v22 = vadd.f32 %v2516_v52, %v4642_v47  ;;  %v4763_v52 = vld [vmem:[%s4884_s23] ss:$0 sm:$0xff] }
 0x8de   : > { %v2549_v60 = vsel %vm606_vm0, %v2533_v22, 0.0 }
 0x8df   : > { %2550 = vadd.xlane.f32.xlu1 %v2549_v60  ;;  %v4769_v60 = vld [vmem:[%s4885_s27] ss:$0 sm:$0xff] }
 0x8e1   : > { %v2518_v19 = vpop.f32.mrf.mxu2 }
 0x8e2   : > { %v2519_v30 = vadd.f32 %v3167_v62, %v2518_v19 }
 0x8e4   : > { %v2534_v16 = vadd.f32 %v2519_v30, %v4655_v46 }
 0x8e6   : > { %v2552_v5 = vsel %vm606_vm0, %v2534_v16, 0.0 }
 0x8e7   : > { %2553 = vadd.xlane.f32.xlu2 %v2552_v5 }
 0x8ea   : > { %v2521_v4 = vpop.f32.mrf.mxu2 }
 0x8eb   : > { %v2522_v1 = vadd.f32 %v3167_v62, %v2521_v4 }
 0x8ed   : > { %v2535_v39 = vadd.f32 %v2522_v1, %v4668_v27 }
 0x8ef   : > { %v2555_v0 = vsel %vm606_vm0, %v2535_v39, 0.0 }
 0x8f0   : > { %2556 = vadd.xlane.f32.xlu0 %v2555_v0 }
 0x8f2   : > { %v2524_v9 = vpop.f32.mrf.mxu2 }
 0x8f3   : > { %v2525_v26 = vadd.f32 %v3167_v62, %v2524_v9 }
 0x8f5   : > { %v2536_v47 = vadd.f32 %v2525_v26, %v4675_v24  ;;  %v2542_v32 = vpop.xlane.xlu1 %2541 }
 0x8f6   : > { %v2564_v17 = vmul.f32 %v2542_v32, %v4511_v15 }
 0x8f7   : > { %v2558_v11 = vsel %vm606_vm0, %v2536_v47, 0.0 }
 0x8f8   : > { %v4716_v46 = vsub.f32 %v2530_v2, %v2564_v17  ;;  %2559 = vadd.xlane.f32.xlu1 %v2558_v11 }
 0x8fa   : > { %v2580_v36 = vmul.f32 %v4716_v46, %v4716_v46 }
 0x8fc   : > { %v2588_v27 = vsel %vm606_vm0, %v2580_v36, 0.0 }
 0x8fd   : > { %2589 = vadd.xlane.f32.xlu0 %v2588_v27 }
 0x91c   : > { %v2527_v44 = vpop.f32.mrf.mxu2 }
 0x91d   : > { %v2528_v25 = vadd.f32 %v3167_v62, %v2527_v44  ;;  %v2545_v13 = vpop.xlane.xlu2 %2544 }
 0x91e   : > { %v2565_v40 = vmul.f32 %v2545_v13, %v4511_v15 }
 0x91f   : > { %v2537_v24 = vadd.f32 %v2528_v25, %v4687_v10 }
 0x920   : > { %v4723_v42 = vsub.f32 %v2531_v35, %v2565_v40 }
 0x921   : > { %v2561_v38 = vsel %vm606_vm0, %v2537_v24, 0.0 }
 0x922   : > { %2562 = vadd.xlane.f32.xlu2 %v2561_v38  ;;  %v2581_v49 = vmul.f32 %v4723_v42, %v4723_v42 }
 0x924   : > { %v2591_v37 = vsel %vm606_vm0, %v2581_v49, 0.0 }
 0x925   : > { %2592 = vadd.xlane.f32.xlu1 %v2591_v37 }
 0x94a   : > { %v2548_v34 = vpop.xlane.xlu0 %2547 }
 0x94b   : > { %v2566_v56 = vmul.f32 %v2548_v34, %v4511_v15 }
 0x94d   : > { %v4730_v51 = vsub.f32 %v2532_v61, %v2566_v56 }
 0x94f   : > { %v2582_v14 = vmul.f32 %v4730_v51, %v4730_v51 }
 0x951   : > { %v2594_v10 = vsel %vm606_vm0, %v2582_v14, 0.0 }
 0x952   : > { %v2551_v54 = vpop.xlane.xlu1 %2550  ;;  %2595 = vadd.xlane.f32.xlu2 %v2594_v10 }
 0x953   : > { %v2567_v28 = vmul.f32 %v2551_v54, %v4511_v15 }
 0x955   : > { %v4736_v48 = vsub.f32 %v2533_v22, %v2567_v28 }
 0x957   : > { %v2583_v7 = vmul.f32 %v4736_v48, %v4736_v48 }
 0x959   : > { %v2597_v41 = vsel %vm606_vm0, %v2583_v7, 0.0 }
 0x95a   : > { %2598 = vadd.xlane.f32.xlu0 %v2597_v41  ;;  %v2554_v55 = vpop.xlane.xlu2 %2553 }
 0x95b   : > { %v2568_v29 = vmul.f32 %v2554_v55, %v4511_v15 }
 0x95d   : > { %v4742_v18 = vsub.f32 %v2534_v16, %v2568_v29 }
 0x95f   : > { %v2584_v12 = vmul.f32 %v4742_v18, %v4742_v18 }
 0x961   : > { %v2600_v3 = vsel %vm606_vm0, %v2584_v12, 0.0 }
 0x962   : > { %2601 = vadd.xlane.f32.xlu1 %v2600_v3 }
 0x963   : > { %v2557_v23 = vpop.xlane.xlu0 %2556 }
 0x964   : > { %v2569_v63 = vmul.f32 %v2557_v23, %v4511_v15 }
 0x966   : > { %v4748_v62 = vsub.f32 %v2535_v39, %v2569_v63 }
 0x968   : > { %v2585_v43 = vmul.f32 %v4748_v62, %v4748_v62 }
 0x96a   : > { %v2603_v58 = vsel %vm606_vm0, %v2585_v43, 0.0 }
 0x96b   : > { %v2560_v2 = vpop.xlane.xlu1 %2559  ;;  %2604 = vadd.xlane.f32.xlu2 %v2603_v58 }
 0x96c   : > { %v2570_v8 = vmul.f32 %v2560_v2, %v4511_v15 }
 0x96e   : > { %v4754_v20 = vsub.f32 %v2536_v47, %v2570_v8 }
 0x970   : > { %v2590_v31 = vpop.xlane.xlu0 %2589  ;;  %v2586_v33 = vmul.f32 %v4754_v20, %v4754_v20 }
 0x971   : > { %v2612_v45 = vmul.f32 %v2590_v31, %v4511_v15 }
 0x972   : > { %v2606_v6 = vsel %vm606_vm0, %v2586_v33, 0.0 }
 0x973   : > { %v2620_v35 = vadd.f32 1e-05, %v2612_v45  ;;  %2607 = vadd.xlane.f32.xlu0 %v2606_v6 }
 0x975   : > { %3316 = vrsqrt.f32 %v2620_v35  ;;  %vm2634_vm14 = vweird.f32 %v2620_v35 }
 0x97b   : > { %v3317_v21 = vpop.eup %3316 }
 0x97c   : > { %v2629_v57 = vmul.f32 %v3317_v21, %v2620_v35  ;;  %vm2635_vm2 = vweird.f32 %v3317_v21 }
 0x97d   : > { %vm2636_vm15 = vmor %vm2634_vm14, %vm2635_vm2 }
 0x97e   : > { %v2630_v59 = vmul.f32 %v3317_v21, %v2629_v57 }
 0x980   : > { %v2631_v61 = vmul.f32 0.5, %v2630_v59 }
 0x982   : > { %v2632_v53 = vsub.f32 1.5, %v2631_v61 }
 0x984   : > { %v2633_v50 = vmul.f32 %v3317_v21, %v2632_v53 }
 0x986   : > { %v2637_v22 = vsel %vm2636_vm15, %v3317_v21, %v2633_v50 }
 0x987   : > { %v2708_v19 = vmul.f32 %v2637_v22, %v4716_v46 }
 0x989   : > { %v2719_v30 = vmul.f32 %v4763_v52, %v2708_v19 }
 0x98b   : > { %v2730_v16 = vadd.f32 %v4769_v60, %v2719_v30 }
 0x98d   : > { %2738 = vst.msk [vmem:[%s4776_s11] sm:$0xff] %vm606_vm0, %v2730_v16 }
 0x995   : > { %v2563_v5 = vpop.xlane.xlu2 %2562 }
 0x996   : > { %v2571_v4 = vmul.f32 %v2563_v5, %v4511_v15 }
 0x998   : > { %v4782_v1 = vsub.f32 %v2537_v24, %v2571_v4  ;;  %v2593_v39 = vpop.xlane.xlu1 %2592 }
 0x999   : > { %v2613_v0 = vmul.f32 %v2593_v39, %v4511_v15 }
 0x99a   : > { %v2587_v9 = vmul.f32 %v4782_v1, %v4782_v1 }
 0x99b   : > { %v2621_v26 = vadd.f32 1e-05, %v2613_v0 }
 0x99c   : > { %v2609_v47 = vsel %vm606_vm0, %v2587_v9, 0.0 }
 0x99d   : > { %3318 = vrsqrt.f32 %v2621_v26  ;;  %2610 = vadd.xlane.f32.xlu1 %v2609_v47  ;;  %vm2644_vm3 = vweird.f32 %v2621_v26 }
 0x9a3   : > { %v3319_v32 = vpop.eup %3318 }
 0x9a4   : > { %v2639_v17 = vmul.f32 %v3319_v32, %v2621_v26  ;;  %vm2645_vm1 = vweird.f32 %v3319_v32 }
 0x9a5   : > { %vm2646_vm4 = vmor %vm2644_vm3, %vm2645_vm1 }
 0x9a6   : > { %v2640_v11 = vmul.f32 %v3319_v32, %v2639_v17 }
 0x9a8   : > { %v2641_v46 = vmul.f32 0.5, %v2640_v11 }
 0x9aa   : > { %v2642_v36 = vsub.f32 1.5, %v2641_v46 }
 0x9ac   : > { %v2643_v27 = vmul.f32 %v3319_v32, %v2642_v36 }
 0x9ae   : > { %v2647_v44 = vsel %vm2646_vm4, %v3319_v32, %v2643_v27 }
 0x9af   : > { %v2709_v25 = vmul.f32 %v2647_v44, %v4723_v42 }
 0x9b1   : > { %v2720_v13 = vmul.f32 %v4763_v52, %v2709_v25 }
 0x9b3   : > { %v2731_v40 = vadd.f32 %v4769_v60, %v2720_v13 }
 0x9b5   : > { %2739 = vst.msk [vmem:[%s4776_s11 + $0x8] sm:$0xff] %vm606_vm0, %v2731_v40 }
 0x9c5   : > { %v2596_v24 = vpop.xlane.xlu2 %2595 }
 0x9c6   : > { %v2614_v38 = vmul.f32 %v2596_v24, %v4511_v15 }
 0x9c8   : > { %v2622_v49 = vadd.f32 1e-05, %v2614_v38 }
 0x9ca   : > { %3320 = vrsqrt.f32 %v2622_v49  ;;  %vm2654_vm6 = vweird.f32 %v2622_v49 }
 0x9cd   : > { %v2599_v37 = vpop.xlane.xlu0 %2598 }
 0x9ce   : > { %v2615_v34 = vmul.f32 %v2599_v37, %v4511_v15 }
 0x9d0   : > { %v3321_v56 = vpop.eup %3320  ;;  %v2623_v14 = vadd.f32 1e-05, %v2615_v34 }
 0x9d1   : > { %v2649_v10 = vmul.f32 %v3321_v56, %v2622_v49  ;;  %vm2655_vm5 = vweird.f32 %v3321_v56 }
 0x9d2   : > { %3322 = vrsqrt.f32 %v2623_v14  ;;  %vm2656_vm7 = vmor %vm2654_vm6, %vm2655_vm5  ;;  %vm2664_vm9 = vweird.f32 %v2623_v14 }
 0x9d3   : > { %v2650_v54 = vmul.f32 %v3321_v56, %v2649_v10 }
 0x9d5   : > { %v2651_v42 = vmul.f32 0.5, %v2650_v54  ;;  %v2602_v28 = vpop.xlane.xlu1 %2601 }
 0x9d6   : > { %v2616_v7 = vmul.f32 %v2602_v28, %v4511_v15 }
 0x9d7   : > { %v2652_v41 = vsub.f32 1.5, %v2651_v42 }
 0x9d8   : > { %v3323_v55 = vpop.eup %3322  ;;  %v2624_v29 = vadd.f32 1e-05, %v2616_v7 }
 0x9d9   : > { %v2653_v12 = vmul.f32 %v3321_v56, %v2652_v41  ;;  %v2659_v3 = vmul.f32 %v3323_v55, %v2623_v14  ;;  %vm2665_vm8 = vweird.f32 %v3323_v55 }
 0x9da   : > { %3324 = vrsqrt.f32 %v2624_v29  ;;  %vm2666_vm10 = vmor %vm2664_vm9, %vm2665_vm8  ;;  %vm2674_vm12 = vweird.f32 %v2624_v29 }
 0x9db   : > { %v2657_v23 = vsel %vm2656_vm7, %v3321_v56, %v2653_v12  ;;  %v2660_v63 = vmul.f32 %v3323_v55, %v2659_v3 }
 0x9dc   : > { %v2710_v43 = vmul.f32 %v2657_v23, %v4730_v51 }
 0x9dd   : > { %v2661_v58 = vmul.f32 0.5, %v2660_v63 }
 0x9de   : > { %v2721_v2 = vmul.f32 %v4763_v52, %v2710_v43  ;;  %v2605_v8 = vpop.xlane.xlu2 %2604 }
 0x9df   : > { %v2662_v31 = vsub.f32 1.5, %v2661_v58  ;;  %v2617_v33 = vmul.f32 %v2605_v8, %v4511_v15 }
 0x9e0   : > { %v3325_v45 = vpop.eup %3324  ;;  %v2732_v6 = vadd.f32 %v4769_v60, %v2721_v2 }
 0x9e1   : > { %v2663_v35 = vmul.f32 %v3323_v55, %v2662_v31  ;;  %v2669_v21 = vmul.f32 %v3325_v45, %v2624_v29  ;;  %v2625_v57 = vadd.f32 1e-05, %v2617_v33  ;;  %vm2675_vm11 = vweird.f32 %v3325_v45 }
 0x9e2   : > { %2740 = vst.msk [vmem:[%s4776_s11 + $0x10] sm:$0xff] %vm606_vm0, %v2732_v6  ;;  %vm2676_vm13 = vmor %vm2674_vm12, %vm2675_vm11 }
 0x9e3   : > { %v2667_v51 = vsel %vm2666_vm10, %v3323_v55, %v2663_v35  ;;  %v2670_v59 = vmul.f32 %v3325_v45, %v2669_v21  ;;  %3326 = vrsqrt.f32 %v2625_v57  ;;  %vm2684_vm14 = vweird.f32 %v2625_v57 }
 0x9e4   : > { %v2711_v61 = vmul.f32 %v2667_v51, %v4736_v48 }
 0x9e5   : > { %v2671_v53 = vmul.f32 0.5, %v2670_v59 }
 0x9e6   : > { %v2722_v50 = vmul.f32 %v4763_v52, %v2711_v61  ;;  %v2608_v22 = vpop.xlane.xlu0 %2607 }
 0x9e7   : > { %v2672_v19 = vsub.f32 1.5, %v2671_v53  ;;  %v2618_v30 = vmul.f32 %v2608_v22, %v4511_v15 }
 0x9e8   : > { %v2733_v16 = vadd.f32 %v4769_v60, %v2722_v50 }
 0x9e9   : > { %v3327_v5 = vpop.eup %3326  ;;  %v2673_v4 = vmul.f32 %v3325_v45, %v2672_v19  ;;  %v2626_v39 = vadd.f32 1e-05, %v2618_v30 }
 0x9ea   : > { %2741 = vst.msk [vmem:[%s4776_s11 + $0x18] sm:$0xff] %vm606_vm0, %v2733_v16  ;;  %v2679_v0 = vmul.f32 %v3327_v5, %v2625_v57  ;;  %vm2685_vm2 = vweird.f32 %v3327_v5 }
 0x9eb   : > { %v2677_v48 = vsel %vm2676_vm13, %v3325_v45, %v2673_v4  ;;  %3328 = vrsqrt.f32 %v2626_v39  ;;  %vm2686_vm15 = vmor %vm2684_vm14, %vm2685_vm2  ;;  %vm2694_vm3 = vweird.f32 %v2626_v39 }
 0x9ec   : > { %v2712_v9 = vmul.f32 %v2677_v48, %v4742_v18  ;;  %v2680_v26 = vmul.f32 %v3327_v5, %v2679_v0 }
 0x9ee   : > { %v2723_v47 = vmul.f32 %v4763_v52, %v2712_v9  ;;  %v2681_v32 = vmul.f32 0.5, %v2680_v26 }
 0x9f0   : > { %v2734_v17 = vadd.f32 %v4769_v60, %v2723_v47  ;;  %v2682_v11 = vsub.f32 1.5, %v2681_v32 }
 0x9f1   : > { %v3329_v46 = vpop.eup %3328 }
 0x9f2   : > { %2742 = vst.msk [vmem:[%s4776_s11 + $0x20] sm:$0xff] %vm606_vm0, %v2734_v17  ;;  %v2683_v36 = vmul.f32 %v3327_v5, %v2682_v11  ;;  %v2689_v27 = vmul.f32 %v3329_v46, %v2626_v39  ;;  %vm2695_vm1 = vweird.f32 %v3329_v46 }
 0x9f3   : > { %vm2696_vm4 = vmor %vm2694_vm3, %vm2695_vm1 }
 0x9f4   : > { %v2687_v44 = vsel %vm2686_vm15, %v3327_v5, %v2683_v36  ;;  %v2690_v25 = vmul.f32 %v3329_v46, %v2689_v27 }
 0x9f5   : > { %v2713_v18 = vmul.f32 %v2687_v44, %v4748_v62 }
 0x9f6   : > { %v2691_v13 = vmul.f32 0.5, %v2690_v25 }
 0x9f7   : > { %v2724_v40 = vmul.f32 %v4763_v52, %v2713_v18 }
 0x9f8   : > { %v2692_v24 = vsub.f32 1.5, %v2691_v13 }
 0x9f9   : > { %v2735_v38 = vadd.f32 %v4769_v60, %v2724_v40 }
 0x9fa   : > { %v2693_v49 = vmul.f32 %v3329_v46, %v2692_v24 }
 0x9fb   : > { %2743 = vst.msk [vmem:[%s4776_s11 + $0x28] sm:$0xff] %vm606_vm0, %v2735_v38 }
 0x9fc   : > { %v2697_v37 = vsel %vm2696_vm4, %v3329_v46, %v2693_v49 }
 0x9fd   : > { %v2714_v34 = vmul.f32 %v2697_v37, %v4754_v20 }
 0x9ff   : > { %v2725_v56 = vmul.f32 %v4763_v52, %v2714_v34 }
 0xa01   : > { %v2736_v14 = vadd.f32 %v4769_v60, %v2725_v56 }
 0xa03   : > { %2744 = vst.msk [vmem:[%s4776_s11 + $0x30] sm:$0xff] %vm606_vm0, %v2736_v14 }
 0xa10   : > { %v2611_v62 = vpop.xlane.xlu1 %2610 }
 0xa11   : > { %v2619_v10 = vmul.f32 %v2611_v62, %v4511_v15 }
 0xa13   : > { %v2627_v54 = vadd.f32 1e-05, %v2619_v10 }
 0xa15   : > { %3330 = vrsqrt.f32 %v2627_v54  ;;  %vm2704_vm6 = vweird.f32 %v2627_v54 }
 0xa1b   : > { %v3331_v42 = vpop.eup %3330 }
 0xa1c   : > { %v2699_v28 = vmul.f32 %v3331_v42, %v2627_v54  ;;  %vm2705_vm5 = vweird.f32 %v3331_v42 }
 0xa1d   : > { %vm2706_vm7 = vmor %vm2704_vm6, %vm2705_vm5 }
 0xa1e   : > { %v2700_v7 = vmul.f32 %v3331_v42, %v2699_v28 }
 0xa20   : > { %v2701_v41 = vmul.f32 0.5, %v2700_v7 }
 0xa22   : > { %v2702_v55 = vsub.f32 1.5, %v2701_v41 }
 0xa24   : > { %v2703_v29 = vmul.f32 %v3331_v42, %v2702_v55 }
 0xa26   : > { %v2707_v20 = vsel %vm2706_vm7, %v3331_v42, %v2703_v29 }
 0xa27   : > { %v2715_v12 = vmul.f32 %v2707_v20, %v4782_v1 }
 0xa29   : > { %v2726_v3 = vmul.f32 %v4763_v52, %v2715_v12 }
 0xa2b   : > { %v2737_v23 = vadd.f32 %v4769_v60, %v2726_v3 }
 0xa2d   : > { %2745 = vst.msk [vmem:[%s4776_s11 + $0x38] sm:$0xff] %vm606_vm0, %v2737_v23 }
 0xa2e PF: > { %s4887_s21 = sld [smem:[#allocation9_spill]]  ;;  %s4890_s18 = smov %s3431_s19 }
 0xa2f   : > { %s4888_s22 = sld [smem:[#allocation8_spill]] }
 0xa30   : > { %s4889_s20 = sld [smem:[#allocation10_spill]] }
 0xa34   : > { %p28_p8 = scmp.ge.s32.totalorder %s4887_s21, 4  }
 0xa35   : > { %s4891_s19 = smov %s4888_s22 }
 0xa36   :  { %30 = sbr.rel (!%p28_p8) target bundleno = 13 (0xd), region = 136 }
 0xa3b   :  { %2767 = vsyncpa [#allocation3], 1 }
 0xa3c   :  { %2769 = vsyncpa [#allocation3 + $0x1], 1 }
 0xa3d   :  { %2770 = vsyncpa [#allocation5], 1 }
 0xa3e   :  { %2772 = vsyncpa [#allocation5 + $0x1], 1 }

// kernel: transformer_forward.7
= control target key start
LH: loop header
LB: loop body
LE: loop exit
PB: predicated region body
PF: predicated region fallthrough
CT: control target
= control target key end

     0   :  { %s3776_s0 = inlined_call_operand.vmem [shape: f32[2,16,32], index: 0, kind: input, shape index: {}]   ;;  %s3777_s1 = inlined_call_operand.vmem [shape: f32[2,16,32], index: 1, kind: input, shape index: {}]   ;;  %s3778_s2 = inlined_call_operand.vmem [shape: f32[2,64,32], index: 2, kind: input, shape index: {}]   ;;  %s3779_s3 = inlined_call_operand.vmem [shape: f32[2,64,32], index: 3, kind: input, shape index: {}]   ;;  %s3780_s4 = inlined_call_operand.vmem [shape: f32[2,1,64], index: 4, kind: input, shape index: {}]   ;;  %s3781_s5 = inlined_call_operand.vmem [shape: f32[32,96], index: 5, kind: input, shape index: {}]   ;;  %s3782_s6 = inlined_call_operand.vmem [shape: f32[1,96], index: 6, kind: input, shape index: {}]   ;;  %s3783_s7 = inlined_call_operand.vmem [shape: f32[32,32], index: 7, kind: input, shape index: {}]   ;;  %s3784_s8 = inlined_call_operand.vmem [shape: f32[1,32], index: 8, kind: input, shape index: {}]   ;;  %s3785_s9 = inlined_call_operand.vmem [shape: f32[1,32], index: 9, kind: input, shape index: {}]   ;;  %s3786_s10 = inlined_call_operand.vmem [shape: f32[1,32], index: 10, kind: input, shape index: {}]   ;;  %s3787_s11 = inlined_call_operand.vmem [shape: f32[32,96], index: 11, kind: input, shape index: {}]   ;;  %s3788_s12 = inlined_call_operand.vmem [shape: f32[1,96], index: 12, kind: input, shape index: {}]   ;;  %s3789_s13 = inlined_call_operand.vmem [shape: f32[32,32], index: 13, kind: input, shape index: {}]   ;;  %s3790_s14 = inlined_call_operand.vmem [shape: f32[1,32], index: 14, kind: input, shape index: {}]   ;;  %s3791_s15 = inlined_call_operand.vmem [shape: f32[1,32], index: 15, kind: input, shape index: {}]   ;;  %s3792_s16 = inlined_call_operand.vmem [shape: f32[1,32], index: 16, kind: input, shape index: {}]   ;;  %s3793_s17 = inlined_call_operand.vmem [shape: f32[32,64], index: 17, kind: input, shape index: {}]   ;;  %s3794_s18 = inlined_call_operand.vmem [shape: f32[1,64], index: 18, kind: input, shape index: {}]   ;;  %s3795_s19 = inlined_call_operand.vmem [shape: f32[64,32], index: 19, kind: input, shape index: {}]   ;;  %s3796_s20 = inlined_call_operand.vmem [shape: f32[1,32], index: 20, kind: input, shape index: {}]   ;;  %s3797_s21 = inlined_call_operand.vmem [shape: f32[1,32], index: 21, kind: input, shape index: {}]   ;;  %s3798_s22 = inlined_call_operand.vmem [shape: f32[1,32], index: 22, kind: input, shape index: {}]   ;;  %s3799_s23 = inlined_call_operand.vmem [shape: f32[2,16,32], index: 23, kind: output, shape index: {}]  }
   0x1   :  { %3813 = sst [smem:[#allocation2_spill]] %s3776_s0 }
   0x2   :  { %3814 = sst [smem:[#allocation3_spill]] %s3777_s1 }
   0x3   :  { %3815 = sst [smem:[#allocation4_spill]] %s3778_s2 }
   0x4   :  { %3816 = sst [smem:[#allocation5_spill]] %s3779_s3 }
   0x5   :  { %3817 = sst [smem:[#allocation6_spill]] %s3780_s4  ;;  %s3124_s4 = smov 0  }
   0x6   :  { %3818 = sst [smem:[#allocation7_spill]] %s3781_s5 }
   0x7   :  { %3819 = sst [smem:[#allocation8_spill]] %s3782_s6 }
   0x8   :  { %3820 = sst [smem:[#allocation9_spill]] %s3783_s7 }
   0x9 LB: > { %s2638_s30 = sadd.s32 4294967295, %s2993_s4   ;;  %p2642_p0 = scmp.ge.s32.totalorder %s2993_s4, 1  ;;  %s2993_s4 = sphi %s3124_s4, %s33_s4  }
   0xa   : > { %p675_p1 = scmp.lt.s32.totalorder %s2993_s4, 3 }
   0xc   : > { %p676_p2 = pnand %p2642_p0, %p675_p1 }
   0xd   : > { %s3821_s5 = sld [smem:[#allocation7_spill]] (!%p676_p2)  ;;  %p757_p3 = scmp.lt.s32.totalorder (!%p676_p2), %s2638_s30, 1 }
   0xe   : > { %679 = sbr.rel (%p676_p2) target bundleno = 3965 (0xf7d), region = 112  ;;  %s3803_s27 = smov (!%p676_p2), 64  }
   0xf   : > { %s3822_s24 = sld [smem:[#allocation2_spill]] (!%p676_p2)  ;;  %s3825_s3 = smov (!%p676_p2), 64  }
  0x10   : > { %s3823_s2 = sld [smem:[#allocation3_spill]] (!%p676_p2)  ;;  %s3812_s26 = smov (!%p676_p2), 96  }
  0x11   : > { %s3826_s1 = sld [smem:[#allocation8_spill]] (!%p676_p2)  ;;  %s3808_s7 = smov (!%p676_p2), 112  }
  0x13   : > { %v809_v0 = vld [vmem:[%s3821_s5 + $0x18] sm:$0xff]  ;;  %v808_v1 = vld [vmem:[%s3821_s5 + $0x10] sm:$0xff]  ;;  %v807_v3 = vld [vmem:[%s3821_s5 + $0x8] sm:$0xff]  ;;  %s3836_s30 = smov (!%p757_p3, %s2638_s30), 1  ;;  %vm816_vm0 = vcmask 261120   ;;  %vm904_vm1 = vcmask 64512  }
  0x14   : > { %835 = vmatpush.msra.mxu0 %v809_v0  ;;  %v2791_v2 = vpack.i.bf16 %v808_v1, %v809_v0  ;;  %v806_v4 = vld [vmem:[%s3821_s5] sm:$0xff]  ;;  %s3148_s29 = sshll.u32 %s3836_s30, 4  ;;  %vm936_vm2 = vcmask 130048   ;;  %s3829_s5 = sld [smem:[#allocation5_spill]]  ;;  %vm1740_vm10 = vcmask 523264  }
  0x15   : > { %s761_s25 = scalar_lea.vmem %s3822_s24, %s3148_s29  ;;  %v2796_v7 = vpack.i.bf16 %v806_v4, %v807_v3  ;;  %s3827_s24 = sld [smem:[#allocation9_spill]] }
  0x16   : > { %2792 = vrot.lane.b32.xlu1 %v2791_v2, %s3803_s27  ;;  %836 = vmatpush.msra.mxu0 %v808_v1  ;;  %s766_s6 = scalar_lea.vmem %s3823_s2, %s3148_s29  ;;  %v3158_v5 = vld [vmem:[%s761_s25] sm:$0xff]  ;;  %s3824_s27 = sld [smem:[#allocation6_spill]]  ;;  %v3169_v9 = vld [vmem:[%s761_s25 + $0x8] sm:$0xff] }
  0x17   : > { %v3160_v6 = vld [vmem:[%s766_s6] sm:$0xff]  ;;  %v3171_v10 = vld [vmem:[%s766_s6 + $0x8] sm:$0xff]  ;;  %s2996_s25 = smov 88   ;;  %s3810_s2 = smov 120  }
  0x18   : > { %837 = vmatpush.msra.mxu0 %v807_v3  ;;  %v811_v8 = vadd.f32 %v3160_v6, %v3158_v5  ;;  %v812_v11 = vadd.f32 %v3171_v10, %v3169_v9  ;;  %v2897_v12 = vld [vmem:[%s3826_s1] ss:$0 sm:$0xff]  ;;  %s2999_s6 = smov 72   ;;  %s3001_s1 = smov 80  }
  0x1a   : > { %838 = vmatpush.msra.mxu0 %v806_v4 }
  0x1b   : > { %2653 = vmatmul.msk.f32.vlgmr.msra.gmra.mxu0 %vm816_vm0, %v811_v8  ;;  %v894_v30 = vld [vmem:[%s3827_s24] sm:$0xff] }
  0x1e   : > { %2797 = vrot.lane.b32.xlu1 %v2796_v7, %s3825_s3 }
  0x23   : > { %2654 = vmatmul.msk.f32.gmra.mxu0 %vm816_vm0, %v812_v11 }
  0x26   : > { %862 = vrot.lane.b32.xlu1 %v2897_v12, %s3825_s3 }
  0x88   : > { %v2793_v13 = vpop.permute.xlu1 %2792 }
  0x89   : > { %v2794_v14 = vunpack.i.l.bf16 %v2793_v13  ;;  %v2795_v15 = vunpack.i.h.bf16 %v2793_v13 }
  0x8b   : > { %883 = vmatpush.msra.mxu1 %v2794_v14 }
  0x8d   : > { %884 = vmatpush.msra.mxu1 %v2795_v15 }
  0x90   : > { %v2798_v16 = vpop.permute.xlu1 %2797 }
  0x91   : > { %v2799_v17 = vunpack.i.l.bf16 %v2798_v16  ;;  %v2800_v18 = vunpack.i.h.bf16 %v2798_v16 }
  0x93   : > { %885 = vmatpush.msra.mxu1 %v2799_v17 }
  0x95   : > { %886 = vmatpush.msra.mxu1 %v2800_v18 }
  0x96   : > { %2655 = vmatmul.msk.f32.vlgmr.msra.gmra.mxu1 %vm816_vm0, %v3158_v5 }
  0x98   : > { %v840_v19 = vpop.f32.mrf.mxu0  ;;  %v863_v23 = vpop.permute.xlu1 %862 }
  0x99   : > { %v841_v22 = vadd.f32 %v2897_v12, %v840_v19 }
  0x9e   : > { %2656 = vmatmul.msk.f32.gmra.mxu1 %vm816_vm0, %v3169_v9 }
  0xa0   : > { %v843_v20 = vpop.f32.mrf.mxu0 }
  0xa1   : > { %v3185_v21 = vadd.f32 %v2897_v12, %v843_v20 }
  0xa3   : > { %994 = vrot.lane.b32.xlu1 %v3185_v21, %s2996_s25  ;;  %902 = vrot.lane.b32.xlu0 %v3185_v21, %s3812_s26 }
  0xab   : > { %988 = vrot.lane.b32.xlu1 %v841_v22, %s3810_s2  ;;  %900 = vrot.lane.b32.xlu0 %v841_v22, %s3812_s26 }
  0xb3   : > { %1277 = vrot.lane.b32.xlu1 %v3185_v21, %s2999_s6 }
  0xbb   : > { %990 = vrot.lane.b32.xlu1 %v3185_v21, %s3810_s2 }
  0xc3   : > { %1275 = vrot.lane.b32.xlu1 %v841_v22, %s2999_s6  ;;  %s3806_s6 = smov 104  }
  0xcb   : > { %1144 = vrot.lane.b32.xlu1 %v841_v22, %s3808_s7 }
  0xd3   : > { %1146 = vrot.lane.b32.xlu1 %v3185_v21, %s3808_s7 }
 0x113   : > { %v888_v24 = vpop.f32.mrf.mxu1 }
 0x114   : > { %v3200_v28 = vadd.f32 %v888_v24, %v863_v23 }
 0x115   : > { %v995_v25 = vpop.permute.xlu1 %994  ;;  %v903_v26 = vpop.permute.xlu0 %902 }
 0x116   : > { %2657 = vmatpush.xpose.msk.msra.mxu2 %vm904_vm1, %v903_v26 }
 0x11b   : > { %v891_v27 = vpop.f32.mrf.mxu1 }
 0x11c   : > { %v3202_v29 = vadd.f32 %v891_v27, %v863_v23 }
 0x11d   : > { %v989_v31 = vpop.permute.xlu1 %988  ;;  %v901_v32 = vpop.permute.xlu0 %900 }
 0x11e   : > { %979 = vmatpush.msra.mxu3 %v3202_v29  ;;  %2658 = vmatpush.xpose.msk.msra.mxu2 %vm904_vm1, %v901_v32 }
 0x120   : > { %980 = vmatpush.msra.mxu3 %v3200_v28 }
 0x121   : > { %2659 = vmatmul.msk.f32.vlgmr.msra.gmra.mxu2 %vm904_vm1, %v841_v22 }
 0x122   : > { %1136 = vmatpush.msrb.mxu2 %v894_v30  ;;  %2663 = vmatpush.xpose.msk.msrb.mxu3 %vm904_vm1, %v995_v25 }
 0x125   : > { %v1278_v33 = vpop.permute.xlu1 %1277 }
 0x126   : > { %2681 = vmatpush.xpose.msk.msra.mxu2 %vm904_vm1, %v1278_v33 }
 0x129   : > { %2660 = vmatmul.msk.f32.gmra.mxu2 %vm904_vm1, %v3185_v21 }
 0x12d   : > { %v991_v34 = vpop.permute.xlu1 %990 }
 0x135   : > { %v1276_v35 = vpop.permute.xlu1 %1275 }
 0x136   : > { %2682 = vmatpush.xpose.msk.msra.mxu2 %vm904_vm1, %v1276_v35 }
 0x13d   : > { %v1145_v59 = vpop.permute.xlu1 %1144 }
 0x145   : > { %v1147_v60 = vpop.permute.xlu1 %1146 }
 0x1a4   : > { %v930_v36 = vpop.f32.mrf.mxu2 }
 0x1a5   : > { %v937_v37 = vsel %vm936_vm2, %v930_v36, -inf }
 0x1a6   : > { %938 = vmax.xlane.f32.xlu2 %v937_v37 }
 0x1ac   : > { %v933_v38 = vpop.f32.mrf.mxu2 }
 0x1ad   : > { %v940_v39 = vsel %vm936_vm2, %v933_v38, -inf }
 0x1ae   : > { %941 = vmax.xlane.f32.xlu2 %v940_v39 }
 0x219   : > { %v939_v40 = vpop.xlane.xlu2 %938 }
 0x21a   : > { %v943_v41 = vsub.f32 %v930_v36, %v939_v40  ;;  %v2801_v36 = vpack.i.bf16 %v3200_v28, %v3202_v29 }
 0x21c   : > { %v945_v42 = vmul.f32 1.442695, %v943_v41 }
 0x21e   : > { %2909 = vpow2.f32 %v945_v42 }
 0x221   : > { %v942_v43 = vpop.xlane.xlu2 %941 }
 0x222   : > { %v944_v44 = vsub.f32 %v933_v38, %v942_v43 }
 0x224   : > { %v2910_v45 = vpop.eup %2909  ;;  %v947_v46 = vmul.f32 1.442695, %v944_v44 }
 0x225   : > { %v949_v47 = vsel %vm936_vm2, %v2910_v45, 0.0 }
 0x226   : > { %2911 = vpow2.f32 %v947_v46  ;;  %950 = vadd.xlane.f32.xlu0 %v949_v47 }
 0x22c   : > { %v2912_v48 = vpop.eup %2911 }
 0x22d   : > { %v952_v49 = vsel %vm936_vm2, %v2912_v48, 0.0 }
 0x22e   : > { %953 = vadd.xlane.f32.xlu2 %v952_v49 }
 0x23a   : > { %1148 = vrot.lane.b32.xlu0 %v841_v22, %s3001_s1 }
 0x246   : > { %992 = vrot.lane.b32.xlu2 %v841_v22, %s2996_s25  ;;  %s2771_s25 = sshll.u32 %s3836_s30, 6 }
 0x24e   : > { %1150 = vrot.lane.b32.xlu2 %v3185_v21, %s3001_s1 }
 0x256   : > { %1271 = vrot.lane.b32.xlu2 %v841_v22, %s3806_s6 }
 0x25e   : > { %1273 = vrot.lane.b32.xlu2 %v3185_v21, %s3806_s6 }
 0x299   : > { %v951_v50 = vpop.xlane.xlu0 %950 }
 0x29a   : > { %2913 = vrcp.f32 %v951_v50 }
 0x2a0   : > { %v2914_v51 = vpop.eup %2913 }
 0x2a1   : > { %v954_v52 = vpop.xlane.xlu2 %953  ;;  %v957_v53 = vmul.f32 %v2914_v51, %v2910_v45 }
 0x2a2   : > { %2915 = vrcp.f32 %v954_v52 }
 0x2a3   : > { %2661 = vmatmul.msk.f32.vlgmr.msra.gmra.mxu3 %vm936_vm2, %v957_v53 }
 0x2a8   : > { %v2916_v54 = vpop.eup %2915 }
 0x2a9   : > { %v993_v55 = vpop.permute.xlu2 %992  ;;  %v958_v56 = vmul.f32 %v2916_v54, %v2912_v48 }
 0x2aa   : > { %2664 = vmatpush.xpose.msk.msrb.mxu3 %vm904_vm1, %v993_v55 }
 0x2ab   : > { %2662 = vmatmul.msk.f32.gmra.mxu3 %vm936_vm2, %v958_v56 }
 0x2ac   : > { %v1149_v58 = vpop.permute.xlu0 %1148 }
 0x2b1   : > { %v1151_v57 = vpop.permute.xlu2 %1150 }
 0x2b2   : > { %2673 = vmatpush.xpose.msk.msra.mxu3 %vm904_vm1, %v1151_v57 }
 0x2b3   : > { %2665 = vmatmul.msk.f32.vlgmr.msrb.gmra.mxu3 %vm904_vm1, %v989_v31 }
 0x2b6   : > { %2674 = vmatpush.xpose.msk.msra.mxu3 %vm904_vm1, %v1149_v58 }
 0x2b9   : > { %v1272_v63 = vpop.permute.xlu2 %1271 }
 0x2bb   : > { %2666 = vmatmul.msk.f32.gmra.mxu3 %vm904_vm1, %v991_v34 }
 0x2c1   : > { %v1274_v2 = vpop.permute.xlu2 %1273 }
 0x2c3   : > { %2675 = vmatmul.msk.f32.vlgmr.msra.gmra.mxu3 %vm904_vm1, %v1145_v59 }
 0x2cb   : > { %2676 = vmatmul.msk.f32.gmra.mxu3 %vm904_vm1, %v1147_v60 }
 0x326   : > { %v982_v61 = vpop.f32.mrf.mxu3 }
 0x327   : > { %2671 = vmatmul.msk.f32.vlgmr.msrb.gmra.mxu2 %vm904_vm1, %v982_v61 }
 0x32e   : > { %v985_v62 = vpop.f32.mrf.mxu3 }
 0x32f   : > { %2672 = vmatmul.msk.f32.gmra.mxu2 %vm904_vm1, %v985_v62 }
 0x336   : > { %v1021_v0 = vpop.f32.mrf.mxu3 }
 0x337   : > { %2683 = vmatmul.msk.f32.vlgmr.msra.gmra.mxu2 %vm904_vm1, %v1272_v63  ;;  %v1027_v1 = vsel %vm936_vm2, %v1021_v0, -inf }
 0x338   : > { %1028 = vmax.xlane.f32.xlu2 %v1027_v1  ;;  %v895_v1 = vld [vmem:[%s3827_s24 + $0x8] sm:$0xff] }
 0x339   : > { %1107 = vmatpush.msrb.mxu1 %v895_v1 }
 0x33e   : > { %v1024_v3 = vpop.f32.mrf.mxu3 }
 0x33f   : > { %2684 = vmatmul.msk.f32.gmra.mxu2 %vm904_vm1, %v1274_v2  ;;  %v1030_v4 = vsel %vm936_vm2, %v1024_v3, -inf }
 0x340   : > { %1031 = vmax.xlane.f32.xlu0 %v1030_v4 }
 0x346   : > { %v1177_v7 = vpop.f32.mrf.mxu3 }
 0x347   : > { %v1183_v8 = vsel %vm936_vm2, %v1177_v7, -inf }
 0x348   : > { %1184 = vmax.xlane.f32.xlu2 %v1183_v8 }
 0x34e   : > { %v1180_v11 = vpop.f32.mrf.mxu3 }
 0x34f   : > { %v1186_v12 = vsel %vm936_vm2, %v1180_v11, -inf }
 0x350   : > { %1187 = vmax.xlane.f32.xlu2 %v1186_v12 }
 0x3aa   : > { %v3242_v13 = vpop.f32.mrf.mxu2 }
 0x3ab   : > { %v1029_v14 = vpop.xlane.xlu2 %1028 }
 0x3ac   : > { %v1033_v15 = vsub.f32 %v1021_v0, %v1029_v14 }
 0x3ae   : > { %v1035_v19 = vmul.f32 1.442695, %v1033_v15 }
 0x3b2   : > { %v3244_v16 = vpop.f32.mrf.mxu2 }
 0x3b3   : > { %v1032_v17 = vpop.xlane.xlu0 %1031 }
 0x3b4   : > { %v1034_v18 = vsub.f32 %v1024_v3, %v1032_v17  ;;  %v896_v3 = vld [vmem:[%s3827_s24 + $0x10] sm:$0xff] }
 0x3b5   : > { %1261 = vmatpush.msra.mxu1 %v896_v3  ;;  %v3003_v3 = vmov 32.0  }
 0x3b6   : > { %v1037_v20 = vmul.f32 1.442695, %v1034_v18 }
 0x3b8   : > { %2917 = vpow2.f32 %v1037_v20 }
 0x3b9   : > { %2919 = vpow2.f32 %v1035_v19 }
 0x3ba   : > { %v1304_v21 = vpop.f32.mrf.mxu2 }
 0x3bb   : > { %v1185_v22 = vpop.xlane.xlu2 %1184  ;;  %v1310_v23 = vsel %vm936_vm2, %v1304_v21, -inf }
 0x3bc   : > { %v1189_v24 = vsub.f32 %v1177_v7, %v1185_v22  ;;  %1311 = vmax.xlane.f32.xlu1 %v1310_v23 }
 0x3be   : > { %v2918_v25 = vpop.eup %2917  ;;  %v1191_v26 = vmul.f32 1.442695, %v1189_v24  ;;  %v897_v24 = vld [vmem:[%s3827_s24 + $0x18] sm:$0xff] }
 0x3bf   : > { %v1042_v27 = vsel %vm936_vm2, %v2918_v25, 0.0  ;;  %v2920_v30 = vpop.eup %2919 }
 0x3c0   : > { %2921 = vpow2.f32 %v1191_v26  ;;  %1043 = vadd.xlane.f32.xlu2 %v1042_v27  ;;  %v1039_v33 = vsel %vm936_vm2, %v2920_v30, 0.0  ;;  %v1472_v26 = vld [vmem:[%s3787_s11 + $0x18] sm:$0xff] }
 0x3c2   : > { %v1307_v31 = vpop.f32.mrf.mxu2 }
 0x3c3   : > { %v1313_v32 = vsel %vm936_vm2, %v1307_v31, -inf  ;;  %v1188_v40 = vpop.xlane.xlu2 %1187 }
 0x3c4   : > { %1314 = vmax.xlane.f32.xlu0 %v1313_v32  ;;  %1040 = vadd.xlane.f32.xlu1 %v1039_v33  ;;  %v1190_v44 = vsub.f32 %v1180_v11, %v1188_v40  ;;  %v1469_v33 = vld [vmem:[%s3787_s11] sm:$0xff] }
 0x3c6   : > { %v2922_v34 = vpop.eup %2921  ;;  %v1193_v47 = vmul.f32 1.442695, %v1190_v44  ;;  %v2898_v44 = vld [vmem:[%s3784_s8] ss:$0 sm:$0xff] }
 0x3c7   : > { %v1195_v35 = vsel %vm936_vm2, %v2922_v34, 0.0 }
 0x3c8   : > { %1196 = vadd.xlane.f32.xlu2 %v1195_v35 }
 0x3d8   : > { %2802 = vrot.lane.b32.xlu0 %v2801_v36, %s3810_s2  ;;  %s3832_s2 = smov 120  }
 0x3e0   : > { %2812 = vrot.lane.b32.xlu0 %v2801_v36, %s3808_s7 }
 0x42f   : > { %v1312_v37 = vpop.xlane.xlu1 %1311 }
 0x430   : > { %v1316_v38 = vsub.f32 %v1304_v21, %v1312_v37 }
 0x432   : > { %v1318_v39 = vmul.f32 1.442695, %v1316_v38 }
 0x433   : > { %v1044_v50 = vpop.xlane.xlu2 %1043 }
 0x434   : > { %2923 = vpow2.f32 %v1318_v39 }
 0x437   : > { %v1315_v41 = vpop.xlane.xlu0 %1314  ;;  %v1041_v29 = vpop.xlane.xlu1 %1040 }
 0x438   : > { %v1317_v42 = vsub.f32 %v1307_v31, %v1315_v41 }
 0x43a   : > { %v2924_v43 = vpop.eup %2923  ;;  %v1320_v45 = vmul.f32 1.442695, %v1317_v42 }
 0x43b   : > { %v1322_v46 = vsel %vm936_vm2, %v2924_v43, 0.0  ;;  %v1197_v57 = vpop.xlane.xlu2 %1196 }
 0x43c   : > { %2925 = vpow2.f32 %v1320_v45  ;;  %1323 = vadd.xlane.f32.xlu1 %v1322_v46 }
 0x43d   : > { %2927 = vpow2.f32 %v1193_v47 }
 0x43e   : > { %2929 = vrcp.f32 %v1041_v29 }
 0x43f   : > { %2931 = vrcp.f32 %v1044_v50 }
 0x440   : > { %2933 = vrcp.f32 %v1197_v57 }
 0x442   : > { %v2926_v28 = vpop.eup %2925 }
 0x443   : > { %v1325_v48 = vsel %vm936_vm2, %v2926_v28, 0.0  ;;  %v2928_v49 = vpop.eup %2927 }
 0x444   : > { %1326 = vadd.xlane.f32.xlu2 %v1325_v48  ;;  %v2930_v52 = vpop.eup %2929  ;;  %v1198_v53 = vsel %vm936_vm2, %v2928_v49, 0.0 }
 0x445   : > { %v1047_v56 = vmul.f32 %v2930_v52, %v2920_v30  ;;  %v2932_v59 = vpop.eup %2931 }
 0x446   : > { %v1048_v62 = vmul.f32 %v2932_v59, %v2918_v25  ;;  %v2934_v63 = vpop.eup %2933  ;;  %v1471_v25 = vld [vmem:[%s3787_s11 + $0x10] sm:$0xff] }
 0x447   : > { %v1203_v0 = vmul.f32 %v2934_v63, %v2922_v34  ;;  %v3283_v27 = vpack.i.bf16 %v1471_v25, %v1472_v26  ;;  %v1470_v34 = vld [vmem:[%s3787_s11 + $0x8] sm:$0xff] }
 0x448   : > { %v3296_v35 = vpack.i.bf16 %v1469_v33, %v1470_v34 }
 0x449   : > { %2817 = vrot.lane.b32.xlu0 %v3283_v27, %s3812_s26 }
 0x44a   : > { %v2803_v51 = vpop.permute.xlu0 %2802 }
 0x44b   : > { %v2804_v54 = vunpack.i.l.bf16 %v2803_v51  ;;  %v2805_v55 = vunpack.i.h.bf16 %v2803_v51 }
 0x44c   : > { %1199 = vadd.xlane.f32.xlu2 %v1198_v53 }
 0x44d   : > { %1077 = vmatpush.msrb.mxu0 %v2804_v54 }
 0x44f   : > { %1078 = vmatpush.msrb.mxu0 %v2805_v55 }
 0x450   : > { %2667 = vmatmul.msk.f32.vlgmr.msrb.gmra.mxu0 %vm936_vm2, %v1047_v56 }
 0x452   : > { %v2813_v58 = vpop.permute.xlu0 %2812 }
 0x453   : > { %v2814_v60 = vunpack.i.l.bf16 %v2813_v58  ;;  %v2815_v61 = vunpack.i.h.bf16 %v2813_v58 }
 0x455   : > { %1231 = vmatpush.msra.mxu0 %v2814_v60  ;;  %2807 = vrot.lane.b32.xlu1 %v2801_v36, %s3806_s6  ;;  %s3828_s6 = sld [smem:[#allocation4_spill]] }
 0x457   : > { %1232 = vmatpush.msra.mxu0 %v2815_v61 }
 0x458   : > { %2668 = vmatmul.msk.f32.gmra.mxu0 %vm936_vm2, %v1048_v62 }
 0x459   : > { %1388 = vmatpush.msrb.mxu0 %v897_v24 }
 0x45b   : > { %s3316_s0 = scalar_lea.vmem %s3828_s6, %s2771_s25  ;;  %s784_s6 = scalar_lea.vmem %s3799_s23, %s3148_s29 }
 0x45c   : > { %v3330_v58 = vld [vmem:[%s3316_s0 + $0x8] sm:$0xff]  ;;  %v3336_v61 = vld [vmem:[%s3316_s0 + $0x10] sm:$0xff] }
 0x460   : > { %2677 = vmatmul.msk.f32.vlgmr.msra.gmra.mxu0 %vm936_vm2, %v1203_v0  ;;  %v3342_v0 = vld [vmem:[%s3316_s0 + $0x18] sm:$0xff] }
 0x464   : > { %2822 = vrot.lane.b32.xlu2 %v3296_v35, %s3812_s26  ;;  %s3321_s26 = scalar_lea.vmem %s3829_s5, %s2771_s25  ;;  %s3830_s25 = smov 96  }
 0x465   : > { %v798_v59 = vld [vmem:[%s3321_s26 + $0x8] sm:$0xff]  ;;  %v799_v62 = vld [vmem:[%s3321_s26 + $0x10] sm:$0xff]  ;;  %v800_v1 = vld [vmem:[%s3321_s26 + $0x18] sm:$0xff]  ;;  %s3831_s5 = scalar_lea.vmem %s3824_s27, %s3836_s30  ;;  %s3833_s30 = smov 112  }
 0x466   : > { %v1509_v60 = vadd.f32 %v798_v59, %v3330_v58  ;;  %v1510_v63 = vadd.f32 %v799_v62, %v3336_v61 }
 0x4af   : > { %v1324_v4 = vpop.xlane.xlu1 %1323 }
 0x4b7   : > { %v1327_v2 = vpop.xlane.xlu2 %1326 }
 0x4bb   : > { %v2818_v37 = vpop.permute.xlu0 %2817 }
 0x4bc   : > { %v2820_v38 = vunpack.i.h.bf16 %v2818_v37  ;;  %v2819_v39 = vunpack.i.l.bf16 %v2818_v37 }
 0x4be   : > { %1571 = vmatpush.msrb.mxu2 %v2819_v39 }
 0x4bf   : > { %v1200_v7 = vpop.xlane.xlu2 %1199 }
 0x4c0   : > { %2935 = vrcp.f32 %v1200_v7  ;;  %1572 = vmatpush.msrb.mxu2 %v2820_v38  ;;  %v801_v7 = vld [vmem:[%s3321_s26 + $0x20] sm:$0xff] }
 0x4c1   : > { %2937 = vrcp.f32 %v1324_v4  ;;  %v3348_v4 = vld [vmem:[%s3316_s0 + $0x20] sm:$0xff] }
 0x4c2   : > { %2939 = vrcp.f32 %v1327_v2  ;;  %v1511_v2 = vadd.f32 %v800_v1, %v3342_v0 }
 0x4c3   : > { %2941 = vrcp.f32 %v3003_v3 }
 0x4c6   : > { %v2936_v8 = vpop.eup %2935 }
 0x4c7   : > { %v2808_v11 = vpop.permute.xlu1 %2807  ;;  %v1204_v12 = vmul.f32 %v2936_v8, %v2928_v49  ;;  %v2938_v14 = vpop.eup %2937  ;;  %v1512_v8 = vadd.f32 %v801_v7, %v3348_v4 }
 0x4c8   : > { %v2809_v15 = vunpack.i.l.bf16 %v2808_v11  ;;  %v2810_v17 = vunpack.i.h.bf16 %v2808_v11  ;;  %v1330_v18 = vmul.f32 %v2938_v14, %v2924_v43  ;;  %v2940_v20 = vpop.eup %2939  ;;  %v3354_v14 = vld [vmem:[%s3316_s0 + $0x28] sm:$0xff] }
 0x4c9   : > { %2678 = vmatmul.msk.f32.gmra.mxu0 %vm936_vm2, %v1204_v12  ;;  %v1331_v21 = vmul.f32 %v2940_v20, %v2926_v28  ;;  %v2942_v11 = vpop.eup %2941  ;;  %v3365_v20 = vld [vmem:[%s3316_s0 + $0x30] sm:$0xff] }
 0x4ca   : > { %1358 = vmatpush.msrb.mxu3 %v2809_v15  ;;  %v1415_v12 = vmul.f32 32.0, %v2942_v11  ;;  %v802_v15 = vld [vmem:[%s3321_s26 + $0x28] sm:$0xff]  ;;  %vm1419_vm3 = vweird.f32 %v2942_v11 }
 0x4cc   : > { %1359 = vmatpush.msrb.mxu3 %v2810_v17  ;;  %v1513_v17 = vadd.f32 %v802_v15, %v3354_v14 }
 0x4cd   : > { %v1080_v19 = vpop.f32.mrf.mxu0  ;;  %2685 = vmatmul.msk.f32.vlgmr.msrb.gmra.mxu3 %vm936_vm2, %v1330_v18  ;;  %v3361_v18 = vld [vmem:[%s3788_s12] ss:$0 sm:$0xff] }
 0x4ce   : > { %2669 = vmatmul.msk.f32.vlgmr.msrb.gmra.mxu1 %vm904_vm1, %v1080_v19  ;;  %v1416_v19 = vsub.f32 1.0, %v1415_v12 }
 0x4cf   : > { %1497 = vmatpush.msrb.mxu1 %v1472_v26  ;;  %v804_v26 = vld [vmem:[%s3321_s26 + $0x38] sm:$0xff] }
 0x4d1   : > { %1498 = vmatpush.msrb.mxu1 %v1471_v25  ;;  %v3373_v25 = vld [vmem:[%s3316_s0 + $0x38] sm:$0xff] }
 0x4d3   : > { %1499 = vmatpush.msrb.mxu1 %v1470_v34 }
 0x4d5   : > { %v1083_v22 = vpop.f32.mrf.mxu0  ;;  %2686 = vmatmul.msk.f32.gmra.mxu3 %vm936_vm2, %v1331_v21  ;;  %1500 = vmatpush.msrb.mxu1 %v1469_v33  ;;  %v803_v21 = vld [vmem:[%s3321_s26 + $0x30] sm:$0xff] }
 0x4d6   : > { %2670 = vmatmul.msk.f32.gmra.mxu1 %vm904_vm1, %v1083_v22  ;;  %v1417_v22 = vmul.f32 %v2942_v11, %v1416_v19 }
 0x4d8   : > { %v1418_v24 = vadd.f32 %v2942_v11, %v1417_v22 }
 0x4dd   : > { %v1234_v23 = vpop.f32.mrf.mxu0 }
 0x4de   : > { %2679 = vmatmul.msk.f32.vlgmr.msra.gmra.mxu1 %vm904_vm1, %v1234_v23  ;;  %v1514_v23 = vadd.f32 %v803_v21, %v3365_v20 }
 0x546   : > { %v1237_v30 = vpop.f32.mrf.mxu0 }
 0x547   : > { %2680 = vmatmul.msk.f32.gmra.mxu1 %vm904_vm1, %v1237_v30  ;;  %v3376_v30 = vsel %vm1419_vm3, %v2942_v11, %v1418_v24 }
 0x54b   : > { %v1109_v36 = vpop.f32.mrf.mxu1 }
 0x54c   : > { %v1139_v42 = vadd.f32 %v3242_v13, %v1109_v36 }
 0x550   : > { %v1361_v31 = vpop.f32.mrf.mxu3 }
 0x551   : > { %2687 = vmatmul.msk.f32.vlgmr.msrb.gmra.mxu0 %vm904_vm1, %v1361_v31  ;;  %v1515_v31 = vadd.f32 %v804_v26, %v3373_v25 }
 0x553   : > { %v1112_v40 = vpop.f32.mrf.mxu1 }
 0x554   : > { %v1142_v29 = vadd.f32 %v3244_v16, %v1112_v40  ;;  %v2823_v16 = vpop.permute.xlu2 %2822 }
 0x555   : > { %v2825_v55 = vunpack.i.h.bf16 %v2823_v16  ;;  %v2824_v56 = vunpack.i.l.bf16 %v2823_v16 }
 0x557   : > { %1573 = vmatpush.msrb.mxu2 %v2824_v56 }
 0x558   : > { %v1364_v32 = vpop.f32.mrf.mxu3 }
 0x559   : > { %2688 = vmatmul.msk.f32.gmra.mxu0 %vm904_vm1, %v1364_v32  ;;  %1574 = vmatpush.msrb.mxu2 %v2825_v55 }
 0x55b   : > { %v1263_v41 = vpop.f32.mrf.mxu1 }
 0x55c   : > { %v1269_v43 = vadd.f32 %v1263_v41, %v1139_v42 }
 0x5c4   : > { %v1266_v28 = vpop.f32.mrf.mxu1 }
 0x5c5   : > { %v1270_v49 = vadd.f32 %v1266_v28, %v1142_v29 }
 0x5ce   : > { %v1390_v45 = vpop.f32.mrf.mxu0 }
 0x5cf   : > { %v1396_v46 = vadd.f32 %v1390_v45, %v1269_v43 }
 0x5d1   : > { %v1402_v47 = vadd.f32 %v2898_v44, %v1396_v46 }
 0x5d3   : > { %v3306_v48 = vadd.f32 %v1402_v47, %v3158_v5  ;;  %v3324_v5 = vld [vmem:[%s3316_s0] sm:$0xff] }
 0x5d5   : > { %v1408_v50 = vsel %vm816_vm0, %v3306_v48, 0.0 }
 0x5d6   : > { %1409 = vadd.xlane.f32.xlu1 %v1408_v50  ;;  %v1393_v13 = vpop.f32.mrf.mxu0 }
 0x5d7   : > { %v1397_v51 = vadd.f32 %v1393_v13, %v1270_v49 }
 0x5d9   : > { %v1403_v52 = vadd.f32 %v2898_v44, %v1397_v51 }
 0x5db   : > { %v1405_v53 = vadd.f32 %v1403_v52, %v3169_v9  ;;  %v797_v9 = vld [vmem:[%s3321_s26] sm:$0xff] }
 0x5dc   : > { %v1508_v57 = vadd.f32 %v797_v9, %v3324_v5 }
 0x5dd   : > { %v1411_v54 = vsel %vm816_vm0, %v1405_v53, 0.0 }
 0x5de   : > { %1412 = vadd.xlane.f32.xlu0 %v1411_v54  ;;  %2691 = vmatmul.msk.f32.vlgmr.msrb.gmra.mxu2 %vm816_vm0, %v1508_v57 }
 0x5e6   : > { %2692 = vmatmul.msk.f32.gmra.mxu2 %vm816_vm0, %v1509_v60 }
 0x5ee   : > { %2693 = vmatmul.msk.f32.gmra.mxu2 %vm816_vm0, %v1510_v63 }
 0x5f2   : > { %1532 = vrot.lane.b32.xlu0 %v3361_v18, %s3830_s25 }
 0x5f6   : > { %2694 = vmatmul.msk.f32.gmra.mxu2 %vm816_vm0, %v1511_v2 }
 0x5fa   : > { %2832 = vrot.lane.b32.xlu0 %v3296_v35, %s3825_s3  ;;  %v2900_v35 = vld [vmem:[%s3785_s9] ss:$0 sm:$0xff] }
 0x5fe   : > { %2695 = vmatmul.msk.f32.gmra.mxu2 %vm816_vm0, %v1512_v8  ;;  %v2901_v8 = vld [vmem:[%s3786_s10] ss:$0 sm:$0xff] }
 0x606   : > { %2696 = vmatmul.msk.f32.gmra.mxu2 %vm816_vm0, %v1513_v17 }
 0x60e   : > { %2697 = vmatmul.msk.f32.gmra.mxu2 %vm816_vm0, %v1514_v23 }
 0x616   : > { %2698 = vmatmul.msk.f32.gmra.mxu2 %vm816_vm0, %v1515_v31 }
 0x649   : > { %v1410_v32 = vpop.xlane.xlu1 %1409 }
 0x64a   : > { %v1421_v33 = vmul.f32 %v3376_v30, %v1410_v32 }
 0x64c   : > { %v1423_v34 = vsub.f32 %v3306_v48, %v1421_v33 }
 0x64e   : > { %v1425_v36 = vmul.f32 %v1423_v34, %v1423_v34 }
 0x650   : > { %v1427_v37 = vsel %vm816_vm0, %v1425_v36, 0.0 }
 0x651   : > { %1428 = vadd.xlane.f32.xlu2 %v1427_v37  ;;  %v1413_v38 = vpop.xlane.xlu0 %1412 }
 0x652   : > { %v1422_v39 = vmul.f32 %v3376_v30, %v1413_v38 }
 0x654   : > { %v1424_v40 = vsub.f32 %v1405_v53, %v1422_v39 }
 0x656   : > { %v1426_v41 = vmul.f32 %v1424_v40, %v1424_v40 }
 0x658   : > { %v1430_v42 = vsel %vm816_vm0, %v1426_v41, 0.0 }
 0x659   : > { %1431 = vadd.xlane.f32.xlu1 %v1430_v42 }
 0x661   : > { %v3385_v43 = vpop.f32.mrf.mxu2 }
 0x664   : > { %v1533_v51 = vpop.permute.xlu0 %1532 }
 0x665   : > { %v3437_v36 = vadd.f32 %v3385_v43, %v1533_v51 }
 0x669   : > { %v1579_v44 = vpop.f32.mrf.mxu2 }
 0x66a   : > { %v3428_v33 = vadd.f32 %v1579_v44, %v1533_v51 }
 0x66c   : > { %v2833_v38 = vpop.permute.xlu0 %2832 }
 0x66d   : > { %v2834_v41 = vunpack.i.l.bf16 %v2833_v38  ;;  %v2835_v42 = vunpack.i.h.bf16 %v2833_v38 }
 0x671   : > { %v1582_v45 = vpop.f32.mrf.mxu2 }
 0x672   : > { %2827 = vrot.lane.b32.xlu1 %v3283_v27, %s3825_s3  ;;  %v3423_v24 = vadd.f32 %v1582_v45, %v1533_v51 }
 0x679   : > { %v1585_v46 = vpop.f32.mrf.mxu2 }
 0x67a   : > { %v3415_v17 = vadd.f32 %v1585_v46, %v1533_v51 }
 0x681   : > { %v1588_v47 = vpop.f32.mrf.mxu2 }
 0x682   : > { %v3408_v2 = vadd.f32 %v1588_v47, %v1533_v51 }
 0x689   : > { %v1591_v28 = vpop.f32.mrf.mxu2 }
 0x68a   : > { %v3401_v60 = vadd.f32 %v1591_v28, %v1533_v51 }
 0x691   : > { %v1594_v49 = vpop.f32.mrf.mxu2 }
 0x692   : > { %v3397_v56 = vadd.f32 %v1594_v49, %v1533_v51 }
 0x699   : > { %v1597_v53 = vpop.f32.mrf.mxu2 }
 0x69a   : > { %v3389_v16 = vadd.f32 %v1597_v53, %v1533_v51 }
 0x69c   : > { %2707 = vmatpush.xpose.msk.msra.mxu0 %vm904_vm1, %v3389_v16 }
 0x6a0   : > { %2708 = vmatpush.xpose.msk.msra.mxu0 %vm904_vm1, %v3397_v56 }
 0x6a4   : > { %2709 = vmatpush.xpose.msk.msra.mxu0 %vm904_vm1, %v3401_v60 }
 0x6a8   : > { %2710 = vmatpush.xpose.msk.msra.mxu0 %vm904_vm1, %v3408_v2 }
 0x6ac   : > { %2711 = vmatpush.xpose.msk.msra.mxu0 %vm904_vm1, %v3415_v17 }
 0x6b0   : > { %2712 = vmatpush.xpose.msk.msra.mxu0 %vm904_vm1, %v3423_v24 }
 0x6b4   : > { %2713 = vmatpush.xpose.msk.msra.mxu0 %vm904_vm1, %v3428_v33 }
 0x6b8   : > { %2714 = vmatpush.xpose.msk.msra.mxu0 %vm904_vm1, %v3437_v36 }
 0x6c4   : > { %v1429_v29 = vpop.xlane.xlu2 %1428 }
 0x6c5   : > { %v1433_v48 = vmul.f32 %v1429_v29, %v3376_v30 }
 0x6c7   : > { %v1435_v50 = vadd.f32 1e-05, %v1433_v48 }
 0x6c9   : > { %2943 = vrsqrt.f32 %v1435_v50  ;;  %vm1443_vm5 = vweird.f32 %v1435_v50 }
 0x6cc   : > { %v1432_v13 = vpop.xlane.xlu1 %1431 }
 0x6cd   : > { %v1434_v52 = vmul.f32 %v1432_v13, %v3376_v30 }
 0x6cf   : > { %v2944_v54 = vpop.eup %2943  ;;  %v1436_v9 = vadd.f32 1e-05, %v1434_v52 }
 0x6d0   : > { %v1438_v55 = vmul.f32 %v2944_v54, %v1435_v50  ;;  %vm1444_vm4 = vweird.f32 %v2944_v54 }
 0x6d1   : > { %2945 = vrsqrt.f32 %v1436_v9  ;;  %vm1445_vm6 = vmor %vm1443_vm5, %vm1444_vm4  ;;  %vm1453_vm8 = vweird.f32 %v1436_v9 }
 0x6d2   : > { %v1439_v57 = vmul.f32 %v2944_v54, %v1438_v55 }
 0x6d4   : > { %v1440_v59 = vmul.f32 0.5, %v1439_v57 }
 0x6d6   : > { %v1441_v62 = vsub.f32 1.5, %v1440_v59 }
 0x6d7   : > { %v2946_v63 = vpop.eup %2945 }
 0x6d8   : > { %v1442_v27 = vmul.f32 %v2944_v54, %v1441_v62  ;;  %v1448_v1 = vmul.f32 %v2946_v63, %v1436_v9  ;;  %vm1454_vm7 = vweird.f32 %v2946_v63 }
 0x6d9   : > { %vm1455_vm9 = vmor %vm1453_vm8, %vm1454_vm7 }
 0x6da   : > { %v1446_v3 = vsel %vm1445_vm6, %v2944_v54, %v1442_v27  ;;  %v1449_v7 = vmul.f32 %v2946_v63, %v1448_v1 }
 0x6db   : > { %v1457_v11 = vmul.f32 %v1446_v3, %v1423_v34 }
 0x6dc   : > { %v1450_v12 = vmul.f32 0.5, %v1449_v7 }
 0x6dd   : > { %v1462_v15 = vmul.f32 %v2900_v35, %v1457_v11 }
 0x6de   : > { %v1451_v19 = vsub.f32 1.5, %v1450_v12 }
 0x6df   : > { %v3417_v21 = vadd.f32 %v2901_v8, %v1462_v15 }
 0x6e0   : > { %v1452_v22 = vmul.f32 %v2946_v63, %v1451_v19 }
 0x6e1   : > { %v1474_v23 = vadd.f32 %v3417_v21, %v3160_v6 }
 0x6e2   : > { %v1456_v26 = vsel %vm1455_vm9, %v2946_v63, %v1452_v22 }
 0x6e3   : > { %v1458_v31 = vmul.f32 %v1456_v26, %v1424_v40  ;;  %2689 = vmatmul.msk.f32.vlgmr.msrb.gmra.mxu1 %vm816_vm0, %v1474_v23 }
 0x6e4   : > { %v2828_v37 = vpop.permute.xlu1 %2827 }
 0x6e5   : > { %v1463_v32 = vmul.f32 %v2900_v35, %v1458_v31  ;;  %v2830_v39 = vunpack.i.h.bf16 %v2828_v37  ;;  %v2829_v40 = vunpack.i.l.bf16 %v2828_v37 }
 0x6e7   : > { %v3430_v34 = vadd.f32 %v2901_v8, %v1463_v32  ;;  %1651 = vmatpush.msra.mxu3 %v2829_v40 }
 0x6e9   : > { %v1475_v6 = vadd.f32 %v3430_v34, %v3171_v10  ;;  %1652 = vmatpush.msra.mxu3 %v2830_v39 }
 0x6eb   : > { %2690 = vmatmul.msk.f32.gmra.mxu1 %vm816_vm0, %v1475_v6  ;;  %1653 = vmatpush.msra.mxu3 %v2834_v41 }
 0x6ed   : > { %1654 = vmatpush.msra.mxu3 %v2835_v42 }
 0x6ee   : > { %2699 = vmatmul.msk.f32.vlgmr.msra.gmra.mxu3 %vm816_vm0, %v3324_v5  ;;  %v3473_v5 = vld [vmem:[%s3831_s5] ss:$0 sm:$0xff] }
 0x6f6   : > { %2700 = vmatmul.msk.f32.gmra.mxu3 %vm816_vm0, %v3330_v58 }
 0x6fe   : > { %2701 = vmatmul.msk.f32.gmra.mxu3 %vm816_vm0, %v3336_v61 }
 0x706   : > { %2702 = vmatmul.msk.f32.gmra.mxu3 %vm816_vm0, %v3342_v0 }
 0x70e   : > { %2703 = vmatmul.msk.f32.gmra.mxu3 %vm816_vm0, %v3348_v4 }
 0x716   : > { %2704 = vmatmul.msk.f32.gmra.mxu3 %vm816_vm0, %v3354_v14 }
 0x71e   : > { %2705 = vmatmul.msk.f32.gmra.mxu3 %vm816_vm0, %v3365_v20 }
 0x726   : > { %2706 = vmatmul.msk.f32.gmra.mxu3 %vm816_vm0, %v3373_v25 }
 0x760   : > { %v1502_v10 = vpop.f32.mrf.mxu1 }
 0x761   : > { %v3447_v43 = vadd.f32 %v3361_v18, %v1502_v10  ;;  %v1680_v10 = vld [vmem:[%s3789_s13] sm:$0xff] }
 0x763   : > { %2715 = vmatmul.msk.f32.vlgmr.msra.gmra.mxu0 %vm904_vm1, %v3447_v43 }
 0x768   : > { %v1505_v44 = vpop.f32.mrf.mxu1 }
 0x769   : > { %v3454_v45 = vadd.f32 %v3361_v18, %v1505_v44 }
 0x76b   : > { %2716 = vmatmul.msk.f32.gmra.mxu0 %vm904_vm1, %v3454_v45 }
 0x771   : > { %v1656_v25 = vpop.f32.mrf.mxu3 }
 0x779   : > { %v1659_v46 = vpop.f32.mrf.mxu3 }
 0x7e0   : > { %v1734_v58 = vpop.f32.mrf.mxu0 }
 0x7e1   : > { %v1735_v61 = vadd.f32 %v3473_v5, %v1734_v58 }
 0x7e3   : > { %v1741_v0 = vsel %vm1740_vm10, %v1735_v61, -inf }
 0x7e4   : > { %1742 = vmax.xlane.f32.xlu2 %v1741_v0 }
 0x7e8   : > { %v1737_v4 = vpop.f32.mrf.mxu0 }
 0x7e9   : > { %v1738_v14 = vadd.f32 %v3473_v5, %v1737_v4 }
 0x7eb   : > { %v1744_v20 = vsel %vm1740_vm10, %v1738_v14, -inf }
 0x7ec   : > { %1745 = vmax.xlane.f32.xlu0 %v1744_v20 }
 0x7fc   : > { %1612 = vrot.lane.b32.xlu2 %v3361_v18, %s3825_s3  ;;  %v1662_v18 = vpop.f32.mrf.mxu3  ;;  %s3834_s3 = smov 104  }
 0x800   : > { %1810 = vrot.lane.b32.xlu0 %v3389_v16, %s3832_s2 }
 0x804   : > { %v1665_v47 = vpop.f32.mrf.mxu3 }
 0x808   : > { %1806 = vrot.lane.b32.xlu0 %v3401_v60, %s3832_s2 }
 0x80c   : > { %v1668_v28 = vpop.f32.mrf.mxu3 }
 0x810   : > { %1802 = vrot.lane.b32.xlu0 %v3415_v17, %s3832_s2 }
 0x814   : > { %v1671_v29 = vpop.f32.mrf.mxu3 }
 0x818   : > { %1798 = vrot.lane.b32.xlu0 %v3428_v33, %s3832_s2 }
 0x81c   : > { %v1674_v48 = vpop.f32.mrf.mxu3 }
 0x820   : > { %2014 = vrot.lane.b32.xlu0 %v3389_v16, %s3833_s30 }
 0x824   : > { %v1677_v51 = vpop.f32.mrf.mxu3 }
 0x828   : > { %2012 = vrot.lane.b32.xlu0 %v3397_v56, %s3833_s30 }
 0x830   : > { %1794 = vrot.lane.b32.xlu0 %v3454_v45, %s3832_s2 }
 0x838   : > { %2177 = vrot.lane.b32.xlu0 %v3408_v2, %s3834_s3 }
 0x840   : > { %2004 = vrot.lane.b32.xlu0 %v3423_v24, %s3833_s30 }
 0x848   : > { %2171 = vrot.lane.b32.xlu0 %v3428_v33, %s3834_s3 }
 0x850   : > { %1996 = vrot.lane.b32.xlu0 %v3447_v43, %s3833_s30 }
 0x857   : > { %v1743_v49 = vpop.xlane.xlu2 %1742 }
 0x858   : > { %v1747_v50 = vsub.f32 %v1735_v61, %v1743_v49  ;;  %2167 = vrot.lane.b32.xlu0 %v3454_v45, %s3834_s3 }
 0x85a   : > { %v1749_v13 = vmul.f32 1.442695, %v1747_v50 }
 0x85c   : > { %2947 = vpow2.f32 %v1749_v13 }
 0x85f   : > { %v1746_v52 = vpop.xlane.xlu0 %1745  ;;  %v1613_v53 = vpop.permute.xlu2 %1612 }
 0x860   : > { %v1748_v54 = vsub.f32 %v1738_v14, %v1746_v52  ;;  %v1678_v9 = vadd.f32 %v1677_v51, %v1613_v53  ;;  %v1675_v55 = vadd.f32 %v1674_v48, %v1613_v53  ;;  %v1672_v62 = vadd.f32 %v1671_v29, %v1613_v53 }
 0x861   : > { %v1669_v27 = vadd.f32 %v1668_v28, %v1613_v53  ;;  %v1666_v1 = vadd.f32 %v1665_v47, %v1613_v53  ;;  %v1663_v35 = vadd.f32 %v1662_v18, %v1613_v53  ;;  %v1660_v7 = vadd.f32 %v1659_v46, %v1613_v53 }
 0x862   : > { %v2948_v57 = vpop.eup %2947  ;;  %v1751_v59 = vmul.f32 1.442695, %v1748_v54  ;;  %1777 = vmatpush.msra.mxu1 %v1678_v9  ;;  %v1657_v11 = vadd.f32 %v1656_v25, %v1613_v53 }
 0x863   : > { %v1753_v63 = vsel %vm1740_vm10, %v2948_v57, 0.0  ;;  %v3526_v31 = vpack.i.bf16 %v1669_v27, %v1672_v62  ;;  %v3532_v32 = vpack.i.bf16 %v1663_v35, %v1666_v1 }
 0x864   : > { %2949 = vpow2.f32 %v1751_v59  ;;  %1754 = vadd.xlane.f32.xlu1 %v1753_v63  ;;  %1778 = vmatpush.msra.mxu1 %v1675_v55  ;;  %v3534_v6 = vpack.i.bf16 %v1657_v11, %v1660_v7 }
 0x866   : > { %1779 = vmatpush.msra.mxu1 %v1672_v62 }
 0x868   : > { %1780 = vmatpush.msra.mxu1 %v1669_v27 }
 0x86a   : > { %v2950_v3 = vpop.eup %2949  ;;  %1781 = vmatpush.msra.mxu1 %v1666_v1 }
 0x86b   : > { %v1756_v8 = vsel %vm1740_vm10, %v2950_v3, 0.0 }
 0x86c   : > { %1757 = vadd.xlane.f32.xlu2 %v1756_v8  ;;  %1782 = vmatpush.msra.mxu1 %v1663_v35 }
 0x86e   : > { %1783 = vmatpush.msra.mxu1 %v1660_v7 }
 0x870   : > { %1784 = vmatpush.msra.mxu1 %v1657_v11 }
 0x872   : > { %v1811_v12 = vpop.permute.xlu0 %1810 }
 0x873   : > { %2719 = vmatpush.xpose.msk.msrb.mxu1 %vm904_vm1, %v1811_v12 }
 0x87a   : > { %v1807_v15 = vpop.permute.xlu0 %1806 }
 0x87d   : > { %1808 = vrot.lane.b32.xlu1 %v3397_v56, %s3832_s2 }
 0x882   : > { %v1803_v19 = vpop.permute.xlu0 %1802 }
 0x884   : > { %1804 = vrot.lane.b32.xlu2 %v3408_v2, %s3832_s2 }
 0x885   : > { %1800 = vrot.lane.b32.xlu1 %v3423_v24, %s3832_s2 }
 0x88a   : > { %v1799_v22 = vpop.permute.xlu0 %1798 }
 0x88c   : > { %2183 = vrot.lane.b32.xlu2 %v3389_v16, %s3834_s3  ;;  %v3528_v16 = vpack.i.bf16 %v1675_v55, %v1678_v9 }
 0x88d   : > { %1796 = vrot.lane.b32.xlu1 %v3437_v36, %s3832_s2 }
 0x892   : > { %v2015_v23 = vpop.permute.xlu0 %2014 }
 0x893   : > { %2735 = vmatpush.xpose.msk.msra.mxu2 %vm904_vm1, %v2015_v23 }
 0x894   : > { %2010 = vrot.lane.b32.xlu2 %v3401_v60, %s3833_s30 }
 0x895   : > { %1792 = vrot.lane.b32.xlu1 %v3447_v43, %s3832_s2 }
 0x89a   : > { %v2013_v26 = vpop.permute.xlu0 %2012 }
 0x89b   : > { %2736 = vmatpush.xpose.msk.msra.mxu2 %vm904_vm1, %v2013_v26 }
 0x89c   : > { %2008 = vrot.lane.b32.xlu2 %v3408_v2, %s3833_s30 }
 0x89d   : > { %2181 = vrot.lane.b32.xlu1 %v3397_v56, %s3834_s3 }
 0x8a4   : > { %2175 = vrot.lane.b32.xlu2 %v3415_v17, %s3834_s3 }
 0x8a5   : > { %2179 = vrot.lane.b32.xlu1 %v3401_v60, %s3834_s3 }
 0x8ac   : > { %2002 = vrot.lane.b32.xlu2 %v3428_v33, %s3833_s30 }
 0x8ad   : > { %2006 = vrot.lane.b32.xlu1 %v3415_v17, %s3833_s30 }
 0x8b4   : > { %2169 = vrot.lane.b32.xlu2 %v3437_v36, %s3834_s3 }
 0x8b5   : > { %2173 = vrot.lane.b32.xlu1 %v3423_v24, %s3834_s3 }
 0x8bc   : > { %1998 = vrot.lane.b32.xlu2 %v3454_v45, %s3833_s30  ;;  %v1795_v45 = vpop.permute.xlu0 %1794 }
 0x8bd   : > { %2000 = vrot.lane.b32.xlu1 %v3437_v36, %s3833_s30 }
 0x8c4   : > { %2842 = vrot.lane.b32.xlu2 %v3526_v31, %s3832_s2  ;;  %v2178_v0 = vpop.permute.xlu0 %2177 }
 0x8c5   : > { %2165 = vrot.lane.b32.xlu1 %v3447_v43, %s3834_s3 }
 0x8cc   : > { %2857 = vrot.lane.b32.xlu2 %v3528_v16, %s3833_s30  ;;  %v2005_v20 = vpop.permute.xlu0 %2004 }
 0x8d4   : > { %v2172_v28 = vpop.permute.xlu0 %2171 }
 0x8d7   : > { %v1755_v56 = vpop.xlane.xlu1 %1754 }
 0x8d8   : > { %2951 = vrcp.f32 %v1755_v56 }
 0x8dc   : > { %v1997_v50 = vpop.permute.xlu0 %1996 }
 0x8de   : > { %v2952_v60 = vpop.eup %2951 }
 0x8df   : > { %v1761_v2 = vmul.f32 %v2952_v60, %v2948_v57  ;;  %v1758_v17 = vpop.xlane.xlu2 %1757 }
 0x8e0   : > { %2953 = vrcp.f32 %v1758_v17 }
 0x8e1   : > { %2717 = vmatmul.msk.f32.vlgmr.msra.gmra.mxu1 %vm1740_vm10, %v1761_v2 }
 0x8e4   : > { %v2168_v54 = vpop.permute.xlu0 %2167 }
 0x8e6   : > { %v2954_v24 = vpop.eup %2953 }
 0x8e7   : > { %v1805_v33 = vpop.permute.xlu2 %1804  ;;  %v1762_v36 = vmul.f32 %v2954_v24, %v2950_v3 }
 0x8e9   : > { %2718 = vmatmul.msk.f32.gmra.mxu1 %vm1740_vm10, %v1762_v36 }
 0x8ef   : > { %v1809_v37 = vpop.permute.xlu1 %1808  ;;  %v2184_v38 = vpop.permute.xlu2 %2183 }
 0x8f0   : > { %2720 = vmatpush.xpose.msk.msrb.mxu1 %vm904_vm1, %v1809_v37 }
 0x8f4   : > { %2721 = vmatpush.xpose.msk.msrb.mxu1 %vm904_vm1, %v1807_v15 }
 0x8f7   : > { %v1801_v39 = vpop.permute.xlu1 %1800  ;;  %v2011_v40 = vpop.permute.xlu2 %2010 }
 0x8f8   : > { %2722 = vmatpush.xpose.msk.msrb.mxu1 %vm904_vm1, %v1805_v33  ;;  %2737 = vmatpush.xpose.msk.msra.mxu2 %vm904_vm1, %v2011_v40 }
 0x8fc   : > { %2723 = vmatpush.xpose.msk.msrb.mxu1 %vm904_vm1, %v1803_v19 }
 0x8ff   : > { %v1797_v41 = vpop.permute.xlu1 %1796  ;;  %v2009_v42 = vpop.permute.xlu2 %2008 }
 0x900   : > { %2724 = vmatpush.xpose.msk.msrb.mxu1 %vm904_vm1, %v1801_v39  ;;  %2738 = vmatpush.xpose.msk.msra.mxu2 %vm904_vm1, %v2009_v42 }
 0x904   : > { %2725 = vmatpush.xpose.msk.msrb.mxu1 %vm904_vm1, %v1799_v22 }
 0x907   : > { %v1793_v43 = vpop.permute.xlu1 %1792  ;;  %v2176_v44 = vpop.permute.xlu2 %2175 }
 0x908   : > { %2726 = vmatpush.xpose.msk.msrb.mxu1 %vm904_vm1, %v1797_v41 }
 0x90b   : > { %2727 = vmatmul.msk.f32.vlgmr.msrb.gmra.mxu1 %vm904_vm1, %v1793_v43 }
 0x90c   : > { %1988 = vmatpush.msra.mxu1 %v1680_v10 }
 0x90e   : > { %2749 = vmatpush.xpose.msk.msrb.mxu1 %vm904_vm1, %v2184_v38 }
 0x90f   : > { %v2182_v58 = vpop.permute.xlu1 %2181  ;;  %v2003_v61 = vpop.permute.xlu2 %2002 }
 0x912   : > { %2750 = vmatpush.xpose.msk.msrb.mxu1 %vm904_vm1, %v2182_v58 }
 0x913   : > { %2728 = vmatmul.msk.f32.gmra.mxu1 %vm904_vm1, %v1795_v45 }
 0x917   : > { %v2180_v4 = vpop.permute.xlu1 %2179  ;;  %v2170_v14 = vpop.permute.xlu2 %2169 }
 0x918   : > { %2751 = vmatpush.xpose.msk.msrb.mxu1 %vm904_vm1, %v2180_v4 }
 0x91c   : > { %2752 = vmatpush.xpose.msk.msrb.mxu1 %vm904_vm1, %v2178_v0 }
 0x91f   : > { %v2007_v25 = vpop.permute.xlu1 %2006  ;;  %v1999_v46 = vpop.permute.xlu2 %1998 }
 0x920   : > { %2739 = vmatpush.xpose.msk.msra.mxu2 %vm904_vm1, %v2007_v25  ;;  %2753 = vmatpush.xpose.msk.msrb.mxu1 %vm904_vm1, %v2176_v44 }
 0x924   : > { %2740 = vmatpush.xpose.msk.msra.mxu2 %vm904_vm1, %v2005_v20 }
 0x927   : > { %v2174_v18 = vpop.permute.xlu1 %2173  ;;  %v3581_v47 = vpop.permute.xlu2 %2842 }
 0x928   : > { %2741 = vmatpush.xpose.msk.msra.mxu2 %vm904_vm1, %v2003_v61  ;;  %2754 = vmatpush.xpose.msk.msrb.mxu1 %vm904_vm1, %v2174_v18  ;;  %v2844_v38 = vunpack.i.l.bf16 %v3581_v47 }
 0x92c   : > { %2755 = vmatpush.xpose.msk.msrb.mxu1 %vm904_vm1, %v2172_v28 }
 0x92f   : > { %v2001_v29 = vpop.permute.xlu1 %2000  ;;  %v2858_v48 = vpop.permute.xlu2 %2857 }
 0x930   : > { %v2859_v49 = vunpack.i.l.bf16 %v2858_v48  ;;  %2742 = vmatpush.xpose.msk.msra.mxu2 %vm904_vm1, %v2001_v29  ;;  %2756 = vmatpush.xpose.msk.msrb.mxu1 %vm904_vm1, %v2170_v14  ;;  %v2860_v13 = vunpack.i.h.bf16 %v2858_v48 }
 0x932   : > { %2119 = vmatpush.msrb.mxu3 %v2859_v49 }
 0x933   : > { %2743 = vmatmul.msk.f32.vlgmr.msra.gmra.mxu2 %vm904_vm1, %v1997_v50 }
 0x934   : > { %2120 = vmatpush.msrb.mxu3 %v2860_v13 }
 0x937   : > { %v2166_v53 = vpop.permute.xlu1 %2165 }
 0x93b   : > { %2744 = vmatmul.msk.f32.gmra.mxu2 %vm904_vm1, %v1999_v46 }
 0x95e   : > { %v1786_v51 = vpop.f32.mrf.mxu1 }
 0x95f   : > { %2733 = vmatmul.msk.f32.vlgmr.msra.gmra.mxu1 %vm904_vm1, %v1786_v51 }
 0x966   : > { %v1789_v52 = vpop.f32.mrf.mxu1 }
 0x967   : > { %2734 = vmatmul.msk.f32.gmra.mxu1 %vm904_vm1, %v1789_v52 }
 0x96f   : > { %2757 = vmatmul.msk.f32.vlgmr.msrb.gmra.mxu1 %vm904_vm1, %v2166_v53 }
 0x977   : > { %2758 = vmatmul.msk.f32.gmra.mxu1 %vm904_vm1, %v2168_v54 }
 0x988   : > { %v1849_v27 = vpop.f32.mrf.mxu1 }
 0x989   : > { %v3622_v22 = vadd.f32 %v3473_v5, %v1849_v27 }
 0x98b   : > { %v1855_v26 = vsel %vm1740_vm10, %v3622_v22, -inf }
 0x990   : > { %v1852_v1 = vpop.f32.mrf.mxu1 }
 0x991   : > { %v3625_v23 = vadd.f32 %v3473_v5, %v1852_v1 }
 0x9b6   : > { %v2053_v9 = vpop.f32.mrf.mxu2 }
 0x9b7   : > { %v2054_v55 = vadd.f32 %v3473_v5, %v2053_v9 }
 0x9b9   : > { %v2059_v57 = vsel %vm1740_vm10, %v2054_v55, -inf }
 0x9ba   : > { %2060 = vmax.xlane.f32.xlu1 %v2059_v57 }
 0x9be   : > { %v2056_v59 = vpop.f32.mrf.mxu2 }
 0x9bf   : > { %v3597_v62 = vadd.f32 %v3473_v5, %v2056_v59 }
 0x9c1   : > { %v2062_v63 = vsel %vm1740_vm10, %v3597_v62, -inf }
 0x9c2   : > { %2063 = vmax.xlane.f32.xlu0 %v2062_v63 }
 0x9d3   : > { %2837 = vrot.lane.b32.xlu1 %v3528_v16, %s3832_s2 }
 0x9d6   : > { %2847 = vrot.lane.b32.xlu0 %v3528_v16, %s3834_s3 }
 0x9db   : > { %2852 = vrot.lane.b32.xlu1 %v3532_v32, %s3832_s2 }
 0x9dc   : > { %v3607_v35 = vpop.f32.mrf.mxu1 }
 0x9de   : > { %2867 = vrot.lane.b32.xlu0 %v3534_v6, %s3832_s2 }
 0x9e3   : > { %2862 = vrot.lane.b32.xlu1 %v3526_v31, %s3834_s3 }
 0x9e4   : > { %v3613_v3 = vpop.f32.mrf.mxu1 }
 0x9e6   : > { %2872 = vrot.lane.b32.xlu0 %v3526_v31, %s3833_s30  ;;  %v1858_v31 = vsel %vm1740_vm10, %v3625_v23, -inf }
 0x9ec   : > { %v2222_v7 = vpop.f32.mrf.mxu1 }
 0x9ed   : > { %v2223_v8 = vadd.f32 %v3473_v5, %v2222_v7 }
 0x9ef   : > { %v2228_v11 = vsel %vm1740_vm10, %v2223_v8, -inf }
 0x9f0   : > { %2229 = vmax.xlane.f32.xlu2 %v2228_v11 }
 0x9f4   : > { %v2225_v12 = vpop.f32.mrf.mxu1 }
 0x9f5   : > { %v2226_v15 = vadd.f32 %v3473_v5, %v2225_v12 }
 0x9f7   : > { %v2231_v19 = vsel %vm1740_vm10, %v2226_v15, -inf }
 0x9f8   : > { %2232 = vmax.xlane.f32.xlu2 %v2231_v19 }
 0xa0d   : > { %1856 = vmax.xlane.f32.xlu1 %v1855_v26 }
 0xa10   : > { %2882 = vrot.lane.b32.xlu2 %v3532_v32, %s3833_s30  ;;  %1859 = vmax.xlane.f32.xlu0 %v1858_v31 }
 0xa24   : > { %2877 = vrot.lane.b32.xlu0 %v3532_v32, %s3834_s3  ;;  %v2845_v32 = vunpack.i.h.bf16 %v3581_v47 }
 0xa2d   : > { %v2061_v16 = vpop.xlane.xlu1 %2060 }
 0xa2e   : > { %v2065_v56 = vsub.f32 %v2054_v55, %v2061_v16 }
 0xa30   : > { %v2067_v60 = vmul.f32 1.442695, %v2065_v56 }
 0xa32   : > { %2955 = vpow2.f32 %v2067_v60 }
 0xa35   : > { %v3635_v2 = vpop.xlane.xlu0 %2063 }
 0xa36   : > { %v2066_v19 = vsub.f32 %v3597_v62, %v3635_v2 }
 0xa38   : > { %v3637_v37 = vpop.eup %2955 }
 0xa39   : > { %v2071_v41 = vsel %vm1740_vm10, %v3637_v37, 0.0 }
 0xa45   : > { %v2838_v5 = vpop.permute.xlu1 %2837 }
 0xa46   : > { %v2839_v17 = vunpack.i.l.bf16 %v2838_v5  ;;  %v2840_v24 = vunpack.i.h.bf16 %v2838_v5 }
 0xa48   : > { %1923 = vmatpush.msrb.mxu0 %v2839_v17  ;;  %v2848_v33 = vpop.permute.xlu0 %2847 }
 0xa49   : > { %v2849_v36 = vunpack.i.l.bf16 %v2848_v33  ;;  %v2850_v39 = vunpack.i.h.bf16 %v2848_v33 }
 0xa4a   : > { %1924 = vmatpush.msrb.mxu0 %v2840_v24 }
 0xa4b   : > { %2288 = vmatpush.msrb.mxu2 %v2849_v36 }
 0xa4c   : > { %1925 = vmatpush.msrb.mxu0 %v2844_v38 }
 0xa4d   : > { %v2853_v40 = vpop.permute.xlu1 %2852  ;;  %2289 = vmatpush.msrb.mxu2 %v2850_v39 }
 0xa4e   : > { %v2854_v42 = vunpack.i.l.bf16 %v2853_v40  ;;  %2072 = vadd.xlane.f32.xlu0 %v2071_v41  ;;  %1926 = vmatpush.msrb.mxu0 %v2845_v32  ;;  %v2855_v10 = vunpack.i.h.bf16 %v2853_v40 }
 0xa50   : > { %v2868_v43 = vpop.permute.xlu0 %2867  ;;  %1927 = vmatpush.msrb.mxu0 %v2854_v42 }
 0xa51   : > { %v2869_v44 = vunpack.i.l.bf16 %v2868_v43  ;;  %v2870_v45 = vunpack.i.h.bf16 %v2868_v43 }
 0xa52   : > { %1928 = vmatpush.msrb.mxu0 %v2855_v10 }
 0xa54   : > { %1929 = vmatpush.msrb.mxu0 %v2869_v44 }
 0xa55   : > { %v2863_v58 = vpop.permute.xlu1 %2862 }
 0xa56   : > { %v2864_v61 = vunpack.i.l.bf16 %v2863_v58  ;;  %1930 = vmatpush.msrb.mxu0 %v2870_v45  ;;  %v2865_v0 = vunpack.i.h.bf16 %v2863_v58 }
 0xa58   : > { %v2873_v4 = vpop.permute.xlu0 %2872  ;;  %2290 = vmatpush.msrb.mxu2 %v2864_v61  ;;  %v1681_v61 = vld [vmem:[%s3789_s13 + $0x8] sm:$0xff] }
 0xa59   : > { %v2874_v14 = vunpack.i.l.bf16 %v2873_v4  ;;  %v2875_v20 = vunpack.i.h.bf16 %v2873_v4  ;;  %1959 = vmatpush.msra.mxu0 %v1681_v61  ;;  %v1683_v4 = vld [vmem:[%s3789_s13 + $0x18] sm:$0xff] }
 0xa5a   : > { %2291 = vmatpush.msrb.mxu2 %v2865_v0  ;;  %v1682_v0 = vld [vmem:[%s3789_s13 + $0x10] sm:$0xff] }
 0xa5b   : > { %2121 = vmatpush.msrb.mxu3 %v2874_v14 }
 0xa5d   : > { %2122 = vmatpush.msrb.mxu3 %v2875_v20 }
 0xa63   : > { %v2230_v25 = vpop.xlane.xlu2 %2229 }
 0xa64   : > { %v2234_v46 = vsub.f32 %v2223_v8, %v2230_v25 }
 0xa66   : > { %v2236_v18 = vmul.f32 1.442695, %v2234_v46 }
 0xa68   : > { %2957 = vpow2.f32 %v2236_v18 }
 0xa6b   : > { %v2233_v47 = vpop.xlane.xlu2 %2232 }
 0xa6c   : > { %v2235_v28 = vsub.f32 %v2226_v15, %v2233_v47 }
 0xa6e   : > { %v3643_v29 = vpop.eup %2957  ;;  %v2238_v48 = vmul.f32 1.442695, %v2235_v28 }
 0xa6f   : > { %v2240_v49 = vsel %vm1740_vm10, %v3643_v29, 0.0 }
 0xa70   : > { %2959 = vpow2.f32 %v2238_v48  ;;  %2241 = vadd.xlane.f32.xlu2 %v2240_v49 }
 0xa73   : > { %v2883_v50 = vpop.permute.xlu2 %2882 }
 0xa74   : > { %v2884_v13 = vunpack.i.l.bf16 %v2883_v50  ;;  %v2885_v52 = vunpack.i.h.bf16 %v2883_v50 }
 0xa76   : > { %v3647_v51 = vpop.eup %2959  ;;  %2123 = vmatpush.msrb.mxu3 %v2884_v13  ;;  %v2902_v13 = vld [vmem:[%s3790_s14] ss:$0 sm:$0xff] }
 0xa77   : > { %v2243_v53 = vsel %vm1740_vm10, %v3647_v51, 0.0 }
 0xa78   : > { %2244 = vadd.xlane.f32.xlu2 %v2243_v53  ;;  %2124 = vmatpush.msrb.mxu3 %v2885_v52 }
 0xa80   : > { %v1857_v54 = vpop.xlane.xlu1 %1856 }
 0xa81   : > { %v1861_v9 = vsub.f32 %v3622_v22, %v1857_v54  ;;  %v2069_v22 = vmul.f32 1.442695, %v2066_v19 }
 0xa83   : > { %v1863_v55 = vmul.f32 1.442695, %v1861_v9  ;;  %v1860_v57 = vpop.xlane.xlu0 %1859 }
 0xa84   : > { %v1862_v59 = vsub.f32 %v3625_v23, %v1860_v57 }
 0xa85   : > { %2961 = vpow2.f32 %v1863_v55 }
 0xa86   : > { %v1865_v63 = vmul.f32 1.442695, %v1862_v59 }
 0xa88   : > { %2963 = vpow2.f32 %v1865_v63 }
 0xa89   : > { %2965 = vpow2.f32 %v2069_v22 }
 0xa8b   : > { %v2962_v27 = vpop.eup %2961 }
 0xa8c   : > { %v1867_v1 = vsel %vm1740_vm10, %v2962_v27, 0.0 }
 0xa8d   : > { %1868 = vadd.xlane.f32.xlu0 %v1867_v1 }
 0xa8e   : > { %v2964_v7 = vpop.eup %2963 }
 0xa8f   : > { %v1870_v8 = vsel %vm1740_vm10, %v2964_v7, 0.0  ;;  %v2966_v23 = vpop.eup %2965 }
 0xa90   : > { %1871 = vadd.xlane.f32.xlu1 %v1870_v8  ;;  %v2074_v26 = vsel %vm1740_vm10, %v2966_v23, 0.0 }
 0xa96   : > { %v2878_v11 = vpop.permute.xlu0 %2877 }
 0xa97   : > { %v2879_v12 = vunpack.i.l.bf16 %v2878_v11  ;;  %v2880_v15 = vunpack.i.h.bf16 %v2878_v11 }
 0xa99   : > { %2292 = vmatpush.msrb.mxu2 %v2879_v12 }
 0xa9b   : > { %2293 = vmatpush.msrb.mxu2 %v2880_v15 }
 0xaa1   : > { %2892 = vrot.lane.b32.xlu0 %v3534_v6, %s3833_s30 }
 0xaa9   : > { %2887 = vrot.lane.b32.xlu1 %v3534_v6, %s3834_s3 }
 0xac1   : > { %v2073_v31 = vpop.xlane.xlu0 %2072 }
 0xad3   : > { %2075 = vadd.xlane.f32.xlu1 %v2074_v26 }
 0xae3   : > { %v2242_v24 = vpop.xlane.xlu2 %2241 }
 0xaeb   : > { %v2245_v39 = vpop.xlane.xlu2 %2244 }
 0xb00   : > { %v1869_v16 = vpop.xlane.xlu0 %1868 }
 0xb01   : > { %2967 = vrcp.f32 %v1869_v16  ;;  %v2399_v16 = vld [vmem:[%s3793_s17 + $0x8] sm:$0xff] }
 0xb03   : > { %v1872_v56 = vpop.xlane.xlu1 %1871 }
 0xb04   : > { %2969 = vrcp.f32 %v1872_v56  ;;  %v2398_v56 = vld [vmem:[%s3793_s17] sm:$0xff] }
 0xb05   : > { %2971 = vrcp.f32 %v2073_v31  ;;  %v2400_v31 = vld [vmem:[%s3793_s17 + $0x10] sm:$0xff] }
 0xb06   : > { %2973 = vrcp.f32 %v2242_v24 }
 0xb07   : > { %v2968_v60 = vpop.eup %2967  ;;  %2975 = vrcp.f32 %v2245_v39 }
 0xb08   : > { %v1875_v5 = vmul.f32 %v2968_v60, %v2962_v27 }
 0xb0a   : > { %2729 = vmatmul.msk.f32.vlgmr.msrb.gmra.mxu0 %vm1740_vm10, %v1875_v5  ;;  %v2970_v17 = vpop.eup %2969 }
 0xb0b   : > { %v1876_v6 = vmul.f32 %v2970_v17, %v2964_v7  ;;  %v2972_v2 = vpop.eup %2971  ;;  %2155 = vmatpush.msrb.mxu0 %v1682_v0  ;;  %v2440_v0 = vld [vmem:[%s3795_s19 + $0x18] sm:$0xff] }
 0xb0c   : > { %v2079_v38 = vmul.f32 %v2972_v2, %v3637_v37  ;;  %v2974_v40 = vpop.eup %2973 }
 0xb0d   : > { %v2248_v10 = vmul.f32 %v2974_v40, %v3643_v29  ;;  %v2976_v43 = vpop.eup %2975  ;;  %v2904_v40 = vld [vmem:[%s3792_s16] ss:$0 sm:$0xff] }
 0xb0e   : > { %v2249_v44 = vmul.f32 %v2976_v43, %v3647_v51  ;;  %v2443_v43 = vld [vmem:[%s3795_s19 + $0x30] sm:$0xff] }
 0xb12   : > { %2730 = vmatmul.msk.f32.gmra.mxu0 %vm1740_vm10, %v1876_v6 }
 0xb13   : > { %v2893_v62 = vpop.permute.xlu0 %2892 }
 0xb14   : > { %v2894_v33 = vunpack.i.l.bf16 %v2893_v62  ;;  %v2895_v36 = vunpack.i.h.bf16 %v2893_v62 }
 0xb16   : > { %2125 = vmatpush.msrb.mxu3 %v2894_v33 }
 0xb18   : > { %2126 = vmatpush.msrb.mxu3 %v2895_v36 }
 0xb19   : > { %2745 = vmatmul.msk.f32.vlgmr.msrb.gmra.mxu3 %vm1740_vm10, %v2079_v38  ;;  %v2903_v38 = vld [vmem:[%s3791_s15] ss:$0 sm:$0xff] }
 0xb1a   : > { %2324 = vmatpush.msra.mxu3 %v1683_v4 }
 0xb1b   : > { %v2888_v32 = vpop.permute.xlu1 %2887 }
 0xb1c   : > { %v2889_v41 = vunpack.i.l.bf16 %v2888_v32  ;;  %v2890_v42 = vunpack.i.h.bf16 %v2888_v32 }
 0xb1e   : > { %2294 = vmatpush.msrb.mxu2 %v2889_v41 }
 0xb20   : > { %2295 = vmatpush.msrb.mxu2 %v2890_v42 }
 0xb21   : > { %2759 = vmatmul.msk.f32.vlgmr.msrb.gmra.mxu2 %vm1740_vm10, %v2248_v10  ;;  %v2444_v10 = vld [vmem:[%s3795_s19 + $0x38] sm:$0xff] }
 0xb22   : > { %2463 = vmatpush.msra.mxu2 %v2444_v10 }
 0xb24   : > { %2464 = vmatpush.msra.mxu2 %v2443_v43 }
 0xb29   : > { %2760 = vmatmul.msk.f32.gmra.mxu2 %vm1740_vm10, %v2249_v44  ;;  %v2442_v44 = vld [vmem:[%s3795_s19 + $0x28] sm:$0xff] }
 0xb2a   : > { %2465 = vmatpush.msra.mxu2 %v2442_v44 }
 0xb46   : > { %v2076_v37 = vpop.xlane.xlu1 %2075 }
 0xb47   : > { %2977 = vrcp.f32 %v2076_v37 }
 0xb4d   : > { %v2978_v45 = vpop.eup %2977 }
 0xb4e   : > { %v2080_v58 = vmul.f32 %v2978_v45, %v2966_v23 }
 0xb50   : > { %2746 = vmatmul.msk.f32.gmra.mxu3 %vm1740_vm10, %v2080_v58  ;;  %v2441_v58 = vld [vmem:[%s3795_s19 + $0x20] sm:$0xff] }
 0xb51   : > { %2466 = vmatpush.msra.mxu2 %v2441_v58 }
 0xb53   : > { %2467 = vmatpush.msra.mxu2 %v2440_v0 }
 0xb87   : > { %v1932_v14 = vpop.f32.mrf.mxu0 }
 0xb88   : > { %2731 = vmatmul.msk.f32.vlgmr.msra.gmra.mxu0 %vm904_vm1, %v1932_v14 }
 0xb8f   : > { %v1935_v20 = vpop.f32.mrf.mxu0 }
 0xb90   : > { %2732 = vmatmul.msk.f32.gmra.mxu0 %vm904_vm1, %v1935_v20 }
 0xb9c   : > { %v2128_v25 = vpop.f32.mrf.mxu3 }
 0xb9d   : > { %2747 = vmatmul.msk.f32.vlgmr.msrb.gmra.mxu0 %vm904_vm1, %v2128_v25 }
 0xba4   : > { %v2297_v46 = vpop.f32.mrf.mxu2 }
 0xba5   : > { %2761 = vmatmul.msk.f32.vlgmr.msra.gmra.mxu3 %vm904_vm1, %v2297_v46 }
 0xbac   : > { %v2300_v18 = vpop.f32.mrf.mxu2 }
 0xbad   : > { %2762 = vmatmul.msk.f32.gmra.mxu3 %vm904_vm1, %v2300_v18 }
 0xbd3   : > { %v2131_v47 = vpop.f32.mrf.mxu3 }
 0xbd4   : > { %2748 = vmatmul.msk.f32.gmra.mxu0 %vm904_vm1, %v2131_v47 }
 0xc05   : > { %v1961_v28 = vpop.f32.mrf.mxu0 }
 0xc06   : > { %v1991_v49 = vadd.f32 %v3607_v35, %v1961_v28 }
 0xc0d   : > { %v1964_v29 = vpop.f32.mrf.mxu0 }
 0xc0e   : > { %v1994_v55 = vadd.f32 %v3613_v3, %v1964_v29 }
 0xc1a   : > { %v2157_v48 = vpop.f32.mrf.mxu0 }
 0xc1b   : > { %v2163_v50 = vadd.f32 %v2157_v48, %v1991_v49  ;;  %v2439_v49 = vld [vmem:[%s3795_s19 + $0x10] sm:$0xff] }
 0xc1c   : > { %2468 = vmatpush.msra.mxu2 %v2439_v49 }
 0xc28   : > { %v2326_v51 = vpop.f32.mrf.mxu3 }
 0xc29   : > { %v2332_v52 = vadd.f32 %v2326_v51, %v2163_v50  ;;  %v2438_v50 = vld [vmem:[%s3795_s19 + $0x8] sm:$0xff]  ;;  %v2905_v51 = vld [vmem:[%s3794_s18] ss:$0 sm:$0xff] }
 0xc2a   : > { %2469 = vmatpush.msra.mxu2 %v2438_v50 }
 0xc2b   : > { %v2338_v53 = vadd.f32 %v2902_v13, %v2332_v52 }
 0xc2d   : > { %v2340_v54 = vadd.f32 %v2338_v53, %v3417_v21 }
 0xc2f   : > { %v2344_v9 = vsel %vm816_vm0, %v2340_v54, 0.0 }
 0xc30   : > { %2345 = vadd.xlane.f32.xlu0 %v2344_v9  ;;  %v2329_v63 = vpop.f32.mrf.mxu3 }
 0xc51   : > { %v2160_v57 = vpop.f32.mrf.mxu0 }
 0xc52   : > { %v2164_v59 = vadd.f32 %v2160_v57, %v1994_v55 }
 0xc54   : > { %v2333_v27 = vadd.f32 %v2329_v63, %v2164_v59  ;;  %v2906_v59 = vld [vmem:[%s3796_s20] ss:$0 sm:$0xff] }
 0xc56   : > { %v2339_v35 = vadd.f32 %v2902_v13, %v2333_v27  ;;  %v2437_v13 = vld [vmem:[%s3795_s19] sm:$0xff] }
 0xc57   : > { %2470 = vmatpush.msra.mxu2 %v2437_v13 }
 0xc58   : > { %v2341_v1 = vadd.f32 %v2339_v35, %v3430_v34  ;;  %v2401_v34 = vld [vmem:[%s3793_s17 + $0x18] sm:$0xff] }
 0xc59   : > { %2424 = vmatpush.msra.mxu0 %v2401_v34 }
 0xc5a   : > { %v2347_v7 = vsel %vm816_vm0, %v2341_v1, 0.0 }
 0xc5b   : > { %2348 = vadd.xlane.f32.xlu2 %v2347_v7  ;;  %2425 = vmatpush.msra.mxu0 %v2400_v31 }
 0xc5d   : > { %2426 = vmatpush.msra.mxu0 %v2399_v16 }
 0xc5f   : > { %2427 = vmatpush.msra.mxu0 %v2398_v56 }
 0xca3   : > { %v2346_v8 = vpop.xlane.xlu0 %2345 }
 0xca4   : > { %v2350_v11 = vmul.f32 %v2346_v8, %v3376_v30 }
 0xca6   : > { %v2352_v12 = vsub.f32 %v2340_v54, %v2350_v11 }
 0xca8   : > { %v2354_v21 = vmul.f32 %v2352_v12, %v2352_v12 }
 0xcaa   : > { %v2356_v15 = vsel %vm816_vm0, %v2354_v21, 0.0 }
 0xcab   : > { %2357 = vadd.xlane.f32.xlu2 %v2356_v15 }
 0xcce   : > { %v2349_v19 = vpop.xlane.xlu2 %2348 }
 0xccf   : > { %v2351_v3 = vmul.f32 %v2349_v19, %v3376_v30 }
 0xcd1   : > { %v2353_v22 = vsub.f32 %v2341_v1, %v2351_v3 }
 0xcd3   : > { %v2355_v23 = vmul.f32 %v2353_v22, %v2353_v22 }
 0xcd5   : > { %v2359_v26 = vsel %vm816_vm0, %v2355_v23, 0.0 }
 0xcd6   : > { %2360 = vadd.xlane.f32.xlu1 %v2359_v26 }
 0xd1e   : > { %v2358_v60 = vpop.xlane.xlu2 %2357 }
 0xd1f   : > { %v2362_v5 = vmul.f32 %v2358_v60, %v3376_v30 }
 0xd21   : > { %v2364_v17 = vadd.f32 1e-05, %v2362_v5 }
 0xd23   : > { %2979 = vrsqrt.f32 %v2364_v17  ;;  %vm2372_vm12 = vweird.f32 %v2364_v17 }
 0xd29   : > { %v2980_v6 = vpop.eup %2979 }
 0xd2a   : > { %v2367_v24 = vmul.f32 %v2980_v6, %v2364_v17  ;;  %vm2373_vm11 = vweird.f32 %v2980_v6 }
 0xd2b   : > { %vm2374_vm13 = vmor %vm2372_vm12, %vm2373_vm11 }
 0xd2c   : > { %v2368_v62 = vmul.f32 %v2980_v6, %v2367_v24 }
 0xd2e   : > { %v2369_v2 = vmul.f32 0.5, %v2368_v62 }
 0xd30   : > { %v2370_v33 = vsub.f32 1.5, %v2369_v2 }
 0xd32   : > { %v2371_v36 = vmul.f32 %v2980_v6, %v2370_v33 }
 0xd34   : > { %v2375_v39 = vsel %vm2374_vm13, %v2980_v6, %v2371_v36  ;;  %v2907_v36 = vld [vmem:[%s3797_s21] ss:$0 sm:$0xff] }
 0xd35   : > { %v2386_v32 = vmul.f32 %v2375_v39, %v2352_v12  ;;  %v2908_v39 = vld [vmem:[%s3798_s22] ss:$0 sm:$0xff] }
 0xd37   : > { %v2391_v41 = vmul.f32 %v2903_v38, %v2386_v32 }
 0xd39   : > { %v2396_v42 = vadd.f32 %v2904_v40, %v2391_v41 }
 0xd3b   : > { %2763 = vmatmul.msk.f32.vlgmr.msra.gmra.mxu0 %vm816_vm0, %v2396_v42 }
 0xd49   : > { %v2361_v37 = vpop.xlane.xlu1 %2360 }
 0xd4a   : > { %v2363_v45 = vmul.f32 %v2361_v37, %v3376_v30 }
 0xd4c   : > { %v2365_v61 = vadd.f32 1e-05, %v2363_v45 }
 0xd4e   : > { %2981 = vrsqrt.f32 %v2365_v61  ;;  %vm2382_vm15 = vweird.f32 %v2365_v61 }
 0xd54   : > { %v2982_v4 = vpop.eup %2981 }
 0xd55   : > { %v2377_v14 = vmul.f32 %v2982_v4, %v2365_v61  ;;  %vm2383_vm14 = vweird.f32 %v2982_v4 }
 0xd56   : > { %vm2384_vm1 = vmor %vm2382_vm15, %vm2383_vm14 }
 0xd57   : > { %v2378_v20 = vmul.f32 %v2982_v4, %v2377_v14 }
 0xd59   : > { %v2379_v25 = vmul.f32 0.5, %v2378_v20 }
 0xd5b   : > { %v2380_v46 = vsub.f32 1.5, %v2379_v25 }
 0xd5d   : > { %v2381_v18 = vmul.f32 %v2982_v4, %v2380_v46 }
 0xd5f   : > { %v2385_v47 = vsel %vm2384_vm1, %v2982_v4, %v2381_v18 }
 0xd60   : > { %v2387_v28 = vmul.f32 %v2385_v47, %v2353_v22 }
 0xd62   : > { %v2392_v29 = vmul.f32 %v2903_v38, %v2387_v28 }
 0xd64   : > { %v2397_v48 = vadd.f32 %v2904_v40, %v2392_v29 }
 0xd66   : > { %2764 = vmatmul.msk.f32.gmra.mxu0 %vm816_vm0, %v2397_v48 }
 0xdb8   : > { %v2429_v52 = vpop.f32.mrf.mxu0 }
 0xdb9   : > { %v2430_v53 = vadd.f32 %v2905_v51, %v2429_v52 }
 0xdbb   : > { %v2435_v54 = vmax.f32 %v2430_v53, 0.0 }
 0xdbd   : > { %2765 = vmatmul.msk.f32.vlgmr.msra.gmra.mxu2 %vm1740_vm10, %v2435_v54 }
 0xde3   : > { %v2432_v9 = vpop.f32.mrf.mxu0 }
 0xde4   : > { %v2433_v55 = vadd.f32 %v2905_v51, %v2432_v9 }
 0xde6   : > { %v2436_v57 = vmax.f32 %v2433_v55, 0.0 }
 0xde8   : > { %2766 = vmatmul.msk.f32.gmra.mxu2 %vm1740_vm10, %v2436_v57 }
 0xe40   : > { %v2472_v63 = vpop.f32.mrf.mxu2 }
 0xe41   : > { %v2473_v27 = vadd.f32 %v2906_v59, %v2472_v63 }
 0xe43   : > { %v2478_v35 = vadd.f32 %v2473_v27, %v2396_v42 }
 0xe45   : > { %v2482_v1 = vsel %vm816_vm0, %v2478_v35, 0.0 }
 0xe46   : > { %2483 = vadd.xlane.f32.xlu2 %v2482_v1 }
 0xe6b   : > { %v2475_v7 = vpop.f32.mrf.mxu2 }
 0xe6c   : > { %v2476_v8 = vadd.f32 %v2906_v59, %v2475_v7 }
 0xe6e   : > { %v2479_v11 = vadd.f32 %v2476_v8, %v2397_v48 }
 0xe70   : > { %v2485_v12 = vsel %vm816_vm0, %v2479_v11, 0.0 }
 0xe71   : > { %2486 = vadd.xlane.f32.xlu1 %v2485_v12 }
 0xeb9   : > { %v2484_v21 = vpop.xlane.xlu2 %2483 }
 0xeba   : > { %v2488_v15 = vmul.f32 %v2484_v21, %v3376_v30 }
 0xebc   : > { %v2490_v19 = vsub.f32 %v2478_v35, %v2488_v15 }
 0xebe   : > { %v2492_v3 = vmul.f32 %v2490_v19, %v2490_v19 }
 0xec0   : > { %v2494_v22 = vsel %vm816_vm0, %v2492_v3, 0.0 }
 0xec1   : > { %2495 = vadd.xlane.f32.xlu0 %v2494_v22 }
 0xee4   : > { %v2487_v23 = vpop.xlane.xlu1 %2486 }
 0xee5   : > { %v2489_v26 = vmul.f32 %v2487_v23, %v3376_v30 }
 0xee7   : > { %v2491_v34 = vsub.f32 %v2479_v11, %v2489_v26 }
 0xee9   : > { %v2493_v31 = vmul.f32 %v2491_v34, %v2491_v34 }
 0xeeb   : > { %v2497_v16 = vsel %vm816_vm0, %v2493_v31, 0.0 }
 0xeec   : > { %2498 = vadd.xlane.f32.xlu2 %v2497_v16 }
 0xf34   : > { %v2496_v56 = vpop.xlane.xlu0 %2495 }
 0xf35   : > { %v2500_v60 = vmul.f32 %v2496_v56, %v3376_v30 }
 0xf37   : > { %v2502_v5 = vadd.f32 1e-05, %v2500_v60 }
 0xf39   : > { %2983 = vrsqrt.f32 %v2502_v5  ;;  %vm2510_vm3 = vweird.f32 %v2502_v5 }
 0xf3f   : > { %v2984_v17 = vpop.eup %2983 }
 0xf40   : > { %v2505_v6 = vmul.f32 %v2984_v17, %v2502_v5  ;;  %vm2511_vm2 = vweird.f32 %v2984_v17 }
 0xf41   : > { %vm2512_vm4 = vmor %vm2510_vm3, %vm2511_vm2 }
 0xf42   : > { %v2506_v24 = vmul.f32 %v2984_v17, %v2505_v6 }
 0xf44   : > { %v2507_v62 = vmul.f32 0.5, %v2506_v24 }
 0xf46   : > { %v2508_v2 = vsub.f32 1.5, %v2507_v62 }
 0xf48   : > { %v2509_v33 = vmul.f32 %v2984_v17, %v2508_v2 }
 0xf4a   : > { %v2513_v38 = vsel %vm2512_vm4, %v2984_v17, %v2509_v33 }
 0xf4b   : > { %v2524_v32 = vmul.f32 %v2513_v38, %v2490_v19 }
 0xf4d   : > { %v2529_v40 = vmul.f32 %v2907_v36, %v2524_v32 }
 0xf4f   : > { %v2534_v41 = vadd.f32 %v2908_v39, %v2529_v40 }
 0xf51   : > { %2536 = vst.msk [vmem:[%s784_s6] sm:$0xff] %vm816_vm0, %v2534_v41 }
 0xf5f   : > { %v2499_v42 = vpop.xlane.xlu2 %2498 }
 0xf60   : > { %v2501_v10 = vmul.f32 %v2499_v42, %v3376_v30 }
 0xf62   : > { %v2503_v43 = vadd.f32 1e-05, %v2501_v10 }
 0xf64   : > { %2985 = vrsqrt.f32 %v2503_v43  ;;  %vm2520_vm6 = vweird.f32 %v2503_v43 }
 0xf6a   : > { %v2986_v44 = vpop.eup %2985 }
 0xf6b   : > { %v2515_v37 = vmul.f32 %v2986_v44, %v2503_v43  ;;  %vm2521_vm5 = vweird.f32 %v2986_v44 }
 0xf6c   : > { %vm2522_vm7 = vmor %vm2520_vm6, %vm2521_vm5 }
 0xf6d   : > { %v2516_v45 = vmul.f32 %v2986_v44, %v2515_v37 }
 0xf6f   : > { %v2517_v58 = vmul.f32 0.5, %v2516_v45 }
 0xf71   : > { %v2518_v61 = vsub.f32 1.5, %v2517_v58 }
 0xf73   : > { %v2519_v0 = vmul.f32 %v2986_v44, %v2518_v61 }
 0xf75   : > { %v2523_v4 = vsel %vm2522_vm7, %v2986_v44, %v2519_v0 }
 0xf76   : > { %v2525_v14 = vmul.f32 %v2523_v4, %v2491_v34 }
 0xf78   : > { %v2530_v20 = vmul.f32 %v2907_v36, %v2525_v14 }
 0xf7a   : > { %v2535_v25 = vadd.f32 %v2908_v39, %v2530_v20 }
 0xf7c   : > { %2537 = vst.msk [vmem:[%s784_s6 + $0x8] sm:$0xff] %vm816_vm0, %v2535_v25 }
 0xf7d PF: > { %s33_s4 = sadd.s32 1, %s2993_s4  }
 0xf7e   : > { %p30_p4 = scmp.ge.s32.totalorder %s33_s4, 4  }
 0xf80   :  { %32 = sbr.rel (!%p30_p4) target bundleno = 9 (0x9), region = 154 }

</bundles_post_ra>
